<compile_context>
chip_gen: v5e
topology: v5e:2x2
jax: 0.10.0
libtpu: 0.0.40
codegen_flags: <defaults>
</compile_context>

<pallas_src>
import math

import jax
import jax.numpy as jnp
from jax import lax
from jax.experimental import pallas as pl
from jax.experimental.pallas import tpu as pltpu

# ----------------------- model configuration (small) -----------------------
B = 2
IMAGE_SIZE = 16
IMAGE_PATCH = 8
FRAMES = 4
FRAME_PATCH = 2
CHANNELS = 3
DIM = 32
DEPTH = 2
HEADS = 2
DIM_HEAD = 16
INNER = HEADS * DIM_HEAD            # 32
MLP_DIM = 64
NUM_CLASSES = 5
CURRENT_PATCHES = 6
CURRENT_PATCH_DIM = 24
SCALE = DIM_HEAD ** (-0.5)
EPS = 1e-5
NEG = -1e30

NUM_PATCHES = (IMAGE_SIZE // IMAGE_PATCH) ** 2 * (FRAMES // FRAME_PATCH)   # 8
PATCH_DIM = CHANNELS * IMAGE_PATCH * IMAGE_PATCH * FRAME_PATCH             # 384
N1 = NUM_PATCHES + 1                # 9  (video stream, with cls token)
N2 = CURRENT_PATCHES + 1            # 7  (current stream, with cls token)
PAD1 = 16                           # sublane-padded sequence length, stream 1
PAD2 = 8                            # sublane-padded sequence length, stream 2

NUM_STREAMS = 2
LS = DEPTH * NUM_STREAMS            # 4  (layer, stream) blocks
NUM_ATTN = 2 * LS                   # 8  self-attn blocks then cross-attn blocks

# Row offsets inside the packed (46, DIM) vector slab.
PE1_VEC = 0                         # pe1: lin_b, ln2_g, ln2_b
PE2_VEC = 3                         # pe2: lin_b, ln2_g, ln2_b
ATTN_VEC = 6                        # per attn block j: ln_g, ln_b, out_b
FF_VEC = ATTN_VEC + 3 * NUM_ATTN    # 30: per ff block i: ln_g, ln_b, b2
HD_VEC = FF_VEC + 3 * LS            # 42: per stream: ln_g, ln_b
VEC_ROWS = HD_VEC + 2 * NUM_STREAMS  # 46


def _sa_idx(l, s):
    return l * NUM_STREAMS + s


def _ca_idx(l, s):
    return LS + l * NUM_STREAMS + s


# ------------------------------ fused kernel ---------------------------------
def _vit_kernel(p1_ref, p2_ref, base1_ref, base2_ref,
                pe1_ln_ref, pe1_w_ref, pe2_ln_ref, pe2_w_ref,
                vec_ref, wqkv_ref, wo_ref, ffw1_ref, ffw2_ref, ffb1_ref,
                hdw_ref, hdb_ref, out_ref):

    def vec(r):                      # (1, DIM) row of the packed vector slab
        return vec_ref[pl.ds(r, 1), :]

    def _mm(a, b):
        return jnp.dot(a, b, preferred_element_type=jnp.float32)

    def _ln(x, g, b):                # PyTorch LayerNorm: biased var, eps=1e-5, affine
        mu = jnp.mean(x, axis=-1, keepdims=True)
        var = jnp.mean((x - mu) ** 2, axis=-1, keepdims=True)
        return (x - mu) * lax.rsqrt(var + EPS) * g + b

    def _softmax(x):
        m = jnp.max(x, axis=-1, keepdims=True)
        e = jnp.exp(x - m)
        return e * pl.reciprocal(jnp.sum(e, axis=-1, keepdims=True), approx=True)

    def _gelu(x):                    # nn.GELU() default = exact erf formulation
        return 0.5 * x * (1.0 + lax.erf(x * (1.0 / math.sqrt(2.0))))

    # ---------- patch embeddings (both batch items in one padded slab) ----------
    def embed(x, ln_ref, w_ref, voff):
        g = ln_ref[pl.ds(0, 1), :]
        b = ln_ref[pl.ds(1, 1), :]
        h = _ln(x, g, b)
        h = _mm(h, w_ref[...]) + vec(voff)
        return _ln(h, vec(voff + 1), vec(voff + 2))

    # row masks: 1.0 on the rows that hold real patches (rows 1..num_patches of each block)
    r1 = lax.broadcasted_iota(jnp.int32, (B * PAD1, 1), 0) & (PAD1 - 1)
    pmask1 = jnp.where((r1 >= 1) & (r1 <= NUM_PATCHES), 1.0, 0.0)
    r2 = lax.broadcasted_iota(jnp.int32, (B * PAD2, 1), 0) & (PAD2 - 1)
    pmask2 = jnp.where((r2 >= 1) & (r2 <= CURRENT_PATCHES), 1.0, 0.0)

    # base = (cls + pos[0]) row, pos[1:] rows, zero padding — dropout p=0 is identity.
    x1 = base1_ref[...] + pmask1 * embed(p1_ref[...], pe1_ln_ref, pe1_w_ref, PE1_VEC)   # (32, 32)
    x2 = base2_ref[...] + pmask2 * embed(p2_ref[...], pe2_ln_ref, pe2_w_ref, PE2_VEC)   # (16, 32)

    # key masks: -inf on padded key columns so softmax is exact on the padded layout
    kmask1 = jnp.where(lax.broadcasted_iota(jnp.int32, (1, PAD1), 1) < N1, 0.0, NEG)
    kmask2 = jnp.where(lax.broadcasted_iota(jnp.int32, (1, PAD2), 1) < N2, 0.0, NEG)

    # --------------------------- attention blocks -------------------------------
    def qkv_project(x, j):
        voff = ATTN_VEC + 3 * j
        h = _ln(x, vec(voff), vec(voff + 1))
        qkv = _mm(h, wqkv_ref[j])                        # one (rows, 96) push per block
        return qkv[:, :INNER], qkv[:, INNER:2 * INNER], qkv[:, 2 * INNER:]

    def mha(q, k, v, j_out, pad_q, pad_kv, kmask):
        # q: (B*pad_q, INNER); k, v: (B*pad_kv, INNER)
        outs = []
        for b in range(B):
            qb = q[b * pad_q:(b + 1) * pad_q]
            kb = k[b * pad_kv:(b + 1) * pad_kv]
            vb = v[b * pad_kv:(b + 1) * pad_kv]
            heads = []
            for h in range(HEADS):
                sl = slice(h * DIM_HEAD, (h + 1) * DIM_HEAD)
                s = lax.dot_general(qb[:, sl], kb[:, sl], (((1,), (1,)), ((), ())),
                                    preferred_element_type=jnp.float32) * SCALE + kmask
                heads.append(_mm(_softmax(s), vb[:, sl]))
            outs.append(jnp.concatenate(heads, axis=-1))  # lane concat: 'b h n d -> b n (h d)'
        attn = jnp.concatenate(outs, axis=0)              # re-stack batch along sublanes
        return _mm(attn, wo_ref[j_out]) + vec(ATTN_VEC + 3 * j_out + 2)

    def ffn(x, i):
        voff = FF_VEC + 3 * i
        h = _ln(x, vec(voff), vec(voff + 1))
        h = _gelu(_mm(h, ffw1_ref[i]) + ffb1_ref[pl.ds(i, 1), :])
        return _mm(h, ffw2_ref[i]) + vec(voff + 2)

    # --------------------------- transformer layers -----------------------------
    # DEPTH=2 and the batched body is small, so a full static unroll does not spill.
    for l in range(DEPTH):
        js1, js2 = _sa_idx(l, 0), _sa_idx(l, 1)
        q1, k1, v1 = qkv_project(x1, js1)
        x1 = x1 + mha(q1, k1, v1, js1, PAD1, PAD1, kmask1)
        q2, k2, v2 = qkv_project(x2, js2)
        x2 = x2 + mha(q2, k2, v2, js2, PAD2, PAD2, kmask2)

        jc1, jc2 = _ca_idx(l, 0), _ca_idx(l, 1)
        q1, k1, v1 = qkv_project(x1, jc1)
        q2, k2, v2 = qkv_project(x2, jc2)
        r1 = mha(q1, k2, v2, jc1, PAD1, PAD2, kmask2)   # stream-1 queries attend stream-2 k/v
        r2 = mha(q2, k1, v1, jc2, PAD2, PAD1, kmask1)   # and vice-versa (CrossAttention.SA)
        x1 = x1 + r1
        x2 = x2 + r2

        x1 = x1 + ffn(x1, l * NUM_STREAMS + 0)
        x2 = x2 + ffn(x2, l * NUM_STREAMS + 1)

    # ---------------------- classification head (pool='cls') --------------------
    c1 = jnp.concatenate([x1[0:1, :], x1[PAD1:PAD1 + 1, :]], axis=0)   # (B, DIM) cls tokens
    c2 = jnp.concatenate([x2[0:1, :], x2[PAD2:PAD2 + 1, :]], axis=0)
    y = (_mm(_ln(c1, vec(HD_VEC + 0), vec(HD_VEC + 1)), hdw_ref[0])
         + _mm(_ln(c2, vec(HD_VEC + 2), vec(HD_VEC + 3)), hdw_ref[1])
         + hdb_ref[...])
    out_ref[...] = y                                                   # single (B, 5) store


# ------------------------------- JAX glue -----------------------------------
def video_to_patches(video):
    # einops: 'b c (f pf) (h p1) (w p2) -> b (f h w) (p1 p2 pf c)'
    b, c, F, H, W = video.shape
    f, pf = F // FRAME_PATCH, FRAME_PATCH
    h, p1 = H // IMAGE_PATCH, IMAGE_PATCH
    w, p2 = W // IMAGE_PATCH, IMAGE_PATCH
    x = video.reshape(b, c, f, pf, h, p1, w, p2)
    x = x.transpose(0, 2, 4, 6, 5, 7, 3, 1)      # b f h w p1 p2 pf c
    return x.reshape(b, f * h * w, p1 * p2 * pf * c)


def vit_forward(packed, video, current):
    patches = video_to_patches(video)                                        # (B, 8, 384)
    # pre-padded per-batch blocks: [pad-row-for-cls | patch rows | zero rows]
    p1 = jnp.pad(patches, ((0, 0), (1, PAD1 - 1 - NUM_PATCHES), (0, 0)))
    p1 = p1.reshape(B * PAD1, PATCH_DIM)
    p2 = jnp.pad(current, ((0, 0), (1, PAD2 - 1 - CURRENT_PATCHES), (0, 0)))
    p2 = p2.reshape(B * PAD2, CURRENT_PATCH_DIM)
    return pl.pallas_call(
        _vit_kernel,
        out_shape=jax.ShapeDtypeStruct((B, NUM_CLASSES), jnp.float32),
        compiler_params=pltpu.CompilerParams(vmem_limit_bytes=4 * 1024 * 1024),
    )(p1, p2, *packed)


# ---------------------------- parameters -------------------------------------
def init_params(key):
    it = iter(jax.random.split(key, 24))

    def rand(shape, scale=0.02):
        return jax.random.normal(next(it), shape, jnp.float32) * scale

    ones, zeros = (lambda s: jnp.ones(s, jnp.float32)), (lambda s: jnp.zeros(s, jnp.float32))

    return dict(
        # patch embedding 1 (video): LN(384) -> Linear(384, 32) -> LN(32)
        pe1_ln1_g=ones((PATCH_DIM,)), pe1_ln1_b=zeros((PATCH_DIM,)),
        pe1_w=rand((PATCH_DIM, DIM)), pe1_b=rand((DIM,)),
        pe1_ln2_g=ones((DIM,)), pe1_ln2_b=zeros((DIM,)),
        # patch embedding 2 (current): LN(24) -> Linear(24, 32) -> LN(32)
        pe2_ln1_g=ones((CURRENT_PATCH_DIM,)), pe2_ln1_b=zeros((CURRENT_PATCH_DIM,)),
        pe2_w=rand((CURRENT_PATCH_DIM, DIM)), pe2_b=rand((DIM,)),
        pe2_ln2_g=ones((DIM,)), pe2_ln2_b=zeros((DIM,)),
        # cls tokens / positional embeddings
        cls1=rand((1, DIM), 1.0), pos1=rand((N1, DIM), 1.0),
        cls2=rand((1, DIM), 1.0), pos2=rand((N2, DIM), 1.0),
        # attention blocks: [self for (l,s)] then [cross for (l,s)]; fused W_qkv, full W_out
        attn_ln_g=ones((NUM_ATTN, DIM)), attn_ln_b=zeros((NUM_ATTN, DIM)),
        attn_wqkv=rand((NUM_ATTN, DIM, 3 * INNER)),
        attn_wo=rand((NUM_ATTN, INNER, DIM)), attn_bo=rand((NUM_ATTN, DIM)),
        # feed-forward blocks per (l, s)
        ff_ln_g=ones((LS, DIM)), ff_ln_b=zeros((LS, DIM)),
        ff_w1=rand((LS, DIM, MLP_DIM)), ff_b1=rand((LS, MLP_DIM)),
        ff_w2=rand((LS, MLP_DIM, DIM)), ff_b2=rand((LS, DIM)),
        # classification head per stream
        hd_ln_g=ones((NUM_STREAMS, DIM)), hd_ln_b=zeros((NUM_STREAMS, DIM)),
        hd_w=rand((NUM_STREAMS, DIM, NUM_CLASSES)), hd_b=rand((NUM_STREAMS, NUM_CLASSES)),
    )


def pack_params(p):
    """Collapse all per-layer/per-stream parameters into a handful of stacked slabs."""
    pe1_ln = jnp.stack([p["pe1_ln1_g"], p["pe1_ln1_b"]], axis=0)          # (2, 384)
    pe2_ln = jnp.stack([p["pe2_ln1_g"], p["pe2_ln1_b"]], axis=0)          # (2, 24)

    rows = [p["pe1_b"], p["pe1_ln2_g"], p["pe1_ln2_b"],
            p["pe2_b"], p["pe2_ln2_g"], p["pe2_ln2_b"]]
    for j in range(NUM_ATTN):
        rows += [p["attn_ln_g"][j], p["attn_ln_b"][j], p["attn_bo"][j]]
    for i in range(LS):
        rows += [p["ff_ln_g"][i], p["ff_ln_b"][i], p["ff_b2"][i]]
    for s in range(NUM_STREAMS):
        rows += [p["hd_ln_g"][s], p["hd_ln_b"][s]]
    assert len(rows) == VEC_ROWS
    vec32 = jnp.stack(rows, axis=0)                                        # (46, 32)

    # padded "base" slabs: row0 = cls + pos[0], rows 1..n-1 = pos[1:], rest zeros; tiled over B
    blk1 = jnp.concatenate([p["cls1"] + p["pos1"][:1], p["pos1"][1:]], axis=0)
    base1 = jnp.tile(jnp.pad(blk1, ((0, PAD1 - N1), (0, 0))), (B, 1))      # (32, 32)
    blk2 = jnp.concatenate([p["cls2"] + p["pos2"][:1], p["pos2"][1:]], axis=0)
    base2 = jnp.tile(jnp.pad(blk2, ((0, PAD2 - N2), (0, 0))), (B, 1))      # (16, 32)

    hd_b = (p["hd_b"][0] + p["hd_b"][1])[None, :]                          # biases always summed

    return (base1, base2, pe1_ln, p["pe1_w"], pe2_ln, p["pe2_w"], vec32,
            p["attn_wqkv"], p["attn_wo"], p["ff_w1"], p["ff_w2"], p["ff_b1"],
            p["hd_w"], hd_b)


# --------------------------------- main ---------------------------------------
if __name__ == "__main__":
    key = jax.random.PRNGKey(0)
    k_video, k_current, k_params = jax.random.split(key, 3)
    video = jax.random.normal(k_video, (B, CHANNELS, FRAMES, IMAGE_SIZE, IMAGE_SIZE),
                              jnp.float32)
    current = jax.random.normal(k_current, (B, CURRENT_PATCHES, CURRENT_PATCH_DIM),
                                jnp.float32)
    params = init_params(k_params)
    packed = pack_params(params)     # one-time host-side packing into ~14 slabs

    # TODO(synk): task='segmentation' head (ConvTranspose/BatchNorm decoder) and the
    # additional=True AdditionalVideoTokens branch (nearest interpolation) are not
    # exercised here; only the default classification path is implemented.
    out = jax.jit(vit_forward)(packed, video, current)
    out = jax.block_until_ready(out)
    assert out.shape == (B, NUM_CLASSES) and out.dtype == jnp.float32
    assert bool(jnp.all(jnp.isfinite(out)))
    print("KERNEL_OK")
</pallas_src>

<mosaic_0001>
module attributes {stable_mosaic.version = 11 : i64} {
  func.func @_vit_kernel(%arg0: memref<32x384xf32, #tpu.memory_space<vmem>>, %arg1: memref<16x24xf32, #tpu.memory_space<vmem>>, %arg2: memref<32x32xf32, #tpu.memory_space<vmem>>, %arg3: memref<16x32xf32, #tpu.memory_space<vmem>>, %arg4: memref<2x384xf32, #tpu.memory_space<vmem>>, %arg5: memref<384x32xf32, #tpu.memory_space<vmem>>, %arg6: memref<2x24xf32, #tpu.memory_space<vmem>>, %arg7: memref<24x32xf32, #tpu.memory_space<vmem>>, %arg8: memref<46x32xf32, #tpu.memory_space<vmem>>, %arg9: memref<8x32x96xf32, #tpu.memory_space<vmem>>, %arg10: memref<8x32x32xf32, #tpu.memory_space<vmem>>, %arg11: memref<4x32x64xf32, #tpu.memory_space<vmem>>, %arg12: memref<4x64x32xf32, #tpu.memory_space<vmem>>, %arg13: memref<4x64xf32, #tpu.memory_space<vmem>>, %arg14: memref<2x32x5xf32, #tpu.memory_space<vmem>>, %arg15: memref<1x5xf32, #tpu.memory_space<vmem>>, %arg16: memref<2x5xf32, #tpu.memory_space<vmem>>) attributes {dimension_semantics = [], scalar_prefetch = 0 : i64, scratch_operands = 0 : i64, tpu.core_type = #tpu.core_type<tc>} {
    %0 = tpu.iota {dimensions = array<i32: 0>} : vector<32x1xi32>
    %c15_i32 = arith.constant 15 : i32
    %1 = vector.broadcast %c15_i32 : i32 to vector<32x1xi32>
    %2 = arith.andi %0, %1 : vector<32x1xi32>
    %c1_i32 = arith.constant 1 : i32
    %3 = vector.broadcast %c1_i32 : i32 to vector<32x1xi32>
    %4 = arith.cmpi sge, %2, %3 : vector<32x1xi32>
    %c8_i32 = arith.constant 8 : i32
    %5 = vector.broadcast %c8_i32 : i32 to vector<32x1xi32>
    %6 = arith.cmpi sle, %2, %5 : vector<32x1xi32>
    %7 = arith.andi %4, %6 : vector<32x1xi1>
    %cst = arith.constant 1.000000e+00 : f32
    %cst_0 = arith.constant 0.000000e+00 : f32
    %8 = vector.broadcast %cst : f32 to vector<32x1xf32>
    %9 = vector.broadcast %cst_0 : f32 to vector<32x1xf32>
    %10 = arith.select %7, %8, %9 : vector<32x1xi1>, vector<32x1xf32>
    %11 = tpu.iota {dimensions = array<i32: 0>} : vector<16x1xi32>
    %c7_i32 = arith.constant 7 : i32
    %12 = vector.broadcast %c7_i32 : i32 to vector<16x1xi32>
    %13 = arith.andi %11, %12 : vector<16x1xi32>
    %c1_i32_1 = arith.constant 1 : i32
    %14 = vector.broadcast %c1_i32_1 : i32 to vector<16x1xi32>
    %15 = arith.cmpi sge, %13, %14 : vector<16x1xi32>
    %c6_i32 = arith.constant 6 : i32
    %16 = vector.broadcast %c6_i32 : i32 to vector<16x1xi32>
    %17 = arith.cmpi sle, %13, %16 : vector<16x1xi32>
    %18 = arith.andi %15, %17 : vector<16x1xi1>
    %cst_2 = arith.constant 1.000000e+00 : f32
    %cst_3 = arith.constant 0.000000e+00 : f32
    %19 = vector.broadcast %cst_2 : f32 to vector<16x1xf32>
    %20 = vector.broadcast %cst_3 : f32 to vector<16x1xf32>
    %21 = arith.select %18, %19, %20 : vector<16x1xi1>, vector<16x1xf32>
    %c0 = arith.constant 0 : index
    %c0_4 = arith.constant 0 : index
    %22 = vector.load %arg2[%c0, %c0_4] : memref<32x32xf32, #tpu.memory_space<vmem>>, vector<32x32xf32>
    %c0_5 = arith.constant 0 : index
    %c0_6 = arith.constant 0 : index
    %23 = vector.load %arg0[%c0_5, %c0_6] : memref<32x384xf32, #tpu.memory_space<vmem>>, vector<32x384xf32>
    %c0_7 = arith.constant 0 : index
    %c0_8 = arith.constant 0 : index
    %24 = vector.load %arg4[%c0_7, %c0_8] : memref<2x384xf32, #tpu.memory_space<vmem>>, vector<1x384xf32>
    %c1 = arith.constant 1 : index
    %c0_9 = arith.constant 0 : index
    %25 = vector.load %arg4[%c1, %c0_9] : memref<2x384xf32, #tpu.memory_space<vmem>>, vector<1x384xf32>
    %cst_10 = arith.constant dense<0.000000e+00> : vector<32xf32>
    %26 = vector.multi_reduction <add>, %23, %cst_10 [1] : vector<32x384xf32> to vector<32xf32>
    %27 = vector.shape_cast %26 : vector<32xf32> to vector<32x1xf32>
    %cst_11 = arith.constant 3.840000e+02 : f32
    %28 = vector.broadcast %cst_11 : f32 to vector<32x1xf32>
    %29 = arith.divf %27, %28 : vector<32x1xf32>
    %30 = vector.broadcast %29 : vector<32x1xf32> to vector<32x384xf32>
    %31 = arith.subf %23, %30 : vector<32x384xf32>
    %32 = arith.mulf %31, %31 : vector<32x384xf32>
    %cst_12 = arith.constant dense<0.000000e+00> : vector<32xf32>
    %33 = vector.multi_reduction <add>, %32, %cst_12 [1] : vector<32x384xf32> to vector<32xf32>
    %34 = vector.shape_cast %33 : vector<32xf32> to vector<32x1xf32>
    %cst_13 = arith.constant 3.840000e+02 : f32
    %35 = vector.broadcast %cst_13 : f32 to vector<32x1xf32>
    %36 = arith.divf %34, %35 : vector<32x1xf32>
    %37 = vector.broadcast %29 : vector<32x1xf32> to vector<32x384xf32>
    %38 = arith.subf %23, %37 : vector<32x384xf32>
    %cst_14 = arith.constant 9.99999974E-6 : f32
    %39 = vector.broadcast %cst_14 : f32 to vector<32x1xf32>
    %40 = arith.addf %36, %39 : vector<32x1xf32>
    %41 = math.rsqrt %40 : vector<32x1xf32>
    %42 = vector.broadcast %41 : vector<32x1xf32> to vector<32x384xf32>
    %43 = arith.mulf %38, %42 : vector<32x384xf32>
    %44 = vector.broadcast %24 : vector<1x384xf32> to vector<32x384xf32>
    %45 = arith.mulf %43, %44 : vector<32x384xf32>
    %46 = vector.broadcast %25 : vector<1x384xf32> to vector<32x384xf32>
    %47 = arith.addf %45, %46 : vector<32x384xf32>
    %c0_15 = arith.constant 0 : index
    %c0_16 = arith.constant 0 : index
    %48 = vector.load %arg5[%c0_15, %c0_16] : memref<384x32xf32, #tpu.memory_space<vmem>>, vector<384x32xf32>
    %cst_17 = arith.constant dense<0.000000e+00> : vector<32x32xf32>
    %49 = tpu.matmul %47, %48, %cst_17 {dimension_numbers = #tpu.dot_dimension_numbers<[1], [0], [0], [1], [0, 0, 1, 1], [], []>} : vector<32x384xf32>, vector<384x32xf32>, vector<32x32xf32> -> vector<32x32xf32>
    %c0_18 = arith.constant 0 : index
    %c0_19 = arith.constant 0 : index
    %50 = vector.load %arg8[%c0_18, %c0_19] : memref<46x32xf32, #tpu.memory_space<vmem>>, vector<1x32xf32>
    %51 = vector.broadcast %50 : vector<1x32xf32> to vector<32x32xf32>
    %52 = arith.addf %49, %51 : vector<32x32xf32>
    %c1_20 = arith.constant 1 : index
    %c0_21 = arith.constant 0 : index
    %53 = vector.load %arg8[%c1_20, %c0_21] : memref<46x32xf32, #tpu.memory_space<vmem>>, vector<1x32xf32>
    %c2 = arith.constant 2 : index
    %c0_22 = arith.constant 0 : index
    %54 = vector.load %arg8[%c2, %c0_22] : memref<46x32xf32, #tpu.memory_space<vmem>>, vector<1x32xf32>
    %cst_23 = arith.constant dense<0.000000e+00> : vector<32xf32>
    %55 = vector.multi_reduction <add>, %52, %cst_23 [1] : vector<32x32xf32> to vector<32xf32>
    %56 = vector.shape_cast %55 : vector<32xf32> to vector<32x1xf32>
    %cst_24 = arith.constant 3.200000e+01 : f32
    %57 = vector.broadcast %cst_24 : f32 to vector<32x1xf32>
    %58 = arith.divf %56, %57 : vector<32x1xf32>
    %59 = vector.broadcast %58 : vector<32x1xf32> to vector<32x32xf32>
    %60 = arith.subf %52, %59 : vector<32x32xf32>
    %61 = arith.mulf %60, %60 : vector<32x32xf32>
    %cst_25 = arith.constant dense<0.000000e+00> : vector<32xf32>
    %62 = vector.multi_reduction <add>, %61, %cst_25 [1] : vector<32x32xf32> to vector<32xf32>
    %63 = vector.shape_cast %62 : vector<32xf32> to vector<32x1xf32>
    %cst_26 = arith.constant 3.200000e+01 : f32
    %64 = vector.broadcast %cst_26 : f32 to vector<32x1xf32>
    %65 = arith.divf %63, %64 : vector<32x1xf32>
    %66 = vector.broadcast %58 : vector<32x1xf32> to vector<32x32xf32>
    %67 = arith.subf %52, %66 : vector<32x32xf32>
    %cst_27 = arith.constant 9.99999974E-6 : f32
    %68 = vector.broadcast %cst_27 : f32 to vector<32x1xf32>
    %69 = arith.addf %65, %68 : vector<32x1xf32>
    %70 = math.rsqrt %69 : vector<32x1xf32>
    %71 = vector.broadcast %70 : vector<32x1xf32> to vector<32x32xf32>
    %72 = arith.mulf %67, %71 : vector<32x32xf32>
    %73 = vector.broadcast %53 : vector<1x32xf32> to vector<32x32xf32>
    %74 = arith.mulf %72, %73 : vector<32x32xf32>
    %75 = vector.broadcast %54 : vector<1x32xf32> to vector<32x32xf32>
    %76 = arith.addf %74, %75 : vector<32x32xf32>
    %77 = vector.broadcast %10 : vector<32x1xf32> to vector<32x32xf32>
    %78 = arith.mulf %77, %76 : vector<32x32xf32>
    %79 = arith.addf %22, %78 : vector<32x32xf32>
    %c0_28 = arith.constant 0 : index
    %c0_29 = arith.constant 0 : index
    %80 = vector.load %arg3[%c0_28, %c0_29] : memref<16x32xf32, #tpu.memory_space<vmem>>, vector<16x32xf32>
    %c0_30 = arith.constant 0 : index
    %c0_31 = arith.constant 0 : index
    %81 = vector.load %arg1[%c0_30, %c0_31] : memref<16x24xf32, #tpu.memory_space<vmem>>, vector<16x24xf32>
    %c0_32 = arith.constant 0 : index
    %c0_33 = arith.constant 0 : index
    %82 = vector.load %arg6[%c0_32, %c0_33] : memref<2x24xf32, #tpu.memory_space<vmem>>, vector<1x24xf32>
    %c1_34 = arith.constant 1 : index
    %c0_35 = arith.constant 0 : index
    %83 = vector.load %arg6[%c1_34, %c0_35] : memref<2x24xf32, #tpu.memory_space<vmem>>, vector<1x24xf32>
    %cst_36 = arith.constant dense<0.000000e+00> : vector<16xf32>
    %84 = vector.multi_reduction <add>, %81, %cst_36 [1] : vector<16x24xf32> to vector<16xf32>
    %85 = vector.shape_cast %84 : vector<16xf32> to vector<16x1xf32>
    %cst_37 = arith.constant 2.400000e+01 : f32
    %86 = vector.broadcast %cst_37 : f32 to vector<16x1xf32>
    %87 = arith.divf %85, %86 : vector<16x1xf32>
    %88 = vector.broadcast %87 : vector<16x1xf32> to vector<16x24xf32>
    %89 = arith.subf %81, %88 : vector<16x24xf32>
    %90 = arith.mulf %89, %89 : vector<16x24xf32>
    %cst_38 = arith.constant dense<0.000000e+00> : vector<16xf32>
    %91 = vector.multi_reduction <add>, %90, %cst_38 [1] : vector<16x24xf32> to vector<16xf32>
    %92 = vector.shape_cast %91 : vector<16xf32> to vector<16x1xf32>
    %cst_39 = arith.constant 2.400000e+01 : f32
    %93 = vector.broadcast %cst_39 : f32 to vector<16x1xf32>
    %94 = arith.divf %92, %93 : vector<16x1xf32>
    %95 = vector.broadcast %87 : vector<16x1xf32> to vector<16x24xf32>
    %96 = arith.subf %81, %95 : vector<16x24xf32>
    %cst_40 = arith.constant 9.99999974E-6 : f32
    %97 = vector.broadcast %cst_40 : f32 to vector<16x1xf32>
    %98 = arith.addf %94, %97 : vector<16x1xf32>
    %99 = math.rsqrt %98 : vector<16x1xf32>
    %100 = vector.broadcast %99 : vector<16x1xf32> to vector<16x24xf32>
    %101 = arith.mulf %96, %100 : vector<16x24xf32>
    %102 = vector.broadcast %82 : vector<1x24xf32> to vector<16x24xf32>
    %103 = arith.mulf %101, %102 : vector<16x24xf32>
    %104 = vector.broadcast %83 : vector<1x24xf32> to vector<16x24xf32>
    %105 = arith.addf %103, %104 : vector<16x24xf32>
    %c0_41 = arith.constant 0 : index
    %c0_42 = arith.constant 0 : index
    %106 = vector.load %arg7[%c0_41, %c0_42] : memref<24x32xf32, #tpu.memory_space<vmem>>, vector<24x32xf32>
    %cst_43 = arith.constant dense<0.000000e+00> : vector<16x32xf32>
    %107 = tpu.matmul %105, %106, %cst_43 {dimension_numbers = #tpu.dot_dimension_numbers<[1], [0], [0], [1], [0, 0, 1, 1], [], []>} : vector<16x24xf32>, vector<24x32xf32>, vector<16x32xf32> -> vector<16x32xf32>
    %c3 = arith.constant 3 : index
    %c0_44 = arith.constant 0 : index
    %108 = vector.load %arg8[%c3, %c0_44] : memref<46x32xf32, #tpu.memory_space<vmem>>, vector<1x32xf32>
    %109 = vector.broadcast %108 : vector<1x32xf32> to vector<16x32xf32>
    %110 = arith.addf %107, %109 : vector<16x32xf32>
    %c4 = arith.constant 4 : index
    %c0_45 = arith.constant 0 : index
    %111 = vector.load %arg8[%c4, %c0_45] : memref<46x32xf32, #tpu.memory_space<vmem>>, vector<1x32xf32>
    %c5 = arith.constant 5 : index
    %c0_46 = arith.constant 0 : index
    %112 = vector.load %arg8[%c5, %c0_46] : memref<46x32xf32, #tpu.memory_space<vmem>>, vector<1x32xf32>
    %cst_47 = arith.constant dense<0.000000e+00> : vector<16xf32>
    %113 = vector.multi_reduction <add>, %110, %cst_47 [1] : vector<16x32xf32> to vector<16xf32>
    %114 = vector.shape_cast %113 : vector<16xf32> to vector<16x1xf32>
    %cst_48 = arith.constant 3.200000e+01 : f32
    %115 = vector.broadcast %cst_48 : f32 to vector<16x1xf32>
    %116 = arith.divf %114, %115 : vector<16x1xf32>
    %117 = vector.broadcast %116 : vector<16x1xf32> to vector<16x32xf32>
    %118 = arith.subf %110, %117 : vector<16x32xf32>
    %119 = arith.mulf %118, %118 : vector<16x32xf32>
    %cst_49 = arith.constant dense<0.000000e+00> : vector<16xf32>
    %120 = vector.multi_reduction <add>, %119, %cst_49 [1] : vector<16x32xf32> to vector<16xf32>
    %121 = vector.shape_cast %120 : vector<16xf32> to vector<16x1xf32>
    %cst_50 = arith.constant 3.200000e+01 : f32
    %122 = vector.broadcast %cst_50 : f32 to vector<16x1xf32>
    %123 = arith.divf %121, %122 : vector<16x1xf32>
    %124 = vector.broadcast %116 : vector<16x1xf32> to vector<16x32xf32>
    %125 = arith.subf %110, %124 : vector<16x32xf32>
    %cst_51 = arith.constant 9.99999974E-6 : f32
    %126 = vector.broadcast %cst_51 : f32 to vector<16x1xf32>
    %127 = arith.addf %123, %126 : vector<16x1xf32>
    %128 = math.rsqrt %127 : vector<16x1xf32>
    %129 = vector.broadcast %128 : vector<16x1xf32> to vector<16x32xf32>
    %130 = arith.mulf %125, %129 : vector<16x32xf32>
    %131 = vector.broadcast %111 : vector<1x32xf32> to vector<16x32xf32>
    %132 = arith.mulf %130, %131 : vector<16x32xf32>
    %133 = vector.broadcast %112 : vector<1x32xf32> to vector<16x32xf32>
    %134 = arith.addf %132, %133 : vector<16x32xf32>
    %135 = vector.broadcast %21 : vector<16x1xf32> to vector<16x32xf32>
    %136 = arith.mulf %135, %134 : vector<16x32xf32>
    %137 = arith.addf %80, %136 : vector<16x32xf32>
    %138 = tpu.iota {dimensions = array<i32: 1>} : vector<1x16xi32>
    %c9_i32 = arith.constant 9 : i32
    %139 = vector.broadcast %c9_i32 : i32 to vector<1x16xi32>
    %140 = arith.cmpi slt, %138, %139 : vector<1x16xi32>
    %cst_52 = arith.constant 0.000000e+00 : f32
    %cst_53 = arith.constant -1.000000e+30 : f32
    %141 = vector.broadcast %cst_52 : f32 to vector<1x16xf32>
    %142 = vector.broadcast %cst_53 : f32 to vector<1x16xf32>
    %143 = arith.select %140, %141, %142 : vector<1x16xi1>, vector<1x16xf32>
    %144 = tpu.iota {dimensions = array<i32: 1>} : vector<1x8xi32>
    %c7_i32_54 = arith.constant 7 : i32
    %145 = vector.broadcast %c7_i32_54 : i32 to vector<1x8xi32>
    %146 = arith.cmpi slt, %144, %145 : vector<1x8xi32>
    %cst_55 = arith.constant 0.000000e+00 : f32
    %cst_56 = arith.constant -1.000000e+30 : f32
    %147 = vector.broadcast %cst_55 : f32 to vector<1x8xf32>
    %148 = vector.broadcast %cst_56 : f32 to vector<1x8xf32>
    %149 = arith.select %146, %147, %148 : vector<1x8xi1>, vector<1x8xf32>
    %c6 = arith.constant 6 : index
    %c0_57 = arith.constant 0 : index
    %150 = vector.load %arg8[%c6, %c0_57] : memref<46x32xf32, #tpu.memory_space<vmem>>, vector<1x32xf32>
    %c7 = arith.constant 7 : index
    %c0_58 = arith.constant 0 : index
    %151 = vector.load %arg8[%c7, %c0_58] : memref<46x32xf32, #tpu.memory_space<vmem>>, vector<1x32xf32>
    %cst_59 = arith.constant dense<0.000000e+00> : vector<32xf32>
    %152 = vector.multi_reduction <add>, %79, %cst_59 [1] : vector<32x32xf32> to vector<32xf32>
    %153 = vector.shape_cast %152 : vector<32xf32> to vector<32x1xf32>
    %cst_60 = arith.constant 3.200000e+01 : f32
    %154 = vector.broadcast %cst_60 : f32 to vector<32x1xf32>
    %155 = arith.divf %153, %154 : vector<32x1xf32>
    %156 = vector.broadcast %155 : vector<32x1xf32> to vector<32x32xf32>
    %157 = arith.subf %79, %156 : vector<32x32xf32>
    %158 = arith.mulf %157, %157 : vector<32x32xf32>
    %cst_61 = arith.constant dense<0.000000e+00> : vector<32xf32>
    %159 = vector.multi_reduction <add>, %158, %cst_61 [1] : vector<32x32xf32> to vector<32xf32>
    %160 = vector.shape_cast %159 : vector<32xf32> to vector<32x1xf32>
    %cst_62 = arith.constant 3.200000e+01 : f32
    %161 = vector.broadcast %cst_62 : f32 to vector<32x1xf32>
    %162 = arith.divf %160, %161 : vector<32x1xf32>
    %163 = vector.broadcast %155 : vector<32x1xf32> to vector<32x32xf32>
    %164 = arith.subf %79, %163 : vector<32x32xf32>
    %cst_63 = arith.constant 9.99999974E-6 : f32
    %165 = vector.broadcast %cst_63 : f32 to vector<32x1xf32>
    %166 = arith.addf %162, %165 : vector<32x1xf32>
    %167 = math.rsqrt %166 : vector<32x1xf32>
    %168 = vector.broadcast %167 : vector<32x1xf32> to vector<32x32xf32>
    %169 = arith.mulf %164, %168 : vector<32x32xf32>
    %170 = vector.broadcast %150 : vector<1x32xf32> to vector<32x32xf32>
    %171 = arith.mulf %169, %170 : vector<32x32xf32>
    %172 = vector.broadcast %151 : vector<1x32xf32> to vector<32x32xf32>
    %173 = arith.addf %171, %172 : vector<32x32xf32>
    %c0_64 = arith.constant 0 : index
    %c0_65 = arith.constant 0 : index
    %c0_66 = arith.constant 0 : index
    %174 = vector.load %arg9[%c0_64, %c0_65, %c0_66] : memref<8x32x96xf32, #tpu.memory_space<vmem>>, vector<1x32x96xf32>
    %175 = vector.shape_cast %174 : vector<1x32x96xf32> to vector<32x96xf32>
    %cst_67 = arith.constant dense<0.000000e+00> : vector<32x96xf32>
    %176 = tpu.matmul %173, %175, %cst_67 {dimension_numbers = #tpu.dot_dimension_numbers<[1], [0], [0], [1], [0, 0, 1, 1], [], []>} : vector<32x32xf32>, vector<32x96xf32>, vector<32x96xf32> -> vector<32x96xf32>
    %177 = vector.extract_strided_slice %176 {offsets = [0, 0], sizes = [32, 32], strides = [1, 1]} : vector<32x96xf32> to vector<32x32xf32>
    %178 = vector.extract_strided_slice %176 {offsets = [0, 32], sizes = [32, 32], strides = [1, 1]} : vector<32x96xf32> to vector<32x32xf32>
    %179 = vector.extract_strided_slice %176 {offsets = [0, 64], sizes = [32, 32], strides = [1, 1]} : vector<32x96xf32> to vector<32x32xf32>
    %180 = vector.extract_strided_slice %177 {offsets = [0, 0], sizes = [16, 32], strides = [1, 1]} : vector<32x32xf32> to vector<16x32xf32>
    %181 = vector.extract_strided_slice %178 {offsets = [0, 0], sizes = [16, 32], strides = [1, 1]} : vector<32x32xf32> to vector<16x32xf32>
    %182 = vector.extract_strided_slice %179 {offsets = [0, 0], sizes = [16, 32], strides = [1, 1]} : vector<32x32xf32> to vector<16x32xf32>
    %183 = vector.extract_strided_slice %180 {offsets = [0, 0], sizes = [16, 16], strides = [1, 1]} : vector<16x32xf32> to vector<16x16xf32>
    %184 = vector.extract_strided_slice %181 {offsets = [0, 0], sizes = [16, 16], strides = [1, 1]} : vector<16x32xf32> to vector<16x16xf32>
    %cst_68 = arith.constant dense<0.000000e+00> : vector<16x16xf32>
    %185 = tpu.matmul %183, %184, %cst_68 {dimension_numbers = #tpu.dot_dimension_numbers<[1], [1], [0], [0], [0, 0, 1, 0], [], []>} : vector<16x16xf32>, vector<16x16xf32>, vector<16x16xf32> -> vector<16x16xf32>
    %cst_69 = arith.constant 2.500000e-01 : f32
    %186 = vector.broadcast %cst_69 : f32 to vector<16x16xf32>
    %187 = arith.mulf %185, %186 : vector<16x16xf32>
    %188 = vector.broadcast %143 : vector<1x16xf32> to vector<16x16xf32>
    %189 = arith.addf %187, %188 : vector<16x16xf32>
    %cst_70 = arith.constant dense<0xFF800000> : vector<16xf32>
    %190 = vector.multi_reduction <maximumf>, %189, %cst_70 [1] : vector<16x16xf32> to vector<16xf32>
    %191 = vector.shape_cast %190 : vector<16xf32> to vector<16x1xf32>
    %192 = vector.broadcast %191 : vector<16x1xf32> to vector<16x16xf32>
    %193 = arith.subf %189, %192 : vector<16x16xf32>
    %194 = math.exp %193 : vector<16x16xf32>
    %cst_71 = arith.constant dense<0.000000e+00> : vector<16xf32>
    %195 = vector.multi_reduction <add>, %194, %cst_71 [1] : vector<16x16xf32> to vector<16xf32>
    %196 = vector.shape_cast %195 : vector<16xf32> to vector<16x1xf32>
    %197 = tpu.reciprocal %196 {approx = true} : vector<16x1xf32> -> vector<16x1xf32>
    %198 = vector.broadcast %197 : vector<16x1xf32> to vector<16x16xf32>
    %199 = arith.mulf %194, %198 : vector<16x16xf32>
    %200 = vector.extract_strided_slice %182 {offsets = [0, 0], sizes = [16, 16], strides = [1, 1]} : vector<16x32xf32> to vector<16x16xf32>
    %cst_72 = arith.constant dense<0.000000e+00> : vector<16x16xf32>
    %201 = tpu.matmul %199, %200, %cst_72 {dimension_numbers = #tpu.dot_dimension_numbers<[1], [0], [0], [1], [0, 0, 1, 1], [], []>} : vector<16x16xf32>, vector<16x16xf32>, vector<16x16xf32> -> vector<16x16xf32>
    %202 = vector.extract_strided_slice %180 {offsets = [0, 16], sizes = [16, 16], strides = [1, 1]} : vector<16x32xf32> to vector<16x16xf32>
    %203 = vector.extract_strided_slice %181 {offsets = [0, 16], sizes = [16, 16], strides = [1, 1]} : vector<16x32xf32> to vector<16x16xf32>
    %cst_73 = arith.constant dense<0.000000e+00> : vector<16x16xf32>
    %204 = tpu.matmul %202, %203, %cst_73 {dimension_numbers = #tpu.dot_dimension_numbers<[1], [1], [0], [0], [0, 0, 1, 0], [], []>} : vector<16x16xf32>, vector<16x16xf32>, vector<16x16xf32> -> vector<16x16xf32>
    %cst_74 = arith.constant 2.500000e-01 : f32
    %205 = vector.broadcast %cst_74 : f32 to vector<16x16xf32>
    %206 = arith.mulf %204, %205 : vector<16x16xf32>
    %207 = vector.broadcast %143 : vector<1x16xf32> to vector<16x16xf32>
    %208 = arith.addf %206, %207 : vector<16x16xf32>
    %cst_75 = arith.constant dense<0xFF800000> : vector<16xf32>
    %209 = vector.multi_reduction <maximumf>, %208, %cst_75 [1] : vector<16x16xf32> to vector<16xf32>
    %210 = vector.shape_cast %209 : vector<16xf32> to vector<16x1xf32>
    %211 = vector.broadcast %210 : vector<16x1xf32> to vector<16x16xf32>
    %212 = arith.subf %208, %211 : vector<16x16xf32>
    %213 = math.exp %212 : vector<16x16xf32>
    %cst_76 = arith.constant dense<0.000000e+00> : vector<16xf32>
    %214 = vector.multi_reduction <add>, %213, %cst_76 [1] : vector<16x16xf32> to vector<16xf32>
    %215 = vector.shape_cast %214 : vector<16xf32> to vector<16x1xf32>
    %216 = tpu.reciprocal %215 {approx = true} : vector<16x1xf32> -> vector<16x1xf32>
    %217 = vector.broadcast %216 : vector<16x1xf32> to vector<16x16xf32>
    %218 = arith.mulf %213, %217 : vector<16x16xf32>
    %219 = vector.extract_strided_slice %182 {offsets = [0, 16], sizes = [16, 16], strides = [1, 1]} : vector<16x32xf32> to vector<16x16xf32>
    %cst_77 = arith.constant dense<0.000000e+00> : vector<16x16xf32>
    %220 = tpu.matmul %218, %219, %cst_77 {dimension_numbers = #tpu.dot_dimension_numbers<[1], [0], [0], [1], [0, 0, 1, 1], [], []>} : vector<16x16xf32>, vector<16x16xf32>, vector<16x16xf32> -> vector<16x16xf32>
    %221 = tpu.concatenate %201, %220 in 1 : vector<16x16xf32>, vector<16x16xf32> -> vector<16x32xf32>
    %222 = vector.extract_strided_slice %177 {offsets = [16, 0], sizes = [16, 32], strides = [1, 1]} : vector<32x32xf32> to vector<16x32xf32>
    %223 = vector.extract_strided_slice %178 {offsets = [16, 0], sizes = [16, 32], strides = [1, 1]} : vector<32x32xf32> to vector<16x32xf32>
    %224 = vector.extract_strided_slice %179 {offsets = [16, 0], sizes = [16, 32], strides = [1, 1]} : vector<32x32xf32> to vector<16x32xf32>
    %225 = vector.extract_strided_slice %222 {offsets = [0, 0], sizes = [16, 16], strides = [1, 1]} : vector<16x32xf32> to vector<16x16xf32>
    %226 = vector.extract_strided_slice %223 {offsets = [0, 0], sizes = [16, 16], strides = [1, 1]} : vector<16x32xf32> to vector<16x16xf32>
    %cst_78 = arith.constant dense<0.000000e+00> : vector<16x16xf32>
    %227 = tpu.matmul %225, %226, %cst_78 {dimension_numbers = #tpu.dot_dimension_numbers<[1], [1], [0], [0], [0, 0, 1, 0], [], []>} : vector<16x16xf32>, vector<16x16xf32>, vector<16x16xf32> -> vector<16x16xf32>
    %cst_79 = arith.constant 2.500000e-01 : f32
    %228 = vector.broadcast %cst_79 : f32 to vector<16x16xf32>
    %229 = arith.mulf %227, %228 : vector<16x16xf32>
    %230 = vector.broadcast %143 : vector<1x16xf32> to vector<16x16xf32>
    %231 = arith.addf %229, %230 : vector<16x16xf32>
    %cst_80 = arith.constant dense<0xFF800000> : vector<16xf32>
    %232 = vector.multi_reduction <maximumf>, %231, %cst_80 [1] : vector<16x16xf32> to vector<16xf32>
    %233 = vector.shape_cast %232 : vector<16xf32> to vector<16x1xf32>
    %234 = vector.broadcast %233 : vector<16x1xf32> to vector<16x16xf32>
    %235 = arith.subf %231, %234 : vector<16x16xf32>
    %236 = math.exp %235 : vector<16x16xf32>
    %cst_81 = arith.constant dense<0.000000e+00> : vector<16xf32>
    %237 = vector.multi_reduction <add>, %236, %cst_81 [1] : vector<16x16xf32> to vector<16xf32>
    %238 = vector.shape_cast %237 : vector<16xf32> to vector<16x1xf32>
    %239 = tpu.reciprocal %238 {approx = true} : vector<16x1xf32> -> vector<16x1xf32>
    %240 = vector.broadcast %239 : vector<16x1xf32> to vector<16x16xf32>
    %241 = arith.mulf %236, %240 : vector<16x16xf32>
    %242 = vector.extract_strided_slice %224 {offsets = [0, 0], sizes = [16, 16], strides = [1, 1]} : vector<16x32xf32> to vector<16x16xf32>
    %cst_82 = arith.constant dense<0.000000e+00> : vector<16x16xf32>
    %243 = tpu.matmul %241, %242, %cst_82 {dimension_numbers = #tpu.dot_dimension_numbers<[1], [0], [0], [1], [0, 0, 1, 1], [], []>} : vector<16x16xf32>, vector<16x16xf32>, vector<16x16xf32> -> vector<16x16xf32>
    %244 = vector.extract_strided_slice %222 {offsets = [0, 16], sizes = [16, 16], strides = [1, 1]} : vector<16x32xf32> to vector<16x16xf32>
    %245 = vector.extract_strided_slice %223 {offsets = [0, 16], sizes = [16, 16], strides = [1, 1]} : vector<16x32xf32> to vector<16x16xf32>
    %cst_83 = arith.constant dense<0.000000e+00> : vector<16x16xf32>
    %246 = tpu.matmul %244, %245, %cst_83 {dimension_numbers = #tpu.dot_dimension_numbers<[1], [1], [0], [0], [0, 0, 1, 0], [], []>} : vector<16x16xf32>, vector<16x16xf32>, vector<16x16xf32> -> vector<16x16xf32>
    %cst_84 = arith.constant 2.500000e-01 : f32
    %247 = vector.broadcast %cst_84 : f32 to vector<16x16xf32>
    %248 = arith.mulf %246, %247 : vector<16x16xf32>
    %249 = vector.broadcast %143 : vector<1x16xf32> to vector<16x16xf32>
    %250 = arith.addf %248, %249 : vector<16x16xf32>
    %cst_85 = arith.constant dense<0xFF800000> : vector<16xf32>
    %251 = vector.multi_reduction <maximumf>, %250, %cst_85 [1] : vector<16x16xf32> to vector<16xf32>
    %252 = vector.shape_cast %251 : vector<16xf32> to vector<16x1xf32>
    %253 = vector.broadcast %252 : vector<16x1xf32> to vector<16x16xf32>
    %254 = arith.subf %250, %253 : vector<16x16xf32>
    %255 = math.exp %254 : vector<16x16xf32>
    %cst_86 = arith.constant dense<0.000000e+00> : vector<16xf32>
    %256 = vector.multi_reduction <add>, %255, %cst_86 [1] : vector<16x16xf32> to vector<16xf32>
    %257 = vector.shape_cast %256 : vector<16xf32> to vector<16x1xf32>
    %258 = tpu.reciprocal %257 {approx = true} : vector<16x1xf32> -> vector<16x1xf32>
    %259 = vector.broadcast %258 : vector<16x1xf32> to vector<16x16xf32>
    %260 = arith.mulf %255, %259 : vector<16x16xf32>
    %261 = vector.extract_strided_slice %224 {offsets = [0, 16], sizes = [16, 16], strides = [1, 1]} : vector<16x32xf32> to vector<16x16xf32>
    %cst_87 = arith.constant dense<0.000000e+00> : vector<16x16xf32>
    %262 = tpu.matmul %260, %261, %cst_87 {dimension_numbers = #tpu.dot_dimension_numbers<[1], [0], [0], [1], [0, 0, 1, 1], [], []>} : vector<16x16xf32>, vector<16x16xf32>, vector<16x16xf32> -> vector<16x16xf32>
    %263 = tpu.concatenate %243, %262 in 1 : vector<16x16xf32>, vector<16x16xf32> -> vector<16x32xf32>
    %264 = tpu.concatenate %221, %263 in 0 : vector<16x32xf32>, vector<16x32xf32> -> vector<32x32xf32>
    %c0_88 = arith.constant 0 : index
    %c0_89 = arith.constant 0 : index
    %c0_90 = arith.constant 0 : index
    %265 = vector.load %arg10[%c0_88, %c0_89, %c0_90] : memref<8x32x32xf32, #tpu.memory_space<vmem>>, vector<1x32x32xf32>
    %266 = vector.shape_cast %265 : vector<1x32x32xf32> to vector<32x32xf32>
    %cst_91 = arith.constant dense<0.000000e+00> : vector<32x32xf32>
    %267 = tpu.matmul %264, %266, %cst_91 {dimension_numbers = #tpu.dot_dimension_numbers<[1], [0], [0], [1], [0, 0, 1, 1], [], []>} : vector<32x32xf32>, vector<32x32xf32>, vector<32x32xf32> -> vector<32x32xf32>
    %c8 = arith.constant 8 : index
    %c0_92 = arith.constant 0 : index
    %268 = vector.load %arg8[%c8, %c0_92] : memref<46x32xf32, #tpu.memory_space<vmem>>, vector<1x32xf32>
    %269 = vector.broadcast %268 : vector<1x32xf32> to vector<32x32xf32>
    %270 = arith.addf %267, %269 : vector<32x32xf32>
    %271 = arith.addf %79, %270 : vector<32x32xf32>
    %c9 = arith.constant 9 : index
    %c0_93 = arith.constant 0 : index
    %272 = vector.load %arg8[%c9, %c0_93] : memref<46x32xf32, #tpu.memory_space<vmem>>, vector<1x32xf32>
    %c10 = arith.constant 10 : index
    %c0_94 = arith.constant 0 : index
    %273 = vector.load %arg8[%c10, %c0_94] : memref<46x32xf32, #tpu.memory_space<vmem>>, vector<1x32xf32>
    %cst_95 = arith.constant dense<0.000000e+00> : vector<16xf32>
    %274 = vector.multi_reduction <add>, %137, %cst_95 [1] : vector<16x32xf32> to vector<16xf32>
    %275 = vector.shape_cast %274 : vector<16xf32> to vector<16x1xf32>
    %cst_96 = arith.constant 3.200000e+01 : f32
    %276 = vector.broadcast %cst_96 : f32 to vector<16x1xf32>
    %277 = arith.divf %275, %276 : vector<16x1xf32>
    %278 = vector.broadcast %277 : vector<16x1xf32> to vector<16x32xf32>
    %279 = arith.subf %137, %278 : vector<16x32xf32>
    %280 = arith.mulf %279, %279 : vector<16x32xf32>
    %cst_97 = arith.constant dense<0.000000e+00> : vector<16xf32>
    %281 = vector.multi_reduction <add>, %280, %cst_97 [1] : vector<16x32xf32> to vector<16xf32>
    %282 = vector.shape_cast %281 : vector<16xf32> to vector<16x1xf32>
    %cst_98 = arith.constant 3.200000e+01 : f32
    %283 = vector.broadcast %cst_98 : f32 to vector<16x1xf32>
    %284 = arith.divf %282, %283 : vector<16x1xf32>
    %285 = vector.broadcast %277 : vector<16x1xf32> to vector<16x32xf32>
    %286 = arith.subf %137, %285 : vector<16x32xf32>
    %cst_99 = arith.constant 9.99999974E-6 : f32
    %287 = vector.broadcast %cst_99 : f32 to vector<16x1xf32>
    %288 = arith.addf %284, %287 : vector<16x1xf32>
    %289 = math.rsqrt %288 : vector<16x1xf32>
    %290 = vector.broadcast %289 : vector<16x1xf32> to vector<16x32xf32>
    %291 = arith.mulf %286, %290 : vector<16x32xf32>
    %292 = vector.broadcast %272 : vector<1x32xf32> to vector<16x32xf32>
    %293 = arith.mulf %291, %292 : vector<16x32xf32>
    %294 = vector.broadcast %273 : vector<1x32xf32> to vector<16x32xf32>
    %295 = arith.addf %293, %294 : vector<16x32xf32>
    %c1_100 = arith.constant 1 : index
    %c0_101 = arith.constant 0 : index
    %c0_102 = arith.constant 0 : index
    %296 = vector.load %arg9[%c1_100, %c0_101, %c0_102] : memref<8x32x96xf32, #tpu.memory_space<vmem>>, vector<1x32x96xf32>
    %297 = vector.shape_cast %296 : vector<1x32x96xf32> to vector<32x96xf32>
    %cst_103 = arith.constant dense<0.000000e+00> : vector<16x96xf32>
    %298 = tpu.matmul %295, %297, %cst_103 {dimension_numbers = #tpu.dot_dimension_numbers<[1], [0], [0], [1], [0, 0, 1, 1], [], []>} : vector<16x32xf32>, vector<32x96xf32>, vector<16x96xf32> -> vector<16x96xf32>
    %299 = vector.extract_strided_slice %298 {offsets = [0, 0], sizes = [16, 32], strides = [1, 1]} : vector<16x96xf32> to vector<16x32xf32>
    %300 = vector.extract_strided_slice %298 {offsets = [0, 32], sizes = [16, 32], strides = [1, 1]} : vector<16x96xf32> to vector<16x32xf32>
    %301 = vector.extract_strided_slice %298 {offsets = [0, 64], sizes = [16, 32], strides = [1, 1]} : vector<16x96xf32> to vector<16x32xf32>
    %302 = vector.extract_strided_slice %299 {offsets = [0, 0], sizes = [8, 32], strides = [1, 1]} : vector<16x32xf32> to vector<8x32xf32>
    %303 = vector.extract_strided_slice %300 {offsets = [0, 0], sizes = [8, 32], strides = [1, 1]} : vector<16x32xf32> to vector<8x32xf32>
    %304 = vector.extract_strided_slice %301 {offsets = [0, 0], sizes = [8, 32], strides = [1, 1]} : vector<16x32xf32> to vector<8x32xf32>
    %305 = vector.extract_strided_slice %302 {offsets = [0, 0], sizes = [8, 16], strides = [1, 1]} : vector<8x32xf32> to vector<8x16xf32>
    %306 = vector.extract_strided_slice %303 {offsets = [0, 0], sizes = [8, 16], strides = [1, 1]} : vector<8x32xf32> to vector<8x16xf32>
    %cst_104 = arith.constant dense<0.000000e+00> : vector<8x8xf32>
    %307 = tpu.matmul %305, %306, %cst_104 {dimension_numbers = #tpu.dot_dimension_numbers<[1], [1], [0], [0], [0, 0, 1, 0], [], []>} : vector<8x16xf32>, vector<8x16xf32>, vector<8x8xf32> -> vector<8x8xf32>
    %cst_105 = arith.constant 2.500000e-01 : f32
    %308 = vector.broadcast %cst_105 : f32 to vector<8x8xf32>
    %309 = arith.mulf %307, %308 : vector<8x8xf32>
    %310 = vector.broadcast %149 : vector<1x8xf32> to vector<8x8xf32>
    %311 = arith.addf %309, %310 : vector<8x8xf32>
    %cst_106 = arith.constant dense<0xFF800000> : vector<8xf32>
    %312 = vector.multi_reduction <maximumf>, %311, %cst_106 [1] : vector<8x8xf32> to vector<8xf32>
    %313 = vector.shape_cast %312 : vector<8xf32> to vector<8x1xf32>
    %314 = vector.broadcast %313 : vector<8x1xf32> to vector<8x8xf32>
    %315 = arith.subf %311, %314 : vector<8x8xf32>
    %316 = math.exp %315 : vector<8x8xf32>
    %cst_107 = arith.constant dense<0.000000e+00> : vector<8xf32>
    %317 = vector.multi_reduction <add>, %316, %cst_107 [1] : vector<8x8xf32> to vector<8xf32>
    %318 = vector.shape_cast %317 : vector<8xf32> to vector<8x1xf32>
    %319 = tpu.reciprocal %318 {approx = true} : vector<8x1xf32> -> vector<8x1xf32>
    %320 = vector.broadcast %319 : vector<8x1xf32> to vector<8x8xf32>
    %321 = arith.mulf %316, %320 : vector<8x8xf32>
    %322 = vector.extract_strided_slice %304 {offsets = [0, 0], sizes = [8, 16], strides = [1, 1]} : vector<8x32xf32> to vector<8x16xf32>
    %cst_108 = arith.constant dense<0.000000e+00> : vector<8x16xf32>
    %323 = tpu.matmul %321, %322, %cst_108 {dimension_numbers = #tpu.dot_dimension_numbers<[1], [0], [0], [1], [0, 0, 1, 1], [], []>} : vector<8x8xf32>, vector<8x16xf32>, vector<8x16xf32> -> vector<8x16xf32>
    %324 = vector.extract_strided_slice %302 {offsets = [0, 16], sizes = [8, 16], strides = [1, 1]} : vector<8x32xf32> to vector<8x16xf32>
    %325 = vector.extract_strided_slice %303 {offsets = [0, 16], sizes = [8, 16], strides = [1, 1]} : vector<8x32xf32> to vector<8x16xf32>
    %cst_109 = arith.constant dense<0.000000e+00> : vector<8x8xf32>
    %326 = tpu.matmul %324, %325, %cst_109 {dimension_numbers = #tpu.dot_dimension_numbers<[1], [1], [0], [0], [0, 0, 1, 0], [], []>} : vector<8x16xf32>, vector<8x16xf32>, vector<8x8xf32> -> vector<8x8xf32>
    %cst_110 = arith.constant 2.500000e-01 : f32
    %327 = vector.broadcast %cst_110 : f32 to vector<8x8xf32>
    %328 = arith.mulf %326, %327 : vector<8x8xf32>
    %329 = vector.broadcast %149 : vector<1x8xf32> to vector<8x8xf32>
    %330 = arith.addf %328, %329 : vector<8x8xf32>
    %cst_111 = arith.constant dense<0xFF800000> : vector<8xf32>
    %331 = vector.multi_reduction <maximumf>, %330, %cst_111 [1] : vector<8x8xf32> to vector<8xf32>
    %332 = vector.shape_cast %331 : vector<8xf32> to vector<8x1xf32>
    %333 = vector.broadcast %332 : vector<8x1xf32> to vector<8x8xf32>
    %334 = arith.subf %330, %333 : vector<8x8xf32>
    %335 = math.exp %334 : vector<8x8xf32>
    %cst_112 = arith.constant dense<0.000000e+00> : vector<8xf32>
    %336 = vector.multi_reduction <add>, %335, %cst_112 [1] : vector<8x8xf32> to vector<8xf32>
    %337 = vector.shape_cast %336 : vector<8xf32> to vector<8x1xf32>
    %338 = tpu.reciprocal %337 {approx = true} : vector<8x1xf32> -> vector<8x1xf32>
    %339 = vector.broadcast %338 : vector<8x1xf32> to vector<8x8xf32>
    %340 = arith.mulf %335, %339 : vector<8x8xf32>
    %341 = vector.extract_strided_slice %304 {offsets = [0, 16], sizes = [8, 16], strides = [1, 1]} : vector<8x32xf32> to vector<8x16xf32>
    %cst_113 = arith.constant dense<0.000000e+00> : vector<8x16xf32>
    %342 = tpu.matmul %340, %341, %cst_113 {dimension_numbers = #tpu.dot_dimension_numbers<[1], [0], [0], [1], [0, 0, 1, 1], [], []>} : vector<8x8xf32>, vector<8x16xf32>, vector<8x16xf32> -> vector<8x16xf32>
    %343 = tpu.concatenate %323, %342 in 1 : vector<8x16xf32>, vector<8x16xf32> -> vector<8x32xf32>
    %344 = vector.extract_strided_slice %299 {offsets = [8, 0], sizes = [8, 32], strides = [1, 1]} : vector<16x32xf32> to vector<8x32xf32>
    %345 = vector.extract_strided_slice %300 {offsets = [8, 0], sizes = [8, 32], strides = [1, 1]} : vector<16x32xf32> to vector<8x32xf32>
    %346 = vector.extract_strided_slice %301 {offsets = [8, 0], sizes = [8, 32], strides = [1, 1]} : vector<16x32xf32> to vector<8x32xf32>
    %347 = vector.extract_strided_slice %344 {offsets = [0, 0], sizes = [8, 16], strides = [1, 1]} : vector<8x32xf32> to vector<8x16xf32>
    %348 = vector.extract_strided_slice %345 {offsets = [0, 0], sizes = [8, 16], strides = [1, 1]} : vector<8x32xf32> to vector<8x16xf32>
    %cst_114 = arith.constant dense<0.000000e+00> : vector<8x8xf32>
    %349 = tpu.matmul %347, %348, %cst_114 {dimension_numbers = #tpu.dot_dimension_numbers<[1], [1], [0], [0], [0, 0, 1, 0], [], []>} : vector<8x16xf32>, vector<8x16xf32>, vector<8x8xf32> -> vector<8x8xf32>
    %cst_115 = arith.constant 2.500000e-01 : f32
    %350 = vector.broadcast %cst_115 : f32 to vector<8x8xf32>
    %351 = arith.mulf %349, %350 : vector<8x8xf32>
    %352 = vector.broadcast %149 : vector<1x8xf32> to vector<8x8xf32>
    %353 = arith.addf %351, %352 : vector<8x8xf32>
    %cst_116 = arith.constant dense<0xFF800000> : vector<8xf32>
    %354 = vector.multi_reduction <maximumf>, %353, %cst_116 [1] : vector<8x8xf32> to vector<8xf32>
    %355 = vector.shape_cast %354 : vector<8xf32> to vector<8x1xf32>
    %356 = vector.broadcast %355 : vector<8x1xf32> to vector<8x8xf32>
    %357 = arith.subf %353, %356 : vector<8x8xf32>
    %358 = math.exp %357 : vector<8x8xf32>
    %cst_117 = arith.constant dense<0.000000e+00> : vector<8xf32>
    %359 = vector.multi_reduction <add>, %358, %cst_117 [1] : vector<8x8xf32> to vector<8xf32>
    %360 = vector.shape_cast %359 : vector<8xf32> to vector<8x1xf32>
    %361 = tpu.reciprocal %360 {approx = true} : vector<8x1xf32> -> vector<8x1xf32>
    %362 = vector.broadcast %361 : vector<8x1xf32> to vector<8x8xf32>
    %363 = arith.mulf %358, %362 : vector<8x8xf32>
    %364 = vector.extract_strided_slice %346 {offsets = [0, 0], sizes = [8, 16], strides = [1, 1]} : vector<8x32xf32> to vector<8x16xf32>
    %cst_118 = arith.constant dense<0.000000e+00> : vector<8x16xf32>
    %365 = tpu.matmul %363, %364, %cst_118 {dimension_numbers = #tpu.dot_dimension_numbers<[1], [0], [0], [1], [0, 0, 1, 1], [], []>} : vector<8x8xf32>, vector<8x16xf32>, vector<8x16xf32> -> vector<8x16xf32>
    %366 = vector.extract_strided_slice %344 {offsets = [0, 16], sizes = [8, 16], strides = [1, 1]} : vector<8x32xf32> to vector<8x16xf32>
    %367 = vector.extract_strided_slice %345 {offsets = [0, 16], sizes = [8, 16], strides = [1, 1]} : vector<8x32xf32> to vector<8x16xf32>
    %cst_119 = arith.constant dense<0.000000e+00> : vector<8x8xf32>
    %368 = tpu.matmul %366, %367, %cst_119 {dimension_numbers = #tpu.dot_dimension_numbers<[1], [1], [0], [0], [0, 0, 1, 0], [], []>} : vector<8x16xf32>, vector<8x16xf32>, vector<8x8xf32> -> vector<8x8xf32>
    %cst_120 = arith.constant 2.500000e-01 : f32
    %369 = vector.broadcast %cst_120 : f32 to vector<8x8xf32>
    %370 = arith.mulf %368, %369 : vector<8x8xf32>
    %371 = vector.broadcast %149 : vector<1x8xf32> to vector<8x8xf32>
    %372 = arith.addf %370, %371 : vector<8x8xf32>
    %cst_121 = arith.constant dense<0xFF800000> : vector<8xf32>
    %373 = vector.multi_reduction <maximumf>, %372, %cst_121 [1] : vector<8x8xf32> to vector<8xf32>
    %374 = vector.shape_cast %373 : vector<8xf32> to vector<8x1xf32>
    %375 = vector.broadcast %374 : vector<8x1xf32> to vector<8x8xf32>
    %376 = arith.subf %372, %375 : vector<8x8xf32>
    %377 = math.exp %376 : vector<8x8xf32>
    %cst_122 = arith.constant dense<0.000000e+00> : vector<8xf32>
    %378 = vector.multi_reduction <add>, %377, %cst_122 [1] : vector<8x8xf32> to vector<8xf32>
    %379 = vector.shape_cast %378 : vector<8xf32> to vector<8x1xf32>
    %380 = tpu.reciprocal %379 {approx = true} : vector<8x1xf32> -> vector<8x1xf32>
    %381 = vector.broadcast %380 : vector<8x1xf32> to vector<8x8xf32>
    %382 = arith.mulf %377, %381 : vector<8x8xf32>
    %383 = vector.extract_strided_slice %346 {offsets = [0, 16], sizes = [8, 16], strides = [1, 1]} : vector<8x32xf32> to vector<8x16xf32>
    %cst_123 = arith.constant dense<0.000000e+00> : vector<8x16xf32>
    %384 = tpu.matmul %382, %383, %cst_123 {dimension_numbers = #tpu.dot_dimension_numbers<[1], [0], [0], [1], [0, 0, 1, 1], [], []>} : vector<8x8xf32>, vector<8x16xf32>, vector<8x16xf32> -> vector<8x16xf32>
    %385 = tpu.concatenate %365, %384 in 1 : vector<8x16xf32>, vector<8x16xf32> -> vector<8x32xf32>
    %386 = tpu.concatenate %343, %385 in 0 : vector<8x32xf32>, vector<8x32xf32> -> vector<16x32xf32>
    %c1_124 = arith.constant 1 : index
    %c0_125 = arith.constant 0 : index
    %c0_126 = arith.constant 0 : index
    %387 = vector.load %arg10[%c1_124, %c0_125, %c0_126] : memref<8x32x32xf32, #tpu.memory_space<vmem>>, vector<1x32x32xf32>
    %388 = vector.shape_cast %387 : vector<1x32x32xf32> to vector<32x32xf32>
    %cst_127 = arith.constant dense<0.000000e+00> : vector<16x32xf32>
    %389 = tpu.matmul %386, %388, %cst_127 {dimension_numbers = #tpu.dot_dimension_numbers<[1], [0], [0], [1], [0, 0, 1, 1], [], []>} : vector<16x32xf32>, vector<32x32xf32>, vector<16x32xf32> -> vector<16x32xf32>
    %c11 = arith.constant 11 : index
    %c0_128 = arith.constant 0 : index
    %390 = vector.load %arg8[%c11, %c0_128] : memref<46x32xf32, #tpu.memory_space<vmem>>, vector<1x32xf32>
    %391 = vector.broadcast %390 : vector<1x32xf32> to vector<16x32xf32>
    %392 = arith.addf %389, %391 : vector<16x32xf32>
    %393 = arith.addf %137, %392 : vector<16x32xf32>
    %c18 = arith.constant 18 : index
    %c0_129 = arith.constant 0 : index
    %394 = vector.load %arg8[%c18, %c0_129] : memref<46x32xf32, #tpu.memory_space<vmem>>, vector<1x32xf32>
    %c19 = arith.constant 19 : index
    %c0_130 = arith.constant 0 : index
    %395 = vector.load %arg8[%c19, %c0_130] : memref<46x32xf32, #tpu.memory_space<vmem>>, vector<1x32xf32>
    %cst_131 = arith.constant dense<0.000000e+00> : vector<32xf32>
    %396 = vector.multi_reduction <add>, %271, %cst_131 [1] : vector<32x32xf32> to vector<32xf32>
    %397 = vector.shape_cast %396 : vector<32xf32> to vector<32x1xf32>
    %cst_132 = arith.constant 3.200000e+01 : f32
    %398 = vector.broadcast %cst_132 : f32 to vector<32x1xf32>
    %399 = arith.divf %397, %398 : vector<32x1xf32>
    %400 = vector.broadcast %399 : vector<32x1xf32> to vector<32x32xf32>
    %401 = arith.subf %271, %400 : vector<32x32xf32>
    %402 = arith.mulf %401, %401 : vector<32x32xf32>
    %cst_133 = arith.constant dense<0.000000e+00> : vector<32xf32>
    %403 = vector.multi_reduction <add>, %402, %cst_133 [1] : vector<32x32xf32> to vector<32xf32>
    %404 = vector.shape_cast %403 : vector<32xf32> to vector<32x1xf32>
    %cst_134 = arith.constant 3.200000e+01 : f32
    %405 = vector.broadcast %cst_134 : f32 to vector<32x1xf32>
    %406 = arith.divf %404, %405 : vector<32x1xf32>
    %407 = vector.broadcast %399 : vector<32x1xf32> to vector<32x32xf32>
    %408 = arith.subf %271, %407 : vector<32x32xf32>
    %cst_135 = arith.constant 9.99999974E-6 : f32
    %409 = vector.broadcast %cst_135 : f32 to vector<32x1xf32>
    %410 = arith.addf %406, %409 : vector<32x1xf32>
    %411 = math.rsqrt %410 : vector<32x1xf32>
    %412 = vector.broadcast %411 : vector<32x1xf32> to vector<32x32xf32>
    %413 = arith.mulf %408, %412 : vector<32x32xf32>
    %414 = vector.broadcast %394 : vector<1x32xf32> to vector<32x32xf32>
    %415 = arith.mulf %413, %414 : vector<32x32xf32>
    %416 = vector.broadcast %395 : vector<1x32xf32> to vector<32x32xf32>
    %417 = arith.addf %415, %416 : vector<32x32xf32>
    %c4_136 = arith.constant 4 : index
    %c0_137 = arith.constant 0 : index
    %c0_138 = arith.constant 0 : index
    %418 = vector.load %arg9[%c4_136, %c0_137, %c0_138] : memref<8x32x96xf32, #tpu.memory_space<vmem>>, vector<1x32x96xf32>
    %419 = vector.shape_cast %418 : vector<1x32x96xf32> to vector<32x96xf32>
    %cst_139 = arith.constant dense<0.000000e+00> : vector<32x96xf32>
    %420 = tpu.matmul %417, %419, %cst_139 {dimension_numbers = #tpu.dot_dimension_numbers<[1], [0], [0], [1], [0, 0, 1, 1], [], []>} : vector<32x32xf32>, vector<32x96xf32>, vector<32x96xf32> -> vector<32x96xf32>
    %421 = vector.extract_strided_slice %420 {offsets = [0, 0], sizes = [32, 32], strides = [1, 1]} : vector<32x96xf32> to vector<32x32xf32>
    %422 = vector.extract_strided_slice %420 {offsets = [0, 32], sizes = [32, 32], strides = [1, 1]} : vector<32x96xf32> to vector<32x32xf32>
    %423 = vector.extract_strided_slice %420 {offsets = [0, 64], sizes = [32, 32], strides = [1, 1]} : vector<32x96xf32> to vector<32x32xf32>
    %c21 = arith.constant 21 : index
    %c0_140 = arith.constant 0 : index
    %424 = vector.load %arg8[%c21, %c0_140] : memref<46x32xf32, #tpu.memory_space<vmem>>, vector<1x32xf32>
    %c22 = arith.constant 22 : index
    %c0_141 = arith.constant 0 : index
    %425 = vector.load %arg8[%c22, %c0_141] : memref<46x32xf32, #tpu.memory_space<vmem>>, vector<1x32xf32>
    %cst_142 = arith.constant dense<0.000000e+00> : vector<16xf32>
    %426 = vector.multi_reduction <add>, %393, %cst_142 [1] : vector<16x32xf32> to vector<16xf32>
    %427 = vector.shape_cast %426 : vector<16xf32> to vector<16x1xf32>
    %cst_143 = arith.constant 3.200000e+01 : f32
    %428 = vector.broadcast %cst_143 : f32 to vector<16x1xf32>
    %429 = arith.divf %427, %428 : vector<16x1xf32>
    %430 = vector.broadcast %429 : vector<16x1xf32> to vector<16x32xf32>
    %431 = arith.subf %393, %430 : vector<16x32xf32>
    %432 = arith.mulf %431, %431 : vector<16x32xf32>
    %cst_144 = arith.constant dense<0.000000e+00> : vector<16xf32>
    %433 = vector.multi_reduction <add>, %432, %cst_144 [1] : vector<16x32xf32> to vector<16xf32>
    %434 = vector.shape_cast %433 : vector<16xf32> to vector<16x1xf32>
    %cst_145 = arith.constant 3.200000e+01 : f32
    %435 = vector.broadcast %cst_145 : f32 to vector<16x1xf32>
    %436 = arith.divf %434, %435 : vector<16x1xf32>
    %437 = vector.broadcast %429 : vector<16x1xf32> to vector<16x32xf32>
    %438 = arith.subf %393, %437 : vector<16x32xf32>
    %cst_146 = arith.constant 9.99999974E-6 : f32
    %439 = vector.broadcast %cst_146 : f32 to vector<16x1xf32>
    %440 = arith.addf %436, %439 : vector<16x1xf32>
    %441 = math.rsqrt %440 : vector<16x1xf32>
    %442 = vector.broadcast %441 : vector<16x1xf32> to vector<16x32xf32>
    %443 = arith.mulf %438, %442 : vector<16x32xf32>
    %444 = vector.broadcast %424 : vector<1x32xf32> to vector<16x32xf32>
    %445 = arith.mulf %443, %444 : vector<16x32xf32>
    %446 = vector.broadcast %425 : vector<1x32xf32> to vector<16x32xf32>
    %447 = arith.addf %445, %446 : vector<16x32xf32>
    %c5_147 = arith.constant 5 : index
    %c0_148 = arith.constant 0 : index
    %c0_149 = arith.constant 0 : index
    %448 = vector.load %arg9[%c5_147, %c0_148, %c0_149] : memref<8x32x96xf32, #tpu.memory_space<vmem>>, vector<1x32x96xf32>
    %449 = vector.shape_cast %448 : vector<1x32x96xf32> to vector<32x96xf32>
    %cst_150 = arith.constant dense<0.000000e+00> : vector<16x96xf32>
    %450 = tpu.matmul %447, %449, %cst_150 {dimension_numbers = #tpu.dot_dimension_numbers<[1], [0], [0], [1], [0, 0, 1, 1], [], []>} : vector<16x32xf32>, vector<32x96xf32>, vector<16x96xf32> -> vector<16x96xf32>
    %451 = vector.extract_strided_slice %450 {offsets = [0, 0], sizes = [16, 32], strides = [1, 1]} : vector<16x96xf32> to vector<16x32xf32>
    %452 = vector.extract_strided_slice %450 {offsets = [0, 32], sizes = [16, 32], strides = [1, 1]} : vector<16x96xf32> to vector<16x32xf32>
    %453 = vector.extract_strided_slice %450 {offsets = [0, 64], sizes = [16, 32], strides = [1, 1]} : vector<16x96xf32> to vector<16x32xf32>
    %454 = vector.extract_strided_slice %421 {offsets = [0, 0], sizes = [16, 32], strides = [1, 1]} : vector<32x32xf32> to vector<16x32xf32>
    %455 = vector.extract_strided_slice %452 {offsets = [0, 0], sizes = [8, 32], strides = [1, 1]} : vector<16x32xf32> to vector<8x32xf32>
    %456 = vector.extract_strided_slice %453 {offsets = [0, 0], sizes = [8, 32], strides = [1, 1]} : vector<16x32xf32> to vector<8x32xf32>
    %457 = vector.extract_strided_slice %454 {offsets = [0, 0], sizes = [16, 16], strides = [1, 1]} : vector<16x32xf32> to vector<16x16xf32>
    %458 = vector.extract_strided_slice %455 {offsets = [0, 0], sizes = [8, 16], strides = [1, 1]} : vector<8x32xf32> to vector<8x16xf32>
    %cst_151 = arith.constant dense<0.000000e+00> : vector<16x8xf32>
    %459 = tpu.matmul %457, %458, %cst_151 {dimension_numbers = #tpu.dot_dimension_numbers<[1], [1], [0], [0], [0, 0, 1, 0], [], []>} : vector<16x16xf32>, vector<8x16xf32>, vector<16x8xf32> -> vector<16x8xf32>
    %cst_152 = arith.constant 2.500000e-01 : f32
    %460 = vector.broadcast %cst_152 : f32 to vector<16x8xf32>
    %461 = arith.mulf %459, %460 : vector<16x8xf32>
    %462 = vector.broadcast %149 : vector<1x8xf32> to vector<16x8xf32>
    %463 = arith.addf %461, %462 : vector<16x8xf32>
    %cst_153 = arith.constant dense<0xFF800000> : vector<16xf32>
    %464 = vector.multi_reduction <maximumf>, %463, %cst_153 [1] : vector<16x8xf32> to vector<16xf32>
    %465 = vector.shape_cast %464 : vector<16xf32> to vector<16x1xf32>
    %466 = vector.broadcast %465 : vector<16x1xf32> to vector<16x8xf32>
    %467 = arith.subf %463, %466 : vector<16x8xf32>
    %468 = math.exp %467 : vector<16x8xf32>
    %cst_154 = arith.constant dense<0.000000e+00> : vector<16xf32>
    %469 = vector.multi_reduction <add>, %468, %cst_154 [1] : vector<16x8xf32> to vector<16xf32>
    %470 = vector.shape_cast %469 : vector<16xf32> to vector<16x1xf32>
    %471 = tpu.reciprocal %470 {approx = true} : vector<16x1xf32> -> vector<16x1xf32>
    %472 = vector.broadcast %471 : vector<16x1xf32> to vector<16x8xf32>
    %473 = arith.mulf %468, %472 : vector<16x8xf32>
    %474 = vector.extract_strided_slice %456 {offsets = [0, 0], sizes = [8, 16], strides = [1, 1]} : vector<8x32xf32> to vector<8x16xf32>
    %cst_155 = arith.constant dense<0.000000e+00> : vector<16x16xf32>
    %475 = tpu.matmul %473, %474, %cst_155 {dimension_numbers = #tpu.dot_dimension_numbers<[1], [0], [0], [1], [0, 0, 1, 1], [], []>} : vector<16x8xf32>, vector<8x16xf32>, vector<16x16xf32> -> vector<16x16xf32>
    %476 = vector.extract_strided_slice %454 {offsets = [0, 16], sizes = [16, 16], strides = [1, 1]} : vector<16x32xf32> to vector<16x16xf32>
    %477 = vector.extract_strided_slice %455 {offsets = [0, 16], sizes = [8, 16], strides = [1, 1]} : vector<8x32xf32> to vector<8x16xf32>
    %cst_156 = arith.constant dense<0.000000e+00> : vector<16x8xf32>
    %478 = tpu.matmul %476, %477, %cst_156 {dimension_numbers = #tpu.dot_dimension_numbers<[1], [1], [0], [0], [0, 0, 1, 0], [], []>} : vector<16x16xf32>, vector<8x16xf32>, vector<16x8xf32> -> vector<16x8xf32>
    %cst_157 = arith.constant 2.500000e-01 : f32
    %479 = vector.broadcast %cst_157 : f32 to vector<16x8xf32>
    %480 = arith.mulf %478, %479 : vector<16x8xf32>
    %481 = vector.broadcast %149 : vector<1x8xf32> to vector<16x8xf32>
    %482 = arith.addf %480, %481 : vector<16x8xf32>
    %cst_158 = arith.constant dense<0xFF800000> : vector<16xf32>
    %483 = vector.multi_reduction <maximumf>, %482, %cst_158 [1] : vector<16x8xf32> to vector<16xf32>
    %484 = vector.shape_cast %483 : vector<16xf32> to vector<16x1xf32>
    %485 = vector.broadcast %484 : vector<16x1xf32> to vector<16x8xf32>
    %486 = arith.subf %482, %485 : vector<16x8xf32>
    %487 = math.exp %486 : vector<16x8xf32>
    %cst_159 = arith.constant dense<0.000000e+00> : vector<16xf32>
    %488 = vector.multi_reduction <add>, %487, %cst_159 [1] : vector<16x8xf32> to vector<16xf32>
    %489 = vector.shape_cast %488 : vector<16xf32> to vector<16x1xf32>
    %490 = tpu.reciprocal %489 {approx = true} : vector<16x1xf32> -> vector<16x1xf32>
    %491 = vector.broadcast %490 : vector<16x1xf32> to vector<16x8xf32>
    %492 = arith.mulf %487, %491 : vector<16x8xf32>
    %493 = vector.extract_strided_slice %456 {offsets = [0, 16], sizes = [8, 16], strides = [1, 1]} : vector<8x32xf32> to vector<8x16xf32>
    %cst_160 = arith.constant dense<0.000000e+00> : vector<16x16xf32>
    %494 = tpu.matmul %492, %493, %cst_160 {dimension_numbers = #tpu.dot_dimension_numbers<[1], [0], [0], [1], [0, 0, 1, 1], [], []>} : vector<16x8xf32>, vector<8x16xf32>, vector<16x16xf32> -> vector<16x16xf32>
    %495 = tpu.concatenate %475, %494 in 1 : vector<16x16xf32>, vector<16x16xf32> -> vector<16x32xf32>
    %496 = vector.extract_strided_slice %421 {offsets = [16, 0], sizes = [16, 32], strides = [1, 1]} : vector<32x32xf32> to vector<16x32xf32>
    %497 = vector.extract_strided_slice %452 {offsets = [8, 0], sizes = [8, 32], strides = [1, 1]} : vector<16x32xf32> to vector<8x32xf32>
    %498 = vector.extract_strided_slice %453 {offsets = [8, 0], sizes = [8, 32], strides = [1, 1]} : vector<16x32xf32> to vector<8x32xf32>
    %499 = vector.extract_strided_slice %496 {offsets = [0, 0], sizes = [16, 16], strides = [1, 1]} : vector<16x32xf32> to vector<16x16xf32>
    %500 = vector.extract_strided_slice %497 {offsets = [0, 0], sizes = [8, 16], strides = [1, 1]} : vector<8x32xf32> to vector<8x16xf32>
    %cst_161 = arith.constant dense<0.000000e+00> : vector<16x8xf32>
    %501 = tpu.matmul %499, %500, %cst_161 {dimension_numbers = #tpu.dot_dimension_numbers<[1], [1], [0], [0], [0, 0, 1, 0], [], []>} : vector<16x16xf32>, vector<8x16xf32>, vector<16x8xf32> -> vector<16x8xf32>
    %cst_162 = arith.constant 2.500000e-01 : f32
    %502 = vector.broadcast %cst_162 : f32 to vector<16x8xf32>
    %503 = arith.mulf %501, %502 : vector<16x8xf32>
    %504 = vector.broadcast %149 : vector<1x8xf32> to vector<16x8xf32>
    %505 = arith.addf %503, %504 : vector<16x8xf32>
    %cst_163 = arith.constant dense<0xFF800000> : vector<16xf32>
    %506 = vector.multi_reduction <maximumf>, %505, %cst_163 [1] : vector<16x8xf32> to vector<16xf32>
    %507 = vector.shape_cast %506 : vector<16xf32> to vector<16x1xf32>
    %508 = vector.broadcast %507 : vector<16x1xf32> to vector<16x8xf32>
    %509 = arith.subf %505, %508 : vector<16x8xf32>
    %510 = math.exp %509 : vector<16x8xf32>
    %cst_164 = arith.constant dense<0.000000e+00> : vector<16xf32>
    %511 = vector.multi_reduction <add>, %510, %cst_164 [1] : vector<16x8xf32> to vector<16xf32>
    %512 = vector.shape_cast %511 : vector<16xf32> to vector<16x1xf32>
    %513 = tpu.reciprocal %512 {approx = true} : vector<16x1xf32> -> vector<16x1xf32>
    %514 = vector.broadcast %513 : vector<16x1xf32> to vector<16x8xf32>
    %515 = arith.mulf %510, %514 : vector<16x8xf32>
    %516 = vector.extract_strided_slice %498 {offsets = [0, 0], sizes = [8, 16], strides = [1, 1]} : vector<8x32xf32> to vector<8x16xf32>
    %cst_165 = arith.constant dense<0.000000e+00> : vector<16x16xf32>
    %517 = tpu.matmul %515, %516, %cst_165 {dimension_numbers = #tpu.dot_dimension_numbers<[1], [0], [0], [1], [0, 0, 1, 1], [], []>} : vector<16x8xf32>, vector<8x16xf32>, vector<16x16xf32> -> vector<16x16xf32>
    %518 = vector.extract_strided_slice %496 {offsets = [0, 16], sizes = [16, 16], strides = [1, 1]} : vector<16x32xf32> to vector<16x16xf32>
    %519 = vector.extract_strided_slice %497 {offsets = [0, 16], sizes = [8, 16], strides = [1, 1]} : vector<8x32xf32> to vector<8x16xf32>
    %cst_166 = arith.constant dense<0.000000e+00> : vector<16x8xf32>
    %520 = tpu.matmul %518, %519, %cst_166 {dimension_numbers = #tpu.dot_dimension_numbers<[1], [1], [0], [0], [0, 0, 1, 0], [], []>} : vector<16x16xf32>, vector<8x16xf32>, vector<16x8xf32> -> vector<16x8xf32>
    %cst_167 = arith.constant 2.500000e-01 : f32
    %521 = vector.broadcast %cst_167 : f32 to vector<16x8xf32>
    %522 = arith.mulf %520, %521 : vector<16x8xf32>
    %523 = vector.broadcast %149 : vector<1x8xf32> to vector<16x8xf32>
    %524 = arith.addf %522, %523 : vector<16x8xf32>
    %cst_168 = arith.constant dense<0xFF800000> : vector<16xf32>
    %525 = vector.multi_reduction <maximumf>, %524, %cst_168 [1] : vector<16x8xf32> to vector<16xf32>
    %526 = vector.shape_cast %525 : vector<16xf32> to vector<16x1xf32>
    %527 = vector.broadcast %526 : vector<16x1xf32> to vector<16x8xf32>
    %528 = arith.subf %524, %527 : vector<16x8xf32>
    %529 = math.exp %528 : vector<16x8xf32>
    %cst_169 = arith.constant dense<0.000000e+00> : vector<16xf32>
    %530 = vector.multi_reduction <add>, %529, %cst_169 [1] : vector<16x8xf32> to vector<16xf32>
    %531 = vector.shape_cast %530 : vector<16xf32> to vector<16x1xf32>
    %532 = tpu.reciprocal %531 {approx = true} : vector<16x1xf32> -> vector<16x1xf32>
    %533 = vector.broadcast %532 : vector<16x1xf32> to vector<16x8xf32>
    %534 = arith.mulf %529, %533 : vector<16x8xf32>
    %535 = vector.extract_strided_slice %498 {offsets = [0, 16], sizes = [8, 16], strides = [1, 1]} : vector<8x32xf32> to vector<8x16xf32>
    %cst_170 = arith.constant dense<0.000000e+00> : vector<16x16xf32>
    %536 = tpu.matmul %534, %535, %cst_170 {dimension_numbers = #tpu.dot_dimension_numbers<[1], [0], [0], [1], [0, 0, 1, 1], [], []>} : vector<16x8xf32>, vector<8x16xf32>, vector<16x16xf32> -> vector<16x16xf32>
    %537 = tpu.concatenate %517, %536 in 1 : vector<16x16xf32>, vector<16x16xf32> -> vector<16x32xf32>
    %538 = tpu.concatenate %495, %537 in 0 : vector<16x32xf32>, vector<16x32xf32> -> vector<32x32xf32>
    %c4_171 = arith.constant 4 : index
    %c0_172 = arith.constant 0 : index
    %c0_173 = arith.constant 0 : index
    %539 = vector.load %arg10[%c4_171, %c0_172, %c0_173] : memref<8x32x32xf32, #tpu.memory_space<vmem>>, vector<1x32x32xf32>
    %540 = vector.shape_cast %539 : vector<1x32x32xf32> to vector<32x32xf32>
    %cst_174 = arith.constant dense<0.000000e+00> : vector<32x32xf32>
    %541 = tpu.matmul %538, %540, %cst_174 {dimension_numbers = #tpu.dot_dimension_numbers<[1], [0], [0], [1], [0, 0, 1, 1], [], []>} : vector<32x32xf32>, vector<32x32xf32>, vector<32x32xf32> -> vector<32x32xf32>
    %c20 = arith.constant 20 : index
    %c0_175 = arith.constant 0 : index
    %542 = vector.load %arg8[%c20, %c0_175] : memref<46x32xf32, #tpu.memory_space<vmem>>, vector<1x32xf32>
    %543 = vector.broadcast %542 : vector<1x32xf32> to vector<32x32xf32>
    %544 = arith.addf %541, %543 : vector<32x32xf32>
    %545 = vector.extract_strided_slice %451 {offsets = [0, 0], sizes = [8, 32], strides = [1, 1]} : vector<16x32xf32> to vector<8x32xf32>
    %546 = vector.extract_strided_slice %422 {offsets = [0, 0], sizes = [16, 32], strides = [1, 1]} : vector<32x32xf32> to vector<16x32xf32>
    %547 = vector.extract_strided_slice %423 {offsets = [0, 0], sizes = [16, 32], strides = [1, 1]} : vector<32x32xf32> to vector<16x32xf32>
    %548 = vector.extract_strided_slice %545 {offsets = [0, 0], sizes = [8, 16], strides = [1, 1]} : vector<8x32xf32> to vector<8x16xf32>
    %549 = vector.extract_strided_slice %546 {offsets = [0, 0], sizes = [16, 16], strides = [1, 1]} : vector<16x32xf32> to vector<16x16xf32>
    %cst_176 = arith.constant dense<0.000000e+00> : vector<8x16xf32>
    %550 = tpu.matmul %548, %549, %cst_176 {dimension_numbers = #tpu.dot_dimension_numbers<[1], [1], [0], [0], [0, 0, 1, 0], [], []>} : vector<8x16xf32>, vector<16x16xf32>, vector<8x16xf32> -> vector<8x16xf32>
    %cst_177 = arith.constant 2.500000e-01 : f32
    %551 = vector.broadcast %cst_177 : f32 to vector<8x16xf32>
    %552 = arith.mulf %550, %551 : vector<8x16xf32>
    %553 = vector.broadcast %143 : vector<1x16xf32> to vector<8x16xf32>
    %554 = arith.addf %552, %553 : vector<8x16xf32>
    %cst_178 = arith.constant dense<0xFF800000> : vector<8xf32>
    %555 = vector.multi_reduction <maximumf>, %554, %cst_178 [1] : vector<8x16xf32> to vector<8xf32>
    %556 = vector.shape_cast %555 : vector<8xf32> to vector<8x1xf32>
    %557 = vector.broadcast %556 : vector<8x1xf32> to vector<8x16xf32>
    %558 = arith.subf %554, %557 : vector<8x16xf32>
    %559 = math.exp %558 : vector<8x16xf32>
    %cst_179 = arith.constant dense<0.000000e+00> : vector<8xf32>
    %560 = vector.multi_reduction <add>, %559, %cst_179 [1] : vector<8x16xf32> to vector<8xf32>
    %561 = vector.shape_cast %560 : vector<8xf32> to vector<8x1xf32>
    %562 = tpu.reciprocal %561 {approx = true} : vector<8x1xf32> -> vector<8x1xf32>
    %563 = vector.broadcast %562 : vector<8x1xf32> to vector<8x16xf32>
    %564 = arith.mulf %559, %563 : vector<8x16xf32>
    %565 = vector.extract_strided_slice %547 {offsets = [0, 0], sizes = [16, 16], strides = [1, 1]} : vector<16x32xf32> to vector<16x16xf32>
    %cst_180 = arith.constant dense<0.000000e+00> : vector<8x16xf32>
    %566 = tpu.matmul %564, %565, %cst_180 {dimension_numbers = #tpu.dot_dimension_numbers<[1], [0], [0], [1], [0, 0, 1, 1], [], []>} : vector<8x16xf32>, vector<16x16xf32>, vector<8x16xf32> -> vector<8x16xf32>
    %567 = vector.extract_strided_slice %545 {offsets = [0, 16], sizes = [8, 16], strides = [1, 1]} : vector<8x32xf32> to vector<8x16xf32>
    %568 = vector.extract_strided_slice %546 {offsets = [0, 16], sizes = [16, 16], strides = [1, 1]} : vector<16x32xf32> to vector<16x16xf32>
    %cst_181 = arith.constant dense<0.000000e+00> : vector<8x16xf32>
    %569 = tpu.matmul %567, %568, %cst_181 {dimension_numbers = #tpu.dot_dimension_numbers<[1], [1], [0], [0], [0, 0, 1, 0], [], []>} : vector<8x16xf32>, vector<16x16xf32>, vector<8x16xf32> -> vector<8x16xf32>
    %cst_182 = arith.constant 2.500000e-01 : f32
    %570 = vector.broadcast %cst_182 : f32 to vector<8x16xf32>
    %571 = arith.mulf %569, %570 : vector<8x16xf32>
    %572 = vector.broadcast %143 : vector<1x16xf32> to vector<8x16xf32>
    %573 = arith.addf %571, %572 : vector<8x16xf32>
    %cst_183 = arith.constant dense<0xFF800000> : vector<8xf32>
    %574 = vector.multi_reduction <maximumf>, %573, %cst_183 [1] : vector<8x16xf32> to vector<8xf32>
    %575 = vector.shape_cast %574 : vector<8xf32> to vector<8x1xf32>
    %576 = vector.broadcast %575 : vector<8x1xf32> to vector<8x16xf32>
    %577 = arith.subf %573, %576 : vector<8x16xf32>
    %578 = math.exp %577 : vector<8x16xf32>
    %cst_184 = arith.constant dense<0.000000e+00> : vector<8xf32>
    %579 = vector.multi_reduction <add>, %578, %cst_184 [1] : vector<8x16xf32> to vector<8xf32>
    %580 = vector.shape_cast %579 : vector<8xf32> to vector<8x1xf32>
    %581 = tpu.reciprocal %580 {approx = true} : vector<8x1xf32> -> vector<8x1xf32>
    %582 = vector.broadcast %581 : vector<8x1xf32> to vector<8x16xf32>
    %583 = arith.mulf %578, %582 : vector<8x16xf32>
    %584 = vector.extract_strided_slice %547 {offsets = [0, 16], sizes = [16, 16], strides = [1, 1]} : vector<16x32xf32> to vector<16x16xf32>
    %cst_185 = arith.constant dense<0.000000e+00> : vector<8x16xf32>
    %585 = tpu.matmul %583, %584, %cst_185 {dimension_numbers = #tpu.dot_dimension_numbers<[1], [0], [0], [1], [0, 0, 1, 1], [], []>} : vector<8x16xf32>, vector<16x16xf32>, vector<8x16xf32> -> vector<8x16xf32>
    %586 = tpu.concatenate %566, %585 in 1 : vector<8x16xf32>, vector<8x16xf32> -> vector<8x32xf32>
    %587 = vector.extract_strided_slice %451 {offsets = [8, 0], sizes = [8, 32], strides = [1, 1]} : vector<16x32xf32> to vector<8x32xf32>
    %588 = vector.extract_strided_slice %422 {offsets = [16, 0], sizes = [16, 32], strides = [1, 1]} : vector<32x32xf32> to vector<16x32xf32>
    %589 = vector.extract_strided_slice %423 {offsets = [16, 0], sizes = [16, 32], strides = [1, 1]} : vector<32x32xf32> to vector<16x32xf32>
    %590 = vector.extract_strided_slice %587 {offsets = [0, 0], sizes = [8, 16], strides = [1, 1]} : vector<8x32xf32> to vector<8x16xf32>
    %591 = vector.extract_strided_slice %588 {offsets = [0, 0], sizes = [16, 16], strides = [1, 1]} : vector<16x32xf32> to vector<16x16xf32>
    %cst_186 = arith.constant dense<0.000000e+00> : vector<8x16xf32>
    %592 = tpu.matmul %590, %591, %cst_186 {dimension_numbers = #tpu.dot_dimension_numbers<[1], [1], [0], [0], [0, 0, 1, 0], [], []>} : vector<8x16xf32>, vector<16x16xf32>, vector<8x16xf32> -> vector<8x16xf32>
    %cst_187 = arith.constant 2.500000e-01 : f32
    %593 = vector.broadcast %cst_187 : f32 to vector<8x16xf32>
    %594 = arith.mulf %592, %593 : vector<8x16xf32>
    %595 = vector.broadcast %143 : vector<1x16xf32> to vector<8x16xf32>
    %596 = arith.addf %594, %595 : vector<8x16xf32>
    %cst_188 = arith.constant dense<0xFF800000> : vector<8xf32>
    %597 = vector.multi_reduction <maximumf>, %596, %cst_188 [1] : vector<8x16xf32> to vector<8xf32>
    %598 = vector.shape_cast %597 : vector<8xf32> to vector<8x1xf32>
    %599 = vector.broadcast %598 : vector<8x1xf32> to vector<8x16xf32>
    %600 = arith.subf %596, %599 : vector<8x16xf32>
    %601 = math.exp %600 : vector<8x16xf32>
    %cst_189 = arith.constant dense<0.000000e+00> : vector<8xf32>
    %602 = vector.multi_reduction <add>, %601, %cst_189 [1] : vector<8x16xf32> to vector<8xf32>
    %603 = vector.shape_cast %602 : vector<8xf32> to vector<8x1xf32>
    %604 = tpu.reciprocal %603 {approx = true} : vector<8x1xf32> -> vector<8x1xf32>
    %605 = vector.broadcast %604 : vector<8x1xf32> to vector<8x16xf32>
    %606 = arith.mulf %601, %605 : vector<8x16xf32>
    %607 = vector.extract_strided_slice %589 {offsets = [0, 0], sizes = [16, 16], strides = [1, 1]} : vector<16x32xf32> to vector<16x16xf32>
    %cst_190 = arith.constant dense<0.000000e+00> : vector<8x16xf32>
    %608 = tpu.matmul %606, %607, %cst_190 {dimension_numbers = #tpu.dot_dimension_numbers<[1], [0], [0], [1], [0, 0, 1, 1], [], []>} : vector<8x16xf32>, vector<16x16xf32>, vector<8x16xf32> -> vector<8x16xf32>
    %609 = vector.extract_strided_slice %587 {offsets = [0, 16], sizes = [8, 16], strides = [1, 1]} : vector<8x32xf32> to vector<8x16xf32>
    %610 = vector.extract_strided_slice %588 {offsets = [0, 16], sizes = [16, 16], strides = [1, 1]} : vector<16x32xf32> to vector<16x16xf32>
    %cst_191 = arith.constant dense<0.000000e+00> : vector<8x16xf32>
    %611 = tpu.matmul %609, %610, %cst_191 {dimension_numbers = #tpu.dot_dimension_numbers<[1], [1], [0], [0], [0, 0, 1, 0], [], []>} : vector<8x16xf32>, vector<16x16xf32>, vector<8x16xf32> -> vector<8x16xf32>
    %cst_192 = arith.constant 2.500000e-01 : f32
    %612 = vector.broadcast %cst_192 : f32 to vector<8x16xf32>
    %613 = arith.mulf %611, %612 : vector<8x16xf32>
    %614 = vector.broadcast %143 : vector<1x16xf32> to vector<8x16xf32>
    %615 = arith.addf %613, %614 : vector<8x16xf32>
    %cst_193 = arith.constant dense<0xFF800000> : vector<8xf32>
    %616 = vector.multi_reduction <maximumf>, %615, %cst_193 [1] : vector<8x16xf32> to vector<8xf32>
    %617 = vector.shape_cast %616 : vector<8xf32> to vector<8x1xf32>
    %618 = vector.broadcast %617 : vector<8x1xf32> to vector<8x16xf32>
    %619 = arith.subf %615, %618 : vector<8x16xf32>
    %620 = math.exp %619 : vector<8x16xf32>
    %cst_194 = arith.constant dense<0.000000e+00> : vector<8xf32>
    %621 = vector.multi_reduction <add>, %620, %cst_194 [1] : vector<8x16xf32> to vector<8xf32>
    %622 = vector.shape_cast %621 : vector<8xf32> to vector<8x1xf32>
    %623 = tpu.reciprocal %622 {approx = true} : vector<8x1xf32> -> vector<8x1xf32>
    %624 = vector.broadcast %623 : vector<8x1xf32> to vector<8x16xf32>
    %625 = arith.mulf %620, %624 : vector<8x16xf32>
    %626 = vector.extract_strided_slice %589 {offsets = [0, 16], sizes = [16, 16], strides = [1, 1]} : vector<16x32xf32> to vector<16x16xf32>
    %cst_195 = arith.constant dense<0.000000e+00> : vector<8x16xf32>
    %627 = tpu.matmul %625, %626, %cst_195 {dimension_numbers = #tpu.dot_dimension_numbers<[1], [0], [0], [1], [0, 0, 1, 1], [], []>} : vector<8x16xf32>, vector<16x16xf32>, vector<8x16xf32> -> vector<8x16xf32>
    %628 = tpu.concatenate %608, %627 in 1 : vector<8x16xf32>, vector<8x16xf32> -> vector<8x32xf32>
    %629 = tpu.concatenate %586, %628 in 0 : vector<8x32xf32>, vector<8x32xf32> -> vector<16x32xf32>
    %c5_196 = arith.constant 5 : index
    %c0_197 = arith.constant 0 : index
    %c0_198 = arith.constant 0 : index
    %630 = vector.load %arg10[%c5_196, %c0_197, %c0_198] : memref<8x32x32xf32, #tpu.memory_space<vmem>>, vector<1x32x32xf32>
    %631 = vector.shape_cast %630 : vector<1x32x32xf32> to vector<32x32xf32>
    %cst_199 = arith.constant dense<0.000000e+00> : vector<16x32xf32>
    %632 = tpu.matmul %629, %631, %cst_199 {dimension_numbers = #tpu.dot_dimension_numbers<[1], [0], [0], [1], [0, 0, 1, 1], [], []>} : vector<16x32xf32>, vector<32x32xf32>, vector<16x32xf32> -> vector<16x32xf32>
    %c23 = arith.constant 23 : index
    %c0_200 = arith.constant 0 : index
    %633 = vector.load %arg8[%c23, %c0_200] : memref<46x32xf32, #tpu.memory_space<vmem>>, vector<1x32xf32>
    %634 = vector.broadcast %633 : vector<1x32xf32> to vector<16x32xf32>
    %635 = arith.addf %632, %634 : vector<16x32xf32>
    %636 = arith.addf %271, %544 : vector<32x32xf32>
    %637 = arith.addf %393, %635 : vector<16x32xf32>
    %c30 = arith.constant 30 : index
    %c0_201 = arith.constant 0 : index
    %638 = vector.load %arg8[%c30, %c0_201] : memref<46x32xf32, #tpu.memory_space<vmem>>, vector<1x32xf32>
    %c31 = arith.constant 31 : index
    %c0_202 = arith.constant 0 : index
    %639 = vector.load %arg8[%c31, %c0_202] : memref<46x32xf32, #tpu.memory_space<vmem>>, vector<1x32xf32>
    %cst_203 = arith.constant dense<0.000000e+00> : vector<32xf32>
    %640 = vector.multi_reduction <add>, %636, %cst_203 [1] : vector<32x32xf32> to vector<32xf32>
    %641 = vector.shape_cast %640 : vector<32xf32> to vector<32x1xf32>
    %cst_204 = arith.constant 3.200000e+01 : f32
    %642 = vector.broadcast %cst_204 : f32 to vector<32x1xf32>
    %643 = arith.divf %641, %642 : vector<32x1xf32>
    %644 = vector.broadcast %643 : vector<32x1xf32> to vector<32x32xf32>
    %645 = arith.subf %636, %644 : vector<32x32xf32>
    %646 = arith.mulf %645, %645 : vector<32x32xf32>
    %cst_205 = arith.constant dense<0.000000e+00> : vector<32xf32>
    %647 = vector.multi_reduction <add>, %646, %cst_205 [1] : vector<32x32xf32> to vector<32xf32>
    %648 = vector.shape_cast %647 : vector<32xf32> to vector<32x1xf32>
    %cst_206 = arith.constant 3.200000e+01 : f32
    %649 = vector.broadcast %cst_206 : f32 to vector<32x1xf32>
    %650 = arith.divf %648, %649 : vector<32x1xf32>
    %651 = vector.broadcast %643 : vector<32x1xf32> to vector<32x32xf32>
    %652 = arith.subf %636, %651 : vector<32x32xf32>
    %cst_207 = arith.constant 9.99999974E-6 : f32
    %653 = vector.broadcast %cst_207 : f32 to vector<32x1xf32>
    %654 = arith.addf %650, %653 : vector<32x1xf32>
    %655 = math.rsqrt %654 : vector<32x1xf32>
    %656 = vector.broadcast %655 : vector<32x1xf32> to vector<32x32xf32>
    %657 = arith.mulf %652, %656 : vector<32x32xf32>
    %658 = vector.broadcast %638 : vector<1x32xf32> to vector<32x32xf32>
    %659 = arith.mulf %657, %658 : vector<32x32xf32>
    %660 = vector.broadcast %639 : vector<1x32xf32> to vector<32x32xf32>
    %661 = arith.addf %659, %660 : vector<32x32xf32>
    %c0_208 = arith.constant 0 : index
    %c0_209 = arith.constant 0 : index
    %c0_210 = arith.constant 0 : index
    %662 = vector.load %arg11[%c0_208, %c0_209, %c0_210] : memref<4x32x64xf32, #tpu.memory_space<vmem>>, vector<1x32x64xf32>
    %663 = vector.shape_cast %662 : vector<1x32x64xf32> to vector<32x64xf32>
    %cst_211 = arith.constant dense<0.000000e+00> : vector<32x64xf32>
    %664 = tpu.matmul %661, %663, %cst_211 {dimension_numbers = #tpu.dot_dimension_numbers<[1], [0], [0], [1], [0, 0, 1, 1], [], []>} : vector<32x32xf32>, vector<32x64xf32>, vector<32x64xf32> -> vector<32x64xf32>
    %c0_212 = arith.constant 0 : index
    %c0_213 = arith.constant 0 : index
    %665 = vector.load %arg13[%c0_212, %c0_213] : memref<4x64xf32, #tpu.memory_space<vmem>>, vector<1x64xf32>
    %666 = vector.broadcast %665 : vector<1x64xf32> to vector<32x64xf32>
    %667 = arith.addf %664, %666 : vector<32x64xf32>
    %cst_214 = arith.constant 5.000000e-01 : f32
    %668 = vector.broadcast %cst_214 : f32 to vector<32x64xf32>
    %669 = arith.mulf %668, %667 : vector<32x64xf32>
    %cst_215 = arith.constant 0.707106769 : f32
    %670 = vector.broadcast %cst_215 : f32 to vector<32x64xf32>
    %671 = arith.mulf %667, %670 : vector<32x64xf32>
    %672 = math.erf %671 : vector<32x64xf32>
    %cst_216 = arith.constant 1.000000e+00 : f32
    %673 = vector.broadcast %cst_216 : f32 to vector<32x64xf32>
    %674 = arith.addf %673, %672 : vector<32x64xf32>
    %675 = arith.mulf %669, %674 : vector<32x64xf32>
    %c0_217 = arith.constant 0 : index
    %c0_218 = arith.constant 0 : index
    %c0_219 = arith.constant 0 : index
    %676 = vector.load %arg12[%c0_217, %c0_218, %c0_219] : memref<4x64x32xf32, #tpu.memory_space<vmem>>, vector<1x64x32xf32>
    %677 = vector.shape_cast %676 : vector<1x64x32xf32> to vector<64x32xf32>
    %cst_220 = arith.constant dense<0.000000e+00> : vector<32x32xf32>
    %678 = tpu.matmul %675, %677, %cst_220 {dimension_numbers = #tpu.dot_dimension_numbers<[1], [0], [0], [1], [0, 0, 1, 1], [], []>} : vector<32x64xf32>, vector<64x32xf32>, vector<32x32xf32> -> vector<32x32xf32>
    %c32 = arith.constant 32 : index
    %c0_221 = arith.constant 0 : index
    %679 = vector.load %arg8[%c32, %c0_221] : memref<46x32xf32, #tpu.memory_space<vmem>>, vector<1x32xf32>
    %680 = vector.broadcast %679 : vector<1x32xf32> to vector<32x32xf32>
    %681 = arith.addf %678, %680 : vector<32x32xf32>
    %682 = arith.addf %636, %681 : vector<32x32xf32>
    %c33 = arith.constant 33 : index
    %c0_222 = arith.constant 0 : index
    %683 = vector.load %arg8[%c33, %c0_222] : memref<46x32xf32, #tpu.memory_space<vmem>>, vector<1x32xf32>
    %c34 = arith.constant 34 : index
    %c0_223 = arith.constant 0 : index
    %684 = vector.load %arg8[%c34, %c0_223] : memref<46x32xf32, #tpu.memory_space<vmem>>, vector<1x32xf32>
    %cst_224 = arith.constant dense<0.000000e+00> : vector<16xf32>
    %685 = vector.multi_reduction <add>, %637, %cst_224 [1] : vector<16x32xf32> to vector<16xf32>
    %686 = vector.shape_cast %685 : vector<16xf32> to vector<16x1xf32>
    %cst_225 = arith.constant 3.200000e+01 : f32
    %687 = vector.broadcast %cst_225 : f32 to vector<16x1xf32>
    %688 = arith.divf %686, %687 : vector<16x1xf32>
    %689 = vector.broadcast %688 : vector<16x1xf32> to vector<16x32xf32>
    %690 = arith.subf %637, %689 : vector<16x32xf32>
    %691 = arith.mulf %690, %690 : vector<16x32xf32>
    %cst_226 = arith.constant dense<0.000000e+00> : vector<16xf32>
    %692 = vector.multi_reduction <add>, %691, %cst_226 [1] : vector<16x32xf32> to vector<16xf32>
    %693 = vector.shape_cast %692 : vector<16xf32> to vector<16x1xf32>
    %cst_227 = arith.constant 3.200000e+01 : f32
    %694 = vector.broadcast %cst_227 : f32 to vector<16x1xf32>
    %695 = arith.divf %693, %694 : vector<16x1xf32>
    %696 = vector.broadcast %688 : vector<16x1xf32> to vector<16x32xf32>
    %697 = arith.subf %637, %696 : vector<16x32xf32>
    %cst_228 = arith.constant 9.99999974E-6 : f32
    %698 = vector.broadcast %cst_228 : f32 to vector<16x1xf32>
    %699 = arith.addf %695, %698 : vector<16x1xf32>
    %700 = math.rsqrt %699 : vector<16x1xf32>
    %701 = vector.broadcast %700 : vector<16x1xf32> to vector<16x32xf32>
    %702 = arith.mulf %697, %701 : vector<16x32xf32>
    %703 = vector.broadcast %683 : vector<1x32xf32> to vector<16x32xf32>
    %704 = arith.mulf %702, %703 : vector<16x32xf32>
    %705 = vector.broadcast %684 : vector<1x32xf32> to vector<16x32xf32>
    %706 = arith.addf %704, %705 : vector<16x32xf32>
    %c1_229 = arith.constant 1 : index
    %c0_230 = arith.constant 0 : index
    %c0_231 = arith.constant 0 : index
    %707 = vector.load %arg11[%c1_229, %c0_230, %c0_231] : memref<4x32x64xf32, #tpu.memory_space<vmem>>, vector<1x32x64xf32>
    %708 = vector.shape_cast %707 : vector<1x32x64xf32> to vector<32x64xf32>
    %cst_232 = arith.constant dense<0.000000e+00> : vector<16x64xf32>
    %709 = tpu.matmul %706, %708, %cst_232 {dimension_numbers = #tpu.dot_dimension_numbers<[1], [0], [0], [1], [0, 0, 1, 1], [], []>} : vector<16x32xf32>, vector<32x64xf32>, vector<16x64xf32> -> vector<16x64xf32>
    %c1_233 = arith.constant 1 : index
    %c0_234 = arith.constant 0 : index
    %710 = vector.load %arg13[%c1_233, %c0_234] : memref<4x64xf32, #tpu.memory_space<vmem>>, vector<1x64xf32>
    %711 = vector.broadcast %710 : vector<1x64xf32> to vector<16x64xf32>
    %712 = arith.addf %709, %711 : vector<16x64xf32>
    %cst_235 = arith.constant 5.000000e-01 : f32
    %713 = vector.broadcast %cst_235 : f32 to vector<16x64xf32>
    %714 = arith.mulf %713, %712 : vector<16x64xf32>
    %cst_236 = arith.constant 0.707106769 : f32
    %715 = vector.broadcast %cst_236 : f32 to vector<16x64xf32>
    %716 = arith.mulf %712, %715 : vector<16x64xf32>
    %717 = math.erf %716 : vector<16x64xf32>
    %cst_237 = arith.constant 1.000000e+00 : f32
    %718 = vector.broadcast %cst_237 : f32 to vector<16x64xf32>
    %719 = arith.addf %718, %717 : vector<16x64xf32>
    %720 = arith.mulf %714, %719 : vector<16x64xf32>
    %c1_238 = arith.constant 1 : index
    %c0_239 = arith.constant 0 : index
    %c0_240 = arith.constant 0 : index
    %721 = vector.load %arg12[%c1_238, %c0_239, %c0_240] : memref<4x64x32xf32, #tpu.memory_space<vmem>>, vector<1x64x32xf32>
    %722 = vector.shape_cast %721 : vector<1x64x32xf32> to vector<64x32xf32>
    %cst_241 = arith.constant dense<0.000000e+00> : vector<16x32xf32>
    %723 = tpu.matmul %720, %722, %cst_241 {dimension_numbers = #tpu.dot_dimension_numbers<[1], [0], [0], [1], [0, 0, 1, 1], [], []>} : vector<16x64xf32>, vector<64x32xf32>, vector<16x32xf32> -> vector<16x32xf32>
    %c35 = arith.constant 35 : index
    %c0_242 = arith.constant 0 : index
    %724 = vector.load %arg8[%c35, %c0_242] : memref<46x32xf32, #tpu.memory_space<vmem>>, vector<1x32xf32>
    %725 = vector.broadcast %724 : vector<1x32xf32> to vector<16x32xf32>
    %726 = arith.addf %723, %725 : vector<16x32xf32>
    %727 = arith.addf %637, %726 : vector<16x32xf32>
    %c12 = arith.constant 12 : index
    %c0_243 = arith.constant 0 : index
    %728 = vector.load %arg8[%c12, %c0_243] : memref<46x32xf32, #tpu.memory_space<vmem>>, vector<1x32xf32>
    %c13 = arith.constant 13 : index
    %c0_244 = arith.constant 0 : index
    %729 = vector.load %arg8[%c13, %c0_244] : memref<46x32xf32, #tpu.memory_space<vmem>>, vector<1x32xf32>
    %cst_245 = arith.constant dense<0.000000e+00> : vector<32xf32>
    %730 = vector.multi_reduction <add>, %682, %cst_245 [1] : vector<32x32xf32> to vector<32xf32>
    %731 = vector.shape_cast %730 : vector<32xf32> to vector<32x1xf32>
    %cst_246 = arith.constant 3.200000e+01 : f32
    %732 = vector.broadcast %cst_246 : f32 to vector<32x1xf32>
    %733 = arith.divf %731, %732 : vector<32x1xf32>
    %734 = vector.broadcast %733 : vector<32x1xf32> to vector<32x32xf32>
    %735 = arith.subf %682, %734 : vector<32x32xf32>
    %736 = arith.mulf %735, %735 : vector<32x32xf32>
    %cst_247 = arith.constant dense<0.000000e+00> : vector<32xf32>
    %737 = vector.multi_reduction <add>, %736, %cst_247 [1] : vector<32x32xf32> to vector<32xf32>
    %738 = vector.shape_cast %737 : vector<32xf32> to vector<32x1xf32>
    %cst_248 = arith.constant 3.200000e+01 : f32
    %739 = vector.broadcast %cst_248 : f32 to vector<32x1xf32>
    %740 = arith.divf %738, %739 : vector<32x1xf32>
    %741 = vector.broadcast %733 : vector<32x1xf32> to vector<32x32xf32>
    %742 = arith.subf %682, %741 : vector<32x32xf32>
    %cst_249 = arith.constant 9.99999974E-6 : f32
    %743 = vector.broadcast %cst_249 : f32 to vector<32x1xf32>
    %744 = arith.addf %740, %743 : vector<32x1xf32>
    %745 = math.rsqrt %744 : vector<32x1xf32>
    %746 = vector.broadcast %745 : vector<32x1xf32> to vector<32x32xf32>
    %747 = arith.mulf %742, %746 : vector<32x32xf32>
    %748 = vector.broadcast %728 : vector<1x32xf32> to vector<32x32xf32>
    %749 = arith.mulf %747, %748 : vector<32x32xf32>
    %750 = vector.broadcast %729 : vector<1x32xf32> to vector<32x32xf32>
    %751 = arith.addf %749, %750 : vector<32x32xf32>
    %c2_250 = arith.constant 2 : index
    %c0_251 = arith.constant 0 : index
    %c0_252 = arith.constant 0 : index
    %752 = vector.load %arg9[%c2_250, %c0_251, %c0_252] : memref<8x32x96xf32, #tpu.memory_space<vmem>>, vector<1x32x96xf32>
    %753 = vector.shape_cast %752 : vector<1x32x96xf32> to vector<32x96xf32>
    %cst_253 = arith.constant dense<0.000000e+00> : vector<32x96xf32>
    %754 = tpu.matmul %751, %753, %cst_253 {dimension_numbers = #tpu.dot_dimension_numbers<[1], [0], [0], [1], [0, 0, 1, 1], [], []>} : vector<32x32xf32>, vector<32x96xf32>, vector<32x96xf32> -> vector<32x96xf32>
    %755 = vector.extract_strided_slice %754 {offsets = [0, 0], sizes = [32, 32], strides = [1, 1]} : vector<32x96xf32> to vector<32x32xf32>
    %756 = vector.extract_strided_slice %754 {offsets = [0, 32], sizes = [32, 32], strides = [1, 1]} : vector<32x96xf32> to vector<32x32xf32>
    %757 = vector.extract_strided_slice %754 {offsets = [0, 64], sizes = [32, 32], strides = [1, 1]} : vector<32x96xf32> to vector<32x32xf32>
    %758 = vector.extract_strided_slice %755 {offsets = [0, 0], sizes = [16, 32], strides = [1, 1]} : vector<32x32xf32> to vector<16x32xf32>
    %759 = vector.extract_strided_slice %756 {offsets = [0, 0], sizes = [16, 32], strides = [1, 1]} : vector<32x32xf32> to vector<16x32xf32>
    %760 = vector.extract_strided_slice %757 {offsets = [0, 0], sizes = [16, 32], strides = [1, 1]} : vector<32x32xf32> to vector<16x32xf32>
    %761 = vector.extract_strided_slice %758 {offsets = [0, 0], sizes = [16, 16], strides = [1, 1]} : vector<16x32xf32> to vector<16x16xf32>
    %762 = vector.extract_strided_slice %759 {offsets = [0, 0], sizes = [16, 16], strides = [1, 1]} : vector<16x32xf32> to vector<16x16xf32>
    %cst_254 = arith.constant dense<0.000000e+00> : vector<16x16xf32>
    %763 = tpu.matmul %761, %762, %cst_254 {dimension_numbers = #tpu.dot_dimension_numbers<[1], [1], [0], [0], [0, 0, 1, 0], [], []>} : vector<16x16xf32>, vector<16x16xf32>, vector<16x16xf32> -> vector<16x16xf32>
    %cst_255 = arith.constant 2.500000e-01 : f32
    %764 = vector.broadcast %cst_255 : f32 to vector<16x16xf32>
    %765 = arith.mulf %763, %764 : vector<16x16xf32>
    %766 = vector.broadcast %143 : vector<1x16xf32> to vector<16x16xf32>
    %767 = arith.addf %765, %766 : vector<16x16xf32>
    %cst_256 = arith.constant dense<0xFF800000> : vector<16xf32>
    %768 = vector.multi_reduction <maximumf>, %767, %cst_256 [1] : vector<16x16xf32> to vector<16xf32>
    %769 = vector.shape_cast %768 : vector<16xf32> to vector<16x1xf32>
    %770 = vector.broadcast %769 : vector<16x1xf32> to vector<16x16xf32>
    %771 = arith.subf %767, %770 : vector<16x16xf32>
    %772 = math.exp %771 : vector<16x16xf32>
    %cst_257 = arith.constant dense<0.000000e+00> : vector<16xf32>
    %773 = vector.multi_reduction <add>, %772, %cst_257 [1] : vector<16x16xf32> to vector<16xf32>
    %774 = vector.shape_cast %773 : vector<16xf32> to vector<16x1xf32>
    %775 = tpu.reciprocal %774 {approx = true} : vector<16x1xf32> -> vector<16x1xf32>
    %776 = vector.broadcast %775 : vector<16x1xf32> to vector<16x16xf32>
    %777 = arith.mulf %772, %776 : vector<16x16xf32>
    %778 = vector.extract_strided_slice %760 {offsets = [0, 0], sizes = [16, 16], strides = [1, 1]} : vector<16x32xf32> to vector<16x16xf32>
    %cst_258 = arith.constant dense<0.000000e+00> : vector<16x16xf32>
    %779 = tpu.matmul %777, %778, %cst_258 {dimension_numbers = #tpu.dot_dimension_numbers<[1], [0], [0], [1], [0, 0, 1, 1], [], []>} : vector<16x16xf32>, vector<16x16xf32>, vector<16x16xf32> -> vector<16x16xf32>
    %780 = vector.extract_strided_slice %758 {offsets = [0, 16], sizes = [16, 16], strides = [1, 1]} : vector<16x32xf32> to vector<16x16xf32>
    %781 = vector.extract_strided_slice %759 {offsets = [0, 16], sizes = [16, 16], strides = [1, 1]} : vector<16x32xf32> to vector<16x16xf32>
    %cst_259 = arith.constant dense<0.000000e+00> : vector<16x16xf32>
    %782 = tpu.matmul %780, %781, %cst_259 {dimension_numbers = #tpu.dot_dimension_numbers<[1], [1], [0], [0], [0, 0, 1, 0], [], []>} : vector<16x16xf32>, vector<16x16xf32>, vector<16x16xf32> -> vector<16x16xf32>
    %cst_260 = arith.constant 2.500000e-01 : f32
    %783 = vector.broadcast %cst_260 : f32 to vector<16x16xf32>
    %784 = arith.mulf %782, %783 : vector<16x16xf32>
    %785 = vector.broadcast %143 : vector<1x16xf32> to vector<16x16xf32>
    %786 = arith.addf %784, %785 : vector<16x16xf32>
    %cst_261 = arith.constant dense<0xFF800000> : vector<16xf32>
    %787 = vector.multi_reduction <maximumf>, %786, %cst_261 [1] : vector<16x16xf32> to vector<16xf32>
    %788 = vector.shape_cast %787 : vector<16xf32> to vector<16x1xf32>
    %789 = vector.broadcast %788 : vector<16x1xf32> to vector<16x16xf32>
    %790 = arith.subf %786, %789 : vector<16x16xf32>
    %791 = math.exp %790 : vector<16x16xf32>
    %cst_262 = arith.constant dense<0.000000e+00> : vector<16xf32>
    %792 = vector.multi_reduction <add>, %791, %cst_262 [1] : vector<16x16xf32> to vector<16xf32>
    %793 = vector.shape_cast %792 : vector<16xf32> to vector<16x1xf32>
    %794 = tpu.reciprocal %793 {approx = true} : vector<16x1xf32> -> vector<16x1xf32>
    %795 = vector.broadcast %794 : vector<16x1xf32> to vector<16x16xf32>
    %796 = arith.mulf %791, %795 : vector<16x16xf32>
    %797 = vector.extract_strided_slice %760 {offsets = [0, 16], sizes = [16, 16], strides = [1, 1]} : vector<16x32xf32> to vector<16x16xf32>
    %cst_263 = arith.constant dense<0.000000e+00> : vector<16x16xf32>
    %798 = tpu.matmul %796, %797, %cst_263 {dimension_numbers = #tpu.dot_dimension_numbers<[1], [0], [0], [1], [0, 0, 1, 1], [], []>} : vector<16x16xf32>, vector<16x16xf32>, vector<16x16xf32> -> vector<16x16xf32>
    %799 = tpu.concatenate %779, %798 in 1 : vector<16x16xf32>, vector<16x16xf32> -> vector<16x32xf32>
    %800 = vector.extract_strided_slice %755 {offsets = [16, 0], sizes = [16, 32], strides = [1, 1]} : vector<32x32xf32> to vector<16x32xf32>
    %801 = vector.extract_strided_slice %756 {offsets = [16, 0], sizes = [16, 32], strides = [1, 1]} : vector<32x32xf32> to vector<16x32xf32>
    %802 = vector.extract_strided_slice %757 {offsets = [16, 0], sizes = [16, 32], strides = [1, 1]} : vector<32x32xf32> to vector<16x32xf32>
    %803 = vector.extract_strided_slice %800 {offsets = [0, 0], sizes = [16, 16], strides = [1, 1]} : vector<16x32xf32> to vector<16x16xf32>
    %804 = vector.extract_strided_slice %801 {offsets = [0, 0], sizes = [16, 16], strides = [1, 1]} : vector<16x32xf32> to vector<16x16xf32>
    %cst_264 = arith.constant dense<0.000000e+00> : vector<16x16xf32>
    %805 = tpu.matmul %803, %804, %cst_264 {dimension_numbers = #tpu.dot_dimension_numbers<[1], [1], [0], [0], [0, 0, 1, 0], [], []>} : vector<16x16xf32>, vector<16x16xf32>, vector<16x16xf32> -> vector<16x16xf32>
    %cst_265 = arith.constant 2.500000e-01 : f32
    %806 = vector.broadcast %cst_265 : f32 to vector<16x16xf32>
    %807 = arith.mulf %805, %806 : vector<16x16xf32>
    %808 = vector.broadcast %143 : vector<1x16xf32> to vector<16x16xf32>
    %809 = arith.addf %807, %808 : vector<16x16xf32>
    %cst_266 = arith.constant dense<0xFF800000> : vector<16xf32>
    %810 = vector.multi_reduction <maximumf>, %809, %cst_266 [1] : vector<16x16xf32> to vector<16xf32>
    %811 = vector.shape_cast %810 : vector<16xf32> to vector<16x1xf32>
    %812 = vector.broadcast %811 : vector<16x1xf32> to vector<16x16xf32>
    %813 = arith.subf %809, %812 : vector<16x16xf32>
    %814 = math.exp %813 : vector<16x16xf32>
    %cst_267 = arith.constant dense<0.000000e+00> : vector<16xf32>
    %815 = vector.multi_reduction <add>, %814, %cst_267 [1] : vector<16x16xf32> to vector<16xf32>
    %816 = vector.shape_cast %815 : vector<16xf32> to vector<16x1xf32>
    %817 = tpu.reciprocal %816 {approx = true} : vector<16x1xf32> -> vector<16x1xf32>
    %818 = vector.broadcast %817 : vector<16x1xf32> to vector<16x16xf32>
    %819 = arith.mulf %814, %818 : vector<16x16xf32>
    %820 = vector.extract_strided_slice %802 {offsets = [0, 0], sizes = [16, 16], strides = [1, 1]} : vector<16x32xf32> to vector<16x16xf32>
    %cst_268 = arith.constant dense<0.000000e+00> : vector<16x16xf32>
    %821 = tpu.matmul %819, %820, %cst_268 {dimension_numbers = #tpu.dot_dimension_numbers<[1], [0], [0], [1], [0, 0, 1, 1], [], []>} : vector<16x16xf32>, vector<16x16xf32>, vector<16x16xf32> -> vector<16x16xf32>
    %822 = vector.extract_strided_slice %800 {offsets = [0, 16], sizes = [16, 16], strides = [1, 1]} : vector<16x32xf32> to vector<16x16xf32>
    %823 = vector.extract_strided_slice %801 {offsets = [0, 16], sizes = [16, 16], strides = [1, 1]} : vector<16x32xf32> to vector<16x16xf32>
    %cst_269 = arith.constant dense<0.000000e+00> : vector<16x16xf32>
    %824 = tpu.matmul %822, %823, %cst_269 {dimension_numbers = #tpu.dot_dimension_numbers<[1], [1], [0], [0], [0, 0, 1, 0], [], []>} : vector<16x16xf32>, vector<16x16xf32>, vector<16x16xf32> -> vector<16x16xf32>
    %cst_270 = arith.constant 2.500000e-01 : f32
    %825 = vector.broadcast %cst_270 : f32 to vector<16x16xf32>
    %826 = arith.mulf %824, %825 : vector<16x16xf32>
    %827 = vector.broadcast %143 : vector<1x16xf32> to vector<16x16xf32>
    %828 = arith.addf %826, %827 : vector<16x16xf32>
    %cst_271 = arith.constant dense<0xFF800000> : vector<16xf32>
    %829 = vector.multi_reduction <maximumf>, %828, %cst_271 [1] : vector<16x16xf32> to vector<16xf32>
    %830 = vector.shape_cast %829 : vector<16xf32> to vector<16x1xf32>
    %831 = vector.broadcast %830 : vector<16x1xf32> to vector<16x16xf32>
    %832 = arith.subf %828, %831 : vector<16x16xf32>
    %833 = math.exp %832 : vector<16x16xf32>
    %cst_272 = arith.constant dense<0.000000e+00> : vector<16xf32>
    %834 = vector.multi_reduction <add>, %833, %cst_272 [1] : vector<16x16xf32> to vector<16xf32>
    %835 = vector.shape_cast %834 : vector<16xf32> to vector<16x1xf32>
    %836 = tpu.reciprocal %835 {approx = true} : vector<16x1xf32> -> vector<16x1xf32>
    %837 = vector.broadcast %836 : vector<16x1xf32> to vector<16x16xf32>
    %838 = arith.mulf %833, %837 : vector<16x16xf32>
    %839 = vector.extract_strided_slice %802 {offsets = [0, 16], sizes = [16, 16], strides = [1, 1]} : vector<16x32xf32> to vector<16x16xf32>
    %cst_273 = arith.constant dense<0.000000e+00> : vector<16x16xf32>
    %840 = tpu.matmul %838, %839, %cst_273 {dimension_numbers = #tpu.dot_dimension_numbers<[1], [0], [0], [1], [0, 0, 1, 1], [], []>} : vector<16x16xf32>, vector<16x16xf32>, vector<16x16xf32> -> vector<16x16xf32>
    %841 = tpu.concatenate %821, %840 in 1 : vector<16x16xf32>, vector<16x16xf32> -> vector<16x32xf32>
    %842 = tpu.concatenate %799, %841 in 0 : vector<16x32xf32>, vector<16x32xf32> -> vector<32x32xf32>
    %c2_274 = arith.constant 2 : index
    %c0_275 = arith.constant 0 : index
    %c0_276 = arith.constant 0 : index
    %843 = vector.load %arg10[%c2_274, %c0_275, %c0_276] : memref<8x32x32xf32, #tpu.memory_space<vmem>>, vector<1x32x32xf32>
    %844 = vector.shape_cast %843 : vector<1x32x32xf32> to vector<32x32xf32>
    %cst_277 = arith.constant dense<0.000000e+00> : vector<32x32xf32>
    %845 = tpu.matmul %842, %844, %cst_277 {dimension_numbers = #tpu.dot_dimension_numbers<[1], [0], [0], [1], [0, 0, 1, 1], [], []>} : vector<32x32xf32>, vector<32x32xf32>, vector<32x32xf32> -> vector<32x32xf32>
    %c14 = arith.constant 14 : index
    %c0_278 = arith.constant 0 : index
    %846 = vector.load %arg8[%c14, %c0_278] : memref<46x32xf32, #tpu.memory_space<vmem>>, vector<1x32xf32>
    %847 = vector.broadcast %846 : vector<1x32xf32> to vector<32x32xf32>
    %848 = arith.addf %845, %847 : vector<32x32xf32>
    %849 = arith.addf %682, %848 : vector<32x32xf32>
    %c15 = arith.constant 15 : index
    %c0_279 = arith.constant 0 : index
    %850 = vector.load %arg8[%c15, %c0_279] : memref<46x32xf32, #tpu.memory_space<vmem>>, vector<1x32xf32>
    %c16 = arith.constant 16 : index
    %c0_280 = arith.constant 0 : index
    %851 = vector.load %arg8[%c16, %c0_280] : memref<46x32xf32, #tpu.memory_space<vmem>>, vector<1x32xf32>
    %cst_281 = arith.constant dense<0.000000e+00> : vector<16xf32>
    %852 = vector.multi_reduction <add>, %727, %cst_281 [1] : vector<16x32xf32> to vector<16xf32>
    %853 = vector.shape_cast %852 : vector<16xf32> to vector<16x1xf32>
    %cst_282 = arith.constant 3.200000e+01 : f32
    %854 = vector.broadcast %cst_282 : f32 to vector<16x1xf32>
    %855 = arith.divf %853, %854 : vector<16x1xf32>
    %856 = vector.broadcast %855 : vector<16x1xf32> to vector<16x32xf32>
    %857 = arith.subf %727, %856 : vector<16x32xf32>
    %858 = arith.mulf %857, %857 : vector<16x32xf32>
    %cst_283 = arith.constant dense<0.000000e+00> : vector<16xf32>
    %859 = vector.multi_reduction <add>, %858, %cst_283 [1] : vector<16x32xf32> to vector<16xf32>
    %860 = vector.shape_cast %859 : vector<16xf32> to vector<16x1xf32>
    %cst_284 = arith.constant 3.200000e+01 : f32
    %861 = vector.broadcast %cst_284 : f32 to vector<16x1xf32>
    %862 = arith.divf %860, %861 : vector<16x1xf32>
    %863 = vector.broadcast %855 : vector<16x1xf32> to vector<16x32xf32>
    %864 = arith.subf %727, %863 : vector<16x32xf32>
    %cst_285 = arith.constant 9.99999974E-6 : f32
    %865 = vector.broadcast %cst_285 : f32 to vector<16x1xf32>
    %866 = arith.addf %862, %865 : vector<16x1xf32>
    %867 = math.rsqrt %866 : vector<16x1xf32>
    %868 = vector.broadcast %867 : vector<16x1xf32> to vector<16x32xf32>
    %869 = arith.mulf %864, %868 : vector<16x32xf32>
    %870 = vector.broadcast %850 : vector<1x32xf32> to vector<16x32xf32>
    %871 = arith.mulf %869, %870 : vector<16x32xf32>
    %872 = vector.broadcast %851 : vector<1x32xf32> to vector<16x32xf32>
    %873 = arith.addf %871, %872 : vector<16x32xf32>
    %c3_286 = arith.constant 3 : index
    %c0_287 = arith.constant 0 : index
    %c0_288 = arith.constant 0 : index
    %874 = vector.load %arg9[%c3_286, %c0_287, %c0_288] : memref<8x32x96xf32, #tpu.memory_space<vmem>>, vector<1x32x96xf32>
    %875 = vector.shape_cast %874 : vector<1x32x96xf32> to vector<32x96xf32>
    %cst_289 = arith.constant dense<0.000000e+00> : vector<16x96xf32>
    %876 = tpu.matmul %873, %875, %cst_289 {dimension_numbers = #tpu.dot_dimension_numbers<[1], [0], [0], [1], [0, 0, 1, 1], [], []>} : vector<16x32xf32>, vector<32x96xf32>, vector<16x96xf32> -> vector<16x96xf32>
    %877 = vector.extract_strided_slice %876 {offsets = [0, 0], sizes = [16, 32], strides = [1, 1]} : vector<16x96xf32> to vector<16x32xf32>
    %878 = vector.extract_strided_slice %876 {offsets = [0, 32], sizes = [16, 32], strides = [1, 1]} : vector<16x96xf32> to vector<16x32xf32>
    %879 = vector.extract_strided_slice %876 {offsets = [0, 64], sizes = [16, 32], strides = [1, 1]} : vector<16x96xf32> to vector<16x32xf32>
    %880 = vector.extract_strided_slice %877 {offsets = [0, 0], sizes = [8, 32], strides = [1, 1]} : vector<16x32xf32> to vector<8x32xf32>
    %881 = vector.extract_strided_slice %878 {offsets = [0, 0], sizes = [8, 32], strides = [1, 1]} : vector<16x32xf32> to vector<8x32xf32>
    %882 = vector.extract_strided_slice %879 {offsets = [0, 0], sizes = [8, 32], strides = [1, 1]} : vector<16x32xf32> to vector<8x32xf32>
    %883 = vector.extract_strided_slice %880 {offsets = [0, 0], sizes = [8, 16], strides = [1, 1]} : vector<8x32xf32> to vector<8x16xf32>
    %884 = vector.extract_strided_slice %881 {offsets = [0, 0], sizes = [8, 16], strides = [1, 1]} : vector<8x32xf32> to vector<8x16xf32>
    %cst_290 = arith.constant dense<0.000000e+00> : vector<8x8xf32>
    %885 = tpu.matmul %883, %884, %cst_290 {dimension_numbers = #tpu.dot_dimension_numbers<[1], [1], [0], [0], [0, 0, 1, 0], [], []>} : vector<8x16xf32>, vector<8x16xf32>, vector<8x8xf32> -> vector<8x8xf32>
    %cst_291 = arith.constant 2.500000e-01 : f32
    %886 = vector.broadcast %cst_291 : f32 to vector<8x8xf32>
    %887 = arith.mulf %885, %886 : vector<8x8xf32>
    %888 = vector.broadcast %149 : vector<1x8xf32> to vector<8x8xf32>
    %889 = arith.addf %887, %888 : vector<8x8xf32>
    %cst_292 = arith.constant dense<0xFF800000> : vector<8xf32>
    %890 = vector.multi_reduction <maximumf>, %889, %cst_292 [1] : vector<8x8xf32> to vector<8xf32>
    %891 = vector.shape_cast %890 : vector<8xf32> to vector<8x1xf32>
    %892 = vector.broadcast %891 : vector<8x1xf32> to vector<8x8xf32>
    %893 = arith.subf %889, %892 : vector<8x8xf32>
    %894 = math.exp %893 : vector<8x8xf32>
    %cst_293 = arith.constant dense<0.000000e+00> : vector<8xf32>
    %895 = vector.multi_reduction <add>, %894, %cst_293 [1] : vector<8x8xf32> to vector<8xf32>
    %896 = vector.shape_cast %895 : vector<8xf32> to vector<8x1xf32>
    %897 = tpu.reciprocal %896 {approx = true} : vector<8x1xf32> -> vector<8x1xf32>
    %898 = vector.broadcast %897 : vector<8x1xf32> to vector<8x8xf32>
    %899 = arith.mulf %894, %898 : vector<8x8xf32>
    %900 = vector.extract_strided_slice %882 {offsets = [0, 0], sizes = [8, 16], strides = [1, 1]} : vector<8x32xf32> to vector<8x16xf32>
    %cst_294 = arith.constant dense<0.000000e+00> : vector<8x16xf32>
    %901 = tpu.matmul %899, %900, %cst_294 {dimension_numbers = #tpu.dot_dimension_numbers<[1], [0], [0], [1], [0, 0, 1, 1], [], []>} : vector<8x8xf32>, vector<8x16xf32>, vector<8x16xf32> -> vector<8x16xf32>
    %902 = vector.extract_strided_slice %880 {offsets = [0, 16], sizes = [8, 16], strides = [1, 1]} : vector<8x32xf32> to vector<8x16xf32>
    %903 = vector.extract_strided_slice %881 {offsets = [0, 16], sizes = [8, 16], strides = [1, 1]} : vector<8x32xf32> to vector<8x16xf32>
    %cst_295 = arith.constant dense<0.000000e+00> : vector<8x8xf32>
    %904 = tpu.matmul %902, %903, %cst_295 {dimension_numbers = #tpu.dot_dimension_numbers<[1], [1], [0], [0], [0, 0, 1, 0], [], []>} : vector<8x16xf32>, vector<8x16xf32>, vector<8x8xf32> -> vector<8x8xf32>
    %cst_296 = arith.constant 2.500000e-01 : f32
    %905 = vector.broadcast %cst_296 : f32 to vector<8x8xf32>
    %906 = arith.mulf %904, %905 : vector<8x8xf32>
    %907 = vector.broadcast %149 : vector<1x8xf32> to vector<8x8xf32>
    %908 = arith.addf %906, %907 : vector<8x8xf32>
    %cst_297 = arith.constant dense<0xFF800000> : vector<8xf32>
    %909 = vector.multi_reduction <maximumf>, %908, %cst_297 [1] : vector<8x8xf32> to vector<8xf32>
    %910 = vector.shape_cast %909 : vector<8xf32> to vector<8x1xf32>
    %911 = vector.broadcast %910 : vector<8x1xf32> to vector<8x8xf32>
    %912 = arith.subf %908, %911 : vector<8x8xf32>
    %913 = math.exp %912 : vector<8x8xf32>
    %cst_298 = arith.constant dense<0.000000e+00> : vector<8xf32>
    %914 = vector.multi_reduction <add>, %913, %cst_298 [1] : vector<8x8xf32> to vector<8xf32>
    %915 = vector.shape_cast %914 : vector<8xf32> to vector<8x1xf32>
    %916 = tpu.reciprocal %915 {approx = true} : vector<8x1xf32> -> vector<8x1xf32>
    %917 = vector.broadcast %916 : vector<8x1xf32> to vector<8x8xf32>
    %918 = arith.mulf %913, %917 : vector<8x8xf32>
    %919 = vector.extract_strided_slice %882 {offsets = [0, 16], sizes = [8, 16], strides = [1, 1]} : vector<8x32xf32> to vector<8x16xf32>
    %cst_299 = arith.constant dense<0.000000e+00> : vector<8x16xf32>
    %920 = tpu.matmul %918, %919, %cst_299 {dimension_numbers = #tpu.dot_dimension_numbers<[1], [0], [0], [1], [0, 0, 1, 1], [], []>} : vector<8x8xf32>, vector<8x16xf32>, vector<8x16xf32> -> vector<8x16xf32>
    %921 = tpu.concatenate %901, %920 in 1 : vector<8x16xf32>, vector<8x16xf32> -> vector<8x32xf32>
    %922 = vector.extract_strided_slice %877 {offsets = [8, 0], sizes = [8, 32], strides = [1, 1]} : vector<16x32xf32> to vector<8x32xf32>
    %923 = vector.extract_strided_slice %878 {offsets = [8, 0], sizes = [8, 32], strides = [1, 1]} : vector<16x32xf32> to vector<8x32xf32>
    %924 = vector.extract_strided_slice %879 {offsets = [8, 0], sizes = [8, 32], strides = [1, 1]} : vector<16x32xf32> to vector<8x32xf32>
    %925 = vector.extract_strided_slice %922 {offsets = [0, 0], sizes = [8, 16], strides = [1, 1]} : vector<8x32xf32> to vector<8x16xf32>
    %926 = vector.extract_strided_slice %923 {offsets = [0, 0], sizes = [8, 16], strides = [1, 1]} : vector<8x32xf32> to vector<8x16xf32>
    %cst_300 = arith.constant dense<0.000000e+00> : vector<8x8xf32>
    %927 = tpu.matmul %925, %926, %cst_300 {dimension_numbers = #tpu.dot_dimension_numbers<[1], [1], [0], [0], [0, 0, 1, 0], [], []>} : vector<8x16xf32>, vector<8x16xf32>, vector<8x8xf32> -> vector<8x8xf32>
    %cst_301 = arith.constant 2.500000e-01 : f32
    %928 = vector.broadcast %cst_301 : f32 to vector<8x8xf32>
    %929 = arith.mulf %927, %928 : vector<8x8xf32>
    %930 = vector.broadcast %149 : vector<1x8xf32> to vector<8x8xf32>
    %931 = arith.addf %929, %930 : vector<8x8xf32>
    %cst_302 = arith.constant dense<0xFF800000> : vector<8xf32>
    %932 = vector.multi_reduction <maximumf>, %931, %cst_302 [1] : vector<8x8xf32> to vector<8xf32>
    %933 = vector.shape_cast %932 : vector<8xf32> to vector<8x1xf32>
    %934 = vector.broadcast %933 : vector<8x1xf32> to vector<8x8xf32>
    %935 = arith.subf %931, %934 : vector<8x8xf32>
    %936 = math.exp %935 : vector<8x8xf32>
    %cst_303 = arith.constant dense<0.000000e+00> : vector<8xf32>
    %937 = vector.multi_reduction <add>, %936, %cst_303 [1] : vector<8x8xf32> to vector<8xf32>
    %938 = vector.shape_cast %937 : vector<8xf32> to vector<8x1xf32>
    %939 = tpu.reciprocal %938 {approx = true} : vector<8x1xf32> -> vector<8x1xf32>
    %940 = vector.broadcast %939 : vector<8x1xf32> to vector<8x8xf32>
    %941 = arith.mulf %936, %940 : vector<8x8xf32>
    %942 = vector.extract_strided_slice %924 {offsets = [0, 0], sizes = [8, 16], strides = [1, 1]} : vector<8x32xf32> to vector<8x16xf32>
    %cst_304 = arith.constant dense<0.000000e+00> : vector<8x16xf32>
    %943 = tpu.matmul %941, %942, %cst_304 {dimension_numbers = #tpu.dot_dimension_numbers<[1], [0], [0], [1], [0, 0, 1, 1], [], []>} : vector<8x8xf32>, vector<8x16xf32>, vector<8x16xf32> -> vector<8x16xf32>
    %944 = vector.extract_strided_slice %922 {offsets = [0, 16], sizes = [8, 16], strides = [1, 1]} : vector<8x32xf32> to vector<8x16xf32>
    %945 = vector.extract_strided_slice %923 {offsets = [0, 16], sizes = [8, 16], strides = [1, 1]} : vector<8x32xf32> to vector<8x16xf32>
    %cst_305 = arith.constant dense<0.000000e+00> : vector<8x8xf32>
    %946 = tpu.matmul %944, %945, %cst_305 {dimension_numbers = #tpu.dot_dimension_numbers<[1], [1], [0], [0], [0, 0, 1, 0], [], []>} : vector<8x16xf32>, vector<8x16xf32>, vector<8x8xf32> -> vector<8x8xf32>
    %cst_306 = arith.constant 2.500000e-01 : f32
    %947 = vector.broadcast %cst_306 : f32 to vector<8x8xf32>
    %948 = arith.mulf %946, %947 : vector<8x8xf32>
    %949 = vector.broadcast %149 : vector<1x8xf32> to vector<8x8xf32>
    %950 = arith.addf %948, %949 : vector<8x8xf32>
    %cst_307 = arith.constant dense<0xFF800000> : vector<8xf32>
    %951 = vector.multi_reduction <maximumf>, %950, %cst_307 [1] : vector<8x8xf32> to vector<8xf32>
    %952 = vector.shape_cast %951 : vector<8xf32> to vector<8x1xf32>
    %953 = vector.broadcast %952 : vector<8x1xf32> to vector<8x8xf32>
    %954 = arith.subf %950, %953 : vector<8x8xf32>
    %955 = math.exp %954 : vector<8x8xf32>
    %cst_308 = arith.constant dense<0.000000e+00> : vector<8xf32>
    %956 = vector.multi_reduction <add>, %955, %cst_308 [1] : vector<8x8xf32> to vector<8xf32>
    %957 = vector.shape_cast %956 : vector<8xf32> to vector<8x1xf32>
    %958 = tpu.reciprocal %957 {approx = true} : vector<8x1xf32> -> vector<8x1xf32>
    %959 = vector.broadcast %958 : vector<8x1xf32> to vector<8x8xf32>
    %960 = arith.mulf %955, %959 : vector<8x8xf32>
    %961 = vector.extract_strided_slice %924 {offsets = [0, 16], sizes = [8, 16], strides = [1, 1]} : vector<8x32xf32> to vector<8x16xf32>
    %cst_309 = arith.constant dense<0.000000e+00> : vector<8x16xf32>
    %962 = tpu.matmul %960, %961, %cst_309 {dimension_numbers = #tpu.dot_dimension_numbers<[1], [0], [0], [1], [0, 0, 1, 1], [], []>} : vector<8x8xf32>, vector<8x16xf32>, vector<8x16xf32> -> vector<8x16xf32>
    %963 = tpu.concatenate %943, %962 in 1 : vector<8x16xf32>, vector<8x16xf32> -> vector<8x32xf32>
    %964 = tpu.concatenate %921, %963 in 0 : vector<8x32xf32>, vector<8x32xf32> -> vector<16x32xf32>
    %c3_310 = arith.constant 3 : index
    %c0_311 = arith.constant 0 : index
    %c0_312 = arith.constant 0 : index
    %965 = vector.load %arg10[%c3_310, %c0_311, %c0_312] : memref<8x32x32xf32, #tpu.memory_space<vmem>>, vector<1x32x32xf32>
    %966 = vector.shape_cast %965 : vector<1x32x32xf32> to vector<32x32xf32>
    %cst_313 = arith.constant dense<0.000000e+00> : vector<16x32xf32>
    %967 = tpu.matmul %964, %966, %cst_313 {dimension_numbers = #tpu.dot_dimension_numbers<[1], [0], [0], [1], [0, 0, 1, 1], [], []>} : vector<16x32xf32>, vector<32x32xf32>, vector<16x32xf32> -> vector<16x32xf32>
    %c17 = arith.constant 17 : index
    %c0_314 = arith.constant 0 : index
    %968 = vector.load %arg8[%c17, %c0_314] : memref<46x32xf32, #tpu.memory_space<vmem>>, vector<1x32xf32>
    %969 = vector.broadcast %968 : vector<1x32xf32> to vector<16x32xf32>
    %970 = arith.addf %967, %969 : vector<16x32xf32>
    %971 = arith.addf %727, %970 : vector<16x32xf32>
    %c24 = arith.constant 24 : index
    %c0_315 = arith.constant 0 : index
    %972 = vector.load %arg8[%c24, %c0_315] : memref<46x32xf32, #tpu.memory_space<vmem>>, vector<1x32xf32>
    %c25 = arith.constant 25 : index
    %c0_316 = arith.constant 0 : index
    %973 = vector.load %arg8[%c25, %c0_316] : memref<46x32xf32, #tpu.memory_space<vmem>>, vector<1x32xf32>
    %cst_317 = arith.constant dense<0.000000e+00> : vector<32xf32>
    %974 = vector.multi_reduction <add>, %849, %cst_317 [1] : vector<32x32xf32> to vector<32xf32>
    %975 = vector.shape_cast %974 : vector<32xf32> to vector<32x1xf32>
    %cst_318 = arith.constant 3.200000e+01 : f32
    %976 = vector.broadcast %cst_318 : f32 to vector<32x1xf32>
    %977 = arith.divf %975, %976 : vector<32x1xf32>
    %978 = vector.broadcast %977 : vector<32x1xf32> to vector<32x32xf32>
    %979 = arith.subf %849, %978 : vector<32x32xf32>
    %980 = arith.mulf %979, %979 : vector<32x32xf32>
    %cst_319 = arith.constant dense<0.000000e+00> : vector<32xf32>
    %981 = vector.multi_reduction <add>, %980, %cst_319 [1] : vector<32x32xf32> to vector<32xf32>
    %982 = vector.shape_cast %981 : vector<32xf32> to vector<32x1xf32>
    %cst_320 = arith.constant 3.200000e+01 : f32
    %983 = vector.broadcast %cst_320 : f32 to vector<32x1xf32>
    %984 = arith.divf %982, %983 : vector<32x1xf32>
    %985 = vector.broadcast %977 : vector<32x1xf32> to vector<32x32xf32>
    %986 = arith.subf %849, %985 : vector<32x32xf32>
    %cst_321 = arith.constant 9.99999974E-6 : f32
    %987 = vector.broadcast %cst_321 : f32 to vector<32x1xf32>
    %988 = arith.addf %984, %987 : vector<32x1xf32>
    %989 = math.rsqrt %988 : vector<32x1xf32>
    %990 = vector.broadcast %989 : vector<32x1xf32> to vector<32x32xf32>
    %991 = arith.mulf %986, %990 : vector<32x32xf32>
    %992 = vector.broadcast %972 : vector<1x32xf32> to vector<32x32xf32>
    %993 = arith.mulf %991, %992 : vector<32x32xf32>
    %994 = vector.broadcast %973 : vector<1x32xf32> to vector<32x32xf32>
    %995 = arith.addf %993, %994 : vector<32x32xf32>
    %c6_322 = arith.constant 6 : index
    %c0_323 = arith.constant 0 : index
    %c0_324 = arith.constant 0 : index
    %996 = vector.load %arg9[%c6_322, %c0_323, %c0_324] : memref<8x32x96xf32, #tpu.memory_space<vmem>>, vector<1x32x96xf32>
    %997 = vector.shape_cast %996 : vector<1x32x96xf32> to vector<32x96xf32>
    %cst_325 = arith.constant dense<0.000000e+00> : vector<32x96xf32>
    %998 = tpu.matmul %995, %997, %cst_325 {dimension_numbers = #tpu.dot_dimension_numbers<[1], [0], [0], [1], [0, 0, 1, 1], [], []>} : vector<32x32xf32>, vector<32x96xf32>, vector<32x96xf32> -> vector<32x96xf32>
    %999 = vector.extract_strided_slice %998 {offsets = [0, 0], sizes = [32, 32], strides = [1, 1]} : vector<32x96xf32> to vector<32x32xf32>
    %1000 = vector.extract_strided_slice %998 {offsets = [0, 32], sizes = [32, 32], strides = [1, 1]} : vector<32x96xf32> to vector<32x32xf32>
    %1001 = vector.extract_strided_slice %998 {offsets = [0, 64], sizes = [32, 32], strides = [1, 1]} : vector<32x96xf32> to vector<32x32xf32>
    %c27 = arith.constant 27 : index
    %c0_326 = arith.constant 0 : index
    %1002 = vector.load %arg8[%c27, %c0_326] : memref<46x32xf32, #tpu.memory_space<vmem>>, vector<1x32xf32>
    %c28 = arith.constant 28 : index
    %c0_327 = arith.constant 0 : index
    %1003 = vector.load %arg8[%c28, %c0_327] : memref<46x32xf32, #tpu.memory_space<vmem>>, vector<1x32xf32>
    %cst_328 = arith.constant dense<0.000000e+00> : vector<16xf32>
    %1004 = vector.multi_reduction <add>, %971, %cst_328 [1] : vector<16x32xf32> to vector<16xf32>
    %1005 = vector.shape_cast %1004 : vector<16xf32> to vector<16x1xf32>
    %cst_329 = arith.constant 3.200000e+01 : f32
    %1006 = vector.broadcast %cst_329 : f32 to vector<16x1xf32>
    %1007 = arith.divf %1005, %1006 : vector<16x1xf32>
    %1008 = vector.broadcast %1007 : vector<16x1xf32> to vector<16x32xf32>
    %1009 = arith.subf %971, %1008 : vector<16x32xf32>
    %1010 = arith.mulf %1009, %1009 : vector<16x32xf32>
    %cst_330 = arith.constant dense<0.000000e+00> : vector<16xf32>
    %1011 = vector.multi_reduction <add>, %1010, %cst_330 [1] : vector<16x32xf32> to vector<16xf32>
    %1012 = vector.shape_cast %1011 : vector<16xf32> to vector<16x1xf32>
    %cst_331 = arith.constant 3.200000e+01 : f32
    %1013 = vector.broadcast %cst_331 : f32 to vector<16x1xf32>
    %1014 = arith.divf %1012, %1013 : vector<16x1xf32>
    %1015 = vector.broadcast %1007 : vector<16x1xf32> to vector<16x32xf32>
    %1016 = arith.subf %971, %1015 : vector<16x32xf32>
    %cst_332 = arith.constant 9.99999974E-6 : f32
    %1017 = vector.broadcast %cst_332 : f32 to vector<16x1xf32>
    %1018 = arith.addf %1014, %1017 : vector<16x1xf32>
    %1019 = math.rsqrt %1018 : vector<16x1xf32>
    %1020 = vector.broadcast %1019 : vector<16x1xf32> to vector<16x32xf32>
    %1021 = arith.mulf %1016, %1020 : vector<16x32xf32>
    %1022 = vector.broadcast %1002 : vector<1x32xf32> to vector<16x32xf32>
    %1023 = arith.mulf %1021, %1022 : vector<16x32xf32>
    %1024 = vector.broadcast %1003 : vector<1x32xf32> to vector<16x32xf32>
    %1025 = arith.addf %1023, %1024 : vector<16x32xf32>
    %c7_333 = arith.constant 7 : index
    %c0_334 = arith.constant 0 : index
    %c0_335 = arith.constant 0 : index
    %1026 = vector.load %arg9[%c7_333, %c0_334, %c0_335] : memref<8x32x96xf32, #tpu.memory_space<vmem>>, vector<1x32x96xf32>
    %1027 = vector.shape_cast %1026 : vector<1x32x96xf32> to vector<32x96xf32>
    %cst_336 = arith.constant dense<0.000000e+00> : vector<16x96xf32>
    %1028 = tpu.matmul %1025, %1027, %cst_336 {dimension_numbers = #tpu.dot_dimension_numbers<[1], [0], [0], [1], [0, 0, 1, 1], [], []>} : vector<16x32xf32>, vector<32x96xf32>, vector<16x96xf32> -> vector<16x96xf32>
    %1029 = vector.extract_strided_slice %1028 {offsets = [0, 0], sizes = [16, 32], strides = [1, 1]} : vector<16x96xf32> to vector<16x32xf32>
    %1030 = vector.extract_strided_slice %1028 {offsets = [0, 32], sizes = [16, 32], strides = [1, 1]} : vector<16x96xf32> to vector<16x32xf32>
    %1031 = vector.extract_strided_slice %1028 {offsets = [0, 64], sizes = [16, 32], strides = [1, 1]} : vector<16x96xf32> to vector<16x32xf32>
    %1032 = vector.extract_strided_slice %999 {offsets = [0, 0], sizes = [16, 32], strides = [1, 1]} : vector<32x32xf32> to vector<16x32xf32>
    %1033 = vector.extract_strided_slice %1030 {offsets = [0, 0], sizes = [8, 32], strides = [1, 1]} : vector<16x32xf32> to vector<8x32xf32>
    %1034 = vector.extract_strided_slice %1031 {offsets = [0, 0], sizes = [8, 32], strides = [1, 1]} : vector<16x32xf32> to vector<8x32xf32>
    %1035 = vector.extract_strided_slice %1032 {offsets = [0, 0], sizes = [16, 16], strides = [1, 1]} : vector<16x32xf32> to vector<16x16xf32>
    %1036 = vector.extract_strided_slice %1033 {offsets = [0, 0], sizes = [8, 16], strides = [1, 1]} : vector<8x32xf32> to vector<8x16xf32>
    %cst_337 = arith.constant dense<0.000000e+00> : vector<16x8xf32>
    %1037 = tpu.matmul %1035, %1036, %cst_337 {dimension_numbers = #tpu.dot_dimension_numbers<[1], [1], [0], [0], [0, 0, 1, 0], [], []>} : vector<16x16xf32>, vector<8x16xf32>, vector<16x8xf32> -> vector<16x8xf32>
    %cst_338 = arith.constant 2.500000e-01 : f32
    %1038 = vector.broadcast %cst_338 : f32 to vector<16x8xf32>
    %1039 = arith.mulf %1037, %1038 : vector<16x8xf32>
    %1040 = vector.broadcast %149 : vector<1x8xf32> to vector<16x8xf32>
    %1041 = arith.addf %1039, %1040 : vector<16x8xf32>
    %cst_339 = arith.constant dense<0xFF800000> : vector<16xf32>
    %1042 = vector.multi_reduction <maximumf>, %1041, %cst_339 [1] : vector<16x8xf32> to vector<16xf32>
    %1043 = vector.shape_cast %1042 : vector<16xf32> to vector<16x1xf32>
    %1044 = vector.broadcast %1043 : vector<16x1xf32> to vector<16x8xf32>
    %1045 = arith.subf %1041, %1044 : vector<16x8xf32>
    %1046 = math.exp %1045 : vector<16x8xf32>
    %cst_340 = arith.constant dense<0.000000e+00> : vector<16xf32>
    %1047 = vector.multi_reduction <add>, %1046, %cst_340 [1] : vector<16x8xf32> to vector<16xf32>
    %1048 = vector.shape_cast %1047 : vector<16xf32> to vector<16x1xf32>
    %1049 = tpu.reciprocal %1048 {approx = true} : vector<16x1xf32> -> vector<16x1xf32>
    %1050 = vector.broadcast %1049 : vector<16x1xf32> to vector<16x8xf32>
    %1051 = arith.mulf %1046, %1050 : vector<16x8xf32>
    %1052 = vector.extract_strided_slice %1034 {offsets = [0, 0], sizes = [8, 16], strides = [1, 1]} : vector<8x32xf32> to vector<8x16xf32>
    %cst_341 = arith.constant dense<0.000000e+00> : vector<16x16xf32>
    %1053 = tpu.matmul %1051, %1052, %cst_341 {dimension_numbers = #tpu.dot_dimension_numbers<[1], [0], [0], [1], [0, 0, 1, 1], [], []>} : vector<16x8xf32>, vector<8x16xf32>, vector<16x16xf32> -> vector<16x16xf32>
    %1054 = vector.extract_strided_slice %1032 {offsets = [0, 16], sizes = [16, 16], strides = [1, 1]} : vector<16x32xf32> to vector<16x16xf32>
    %1055 = vector.extract_strided_slice %1033 {offsets = [0, 16], sizes = [8, 16], strides = [1, 1]} : vector<8x32xf32> to vector<8x16xf32>
    %cst_342 = arith.constant dense<0.000000e+00> : vector<16x8xf32>
    %1056 = tpu.matmul %1054, %1055, %cst_342 {dimension_numbers = #tpu.dot_dimension_numbers<[1], [1], [0], [0], [0, 0, 1, 0], [], []>} : vector<16x16xf32>, vector<8x16xf32>, vector<16x8xf32> -> vector<16x8xf32>
    %cst_343 = arith.constant 2.500000e-01 : f32
    %1057 = vector.broadcast %cst_343 : f32 to vector<16x8xf32>
    %1058 = arith.mulf %1056, %1057 : vector<16x8xf32>
    %1059 = vector.broadcast %149 : vector<1x8xf32> to vector<16x8xf32>
    %1060 = arith.addf %1058, %1059 : vector<16x8xf32>
    %cst_344 = arith.constant dense<0xFF800000> : vector<16xf32>
    %1061 = vector.multi_reduction <maximumf>, %1060, %cst_344 [1] : vector<16x8xf32> to vector<16xf32>
    %1062 = vector.shape_cast %1061 : vector<16xf32> to vector<16x1xf32>
    %1063 = vector.broadcast %1062 : vector<16x1xf32> to vector<16x8xf32>
    %1064 = arith.subf %1060, %1063 : vector<16x8xf32>
    %1065 = math.exp %1064 : vector<16x8xf32>
    %cst_345 = arith.constant dense<0.000000e+00> : vector<16xf32>
    %1066 = vector.multi_reduction <add>, %1065, %cst_345 [1] : vector<16x8xf32> to vector<16xf32>
    %1067 = vector.shape_cast %1066 : vector<16xf32> to vector<16x1xf32>
    %1068 = tpu.reciprocal %1067 {approx = true} : vector<16x1xf32> -> vector<16x1xf32>
    %1069 = vector.broadcast %1068 : vector<16x1xf32> to vector<16x8xf32>
    %1070 = arith.mulf %1065, %1069 : vector<16x8xf32>
    %1071 = vector.extract_strided_slice %1034 {offsets = [0, 16], sizes = [8, 16], strides = [1, 1]} : vector<8x32xf32> to vector<8x16xf32>
    %cst_346 = arith.constant dense<0.000000e+00> : vector<16x16xf32>
    %1072 = tpu.matmul %1070, %1071, %cst_346 {dimension_numbers = #tpu.dot_dimension_numbers<[1], [0], [0], [1], [0, 0, 1, 1], [], []>} : vector<16x8xf32>, vector<8x16xf32>, vector<16x16xf32> -> vector<16x16xf32>
    %1073 = tpu.concatenate %1053, %1072 in 1 : vector<16x16xf32>, vector<16x16xf32> -> vector<16x32xf32>
    %1074 = vector.extract_strided_slice %999 {offsets = [16, 0], sizes = [16, 32], strides = [1, 1]} : vector<32x32xf32> to vector<16x32xf32>
    %1075 = vector.extract_strided_slice %1030 {offsets = [8, 0], sizes = [8, 32], strides = [1, 1]} : vector<16x32xf32> to vector<8x32xf32>
    %1076 = vector.extract_strided_slice %1031 {offsets = [8, 0], sizes = [8, 32], strides = [1, 1]} : vector<16x32xf32> to vector<8x32xf32>
    %1077 = vector.extract_strided_slice %1074 {offsets = [0, 0], sizes = [16, 16], strides = [1, 1]} : vector<16x32xf32> to vector<16x16xf32>
    %1078 = vector.extract_strided_slice %1075 {offsets = [0, 0], sizes = [8, 16], strides = [1, 1]} : vector<8x32xf32> to vector<8x16xf32>
    %cst_347 = arith.constant dense<0.000000e+00> : vector<16x8xf32>
    %1079 = tpu.matmul %1077, %1078, %cst_347 {dimension_numbers = #tpu.dot_dimension_numbers<[1], [1], [0], [0], [0, 0, 1, 0], [], []>} : vector<16x16xf32>, vector<8x16xf32>, vector<16x8xf32> -> vector<16x8xf32>
    %cst_348 = arith.constant 2.500000e-01 : f32
    %1080 = vector.broadcast %cst_348 : f32 to vector<16x8xf32>
    %1081 = arith.mulf %1079, %1080 : vector<16x8xf32>
    %1082 = vector.broadcast %149 : vector<1x8xf32> to vector<16x8xf32>
    %1083 = arith.addf %1081, %1082 : vector<16x8xf32>
    %cst_349 = arith.constant dense<0xFF800000> : vector<16xf32>
    %1084 = vector.multi_reduction <maximumf>, %1083, %cst_349 [1] : vector<16x8xf32> to vector<16xf32>
    %1085 = vector.shape_cast %1084 : vector<16xf32> to vector<16x1xf32>
    %1086 = vector.broadcast %1085 : vector<16x1xf32> to vector<16x8xf32>
    %1087 = arith.subf %1083, %1086 : vector<16x8xf32>
    %1088 = math.exp %1087 : vector<16x8xf32>
    %cst_350 = arith.constant dense<0.000000e+00> : vector<16xf32>
    %1089 = vector.multi_reduction <add>, %1088, %cst_350 [1] : vector<16x8xf32> to vector<16xf32>
    %1090 = vector.shape_cast %1089 : vector<16xf32> to vector<16x1xf32>
    %1091 = tpu.reciprocal %1090 {approx = true} : vector<16x1xf32> -> vector<16x1xf32>
    %1092 = vector.broadcast %1091 : vector<16x1xf32> to vector<16x8xf32>
    %1093 = arith.mulf %1088, %1092 : vector<16x8xf32>
    %1094 = vector.extract_strided_slice %1076 {offsets = [0, 0], sizes = [8, 16], strides = [1, 1]} : vector<8x32xf32> to vector<8x16xf32>
    %cst_351 = arith.constant dense<0.000000e+00> : vector<16x16xf32>
    %1095 = tpu.matmul %1093, %1094, %cst_351 {dimension_numbers = #tpu.dot_dimension_numbers<[1], [0], [0], [1], [0, 0, 1, 1], [], []>} : vector<16x8xf32>, vector<8x16xf32>, vector<16x16xf32> -> vector<16x16xf32>
    %1096 = vector.extract_strided_slice %1074 {offsets = [0, 16], sizes = [16, 16], strides = [1, 1]} : vector<16x32xf32> to vector<16x16xf32>
    %1097 = vector.extract_strided_slice %1075 {offsets = [0, 16], sizes = [8, 16], strides = [1, 1]} : vector<8x32xf32> to vector<8x16xf32>
    %cst_352 = arith.constant dense<0.000000e+00> : vector<16x8xf32>
    %1098 = tpu.matmul %1096, %1097, %cst_352 {dimension_numbers = #tpu.dot_dimension_numbers<[1], [1], [0], [0], [0, 0, 1, 0], [], []>} : vector<16x16xf32>, vector<8x16xf32>, vector<16x8xf32> -> vector<16x8xf32>
    %cst_353 = arith.constant 2.500000e-01 : f32
    %1099 = vector.broadcast %cst_353 : f32 to vector<16x8xf32>
    %1100 = arith.mulf %1098, %1099 : vector<16x8xf32>
    %1101 = vector.broadcast %149 : vector<1x8xf32> to vector<16x8xf32>
    %1102 = arith.addf %1100, %1101 : vector<16x8xf32>
    %cst_354 = arith.constant dense<0xFF800000> : vector<16xf32>
    %1103 = vector.multi_reduction <maximumf>, %1102, %cst_354 [1] : vector<16x8xf32> to vector<16xf32>
    %1104 = vector.shape_cast %1103 : vector<16xf32> to vector<16x1xf32>
    %1105 = vector.broadcast %1104 : vector<16x1xf32> to vector<16x8xf32>
    %1106 = arith.subf %1102, %1105 : vector<16x8xf32>
    %1107 = math.exp %1106 : vector<16x8xf32>
    %cst_355 = arith.constant dense<0.000000e+00> : vector<16xf32>
    %1108 = vector.multi_reduction <add>, %1107, %cst_355 [1] : vector<16x8xf32> to vector<16xf32>
    %1109 = vector.shape_cast %1108 : vector<16xf32> to vector<16x1xf32>
    %1110 = tpu.reciprocal %1109 {approx = true} : vector<16x1xf32> -> vector<16x1xf32>
    %1111 = vector.broadcast %1110 : vector<16x1xf32> to vector<16x8xf32>
    %1112 = arith.mulf %1107, %1111 : vector<16x8xf32>
    %1113 = vector.extract_strided_slice %1076 {offsets = [0, 16], sizes = [8, 16], strides = [1, 1]} : vector<8x32xf32> to vector<8x16xf32>
    %cst_356 = arith.constant dense<0.000000e+00> : vector<16x16xf32>
    %1114 = tpu.matmul %1112, %1113, %cst_356 {dimension_numbers = #tpu.dot_dimension_numbers<[1], [0], [0], [1], [0, 0, 1, 1], [], []>} : vector<16x8xf32>, vector<8x16xf32>, vector<16x16xf32> -> vector<16x16xf32>
    %1115 = tpu.concatenate %1095, %1114 in 1 : vector<16x16xf32>, vector<16x16xf32> -> vector<16x32xf32>
    %1116 = tpu.concatenate %1073, %1115 in 0 : vector<16x32xf32>, vector<16x32xf32> -> vector<32x32xf32>
    %c6_357 = arith.constant 6 : index
    %c0_358 = arith.constant 0 : index
    %c0_359 = arith.constant 0 : index
    %1117 = vector.load %arg10[%c6_357, %c0_358, %c0_359] : memref<8x32x32xf32, #tpu.memory_space<vmem>>, vector<1x32x32xf32>
    %1118 = vector.shape_cast %1117 : vector<1x32x32xf32> to vector<32x32xf32>
    %cst_360 = arith.constant dense<0.000000e+00> : vector<32x32xf32>
    %1119 = tpu.matmul %1116, %1118, %cst_360 {dimension_numbers = #tpu.dot_dimension_numbers<[1], [0], [0], [1], [0, 0, 1, 1], [], []>} : vector<32x32xf32>, vector<32x32xf32>, vector<32x32xf32> -> vector<32x32xf32>
    %c26 = arith.constant 26 : index
    %c0_361 = arith.constant 0 : index
    %1120 = vector.load %arg8[%c26, %c0_361] : memref<46x32xf32, #tpu.memory_space<vmem>>, vector<1x32xf32>
    %1121 = vector.broadcast %1120 : vector<1x32xf32> to vector<32x32xf32>
    %1122 = arith.addf %1119, %1121 : vector<32x32xf32>
    %1123 = vector.extract_strided_slice %1029 {offsets = [0, 0], sizes = [8, 32], strides = [1, 1]} : vector<16x32xf32> to vector<8x32xf32>
    %1124 = vector.extract_strided_slice %1000 {offsets = [0, 0], sizes = [16, 32], strides = [1, 1]} : vector<32x32xf32> to vector<16x32xf32>
    %1125 = vector.extract_strided_slice %1001 {offsets = [0, 0], sizes = [16, 32], strides = [1, 1]} : vector<32x32xf32> to vector<16x32xf32>
    %1126 = vector.extract_strided_slice %1123 {offsets = [0, 0], sizes = [8, 16], strides = [1, 1]} : vector<8x32xf32> to vector<8x16xf32>
    %1127 = vector.extract_strided_slice %1124 {offsets = [0, 0], sizes = [16, 16], strides = [1, 1]} : vector<16x32xf32> to vector<16x16xf32>
    %cst_362 = arith.constant dense<0.000000e+00> : vector<8x16xf32>
    %1128 = tpu.matmul %1126, %1127, %cst_362 {dimension_numbers = #tpu.dot_dimension_numbers<[1], [1], [0], [0], [0, 0, 1, 0], [], []>} : vector<8x16xf32>, vector<16x16xf32>, vector<8x16xf32> -> vector<8x16xf32>
    %cst_363 = arith.constant 2.500000e-01 : f32
    %1129 = vector.broadcast %cst_363 : f32 to vector<8x16xf32>
    %1130 = arith.mulf %1128, %1129 : vector<8x16xf32>
    %1131 = vector.broadcast %143 : vector<1x16xf32> to vector<8x16xf32>
    %1132 = arith.addf %1130, %1131 : vector<8x16xf32>
    %cst_364 = arith.constant dense<0xFF800000> : vector<8xf32>
    %1133 = vector.multi_reduction <maximumf>, %1132, %cst_364 [1] : vector<8x16xf32> to vector<8xf32>
    %1134 = vector.shape_cast %1133 : vector<8xf32> to vector<8x1xf32>
    %1135 = vector.broadcast %1134 : vector<8x1xf32> to vector<8x16xf32>
    %1136 = arith.subf %1132, %1135 : vector<8x16xf32>
    %1137 = math.exp %1136 : vector<8x16xf32>
    %cst_365 = arith.constant dense<0.000000e+00> : vector<8xf32>
    %1138 = vector.multi_reduction <add>, %1137, %cst_365 [1] : vector<8x16xf32> to vector<8xf32>
    %1139 = vector.shape_cast %1138 : vector<8xf32> to vector<8x1xf32>
    %1140 = tpu.reciprocal %1139 {approx = true} : vector<8x1xf32> -> vector<8x1xf32>
    %1141 = vector.broadcast %1140 : vector<8x1xf32> to vector<8x16xf32>
    %1142 = arith.mulf %1137, %1141 : vector<8x16xf32>
    %1143 = vector.extract_strided_slice %1125 {offsets = [0, 0], sizes = [16, 16], strides = [1, 1]} : vector<16x32xf32> to vector<16x16xf32>
    %cst_366 = arith.constant dense<0.000000e+00> : vector<8x16xf32>
    %1144 = tpu.matmul %1142, %1143, %cst_366 {dimension_numbers = #tpu.dot_dimension_numbers<[1], [0], [0], [1], [0, 0, 1, 1], [], []>} : vector<8x16xf32>, vector<16x16xf32>, vector<8x16xf32> -> vector<8x16xf32>
    %1145 = vector.extract_strided_slice %1123 {offsets = [0, 16], sizes = [8, 16], strides = [1, 1]} : vector<8x32xf32> to vector<8x16xf32>
    %1146 = vector.extract_strided_slice %1124 {offsets = [0, 16], sizes = [16, 16], strides = [1, 1]} : vector<16x32xf32> to vector<16x16xf32>
    %cst_367 = arith.constant dense<0.000000e+00> : vector<8x16xf32>
    %1147 = tpu.matmul %1145, %1146, %cst_367 {dimension_numbers = #tpu.dot_dimension_numbers<[1], [1], [0], [0], [0, 0, 1, 0], [], []>} : vector<8x16xf32>, vector<16x16xf32>, vector<8x16xf32> -> vector<8x16xf32>
    %cst_368 = arith.constant 2.500000e-01 : f32
    %1148 = vector.broadcast %cst_368 : f32 to vector<8x16xf32>
    %1149 = arith.mulf %1147, %1148 : vector<8x16xf32>
    %1150 = vector.broadcast %143 : vector<1x16xf32> to vector<8x16xf32>
    %1151 = arith.addf %1149, %1150 : vector<8x16xf32>
    %cst_369 = arith.constant dense<0xFF800000> : vector<8xf32>
    %1152 = vector.multi_reduction <maximumf>, %1151, %cst_369 [1] : vector<8x16xf32> to vector<8xf32>
    %1153 = vector.shape_cast %1152 : vector<8xf32> to vector<8x1xf32>
    %1154 = vector.broadcast %1153 : vector<8x1xf32> to vector<8x16xf32>
    %1155 = arith.subf %1151, %1154 : vector<8x16xf32>
    %1156 = math.exp %1155 : vector<8x16xf32>
    %cst_370 = arith.constant dense<0.000000e+00> : vector<8xf32>
    %1157 = vector.multi_reduction <add>, %1156, %cst_370 [1] : vector<8x16xf32> to vector<8xf32>
    %1158 = vector.shape_cast %1157 : vector<8xf32> to vector<8x1xf32>
    %1159 = tpu.reciprocal %1158 {approx = true} : vector<8x1xf32> -> vector<8x1xf32>
    %1160 = vector.broadcast %1159 : vector<8x1xf32> to vector<8x16xf32>
    %1161 = arith.mulf %1156, %1160 : vector<8x16xf32>
    %1162 = vector.extract_strided_slice %1125 {offsets = [0, 16], sizes = [16, 16], strides = [1, 1]} : vector<16x32xf32> to vector<16x16xf32>
    %cst_371 = arith.constant dense<0.000000e+00> : vector<8x16xf32>
    %1163 = tpu.matmul %1161, %1162, %cst_371 {dimension_numbers = #tpu.dot_dimension_numbers<[1], [0], [0], [1], [0, 0, 1, 1], [], []>} : vector<8x16xf32>, vector<16x16xf32>, vector<8x16xf32> -> vector<8x16xf32>
    %1164 = tpu.concatenate %1144, %1163 in 1 : vector<8x16xf32>, vector<8x16xf32> -> vector<8x32xf32>
    %1165 = vector.extract_strided_slice %1029 {offsets = [8, 0], sizes = [8, 32], strides = [1, 1]} : vector<16x32xf32> to vector<8x32xf32>
    %1166 = vector.extract_strided_slice %1000 {offsets = [16, 0], sizes = [16, 32], strides = [1, 1]} : vector<32x32xf32> to vector<16x32xf32>
    %1167 = vector.extract_strided_slice %1001 {offsets = [16, 0], sizes = [16, 32], strides = [1, 1]} : vector<32x32xf32> to vector<16x32xf32>
    %1168 = vector.extract_strided_slice %1165 {offsets = [0, 0], sizes = [8, 16], strides = [1, 1]} : vector<8x32xf32> to vector<8x16xf32>
    %1169 = vector.extract_strided_slice %1166 {offsets = [0, 0], sizes = [16, 16], strides = [1, 1]} : vector<16x32xf32> to vector<16x16xf32>
    %cst_372 = arith.constant dense<0.000000e+00> : vector<8x16xf32>
    %1170 = tpu.matmul %1168, %1169, %cst_372 {dimension_numbers = #tpu.dot_dimension_numbers<[1], [1], [0], [0], [0, 0, 1, 0], [], []>} : vector<8x16xf32>, vector<16x16xf32>, vector<8x16xf32> -> vector<8x16xf32>
    %cst_373 = arith.constant 2.500000e-01 : f32
    %1171 = vector.broadcast %cst_373 : f32 to vector<8x16xf32>
    %1172 = arith.mulf %1170, %1171 : vector<8x16xf32>
    %1173 = vector.broadcast %143 : vector<1x16xf32> to vector<8x16xf32>
    %1174 = arith.addf %1172, %1173 : vector<8x16xf32>
    %cst_374 = arith.constant dense<0xFF800000> : vector<8xf32>
    %1175 = vector.multi_reduction <maximumf>, %1174, %cst_374 [1] : vector<8x16xf32> to vector<8xf32>
    %1176 = vector.shape_cast %1175 : vector<8xf32> to vector<8x1xf32>
    %1177 = vector.broadcast %1176 : vector<8x1xf32> to vector<8x16xf32>
    %1178 = arith.subf %1174, %1177 : vector<8x16xf32>
    %1179 = math.exp %1178 : vector<8x16xf32>
    %cst_375 = arith.constant dense<0.000000e+00> : vector<8xf32>
    %1180 = vector.multi_reduction <add>, %1179, %cst_375 [1] : vector<8x16xf32> to vector<8xf32>
    %1181 = vector.shape_cast %1180 : vector<8xf32> to vector<8x1xf32>
    %1182 = tpu.reciprocal %1181 {approx = true} : vector<8x1xf32> -> vector<8x1xf32>
    %1183 = vector.broadcast %1182 : vector<8x1xf32> to vector<8x16xf32>
    %1184 = arith.mulf %1179, %1183 : vector<8x16xf32>
    %1185 = vector.extract_strided_slice %1167 {offsets = [0, 0], sizes = [16, 16], strides = [1, 1]} : vector<16x32xf32> to vector<16x16xf32>
    %cst_376 = arith.constant dense<0.000000e+00> : vector<8x16xf32>
    %1186 = tpu.matmul %1184, %1185, %cst_376 {dimension_numbers = #tpu.dot_dimension_numbers<[1], [0], [0], [1], [0, 0, 1, 1], [], []>} : vector<8x16xf32>, vector<16x16xf32>, vector<8x16xf32> -> vector<8x16xf32>
    %1187 = vector.extract_strided_slice %1165 {offsets = [0, 16], sizes = [8, 16], strides = [1, 1]} : vector<8x32xf32> to vector<8x16xf32>
    %1188 = vector.extract_strided_slice %1166 {offsets = [0, 16], sizes = [16, 16], strides = [1, 1]} : vector<16x32xf32> to vector<16x16xf32>
    %cst_377 = arith.constant dense<0.000000e+00> : vector<8x16xf32>
    %1189 = tpu.matmul %1187, %1188, %cst_377 {dimension_numbers = #tpu.dot_dimension_numbers<[1], [1], [0], [0], [0, 0, 1, 0], [], []>} : vector<8x16xf32>, vector<16x16xf32>, vector<8x16xf32> -> vector<8x16xf32>
    %cst_378 = arith.constant 2.500000e-01 : f32
    %1190 = vector.broadcast %cst_378 : f32 to vector<8x16xf32>
    %1191 = arith.mulf %1189, %1190 : vector<8x16xf32>
    %1192 = vector.broadcast %143 : vector<1x16xf32> to vector<8x16xf32>
    %1193 = arith.addf %1191, %1192 : vector<8x16xf32>
    %cst_379 = arith.constant dense<0xFF800000> : vector<8xf32>
    %1194 = vector.multi_reduction <maximumf>, %1193, %cst_379 [1] : vector<8x16xf32> to vector<8xf32>
    %1195 = vector.shape_cast %1194 : vector<8xf32> to vector<8x1xf32>
    %1196 = vector.broadcast %1195 : vector<8x1xf32> to vector<8x16xf32>
    %1197 = arith.subf %1193, %1196 : vector<8x16xf32>
    %1198 = math.exp %1197 : vector<8x16xf32>
    %cst_380 = arith.constant dense<0.000000e+00> : vector<8xf32>
    %1199 = vector.multi_reduction <add>, %1198, %cst_380 [1] : vector<8x16xf32> to vector<8xf32>
    %1200 = vector.shape_cast %1199 : vector<8xf32> to vector<8x1xf32>
    %1201 = tpu.reciprocal %1200 {approx = true} : vector<8x1xf32> -> vector<8x1xf32>
    %1202 = vector.broadcast %1201 : vector<8x1xf32> to vector<8x16xf32>
    %1203 = arith.mulf %1198, %1202 : vector<8x16xf32>
    %1204 = vector.extract_strided_slice %1167 {offsets = [0, 16], sizes = [16, 16], strides = [1, 1]} : vector<16x32xf32> to vector<16x16xf32>
    %cst_381 = arith.constant dense<0.000000e+00> : vector<8x16xf32>
    %1205 = tpu.matmul %1203, %1204, %cst_381 {dimension_numbers = #tpu.dot_dimension_numbers<[1], [0], [0], [1], [0, 0, 1, 1], [], []>} : vector<8x16xf32>, vector<16x16xf32>, vector<8x16xf32> -> vector<8x16xf32>
    %1206 = tpu.concatenate %1186, %1205 in 1 : vector<8x16xf32>, vector<8x16xf32> -> vector<8x32xf32>
    %1207 = tpu.concatenate %1164, %1206 in 0 : vector<8x32xf32>, vector<8x32xf32> -> vector<16x32xf32>
    %c7_382 = arith.constant 7 : index
    %c0_383 = arith.constant 0 : index
    %c0_384 = arith.constant 0 : index
    %1208 = vector.load %arg10[%c7_382, %c0_383, %c0_384] : memref<8x32x32xf32, #tpu.memory_space<vmem>>, vector<1x32x32xf32>
    %1209 = vector.shape_cast %1208 : vector<1x32x32xf32> to vector<32x32xf32>
    %cst_385 = arith.constant dense<0.000000e+00> : vector<16x32xf32>
    %1210 = tpu.matmul %1207, %1209, %cst_385 {dimension_numbers = #tpu.dot_dimension_numbers<[1], [0], [0], [1], [0, 0, 1, 1], [], []>} : vector<16x32xf32>, vector<32x32xf32>, vector<16x32xf32> -> vector<16x32xf32>
    %c29 = arith.constant 29 : index
    %c0_386 = arith.constant 0 : index
    %1211 = vector.load %arg8[%c29, %c0_386] : memref<46x32xf32, #tpu.memory_space<vmem>>, vector<1x32xf32>
    %1212 = vector.broadcast %1211 : vector<1x32xf32> to vector<16x32xf32>
    %1213 = arith.addf %1210, %1212 : vector<16x32xf32>
    %1214 = arith.addf %849, %1122 : vector<32x32xf32>
    %1215 = arith.addf %971, %1213 : vector<16x32xf32>
    %c36 = arith.constant 36 : index
    %c0_387 = arith.constant 0 : index
    %1216 = vector.load %arg8[%c36, %c0_387] : memref<46x32xf32, #tpu.memory_space<vmem>>, vector<1x32xf32>
    %c37 = arith.constant 37 : index
    %c0_388 = arith.constant 0 : index
    %1217 = vector.load %arg8[%c37, %c0_388] : memref<46x32xf32, #tpu.memory_space<vmem>>, vector<1x32xf32>
    %cst_389 = arith.constant dense<0.000000e+00> : vector<32xf32>
    %1218 = vector.multi_reduction <add>, %1214, %cst_389 [1] : vector<32x32xf32> to vector<32xf32>
    %1219 = vector.shape_cast %1218 : vector<32xf32> to vector<32x1xf32>
    %cst_390 = arith.constant 3.200000e+01 : f32
    %1220 = vector.broadcast %cst_390 : f32 to vector<32x1xf32>
    %1221 = arith.divf %1219, %1220 : vector<32x1xf32>
    %1222 = vector.broadcast %1221 : vector<32x1xf32> to vector<32x32xf32>
    %1223 = arith.subf %1214, %1222 : vector<32x32xf32>
    %1224 = arith.mulf %1223, %1223 : vector<32x32xf32>
    %cst_391 = arith.constant dense<0.000000e+00> : vector<32xf32>
    %1225 = vector.multi_reduction <add>, %1224, %cst_391 [1] : vector<32x32xf32> to vector<32xf32>
    %1226 = vector.shape_cast %1225 : vector<32xf32> to vector<32x1xf32>
    %cst_392 = arith.constant 3.200000e+01 : f32
    %1227 = vector.broadcast %cst_392 : f32 to vector<32x1xf32>
    %1228 = arith.divf %1226, %1227 : vector<32x1xf32>
    %1229 = vector.broadcast %1221 : vector<32x1xf32> to vector<32x32xf32>
    %1230 = arith.subf %1214, %1229 : vector<32x32xf32>
    %cst_393 = arith.constant 9.99999974E-6 : f32
    %1231 = vector.broadcast %cst_393 : f32 to vector<32x1xf32>
    %1232 = arith.addf %1228, %1231 : vector<32x1xf32>
    %1233 = math.rsqrt %1232 : vector<32x1xf32>
    %1234 = vector.broadcast %1233 : vector<32x1xf32> to vector<32x32xf32>
    %1235 = arith.mulf %1230, %1234 : vector<32x32xf32>
    %1236 = vector.broadcast %1216 : vector<1x32xf32> to vector<32x32xf32>
    %1237 = arith.mulf %1235, %1236 : vector<32x32xf32>
    %1238 = vector.broadcast %1217 : vector<1x32xf32> to vector<32x32xf32>
    %1239 = arith.addf %1237, %1238 : vector<32x32xf32>
    %c2_394 = arith.constant 2 : index
    %c0_395 = arith.constant 0 : index
    %c0_396 = arith.constant 0 : index
    %1240 = vector.load %arg11[%c2_394, %c0_395, %c0_396] : memref<4x32x64xf32, #tpu.memory_space<vmem>>, vector<1x32x64xf32>
    %1241 = vector.shape_cast %1240 : vector<1x32x64xf32> to vector<32x64xf32>
    %cst_397 = arith.constant dense<0.000000e+00> : vector<32x64xf32>
    %1242 = tpu.matmul %1239, %1241, %cst_397 {dimension_numbers = #tpu.dot_dimension_numbers<[1], [0], [0], [1], [0, 0, 1, 1], [], []>} : vector<32x32xf32>, vector<32x64xf32>, vector<32x64xf32> -> vector<32x64xf32>
    %c2_398 = arith.constant 2 : index
    %c0_399 = arith.constant 0 : index
    %1243 = vector.load %arg13[%c2_398, %c0_399] : memref<4x64xf32, #tpu.memory_space<vmem>>, vector<1x64xf32>
    %1244 = vector.broadcast %1243 : vector<1x64xf32> to vector<32x64xf32>
    %1245 = arith.addf %1242, %1244 : vector<32x64xf32>
    %cst_400 = arith.constant 5.000000e-01 : f32
    %1246 = vector.broadcast %cst_400 : f32 to vector<32x64xf32>
    %1247 = arith.mulf %1246, %1245 : vector<32x64xf32>
    %cst_401 = arith.constant 0.707106769 : f32
    %1248 = vector.broadcast %cst_401 : f32 to vector<32x64xf32>
    %1249 = arith.mulf %1245, %1248 : vector<32x64xf32>
    %1250 = math.erf %1249 : vector<32x64xf32>
    %cst_402 = arith.constant 1.000000e+00 : f32
    %1251 = vector.broadcast %cst_402 : f32 to vector<32x64xf32>
    %1252 = arith.addf %1251, %1250 : vector<32x64xf32>
    %1253 = arith.mulf %1247, %1252 : vector<32x64xf32>
    %c2_403 = arith.constant 2 : index
    %c0_404 = arith.constant 0 : index
    %c0_405 = arith.constant 0 : index
    %1254 = vector.load %arg12[%c2_403, %c0_404, %c0_405] : memref<4x64x32xf32, #tpu.memory_space<vmem>>, vector<1x64x32xf32>
    %1255 = vector.shape_cast %1254 : vector<1x64x32xf32> to vector<64x32xf32>
    %cst_406 = arith.constant dense<0.000000e+00> : vector<32x32xf32>
    %1256 = tpu.matmul %1253, %1255, %cst_406 {dimension_numbers = #tpu.dot_dimension_numbers<[1], [0], [0], [1], [0, 0, 1, 1], [], []>} : vector<32x64xf32>, vector<64x32xf32>, vector<32x32xf32> -> vector<32x32xf32>
    %c38 = arith.constant 38 : index
    %c0_407 = arith.constant 0 : index
    %1257 = vector.load %arg8[%c38, %c0_407] : memref<46x32xf32, #tpu.memory_space<vmem>>, vector<1x32xf32>
    %1258 = vector.broadcast %1257 : vector<1x32xf32> to vector<32x32xf32>
    %1259 = arith.addf %1256, %1258 : vector<32x32xf32>
    %1260 = arith.addf %1214, %1259 : vector<32x32xf32>
    %c39 = arith.constant 39 : index
    %c0_408 = arith.constant 0 : index
    %1261 = vector.load %arg8[%c39, %c0_408] : memref<46x32xf32, #tpu.memory_space<vmem>>, vector<1x32xf32>
    %c40 = arith.constant 40 : index
    %c0_409 = arith.constant 0 : index
    %1262 = vector.load %arg8[%c40, %c0_409] : memref<46x32xf32, #tpu.memory_space<vmem>>, vector<1x32xf32>
    %cst_410 = arith.constant dense<0.000000e+00> : vector<16xf32>
    %1263 = vector.multi_reduction <add>, %1215, %cst_410 [1] : vector<16x32xf32> to vector<16xf32>
    %1264 = vector.shape_cast %1263 : vector<16xf32> to vector<16x1xf32>
    %cst_411 = arith.constant 3.200000e+01 : f32
    %1265 = vector.broadcast %cst_411 : f32 to vector<16x1xf32>
    %1266 = arith.divf %1264, %1265 : vector<16x1xf32>
    %1267 = vector.broadcast %1266 : vector<16x1xf32> to vector<16x32xf32>
    %1268 = arith.subf %1215, %1267 : vector<16x32xf32>
    %1269 = arith.mulf %1268, %1268 : vector<16x32xf32>
    %cst_412 = arith.constant dense<0.000000e+00> : vector<16xf32>
    %1270 = vector.multi_reduction <add>, %1269, %cst_412 [1] : vector<16x32xf32> to vector<16xf32>
    %1271 = vector.shape_cast %1270 : vector<16xf32> to vector<16x1xf32>
    %cst_413 = arith.constant 3.200000e+01 : f32
    %1272 = vector.broadcast %cst_413 : f32 to vector<16x1xf32>
    %1273 = arith.divf %1271, %1272 : vector<16x1xf32>
    %1274 = vector.broadcast %1266 : vector<16x1xf32> to vector<16x32xf32>
    %1275 = arith.subf %1215, %1274 : vector<16x32xf32>
    %cst_414 = arith.constant 9.99999974E-6 : f32
    %1276 = vector.broadcast %cst_414 : f32 to vector<16x1xf32>
    %1277 = arith.addf %1273, %1276 : vector<16x1xf32>
    %1278 = math.rsqrt %1277 : vector<16x1xf32>
    %1279 = vector.broadcast %1278 : vector<16x1xf32> to vector<16x32xf32>
    %1280 = arith.mulf %1275, %1279 : vector<16x32xf32>
    %1281 = vector.broadcast %1261 : vector<1x32xf32> to vector<16x32xf32>
    %1282 = arith.mulf %1280, %1281 : vector<16x32xf32>
    %1283 = vector.broadcast %1262 : vector<1x32xf32> to vector<16x32xf32>
    %1284 = arith.addf %1282, %1283 : vector<16x32xf32>
    %c3_415 = arith.constant 3 : index
    %c0_416 = arith.constant 0 : index
    %c0_417 = arith.constant 0 : index
    %1285 = vector.load %arg11[%c3_415, %c0_416, %c0_417] : memref<4x32x64xf32, #tpu.memory_space<vmem>>, vector<1x32x64xf32>
    %1286 = vector.shape_cast %1285 : vector<1x32x64xf32> to vector<32x64xf32>
    %cst_418 = arith.constant dense<0.000000e+00> : vector<16x64xf32>
    %1287 = tpu.matmul %1284, %1286, %cst_418 {dimension_numbers = #tpu.dot_dimension_numbers<[1], [0], [0], [1], [0, 0, 1, 1], [], []>} : vector<16x32xf32>, vector<32x64xf32>, vector<16x64xf32> -> vector<16x64xf32>
    %c3_419 = arith.constant 3 : index
    %c0_420 = arith.constant 0 : index
    %1288 = vector.load %arg13[%c3_419, %c0_420] : memref<4x64xf32, #tpu.memory_space<vmem>>, vector<1x64xf32>
    %1289 = vector.broadcast %1288 : vector<1x64xf32> to vector<16x64xf32>
    %1290 = arith.addf %1287, %1289 : vector<16x64xf32>
    %cst_421 = arith.constant 5.000000e-01 : f32
    %1291 = vector.broadcast %cst_421 : f32 to vector<16x64xf32>
    %1292 = arith.mulf %1291, %1290 : vector<16x64xf32>
    %cst_422 = arith.constant 0.707106769 : f32
    %1293 = vector.broadcast %cst_422 : f32 to vector<16x64xf32>
    %1294 = arith.mulf %1290, %1293 : vector<16x64xf32>
    %1295 = math.erf %1294 : vector<16x64xf32>
    %cst_423 = arith.constant 1.000000e+00 : f32
    %1296 = vector.broadcast %cst_423 : f32 to vector<16x64xf32>
    %1297 = arith.addf %1296, %1295 : vector<16x64xf32>
    %1298 = arith.mulf %1292, %1297 : vector<16x64xf32>
    %c3_424 = arith.constant 3 : index
    %c0_425 = arith.constant 0 : index
    %c0_426 = arith.constant 0 : index
    %1299 = vector.load %arg12[%c3_424, %c0_425, %c0_426] : memref<4x64x32xf32, #tpu.memory_space<vmem>>, vector<1x64x32xf32>
    %1300 = vector.shape_cast %1299 : vector<1x64x32xf32> to vector<64x32xf32>
    %cst_427 = arith.constant dense<0.000000e+00> : vector<16x32xf32>
    %1301 = tpu.matmul %1298, %1300, %cst_427 {dimension_numbers = #tpu.dot_dimension_numbers<[1], [0], [0], [1], [0, 0, 1, 1], [], []>} : vector<16x64xf32>, vector<64x32xf32>, vector<16x32xf32> -> vector<16x32xf32>
    %c41 = arith.constant 41 : index
    %c0_428 = arith.constant 0 : index
    %1302 = vector.load %arg8[%c41, %c0_428] : memref<46x32xf32, #tpu.memory_space<vmem>>, vector<1x32xf32>
    %1303 = vector.broadcast %1302 : vector<1x32xf32> to vector<16x32xf32>
    %1304 = arith.addf %1301, %1303 : vector<16x32xf32>
    %1305 = arith.addf %1215, %1304 : vector<16x32xf32>
    %1306 = vector.extract_strided_slice %1260 {offsets = [0, 0], sizes = [1, 32], strides = [1, 1]} : vector<32x32xf32> to vector<1x32xf32>
    %1307 = vector.extract_strided_slice %1260 {offsets = [16, 0], sizes = [1, 32], strides = [1, 1]} : vector<32x32xf32> to vector<1x32xf32>
    %1308 = tpu.concatenate %1306, %1307 in 0 : vector<1x32xf32>, vector<1x32xf32> -> vector<2x32xf32>
    %1309 = vector.extract_strided_slice %1305 {offsets = [0, 0], sizes = [1, 32], strides = [1, 1]} : vector<16x32xf32> to vector<1x32xf32>
    %1310 = vector.extract_strided_slice %1305 {offsets = [8, 0], sizes = [1, 32], strides = [1, 1]} : vector<16x32xf32> to vector<1x32xf32>
    %1311 = tpu.concatenate %1309, %1310 in 0 : vector<1x32xf32>, vector<1x32xf32> -> vector<2x32xf32>
    %c42 = arith.constant 42 : index
    %c0_429 = arith.constant 0 : index
    %1312 = vector.load %arg8[%c42, %c0_429] : memref<46x32xf32, #tpu.memory_space<vmem>>, vector<1x32xf32>
    %c43 = arith.constant 43 : index
    %c0_430 = arith.constant 0 : index
    %1313 = vector.load %arg8[%c43, %c0_430] : memref<46x32xf32, #tpu.memory_space<vmem>>, vector<1x32xf32>
    %cst_431 = arith.constant dense<0.000000e+00> : vector<2xf32>
    %1314 = vector.multi_reduction <add>, %1308, %cst_431 [1] : vector<2x32xf32> to vector<2xf32>
    %1315 = vector.shape_cast %1314 : vector<2xf32> to vector<2x1xf32>
    %cst_432 = arith.constant 3.200000e+01 : f32
    %1316 = vector.broadcast %cst_432 : f32 to vector<2x1xf32>
    %1317 = arith.divf %1315, %1316 : vector<2x1xf32>
    %1318 = vector.broadcast %1317 : vector<2x1xf32> to vector<2x32xf32>
    %1319 = arith.subf %1308, %1318 : vector<2x32xf32>
    %1320 = arith.mulf %1319, %1319 : vector<2x32xf32>
    %cst_433 = arith.constant dense<0.000000e+00> : vector<2xf32>
    %1321 = vector.multi_reduction <add>, %1320, %cst_433 [1] : vector<2x32xf32> to vector<2xf32>
    %1322 = vector.shape_cast %1321 : vector<2xf32> to vector<2x1xf32>
    %cst_434 = arith.constant 3.200000e+01 : f32
    %1323 = vector.broadcast %cst_434 : f32 to vector<2x1xf32>
    %1324 = arith.divf %1322, %1323 : vector<2x1xf32>
    %1325 = vector.broadcast %1317 : vector<2x1xf32> to vector<2x32xf32>
    %1326 = arith.subf %1308, %1325 : vector<2x32xf32>
    %cst_435 = arith.constant 9.99999974E-6 : f32
    %1327 = vector.broadcast %cst_435 : f32 to vector<2x1xf32>
    %1328 = arith.addf %1324, %1327 : vector<2x1xf32>
    %1329 = math.rsqrt %1328 : vector<2x1xf32>
    %1330 = vector.broadcast %1329 : vector<2x1xf32> to vector<2x32xf32>
    %1331 = arith.mulf %1326, %1330 : vector<2x32xf32>
    %1332 = vector.broadcast %1312 : vector<1x32xf32> to vector<2x32xf32>
    %1333 = arith.mulf %1331, %1332 : vector<2x32xf32>
    %1334 = vector.broadcast %1313 : vector<1x32xf32> to vector<2x32xf32>
    %1335 = arith.addf %1333, %1334 : vector<2x32xf32>
    %c0_436 = arith.constant 0 : index
    %c0_437 = arith.constant 0 : index
    %c0_438 = arith.constant 0 : index
    %1336 = vector.load %arg14[%c0_436, %c0_437, %c0_438] : memref<2x32x5xf32, #tpu.memory_space<vmem>>, vector<1x32x5xf32>
    %1337 = vector.shape_cast %1336 : vector<1x32x5xf32> to vector<32x5xf32>
    %cst_439 = arith.constant dense<0.000000e+00> : vector<2x5xf32>
    %1338 = tpu.matmul %1335, %1337, %cst_439 {dimension_numbers = #tpu.dot_dimension_numbers<[1], [0], [0], [1], [0, 0, 1, 1], [], []>} : vector<2x32xf32>, vector<32x5xf32>, vector<2x5xf32> -> vector<2x5xf32>
    %c44 = arith.constant 44 : index
    %c0_440 = arith.constant 0 : index
    %1339 = vector.load %arg8[%c44, %c0_440] : memref<46x32xf32, #tpu.memory_space<vmem>>, vector<1x32xf32>
    %c45 = arith.constant 45 : index
    %c0_441 = arith.constant 0 : index
    %1340 = vector.load %arg8[%c45, %c0_441] : memref<46x32xf32, #tpu.memory_space<vmem>>, vector<1x32xf32>
    %cst_442 = arith.constant dense<0.000000e+00> : vector<2xf32>
    %1341 = vector.multi_reduction <add>, %1311, %cst_442 [1] : vector<2x32xf32> to vector<2xf32>
    %1342 = vector.shape_cast %1341 : vector<2xf32> to vector<2x1xf32>
    %cst_443 = arith.constant 3.200000e+01 : f32
    %1343 = vector.broadcast %cst_443 : f32 to vector<2x1xf32>
    %1344 = arith.divf %1342, %1343 : vector<2x1xf32>
    %1345 = vector.broadcast %1344 : vector<2x1xf32> to vector<2x32xf32>
    %1346 = arith.subf %1311, %1345 : vector<2x32xf32>
    %1347 = arith.mulf %1346, %1346 : vector<2x32xf32>
    %cst_444 = arith.constant dense<0.000000e+00> : vector<2xf32>
    %1348 = vector.multi_reduction <add>, %1347, %cst_444 [1] : vector<2x32xf32> to vector<2xf32>
    %1349 = vector.shape_cast %1348 : vector<2xf32> to vector<2x1xf32>
    %cst_445 = arith.constant 3.200000e+01 : f32
    %1350 = vector.broadcast %cst_445 : f32 to vector<2x1xf32>
    %1351 = arith.divf %1349, %1350 : vector<2x1xf32>
    %1352 = vector.broadcast %1344 : vector<2x1xf32> to vector<2x32xf32>
    %1353 = arith.subf %1311, %1352 : vector<2x32xf32>
    %cst_446 = arith.constant 9.99999974E-6 : f32
    %1354 = vector.broadcast %cst_446 : f32 to vector<2x1xf32>
    %1355 = arith.addf %1351, %1354 : vector<2x1xf32>
    %1356 = math.rsqrt %1355 : vector<2x1xf32>
    %1357 = vector.broadcast %1356 : vector<2x1xf32> to vector<2x32xf32>
    %1358 = arith.mulf %1353, %1357 : vector<2x32xf32>
    %1359 = vector.broadcast %1339 : vector<1x32xf32> to vector<2x32xf32>
    %1360 = arith.mulf %1358, %1359 : vector<2x32xf32>
    %1361 = vector.broadcast %1340 : vector<1x32xf32> to vector<2x32xf32>
    %1362 = arith.addf %1360, %1361 : vector<2x32xf32>
    %c1_447 = arith.constant 1 : index
    %c0_448 = arith.constant 0 : index
    %c0_449 = arith.constant 0 : index
    %1363 = vector.load %arg14[%c1_447, %c0_448, %c0_449] : memref<2x32x5xf32, #tpu.memory_space<vmem>>, vector<1x32x5xf32>
    %1364 = vector.shape_cast %1363 : vector<1x32x5xf32> to vector<32x5xf32>
    %cst_450 = arith.constant dense<0.000000e+00> : vector<2x5xf32>
    %1365 = tpu.matmul %1362, %1364, %cst_450 {dimension_numbers = #tpu.dot_dimension_numbers<[1], [0], [0], [1], [0, 0, 1, 1], [], []>} : vector<2x32xf32>, vector<32x5xf32>, vector<2x5xf32> -> vector<2x5xf32>
    %1366 = arith.addf %1338, %1365 : vector<2x5xf32>
    %c0_451 = arith.constant 0 : index
    %c0_452 = arith.constant 0 : index
    %1367 = vector.load %arg15[%c0_451, %c0_452] : memref<1x5xf32, #tpu.memory_space<vmem>>, vector<1x5xf32>
    %1368 = vector.broadcast %1367 : vector<1x5xf32> to vector<2x5xf32>
    %1369 = arith.addf %1366, %1368 : vector<2x5xf32>
    %c0_453 = arith.constant 0 : index
    %c0_454 = arith.constant 0 : index
    %1370 = vector.load %arg16[%c0_453, %c0_454] : memref<2x5xf32, #tpu.memory_space<vmem>>, vector<2x5xf32>
    tpu.vector_store %arg16[%c0_453, %c0_454], %1369 {strides = array<i32>} : memref<2x5xf32, #tpu.memory_space<vmem>>, vector<2x5xf32>,
    return
  }
}

</mosaic_0001>

<bundles_post_ra>
// kernel: vit_forward.1
= control target key start
LH: loop header
LB: loop body
LE: loop exit
PB: predicated region body
PF: predicated region fallthrough
CT: control target
= control target key end

     0   :  { %s9499_s0 = inlined_call_operand.vmem [shape: f32[32,384], index: 0, kind: input, shape index: {}]   ;;  %s9500_s1 = inlined_call_operand.vmem [shape: f32[16,24], index: 1, kind: input, shape index: {}]   ;;  %s9501_s2 = inlined_call_operand.vmem [shape: f32[32,32], index: 2, kind: input, shape index: {}]   ;;  %s9502_s3 = inlined_call_operand.vmem [shape: f32[16,32], index: 3, kind: input, shape index: {}]   ;;  %s9503_s4 = inlined_call_operand.vmem [shape: f32[2,384], index: 4, kind: input, shape index: {}]   ;;  %s9504_s5 = inlined_call_operand.vmem [shape: f32[384,32], index: 5, kind: input, shape index: {}]   ;;  %s9505_s6 = inlined_call_operand.vmem [shape: f32[2,24], index: 6, kind: input, shape index: {}]   ;;  %s9506_s7 = inlined_call_operand.vmem [shape: f32[24,32], index: 7, kind: input, shape index: {}]   ;;  %s9507_s8 = inlined_call_operand.vmem [shape: f32[46,32], index: 8, kind: input, shape index: {}]   ;;  %s9508_s9 = inlined_call_operand.vmem [shape: f32[8,32,96], index: 9, kind: input, shape index: {}]   ;;  %s9509_s10 = inlined_call_operand.vmem [shape: f32[8,32,32], index: 10, kind: input, shape index: {}]   ;;  %s9510_s11 = inlined_call_operand.vmem [shape: f32[4,32,64], index: 11, kind: input, shape index: {}]   ;;  %s9511_s12 = inlined_call_operand.vmem [shape: f32[4,64,32], index: 12, kind: input, shape index: {}]   ;;  %s9512_s13 = inlined_call_operand.vmem [shape: f32[4,64], index: 13, kind: input, shape index: {}]   ;;  %s9513_s14 = inlined_call_operand.vmem [shape: f32[2,32,5], index: 14, kind: input, shape index: {}]   ;;  %s9514_s15 = inlined_call_operand.vmem [shape: f32[1,5], index: 15, kind: input, shape index: {}]   ;;  %s9515_s16 = inlined_call_operand.hbm [shape: f32[2,5], index: 16, kind: output, shape index: {}]  }
   0x1   :  { %9517 = sst [smem:[#allocation5_spill]] %s9499_s0 }
   0x2   :  { %s9518_s23 = sld [smem:[#allocation5_spill]] }
   0x8   :  { %v93_v0 = vld [vmem:[%s9518_s23] sm:$0xff]  ;;  %v94_v1 = vld [vmem:[%s9518_s23 + $0x8] sm:$0xff]  ;;  %v95_v2 = vld [vmem:[%s9518_s23 + $0x10] sm:$0xff] }
   0x9   :  { %v108_v3 = vadd.f32 %v94_v1, %v93_v0  ;;  %v96_v4 = vld [vmem:[%s9518_s23 + $0x18] sm:$0xff]  ;;  %v97_v5 = vld [vmem:[%s9518_s23 + $0x20] sm:$0xff]  ;;  %v98_v7 = vld [vmem:[%s9518_s23 + $0x28] sm:$0xff] }
   0xa   :  { %v112_v8 = vadd.f32 %v97_v5, %v96_v4 }
   0xb   :  { %v109_v6 = vadd.f32 %v108_v3, %v95_v2 }
   0xc   :  { %v113_v9 = vadd.f32 %v112_v8, %v98_v7 }
   0xd   :  { %110 = vadd.xlane.f32.xlu0 %v109_v6 }
  0x15   :  { %114 = vadd.xlane.f32.xlu0 %v113_v9 }
  0x16   :  { %21 = vsyncpa [#allocation3], 0  ;;  %v6901_v10 = vmov 384.0   ;;  %v7019_v14 = vld [vmem:[%s9518_s23 + $0x30] sm:$0xff]  ;;  %v7024_v15 = vld [vmem:[%s9518_s23 + $0x38] sm:$0xff]  ;;  %vm412_vm10 = vcmask 261120  }
  0x17   :  { %6553 = vrcp.f32 %v6901_v10  ;;  %v7029_v16 = vld [vmem:[%s9518_s23 + $0x40] sm:$0xff]  ;;  %v116_v17 = vadd.f32 %v7024_v15, %v7019_v14  ;;  %v288_v18 = vld [vmem:[%s9504_s5 + $0x78] sm:$0xff]  ;;  %v287_v21 = vld [vmem:[%s9504_s5 + $0x70] sm:$0xff]  ;;  %vm532_vm11 = vcmask 195584   ;;  %s6906_s28 = smov 96   ;;  %s6907_s30 = smov 64  }
  0x18   :  { %v304_v19 = vld [vmem:[%s9504_s5 + $0xf8] sm:$0xff]  ;;  %323 = vmatpush.msra.mxu0 %v288_v18  ;;  %v303_v22 = vld [vmem:[%s9504_s5 + $0xf0] sm:$0xff]  ;;  %v7083_v48 = vld [vmem:[%s9518_s23 + $0x48] sm:$0xff]  ;;  %s6908_s19 = smov 112   ;;  %s6909_s20 = smov 80  }
  0x19   :  { %v320_v20 = vld [vmem:[%s9504_s5 + $0x178] sm:$0xff]  ;;  %352 = vmatpush.msra.mxu1 %v304_v19  ;;  %v319_v23 = vld [vmem:[%s9504_s5 + $0x170] sm:$0xff]  ;;  %v117_v25 = vadd.f32 %v116_v17, %v7029_v16  ;;  %v286_v50 = vld [vmem:[%s9504_s5 + $0x68] sm:$0xff]  ;;  %s6068_s27 = sshll.u32 %s9515_s16, 4  ;;  %s6069_s27 = int_to_ptr.hbm [resolvable:$true] %s6068_s27 }
  0x1a   :  { %381 = vmatpush.msra.mxu2 %v320_v20  ;;  %324 = vmatpush.msra.mxu0 %v287_v21  ;;  %v7088_v49 = vld [vmem:[%s9518_s23 + $0x50] sm:$0xff]  ;;  %v302_v51 = vld [vmem:[%s9504_s5 + $0xe8] sm:$0xff]  ;;  %v7104_v54 = vld [vmem:[%s9518_s23 + $0x58] sm:$0xff] }
  0x1b   :  { %353 = vmatpush.msra.mxu1 %v303_v22  ;;  %118 = vadd.xlane.f32.xlu2 %v117_v25  ;;  %v318_v52 = vld [vmem:[%s9504_s5 + $0x168] sm:$0xff]  ;;  %v120_v53 = vadd.f32 %v7088_v49, %v7083_v48  ;;  %v285_v55 = vld [vmem:[%s9504_s5 + $0x60] sm:$0xff]  ;;  %v284_v59 = vld [vmem:[%s9504_s5 + $0x58] sm:$0xff] }
  0x1c   :  { %382 = vmatpush.msra.mxu2 %v319_v23  ;;  %325 = vmatpush.msra.mxu0 %v286_v50  ;;  %v301_v56 = vld [vmem:[%s9504_s5 + $0xe0] sm:$0xff]  ;;  %v300_v60 = vld [vmem:[%s9504_s5 + $0xd8] sm:$0xff]  ;;  %v283_v62 = vld [vmem:[%s9504_s5 + $0x50] sm:$0xff] }
  0x1d   :  { %v6554_v11 = vpop.eup %6553  ;;  %354 = vmatpush.msra.mxu1 %v302_v51  ;;  %v317_v57 = vld [vmem:[%s9504_s5 + $0x160] sm:$0xff]  ;;  %v121_v58 = vadd.f32 %v120_v53, %v7104_v54  ;;  %v316_v61 = vld [vmem:[%s9504_s5 + $0x158] sm:$0xff]  ;;  %v299_v63 = vld [vmem:[%s9504_s5 + $0xd0] sm:$0xff] }
  0x1e   :  { %v125_v12 = vmul.f32 384.0, %v6554_v11  ;;  %vm129_vm0 = vweird.f32 %v6554_v11  ;;  %383 = vmatpush.msra.mxu2 %v318_v52  ;;  %326 = vmatpush.msra.mxu0 %v285_v55  ;;  %v314_v3 = vld [vmem:[%s9504_s5 + $0x148] sm:$0xff]  ;;  %v313_v6 = vld [vmem:[%s9504_s5 + $0x140] sm:$0xff]  ;;  %v296_v8 = vld [vmem:[%s9504_s5 + $0xb8] sm:$0xff] }
  0x1f   :  { %355 = vmatpush.msra.mxu1 %v301_v56  ;;  %v312_v9 = vld [vmem:[%s9504_s5 + $0x138] sm:$0xff]  ;;  %v279_v10 = vld [vmem:[%s9504_s5 + $0x30] sm:$0xff]  ;;  %v294_v17 = vld [vmem:[%s9504_s5 + $0xa8] sm:$0xff] }
  0x20   :  { %v126_v13 = vsub.f32 1.0, %v125_v12  ;;  %384 = vmatpush.msra.mxu2 %v317_v57  ;;  %327 = vmatpush.msra.mxu0 %v284_v59  ;;  %v311_v12 = vld [vmem:[%s9504_s5 + $0x130] sm:$0xff]  ;;  %v310_v18 = vld [vmem:[%s9504_s5 + $0x128] sm:$0xff]  ;;  %v277_v19 = vld [vmem:[%s9504_s5 + $0x20] sm:$0xff] }
  0x21   :  { %356 = vmatpush.msra.mxu1 %v300_v60  ;;  %v293_v20 = vld [vmem:[%s9504_s5 + $0xa0] sm:$0xff]  ;;  %v276_v23 = vld [vmem:[%s9504_s5 + $0x18] sm:$0xff] }
  0x22   :  { %v127_v24 = vmul.f32 %v6554_v11, %v126_v13  ;;  %385 = vmatpush.msra.mxu2 %v316_v61  ;;  %328 = vmatpush.msra.mxu0 %v283_v62  ;;  %v278_v13 = vld [vmem:[%s9504_s5 + $0x28] sm:$0xff]  ;;  %v309_v21 = vld [vmem:[%s9504_s5 + $0x120] sm:$0xff]  ;;  %v308_v25 = vld [vmem:[%s9504_s5 + $0x118] sm:$0xff] }
  0x23   :  { %122 = vadd.xlane.f32.xlu2 %v121_v58  ;;  %357 = vmatpush.msra.mxu1 %v299_v63  ;;  %v105_v62 = vld [vmem:[%s9503_s4] ss:$2 sm:$0x7] }
  0x24   :  { %v128_v26 = vadd.f32 %v6554_v11, %v127_v24  ;;  %v292_v24 = vld [vmem:[%s9504_s5 + $0x98] sm:$0xff] }
  0x26   :  { %v7052_v27 = vsel %vm129_vm0, %v6554_v11, %v128_v26  ;;  %v295_v11 = vld [vmem:[%s9504_s5 + $0xb0] sm:$0xff] }
  0x80   :  { %v111_v28 = vpop.xlane.xlu0 %110 }
  0x81   :  { %v131_v29 = vmul.f32 %v7052_v27, %v111_v28  ;;  %v275_v28 = vld [vmem:[%s9504_s5 + $0x10] sm:$0xff] }
  0x83   :  { %v7055_v30 = vsub.f32 %v93_v0, %v131_v29  ;;  %v7057_v31 = vsub.f32 %v94_v1, %v131_v29  ;;  %v7059_v32 = vsub.f32 %v95_v2, %v131_v29  ;;  %v315_v0 = vld [vmem:[%s9504_s5 + $0x150] sm:$0xff]  ;;  %v282_v1 = vld [vmem:[%s9504_s5 + $0x48] sm:$0xff] }
  0x84   :  { %386 = vmatpush.msra.mxu2 %v315_v0  ;;  %v298_v2 = vld [vmem:[%s9504_s5 + $0xc8] sm:$0xff]  ;;  %329 = vmatpush.msra.mxu0 %v282_v1  ;;  %v291_v29 = vld [vmem:[%s9504_s5 + $0x90] sm:$0xff]  ;;  %v6077_v0 = vld [vmem:[%s9503_s4 + $0x1] ss:$2 sm:$0x7] }
  0x85   :  { %v147_v33 = vmul.f32 %v7055_v30, %v7055_v30  ;;  %v148_v34 = vmul.f32 %v7057_v31, %v7057_v31  ;;  %v149_v35 = vmul.f32 %v7059_v32, %v7059_v32  ;;  %358 = vmatpush.msra.mxu1 %v298_v2 }
  0x86   :  { %387 = vmatpush.msra.mxu2 %v314_v3  ;;  %v7248_v3 = vperm.slane %v105_v62, 0 }
  0x87   :  { %v159_v36 = vadd.f32 %v148_v34, %v147_v33  ;;  %v307_v33 = vld [vmem:[%s9504_s5 + $0x110] sm:$0xff] }
  0x88   :  { %v115_v37 = vpop.xlane.xlu0 %114  ;;  %388 = vmatpush.msra.mxu2 %v313_v6 }
  0x89   :  { %v132_v38 = vmul.f32 %v7052_v27, %v115_v37  ;;  %v160_v39 = vadd.f32 %v159_v36, %v149_v35  ;;  %v274_v36 = vld [vmem:[%s9504_s5 + $0x8] sm:$0xff] }
  0x8a   :  { %389 = vmatpush.msra.mxu2 %v312_v9  ;;  %v290_v37 = vld [vmem:[%s9504_s5 + $0x88] sm:$0xff]  ;;  %v7256_v9 = vperm.slane %v6077_v0, 1 }
  0x8b   :  { %v7068_v40 = vsub.f32 %v96_v4, %v132_v38  ;;  %v7070_v41 = vsub.f32 %v97_v5, %v132_v38  ;;  %161 = vadd.xlane.f32.xlu1 %v160_v39  ;;  %v7072_v42 = vsub.f32 %v98_v7, %v132_v38  ;;  %v281_v4 = vld [vmem:[%s9504_s5 + $0x40] sm:$0xff]  ;;  %v280_v7 = vld [vmem:[%s9504_s5 + $0x38] sm:$0xff]  ;;  %v306_v38 = vld [vmem:[%s9504_s5 + $0x108] sm:$0xff] }
  0x8c   :  { %v297_v5 = vld [vmem:[%s9504_s5 + $0xc0] sm:$0xff]  ;;  %330 = vmatpush.msra.mxu0 %v281_v4  ;;  %390 = vmatpush.msra.mxu2 %v311_v12  ;;  %v7250_v4 = vperm.slane %v105_v62, 1 }
  0x8d   :  { %v150_v43 = vmul.f32 %v7068_v40, %v7068_v40  ;;  %v151_v44 = vmul.f32 %v7070_v41, %v7070_v41  ;;  %v152_v45 = vmul.f32 %v7072_v42, %v7072_v42  ;;  %359 = vmatpush.msra.mxu1 %v297_v5  ;;  %v305_v39 = vld [vmem:[%s9504_s5 + $0x100] sm:$0xff]  ;;  %v7252_v5 = vperm.slane %v105_v62, 2 }
  0x8e   :  { %331 = vmatpush.msra.mxu0 %v280_v7  ;;  %391 = vmatpush.msra.mxu2 %v310_v18  ;;  %v119_v22 = vpop.xlane.xlu2 %118 }
  0x8f   :  { %v163_v46 = vadd.f32 %v151_v44, %v150_v43  ;;  %360 = vmatpush.msra.mxu1 %v296_v8  ;;  %v133_v26 = vmul.f32 %v7052_v27, %v119_v22  ;;  %v7254_v8 = vperm.slane %v6077_v0, 0 }
  0x90   :  { %332 = vmatpush.msra.mxu0 %v279_v10  ;;  %392 = vmatpush.msra.mxu2 %v309_v21 }
  0x91   :  { %v164_v47 = vadd.f32 %v163_v46, %v152_v45  ;;  %361 = vmatpush.msra.mxu1 %v295_v11  ;;  %v7208_v34 = vsub.f32 %v7019_v14, %v133_v26  ;;  %v7211_v35 = vsub.f32 %v7024_v15, %v133_v26  ;;  %v273_v14 = vld [vmem:[%s9504_s5] sm:$0xff]  ;;  %v7232_v43 = vsub.f32 %v7029_v16, %v133_v26 }
  0x92   :  { %333 = vmatpush.msra.mxu0 %v278_v13  ;;  %393 = vmatpush.msra.mxu2 %v308_v25  ;;  %v289_v15 = vld [vmem:[%s9504_s5 + $0x80] sm:$0xff]  ;;  %v7261_v13 = vperm.slane %v6077_v0, 2  ;;  %s6912_s5 = smov [#allocation2]  }
  0x93   :  { %165 = vadd.xlane.f32.xlu1 %v164_v47  ;;  %362 = vmatpush.msra.mxu1 %v294_v17  ;;  %v153_v44 = vmul.f32 %v7208_v34, %v7208_v34  ;;  %v154_v45 = vmul.f32 %v7211_v35, %v7211_v35  ;;  %v155_v46 = vmul.f32 %v7232_v43, %v7232_v43  ;;  %s6066_s25 = sshll.u32 %s6912_s5, 4  ;;  %s6067_s25 = int_to_ptr.vmem [resolvable:$true] %s6066_s25 }
  0x94   :  { %334 = vmatpush.msra.mxu0 %v277_v19  ;;  %394 = vmatpush.msra.mxu2 %v307_v33 }
  0x95   :  { %363 = vmatpush.msra.mxu1 %v293_v20  ;;  %v167_v47 = vadd.f32 %v154_v45, %v153_v44 }
  0x96   :  { %335 = vmatpush.msra.mxu0 %v276_v23  ;;  %395 = vmatpush.msra.mxu2 %v306_v38 }
  0x97   :  { %364 = vmatpush.msra.mxu1 %v292_v24  ;;  %v168_v50 = vadd.f32 %v167_v47, %v155_v46 }
  0x98   :  { %336 = vmatpush.msra.mxu0 %v275_v28  ;;  %396 = vmatpush.msra.mxu2 %v305_v39 }
  0x99   :  { %365 = vmatpush.msra.mxu1 %v291_v29  ;;  %169 = vadd.xlane.f32.xlu0 %v168_v50 }
  0x9a   :  { %337 = vmatpush.msra.mxu0 %v274_v36 }
  0x9b   :  { %366 = vmatpush.msra.mxu1 %v290_v37 }
  0x9c   :  { %338 = vmatpush.msra.mxu0 %v273_v14 }
  0x9d   :  { %367 = vmatpush.msra.mxu1 %v289_v15 }
  0xfe   :  { %v162_v51 = vpop.xlane.xlu1 %161 }
  0xff   :  { %v175_v52 = vmul.f32 %v162_v51, %v7052_v27 }
 0x101   :  { %v179_v16 = vadd.f32 1e-05, %v175_v52 }
 0x103   :  { %6555 = vrsqrt.f32 %v179_v16  ;;  %vm189_vm2 = vweird.f32 %v179_v16 }
 0x106   :  { %v166_v53 = vpop.xlane.xlu1 %165 }
 0x107   :  { %v176_v55 = vmul.f32 %v166_v53, %v7052_v27 }
 0x109   :  { %v6556_v56 = vpop.eup %6555  ;;  %v180_v57 = vadd.f32 1e-05, %v176_v55 }
 0x10a   :  { %v184_v58 = vmul.f32 %v6556_v56, %v179_v16  ;;  %vm190_vm1 = vweird.f32 %v6556_v56 }
 0x10b   :  { %6557 = vrsqrt.f32 %v180_v57  ;;  %vm191_vm3 = vmor %vm189_vm2, %vm190_vm1  ;;  %vm199_vm4 = vweird.f32 %v180_v57 }
 0x10c   :  { %v185_v59 = vmul.f32 %v6556_v56, %v184_v58 }
 0x10e   :  { %v186_v60 = vmul.f32 0.5, %v185_v59 }
 0x110   :  { %v187_v61 = vsub.f32 1.5, %v186_v60 }
 0x111   :  { %v6558_v63 = vpop.eup %6557 }
 0x112   :  { %v188_v1 = vmul.f32 %v6556_v56, %v187_v61  ;;  %v194_v2 = vmul.f32 %v6558_v63, %v180_v57  ;;  %vm200_vm5 = vweird.f32 %v6558_v63 }
 0x113   :  { %vm201_vm6 = vmor %vm199_vm4, %vm200_vm5 }
 0x114   :  { %v195_v6 = vmul.f32 %v6558_v63, %v194_v2  ;;  %v192_v7 = vsel %vm191_vm3, %v6556_v56, %v188_v1 }
 0x115   :  { %v223_v10 = vmul.f32 %v192_v7, %v7055_v30  ;;  %v224_v11 = vmul.f32 %v192_v7, %v7057_v31  ;;  %v225_v12 = vmul.f32 %v192_v7, %v7059_v32 }
 0x116   :  { %v196_v17 = vmul.f32 0.5, %v195_v6 }
 0x117   :  { %v242_v18 = vmul.f32 %v7248_v3, %v223_v10  ;;  %v243_v19 = vmul.f32 %v7250_v4, %v224_v11  ;;  %v244_v20 = vmul.f32 %v7252_v5, %v225_v12 }
 0x118   :  { %v197_v21 = vsub.f32 1.5, %v196_v17 }
 0x119   :  { %v261_v22 = vadd.f32 %v7254_v8, %v242_v18  ;;  %v262_v30 = vadd.f32 %v7256_v9, %v243_v19  ;;  %v263_v31 = vadd.f32 %v7261_v13, %v244_v20 }
 0x11a   :  { %v198_v32 = vmul.f32 %v6558_v63, %v197_v21 }
 0x11b   :  { %339 = vmatmul.f32.vlgmr.msra.gmra.mxu0 %v261_v22  ;;  %368 = vmatmul.f32.vlgmr.msra.gmra.mxu1 %v262_v30  ;;  %v7316_v30 = vld [vmem:[%s9500_s1] sm:$0xff] }
 0x11c   :  { %397 = vmatmul.f32.vlgmr.msra.gmra.mxu2 %v263_v31  ;;  %v202_v23 = vsel %vm201_vm6, %v6558_v63, %v198_v32  ;;  %v533_v31 = vsel %vm532_vm11, %v7316_v30, 0.0 }
 0x11d   :  { %v226_v24 = vmul.f32 %v202_v23, %v7068_v40  ;;  %v227_v25 = vmul.f32 %v202_v23, %v7070_v41  ;;  %v228_v26 = vmul.f32 %v202_v23, %v7072_v42  ;;  %v123_v40 = vpop.xlane.xlu2 %122 }
 0x11e   :  { %v134_v41 = vmul.f32 %v7052_v27, %v123_v40 }
 0x11f   :  { %v245_v28 = vmul.f32 %v7248_v3, %v226_v24  ;;  %v246_v29 = vmul.f32 %v7250_v4, %v227_v25  ;;  %v247_v33 = vmul.f32 %v7252_v5, %v228_v26 }
 0x120   :  { %v7280_v42 = vsub.f32 %v7083_v48, %v134_v41  ;;  %v7283_v14 = vsub.f32 %v7088_v49, %v134_v41  ;;  %v7286_v15 = vsub.f32 %v7104_v54, %v134_v41  ;;  %v170_v48 = vpop.xlane.xlu0 %169 }
 0x121   :  { %v264_v36 = vadd.f32 %v7254_v8, %v245_v28  ;;  %v265_v37 = vadd.f32 %v7256_v9, %v246_v29  ;;  %v266_v38 = vadd.f32 %v7261_v13, %v247_v33  ;;  %v177_v50 = vmul.f32 %v170_v48, %v7052_v27 }
 0x122   :  { %v156_v39 = vmul.f32 %v7280_v42, %v7280_v42  ;;  %v157_v44 = vmul.f32 %v7283_v14, %v7283_v14  ;;  %v158_v45 = vmul.f32 %v7286_v15, %v7286_v15 }
 0x123   :  { %342 = vmatmul.f32.gmra.mxu0 %v264_v36  ;;  %371 = vmatmul.f32.gmra.mxu1 %v265_v37  ;;  %v181_v49 = vadd.f32 1e-05, %v177_v50  ;;  %v6903_v50 = vmov 24.0  }
 0x124   :  { %400 = vmatmul.f32.gmra.mxu2 %v266_v38  ;;  %v171_v46 = vadd.f32 %v157_v44, %v156_v39 }
 0x125   :  { %6559 = vrsqrt.f32 %v181_v49  ;;  %vm209_vm7 = vweird.f32 %v181_v49 }
 0x126   :  { %v172_v47 = vadd.f32 %v171_v46, %v158_v45 }
 0x128   :  { %173 = vadd.xlane.f32.xlu1 %v172_v47 }
 0x12b   :  { %v6560_v51 = vpop.eup %6559 }
 0x12c   :  { %v204_v54 = vmul.f32 %v6560_v51, %v181_v49  ;;  %vm210_vm8 = vweird.f32 %v6560_v51 }
 0x12d   :  { %vm211_vm9 = vmor %vm209_vm7, %vm210_vm8 }
 0x12e   :  { %v205_v52 = vmul.f32 %v6560_v51, %v204_v54 }
 0x130   :  { %v206_v16 = vmul.f32 0.5, %v205_v52 }
 0x132   :  { %v207_v53 = vsub.f32 1.5, %v206_v16 }
 0x134   :  { %v208_v55 = vmul.f32 %v6560_v51, %v207_v53 }
 0x136   :  { %v212_v56 = vsel %vm211_vm9, %v6560_v51, %v208_v55 }
 0x137   :  { %v231_v57 = vmul.f32 %v212_v56, %v7232_v43  ;;  %v229_v59 = vmul.f32 %v212_v56, %v7208_v34  ;;  %v230_v62 = vmul.f32 %v212_v56, %v7211_v35  ;;  %v7307_v43 = vld [vmem:[%s9507_s8] ss:$0 sm:$0xff] }
 0x139   :  { %v250_v58 = vmul.f32 %v7252_v5, %v231_v57  ;;  %v248_v61 = vmul.f32 %v7248_v3, %v229_v59  ;;  %v249_v0 = vmul.f32 %v7250_v4, %v230_v62  ;;  %v7342_v57 = vld [vmem:[%s9500_s1 + $0x8] sm:$0xff]  ;;  %s6911_s1 = smov 16  }
 0x13b   :  { %v269_v60 = vadd.f32 %v7261_v13, %v250_v58  ;;  %v267_v63 = vadd.f32 %v7254_v8, %v248_v61  ;;  %v268_v1 = vadd.f32 %v7256_v9, %v249_v0 }
 0x13d   :  { %403 = vmatmul.f32.gmra.mxu2 %v269_v60  ;;  %345 = vmatmul.f32.gmra.mxu0 %v267_v63  ;;  %v536_v60 = vsel %vm532_vm11, %v7342_v57, 0.0 }
 0x13e   :  { %374 = vmatmul.f32.gmra.mxu1 %v268_v1 }
 0x198   :  { %v340_v34 = vpop.f32.mrf.mxu0  ;;  %v369_v6 = vpop.f32.mrf.mxu1 }
 0x199   :  { %v341_v2 = vadd.f32 %v7307_v43, %v340_v34 }
 0x19b   :  { %v370_v7 = vadd.f32 %v369_v6, %v341_v2  ;;  %v174_v32 = vpop.xlane.xlu1 %173 }
 0x19c   :  { %v178_v23 = vmul.f32 %v174_v32, %v7052_v27 }
 0x19e   :  { %v182_v24 = vadd.f32 1e-05, %v178_v23 }
 0x19f   :  { %v398_v35 = vpop.f32.mrf.mxu2 }
 0x1a0   :  { %v399_v10 = vadd.f32 %v398_v35, %v370_v7  ;;  %v343_v11 = vpop.f32.mrf.mxu0  ;;  %v372_v18 = vpop.f32.mrf.mxu1  ;;  %6561 = vrsqrt.f32 %v182_v24  ;;  %vm219_vm12 = vweird.f32 %v182_v24 }
 0x1a1   :  { %v344_v12 = vadd.f32 %v7307_v43, %v343_v11 }
 0x1a2   :  { %v413_v17 = vsel %vm412_vm10, %v399_v10, 0.0 }
 0x1a3   :  { %414 = vadd.xlane.f32.xlu2 %v413_v17  ;;  %v373_v19 = vadd.f32 %v372_v18, %v344_v12 }
 0x1a6   :  { %v6562_v25 = vpop.eup %6561 }
 0x1a7   :  { %v401_v20 = vpop.f32.mrf.mxu2  ;;  %v214_v26 = vmul.f32 %v6562_v25, %v182_v24  ;;  %vm220_vm13 = vweird.f32 %v6562_v25 }
 0x1a8   :  { %v402_v21 = vadd.f32 %v401_v20, %v373_v19  ;;  %vm221_vm14 = vmor %vm219_vm12, %vm220_vm13 }
 0x1a9   :  { %v215_v28 = vmul.f32 %v6562_v25, %v214_v26  ;;  %v592_v26 = vld [vmem:[%s9506_s7 + $0x10] sm:$0xff] }
 0x1aa   :  { %v416_v22 = vsel %vm412_vm10, %v402_v21, 0.0  ;;  %614 = vmatpush.msra.mxu3 %v592_v26 }
 0x1ab   :  { %417 = vadd.xlane.f32.xlu0 %v416_v22  ;;  %v216_v29 = vmul.f32 0.5, %v215_v28 }
 0x1ad   :  { %v217_v33 = vsub.f32 1.5, %v216_v29 }
 0x1af   :  { %v218_v36 = vmul.f32 %v6562_v25, %v217_v33 }
 0x1b1   :  { %v222_v37 = vsel %vm221_vm14, %v6562_v25, %v218_v36 }
 0x1b2   :  { %v234_v38 = vmul.f32 %v222_v37, %v7286_v15  ;;  %v232_v40 = vmul.f32 %v222_v37, %v7280_v42  ;;  %v233_v45 = vmul.f32 %v222_v37, %v7283_v14  ;;  %v6902_v15 = vmov 32.0  }
 0x1b3   :  { %534 = vadd.xlane.f32.xlu0 %v533_v31  ;;  %6563 = vrcp.f32 %v6902_v15 }
 0x1b4   :  { %v253_v41 = vmul.f32 %v7252_v5, %v234_v38  ;;  %v251_v27 = vmul.f32 %v7248_v3, %v232_v40  ;;  %v252_v46 = vmul.f32 %v7250_v4, %v233_v45  ;;  %6565 = vrcp.f32 %v6903_v50 }
 0x1b6   :  { %v272_v39 = vadd.f32 %v7261_v13, %v253_v41  ;;  %v270_v44 = vadd.f32 %v7254_v8, %v251_v27  ;;  %v271_v47 = vadd.f32 %v7256_v9, %v252_v46  ;;  %v7379_v46 = vld [vmem:[%s9507_s8 + $0x1] ss:$0 sm:$0xff] }
 0x1b8   :  { %406 = vmatmul.f32.gmra.mxu2 %v272_v39  ;;  %348 = vmatmul.f32.gmra.mxu0 %v270_v44 }
 0x1b9   :  { %377 = vmatmul.f32.gmra.mxu1 %v271_v47  ;;  %v6564_v42 = vpop.eup %6563 }
 0x1ba   :  { %v426_v48 = vmul.f32 32.0, %v6564_v42  ;;  %v6566_v49 = vpop.eup %6565  ;;  %vm430_vm15 = vweird.f32 %v6564_v42  ;;  %v346_v63 = vpop.f32.mrf.mxu0 }
 0x1bb   :  { %v540_v14 = vmul.f32 24.0, %v6566_v49  ;;  %vm544_vm0 = vweird.f32 %v6566_v49  ;;  %v347_v2 = vadd.f32 %v7307_v43, %v346_v63  ;;  %v375_v6 = vpop.f32.mrf.mxu1 }
 0x1bc   :  { %v427_v5 = vsub.f32 1.0, %v426_v48 }
 0x1bd   :  { %v541_v54 = vsub.f32 1.0, %v540_v14 }
 0x1be   :  { %v428_v3 = vmul.f32 %v6564_v42, %v427_v5  ;;  %v7388_v5 = vld [vmem:[%s9507_s8 + $0x2] ss:$0 sm:$0xff] }
 0x1bf   :  { %v542_v16 = vmul.f32 %v6566_v49, %v541_v54 }
 0x1c0   :  { %v429_v13 = vadd.f32 %v6564_v42, %v428_v3  ;;  %v404_v11 = vpop.f32.mrf.mxu2 }
 0x1c1   :  { %v543_v58 = vadd.f32 %v6566_v49, %v542_v16 }
 0x1c2   :  { %v7330_v8 = vsel %vm430_vm15, %v6564_v42, %v429_v13 }
 0x1c3   :  { %v7350_v62 = vsel %vm544_vm0, %v6566_v49, %v543_v58 }
 0x216   :  { %v415_v51 = vpop.xlane.xlu2 %414 }
 0x217   :  { %v432_v4 = vmul.f32 %v7330_v8, %v415_v51  ;;  %v6905_v51 = vmov 0.0  }
 0x219   :  { %v7333_v9 = vsub.f32 %v399_v10, %v432_v4  ;;  %v376_v10 = vadd.f32 %v375_v6, %v347_v2 }
 0x21b   :  { %v440_v52 = vmul.f32 %v7333_v9, %v7333_v9  ;;  %v405_v17 = vadd.f32 %v404_v11, %v376_v10 }
 0x21d   :  { %v444_v53 = vsel %vm412_vm10, %v440_v52, 0.0  ;;  %v419_v18 = vsel %vm412_vm10, %v405_v17, 0.0 }
 0x21e   :  { %445 = vadd.xlane.f32.xlu1 %v444_v53  ;;  %v418_v55 = vpop.xlane.xlu0 %417 }
 0x21f   :  { %v433_v56 = vmul.f32 %v7330_v8, %v418_v55  ;;  %v89_v55 = vld [vmem:[%s9501_s2] sm:$0xff] }
 0x221   :  { %v7344_v59 = vsub.f32 %v402_v21, %v433_v56  ;;  %v54_v21 = vlaneseq }
 0x223   :  { %v441_v61 = vmul.f32 %v7344_v59, %v7344_v59  ;;  %v7363_v31 = vand.u32 127, %v54_v21  ;;  %v7373_v37 = vshrl.u32 %v54_v21, 7 }
 0x225   :  { %v447_v0 = vsel %vm412_vm10, %v441_v61, 0.0  ;;  %vm684_vm1 = vcmp.lt.s32.totalorder %v7363_v31, 7  ;;  %v59_v39 = vand.u32 15, %v7373_v37  ;;  %v7382_v42 = vadd.s32 8, %v7373_v37 }
 0x226   :  { %537 = vadd.xlane.f32.xlu1 %v536_v60  ;;  %448 = vadd.xlane.f32.xlu2 %v447_v0  ;;  %v535_v1 = vpop.xlane.xlu0 %534 }
 0x227   :  { %v546_v34 = vmul.f32 %v7350_v62, %v535_v1  ;;  %vm63_vm5 = vcmp.ge.s32.totalorder %v59_v39, 1  ;;  %v60_v54 = vand.u32 15, %v7382_v42 }
 0x228   :  { %v75_v4 = vsel %vm63_vm5, 1.0, %v6905_v51 }
 0x229   :  { %v7356_v7 = vsub.f32 %v7316_v30, %v546_v34  ;;  %v6904_v30 = vmov -1e+30   ;;  %vm68_vm9 = vcmp.le.s32.totalorder %v60_v54, 8 }
 0x22a   :  { %v7367_v32 = vsel %vm684_vm1, 0.0, %v6904_v30  ;;  %v76_v6 = vsel %vm68_vm9, 1.0, %v6905_v51 }
 0x22b   :  { %v550_v35 = vmul.f32 %v7356_v7, %v7356_v7 }
 0x22d   :  { %v552_v12 = vsel %vm532_vm11, %v550_v35, 0.0 }
 0x22e   :  { %553 = vadd.xlane.f32.xlu1 %v552_v12 }
 0x235   :  { %v349_v39 = vpop.f32.mrf.mxu0 }
 0x236   :  { %420 = vadd.xlane.f32.xlu1 %v419_v18 }
 0x291   :  { %v446_v19 = vpop.xlane.xlu1 %445 }
 0x292   :  { %v456_v20 = vmul.f32 %v446_v19, %v7330_v8 }
 0x294   :  { %v460_v22 = vadd.f32 1e-05, %v456_v20 }
 0x296   :  { %6567 = vrsqrt.f32 %v460_v22  ;;  %vm470_vm3 = vweird.f32 %v460_v22 }
 0x299   :  { %v538_v23 = vpop.xlane.xlu1 %537  ;;  %v449_v24 = vpop.xlane.xlu2 %448 }
 0x29a   :  { %v457_v25 = vmul.f32 %v449_v24, %v7330_v8 }
 0x29c   :  { %v6568_v28 = vpop.eup %6567  ;;  %v461_v29 = vadd.f32 1e-05, %v457_v25 }
 0x29d   :  { %v465_v33 = vmul.f32 %v6568_v28, %v460_v22  ;;  %vm471_vm2 = vweird.f32 %v6568_v28 }
 0x29e   :  { %6569 = vrsqrt.f32 %v461_v29  ;;  %vm472_vm4 = vmor %vm470_vm3, %vm471_vm2  ;;  %vm480_vm7 = vweird.f32 %v461_v29 }
 0x29f   :  { %v466_v36 = vmul.f32 %v6568_v28, %v465_v33  ;;  %v591_v33 = vld [vmem:[%s9506_s7 + $0x8] sm:$0xff] }
 0x2a0   :  { %615 = vmatpush.msra.mxu3 %v591_v33 }
 0x2a1   :  { %v467_v38 = vmul.f32 0.5, %v466_v36  ;;  %v554_v40 = vpop.xlane.xlu1 %553 }
 0x2a2   :  { %v558_v18 = vmul.f32 %v554_v40, %v7350_v62 }
 0x2a3   :  { %v468_v41 = vsub.f32 1.5, %v467_v38  ;;  %v7439_v38 = vld [vmem:[%s9505_s6 + $0x1] ss:$0 sm:$0xff] }
 0x2a4   :  { %v6570_v27 = vpop.eup %6569  ;;  %v560_v19 = vadd.f32 1e-05, %v558_v18 }
 0x2a5   :  { %v469_v44 = vmul.f32 %v6568_v28, %v468_v41  ;;  %v475_v45 = vmul.f32 %v6570_v27, %v461_v29  ;;  %vm481_vm6 = vweird.f32 %v6570_v27  ;;  %v7430_v29 = vld [vmem:[%s9505_s6] ss:$0 sm:$0xff] }
 0x2a6   :  { %vm482_vm8 = vmor %vm480_vm7, %vm481_vm6  ;;  %6571 = vrsqrt.f32 %v560_v19  ;;  %vm568_vm12 = vweird.f32 %v560_v19 }
 0x2a7   :  { %v473_v47 = vsel %vm472_vm4, %v6568_v28, %v469_v44  ;;  %v476_v15 = vmul.f32 %v6570_v27, %v475_v45 }
 0x2a8   :  { %v504_v48 = vmul.f32 %v473_v47, %v7333_v9  ;;  %v547_v9 = vmul.f32 %v7350_v62, %v538_v23 }
 0x2a9   :  { %v477_v50 = vmul.f32 0.5, %v476_v15  ;;  %v421_v3 = vpop.xlane.xlu1 %420  ;;  %v350_v15 = vadd.f32 %v7307_v43, %v349_v39 }
 0x2aa   :  { %v434_v13 = vmul.f32 %v7330_v8, %v421_v3  ;;  %v509_v49 = vmul.f32 %v7379_v46, %v504_v48  ;;  %v7404_v61 = vsub.f32 %v7342_v57, %v547_v9 }
 0x2ab   :  { %v478_v14 = vsub.f32 1.5, %v477_v50  ;;  %v378_v50 = vpop.f32.mrf.mxu1 }
 0x2ac   :  { %v7395_v52 = vsub.f32 %v405_v17, %v434_v13  ;;  %v514_v16 = vadd.f32 %v7388_v5, %v509_v49  ;;  %v551_v57 = vmul.f32 %v7404_v61, %v7404_v61  ;;  %v6572_v20 = vpop.eup %6571  ;;  %v379_v13 = vadd.f32 %v378_v50, %v350_v15  ;;  %v407_v49 = vpop.f32.mrf.mxu2 }
 0x2ad   :  { %v479_v53 = vmul.f32 %v6570_v27, %v478_v14  ;;  %v563_v21 = vmul.f32 %v6572_v20, %v560_v19  ;;  %vm569_vm13 = vweird.f32 %v6572_v20 }
 0x2ae   :  { %v442_v56 = vmul.f32 %v7395_v52, %v7395_v52  ;;  %v518_v58 = vmul.f32 %v514_v16, %v75_v4  ;;  %v555_v12 = vsel %vm532_vm11, %v551_v57, 0.0  ;;  %vm570_vm14 = vmor %vm568_vm12, %vm569_vm13 }
 0x2af   :  { %v483_v60 = vsel %vm482_vm8, %v6570_v27, %v479_v53  ;;  %v564_v22 = vmul.f32 %v6572_v20, %v563_v21 }
 0x2b0   :  { %v505_v63 = vmul.f32 %v483_v60, %v7344_v59  ;;  %v450_v0 = vsel %vm412_vm10, %v442_v56, 0.0  ;;  %v7408_v1 = vadd.f32 %v518_v58, %v89_v55  ;;  %v90_v59 = vld [vmem:[%s9501_s2 + $0x8] sm:$0xff]  ;;  %v408_v55 = vadd.f32 %v407_v49, %v379_v13 }
 0x2b1   :  { %451 = vadd.xlane.f32.xlu1 %v450_v0  ;;  %v565_v23 = vmul.f32 0.5, %v564_v22  ;;  %v57_v0 = vadd.s32 16, %v7373_v37 }
 0x2b2   :  { %v688_v34 = vsel %vm412_vm10, %v7408_v1, 0.0  ;;  %v510_v2 = vmul.f32 %v7379_v46, %v505_v63 }
 0x2b3   :  { %689 = vadd.xlane.f32.xlu2 %v688_v34  ;;  %v566_v24 = vsub.f32 1.5, %v565_v23  ;;  %v91_v23 = vld [vmem:[%s9501_s2 + $0x10] sm:$0xff] }
 0x2b4   :  { %v515_v35 = vadd.f32 %v7388_v5, %v510_v2  ;;  %v422_v2 = vsel %vm412_vm10, %v408_v55, 0.0 }
 0x2b5   :  { %v567_v25 = vmul.f32 %v6572_v20, %v566_v24 }
 0x2b6   :  { %v519_v10 = vmul.f32 %v515_v35, %v76_v6 }
 0x2b7   :  { %v571_v26 = vsel %vm570_vm14, %v6572_v20, %v567_v25 }
 0x2b8   :  { %v7420_v11 = vadd.f32 %v519_v10, %v90_v59  ;;  %v582_v28 = vmul.f32 %v571_v26, %v7356_v7  ;;  %v590_v7 = vld [vmem:[%s9506_s7] sm:$0xff] }
 0x2b9   :  { %616 = vmatpush.msra.mxu3 %v590_v7 }
 0x2ba   :  { %v691_v17 = vsel %vm412_vm10, %v7420_v11, 0.0  ;;  %v585_v36 = vmul.f32 %v7430_v29, %v582_v28 }
 0x2bb   :  { %692 = vadd.xlane.f32.xlu0 %v691_v17  ;;  %556 = vadd.xlane.f32.xlu2 %v555_v12 }
 0x2bc   :  { %v588_v40 = vadd.f32 %v7439_v38, %v585_v36 }
 0x2be   :  { %6078 = vmatmul.msk.f32.vlgmr.msra.gmra.mxu3 %vm532_vm11, %v588_v40 }
 0x324   :  { %v452_v41 = vpop.xlane.xlu1 %451 }
 0x325   :  { %v458_v27 = vmul.f32 %v452_v41, %v7330_v8  ;;  %v789_v41 = vld [vmem:[%s9508_s9 + $0x18] sm:$0xff] }
 0x326   :  { %v690_v44 = vpop.xlane.xlu2 %689  ;;  %814 = vmatpush.msrb.mxu3 %v789_v41 }
 0x327   :  { %v462_v45 = vadd.f32 1e-05, %v458_v27  ;;  %v700_v47 = vmul.f32 %v690_v44, %v7330_v8  ;;  %v788_v27 = vld [vmem:[%s9508_s9 + $0x10] sm:$0xff] }
 0x328   :  { %815 = vmatpush.msrb.mxu3 %v788_v27 }
 0x329   :  { %6573 = vrsqrt.f32 %v462_v45  ;;  %v7450_v48 = vsub.f32 %v7408_v1, %v700_v47  ;;  %vm490_vm0 = vweird.f32 %v462_v45 }
 0x32b   :  { %v708_v3 = vmul.f32 %v7450_v48, %v7450_v48 }
 0x32d   :  { %v712_v14 = vsel %vm412_vm10, %v708_v3, 0.0 }
 0x32e   :  { %713 = vadd.xlane.f32.xlu0 %v712_v14  ;;  %v693_v4 = vpop.xlane.xlu0 %692  ;;  %v557_v54 = vpop.xlane.xlu2 %556 }
 0x32f   :  { %v6574_v9 = vpop.eup %6573  ;;  %v701_v16 = vmul.f32 %v693_v4, %v7330_v8  ;;  %v559_v43 = vmul.f32 %v557_v54, %v7350_v62  ;;  %v61_v62 = vand.u32 15, %v57_v0 }
 0x330   :  { %v485_v53 = vmul.f32 %v6574_v9, %v462_v45  ;;  %vm491_vm15 = vweird.f32 %v6574_v9 }
 0x331   :  { %v7458_v56 = vsub.f32 %v7420_v11, %v701_v16  ;;  %v561_v58 = vadd.f32 1e-05, %v559_v43  ;;  %vm492_vm1 = vmor %vm490_vm0, %vm491_vm15  ;;  %vm65_vm2 = vcmp.ge.s32.totalorder %v61_v62, 1 }
 0x332   :  { %v486_v60 = vmul.f32 %v6574_v9, %v485_v53  ;;  %v77_v20 = vsel %vm65_vm2, 1.0, %v6905_v51 }
 0x333   :  { %v709_v63 = vmul.f32 %v7458_v56, %v7458_v56  ;;  %6575 = vrsqrt.f32 %v561_v58  ;;  %vm578_vm3 = vweird.f32 %v561_v58 }
 0x334   :  { %v487_v34 = vmul.f32 0.5, %v486_v60 }
 0x335   :  { %v715_v6 = vsel %vm412_vm10, %v709_v63, 0.0 }
 0x336   :  { %v488_v35 = vsub.f32 1.5, %v487_v34  ;;  %423 = vadd.xlane.f32.xlu0 %v422_v2  ;;  %716 = vadd.xlane.f32.xlu2 %v715_v6  ;;  %v7509_v2 = vld [vmem:[%s9507_s8 + $0x7] ss:$0 sm:$0xff] }
 0x338   :  { %v489_v57 = vmul.f32 %v6574_v9, %v488_v35 }
 0x339   :  { %v6576_v59 = vpop.eup %6575 }
 0x33a   :  { %v493_v10 = vsel %vm492_vm1, %v6574_v9, %v489_v57  ;;  %v573_v12 = vmul.f32 %v6576_v59, %v561_v58  ;;  %vm579_vm4 = vweird.f32 %v6576_v59 }
 0x33b   :  { %v506_v17 = vmul.f32 %v493_v10, %v7395_v52  ;;  %vm580_vm5 = vmor %vm578_vm3, %vm579_vm4  ;;  %vm837_vm4 = vcmask 130048  }
 0x33c   :  { %v574_v18 = vmul.f32 %v6576_v59, %v573_v12 }
 0x33d   :  { %v511_v19 = vmul.f32 %v7379_v46, %v506_v17 }
 0x33e   :  { %v575_v21 = vmul.f32 0.5, %v574_v18 }
 0x33f   :  { %v516_v22 = vadd.f32 %v7388_v5, %v511_v19 }
 0x340   :  { %v576_v24 = vsub.f32 1.5, %v575_v21 }
 0x341   :  { %v520_v25 = vmul.f32 %v516_v22, %v77_v20 }
 0x342   :  { %v577_v26 = vmul.f32 %v6576_v59, %v576_v24 }
 0x343   :  { %v7472_v52 = vadd.f32 %v520_v25, %v91_v23 }
 0x344   :  { %v581_v28 = vsel %vm580_vm5, %v6576_v59, %v577_v26 }
 0x345   :  { %v694_v33 = vsel %vm412_vm10, %v7472_v52, 0.0  ;;  %v583_v36 = vmul.f32 %v581_v28, %v7404_v61  ;;  %v787_v61 = vld [vmem:[%s9508_s9 + $0x8] sm:$0xff] }
 0x346   :  { %695 = vadd.xlane.f32.xlu0 %v694_v33  ;;  %816 = vmatpush.msrb.mxu3 %v787_v61  ;;  %v7522_v33 = vpop.f32.mrf.mxu3 }
 0x347   :  { %v586_v7 = vmul.f32 %v7430_v29, %v583_v36  ;;  %v786_v29 = vld [vmem:[%s9508_s9] sm:$0xff] }
 0x348   :  { %817 = vmatpush.msrb.mxu3 %v786_v29 }
 0x349   :  { %v589_v40 = vadd.f32 %v7439_v38, %v586_v7  ;;  %v58_v7 = vadd.s32 24, %v7373_v37 }
 0x34b   :  { %6079 = vmatmul.msk.f32.gmra.mxu3 %vm532_vm11, %v589_v40  ;;  %v62_v29 = vand.u32 15, %v58_v7 }
 0x34d   :  { %vm70_vm0 = vcmp.le.s32.totalorder %v62_v29, 8 }
 0x3a1   :  { %v714_v38 = vpop.xlane.xlu0 %713 }
 0x3a2   :  { %v724_v39 = vmul.f32 %v714_v38, %v7330_v8 }
 0x3a4   :  { %v728_v44 = vadd.f32 1e-05, %v724_v39 }
 0x3a6   :  { %6577 = vrsqrt.f32 %v728_v44  ;;  %vm738_vm6 = vweird.f32 %v728_v44 }
 0x3a9   :  { %v717_v45 = vpop.xlane.xlu2 %716  ;;  %v424_v47 = vpop.xlane.xlu0 %423 }
 0x3aa   :  { %v725_v15 = vmul.f32 %v717_v45, %v7330_v8  ;;  %v435_v50 = vmul.f32 %v7330_v8, %v424_v47 }
 0x3ac   :  { %v6578_v3 = vpop.eup %6577  ;;  %v729_v13 = vadd.f32 1e-05, %v725_v15  ;;  %v7495_v49 = vsub.f32 %v408_v55, %v435_v50  ;;  %v7503_v55 = vld [vmem:[%s9507_s8 + $0x6] ss:$0 sm:$0xff]  ;;  %v78_v15 = vsel %vm70_vm0, 1.0, %v6905_v51 }
 0x3ad   :  { %v733_v14 = vmul.f32 %v6578_v3, %v728_v44  ;;  %vm739_vm11 = vweird.f32 %v6578_v3 }
 0x3ae   :  { %6579 = vrsqrt.f32 %v729_v13  ;;  %v443_v4 = vmul.f32 %v7495_v49, %v7495_v49  ;;  %vm740_vm7 = vmor %vm738_vm6, %vm739_vm11  ;;  %vm748_vm9 = vweird.f32 %v729_v13 }
 0x3af   :  { %v734_v54 = vmul.f32 %v6578_v3, %v733_v14  ;;  %v92_v14 = vld [vmem:[%s9501_s2 + $0x18] sm:$0xff] }
 0x3b0   :  { %v453_v9 = vsel %vm412_vm10, %v443_v4, 0.0 }
 0x3b1   :  { %v735_v16 = vmul.f32 0.5, %v734_v54  ;;  %454 = vadd.xlane.f32.xlu2 %v453_v9 }
 0x3b3   :  { %v736_v43 = vsub.f32 1.5, %v735_v16 }
 0x3b4   :  { %v6580_v53 = vpop.eup %6579 }
 0x3b5   :  { %v737_v58 = vmul.f32 %v6578_v3, %v736_v43  ;;  %v743_v60 = vmul.f32 %v6580_v53, %v729_v13  ;;  %vm749_vm8 = vweird.f32 %v6580_v53 }
 0x3b6   :  { %vm750_vm12 = vmor %vm748_vm9, %vm749_vm8 }
 0x3b7   :  { %v741_v63 = vsel %vm740_vm7, %v6578_v3, %v737_v58  ;;  %v744_v0 = vmul.f32 %v6580_v53, %v743_v60  ;;  %vm682_vm7 = vcmp.lt.s32.totalorder %v7363_v31, 9 }
 0x3b8   :  { %v772_v34 = vmul.f32 %v741_v63, %v7450_v48 }
 0x3b9   :  { %v745_v6 = vmul.f32 0.5, %v744_v0  ;;  %v696_v35 = vpop.xlane.xlu0 %695 }
 0x3ba   :  { %v702_v62 = vmul.f32 %v696_v35, %v7330_v8  ;;  %v777_v57 = vmul.f32 %v7503_v55, %v772_v34 }
 0x3bb   :  { %v746_v59 = vsub.f32 1.5, %v745_v6 }
 0x3bc   :  { %v706_v10 = vsub.f32 %v7472_v52, %v702_v62  ;;  %v782_v12 = vadd.f32 %v7509_v2, %v777_v57 }
 0x3bd   :  { %v747_v17 = vmul.f32 %v6580_v53, %v746_v59 }
 0x3be   :  { %6080 = vmatmul.msk.f32.vlgmr.msrb.gmra.mxu3 %vm412_vm10, %v782_v12  ;;  %v710_v48 = vmul.f32 %v706_v10, %v706_v10 }
 0x3bf   :  { %v751_v18 = vsel %vm750_vm12, %v6580_v53, %v747_v17 }
 0x3c0   :  { %v718_v19 = vsel %vm412_vm10, %v710_v48, 0.0  ;;  %v773_v20 = vmul.f32 %v751_v18, %v7458_v56 }
 0x3c1   :  { %719 = vadd.xlane.f32.xlu2 %v718_v19 }
 0x3c2   :  { %v778_v21 = vmul.f32 %v7503_v55, %v773_v20 }
 0x3c4   :  { %v783_v22 = vadd.f32 %v7509_v2, %v778_v21 }
 0x3c6   :  { %6081 = vmatmul.msk.f32.gmra.mxu3 %vm412_vm10, %v783_v22 }
 0x3ce   :  { %v7526_v39 = vpop.f32.mrf.mxu3 }
 0x424   :  { %v455_v23 = vpop.xlane.xlu2 %454 }
 0x425   :  { %v459_v24 = vmul.f32 %v455_v23, %v7330_v8 }
 0x427   :  { %v463_v25 = vadd.f32 1e-05, %v459_v24 }
 0x429   :  { %6581 = vrsqrt.f32 %v463_v25  ;;  %vm500_vm14 = vweird.f32 %v463_v25 }
 0x42f   :  { %v6582_v26 = vpop.eup %6581 }
 0x430   :  { %v495_v28 = vmul.f32 %v6582_v26, %v463_v25  ;;  %vm501_vm13 = vweird.f32 %v6582_v26 }
 0x431   :  { %vm502_vm15 = vmor %vm500_vm14, %vm501_vm13 }
 0x432   :  { %v496_v36 = vmul.f32 %v6582_v26, %v495_v28 }
 0x434   :  { %v497_v56 = vmul.f32 0.5, %v496_v36  ;;  %v720_v40 = vpop.xlane.xlu2 %719 }
 0x435   :  { %v726_v41 = vmul.f32 %v720_v40, %v7330_v8 }
 0x436   :  { %v498_v27 = vsub.f32 1.5, %v497_v56 }
 0x437   :  { %v730_v61 = vadd.f32 1e-05, %v726_v41 }
 0x438   :  { %v499_v38 = vmul.f32 %v6582_v26, %v498_v27 }
 0x439   :  { %6583 = vrsqrt.f32 %v730_v61  ;;  %vm758_vm2 = vweird.f32 %v730_v61 }
 0x43a   :  { %v503_v44 = vsel %vm502_vm15, %v6582_v26, %v499_v38 }
 0x43b   :  { %v507_v45 = vmul.f32 %v503_v44, %v7495_v49 }
 0x43d   :  { %v512_v47 = vmul.f32 %v7379_v46, %v507_v45 }
 0x43f   :  { %v6584_v50 = vpop.eup %6583  ;;  %v517_v3 = vadd.f32 %v7388_v5, %v512_v47 }
 0x440   :  { %v753_v13 = vmul.f32 %v6584_v50, %v730_v61  ;;  %vm759_vm1 = vweird.f32 %v6584_v50  ;;  %v7580_v61 = vld [vmem:[%s9507_s8 + $0x3] ss:$0 sm:$0xff] }
 0x441   :  { %v7535_v4 = vpop.f32.mrf.mxu3  ;;  %v521_v54 = vmul.f32 %v517_v3, %v78_v15  ;;  %vm760_vm3 = vmor %vm758_vm2, %vm759_vm1  ;;  %v619_v29 = vadd.f32 %v7580_v61, %v7522_v33 }
 0x442   :  { %v754_v9 = vmul.f32 %v6584_v50, %v753_v13  ;;  %833 = vrot.lane.b32.xlu2 %v7535_v4, %s6906_s28 }
 0x443   :  { %v7539_v49 = vadd.f32 %v521_v54, %v92_v14  ;;  %v626_v31 = vsel %vm412_vm10, %v619_v29, 0.0 }
 0x444   :  { %v755_v46 = vmul.f32 0.5, %v754_v9 }
 0x445   :  { %v697_v16 = vsel %vm412_vm10, %v7539_v49, 0.0 }
 0x446   :  { %v756_v5 = vsub.f32 1.5, %v755_v46  ;;  %698 = vadd.xlane.f32.xlu1 %v697_v16 }
 0x448   :  { %v757_v43 = vmul.f32 %v6584_v50, %v756_v5 }
 0x449   :  { %v7546_v0 = vpop.f32.mrf.mxu3 }
 0x44a   :  { %v761_v53 = vsel %vm760_vm3, %v6584_v50, %v757_v43  ;;  %v7590_v33 = vpack.i.bf16 %v7535_v4, %v7546_v0 }
 0x44b   :  { %v774_v58 = vmul.f32 %v761_v53, %v706_v10 }
 0x44d   :  { %v779_v60 = vmul.f32 %v7503_v55, %v774_v58 }
 0x44f   :  { %v784_v63 = vadd.f32 %v7509_v2, %v779_v60 }
 0x451   :  { %6082 = vmatmul.msk.f32.gmra.mxu3 %vm412_vm10, %v784_v63 }
 0x45f   :  { %835 = vrot.lane.b32.xlu1 %v7546_v0, %s6906_s28 }
 0x49c   :  { %v834_v12 = vpop.permute.xlu2 %833 }
 0x4b9   :  { %v699_v34 = vpop.xlane.xlu1 %698 }
 0x4ba   :  { %v703_v6 = vmul.f32 %v699_v34, %v7330_v8 }
 0x4bc   :  { %v707_v35 = vsub.f32 %v7539_v49, %v703_v6 }
 0x4be   :  { %v711_v62 = vmul.f32 %v707_v35, %v707_v35 }
 0x4c0   :  { %v721_v57 = vsel %vm412_vm10, %v711_v62, 0.0 }
 0x4c1   :  { %722 = vadd.xlane.f32.xlu0 %v721_v57 }
 0x4d1   :  { %v836_v59 = vpop.permute.xlu1 %835 }
 0x4d2   :  { %6084 = vmatpush.xpose.msk.msra.mxu3 %vm837_vm4, %v836_v59 }
 0x4d4   :  { %v7554_v10 = vpop.f32.mrf.mxu3 }
 0x4d5   :  { %1042 = vrot.lane.b32.xlu1 %v7554_v10, %s6906_s28 }
 0x4d6   :  { %6085 = vmatpush.xpose.msk.msra.mxu3 %vm837_vm4, %v834_v12 }
 0x534   :  { %v723_v17 = vpop.xlane.xlu0 %722 }
 0x535   :  { %v727_v48 = vmul.f32 %v723_v17, %v7330_v8 }
 0x537   :  { %v731_v18 = vadd.f32 1e-05, %v727_v48  ;;  %v79_v48 = vand.u32 7, %v7373_v37  ;;  %v7611_v37 = vld [vmem:[%s9507_s8 + $0x5] ss:$0 sm:$0xff] }
 0x539   :  { %6585 = vrsqrt.f32 %v731_v18  ;;  %vm768_vm11 = vweird.f32 %v731_v18  ;;  %vm81_vm12 = vcmp.ge.s32.totalorder %v79_v48, 1  ;;  %vm83_vm13 = vcmp.le.s32.totalorder %v79_v48, 6 }
 0x53a   :  { %vm85_vm15 = vmand %vm81_vm12, %vm83_vm13  ;;  %v622_v48 = vadd.f32 %v7580_v61, %v7526_v39 }
 0x53f   :  { %v6586_v19 = vpop.eup %6585 }
 0x540   :  { %v763_v20 = vmul.f32 %v6586_v19, %v731_v18  ;;  %vm769_vm5 = vweird.f32 %v6586_v19 }
 0x541   :  { %vm770_vm6 = vmor %vm768_vm11, %vm769_vm5 }
 0x542   :  { %v764_v21 = vmul.f32 %v6586_v19, %v763_v20  ;;  %v7606_v20 = vld [vmem:[%s9507_s8 + $0x4] ss:$0 sm:$0xff] }
 0x544   :  { %v765_v22 = vmul.f32 0.5, %v764_v21 }
 0x546   :  { %v766_v23 = vsub.f32 1.5, %v765_v22 }
 0x547   :  { %v1043_v5 = vpop.permute.xlu1 %1042 }
 0x548   :  { %v767_v24 = vmul.f32 %v6586_v19, %v766_v23 }
 0x54a   :  { %v771_v25 = vsel %vm770_vm6, %v6586_v19, %v767_v24  ;;  %v87_v24 = vsel %vm85_vm15, 1.0, %v6905_v51 }
 0x54b   :  { %v775_v26 = vmul.f32 %v771_v25, %v707_v35 }
 0x54d   :  { %v780_v28 = vmul.f32 %v7503_v55, %v775_v26  ;;  %v526_v26 = vld [vmem:[%s9502_s3] sm:$0xff] }
 0x54f   :  { %v785_v36 = vadd.f32 %v7509_v2, %v780_v28  ;;  %v7573_v2 = vsel %vm682_vm7, 0.0, %v6904_v30 }
 0x551   :  { %6083 = vmatmul.msk.f32.gmra.mxu3 %vm412_vm10, %v785_v36 }
 0x559   :  { %6086 = vmatmul.msk.f32.vlgmr.msra.gmra.mxu3 %vm837_vm4, %v7535_v4 }
 0x561   :  { %6087 = vmatmul.msk.f32.gmra.mxu3 %vm837_vm4, %v7546_v0 }
 0x5d4   :  { %v7567_v7 = vpop.f32.mrf.mxu3 }
 0x5d5   :  { %1044 = vrot.lane.b32.xlu2 %v7567_v7, %s6906_s28 }
 0x5dc   :  { %v863_v56 = vpop.f32.mrf.mxu3 }
 0x5dd   :  { %v869_v9 = vmul.f32 0.25, %v863_v56 }
 0x5df   :  { %v871_v46 = vadd.f32 %v869_v9, %v7573_v2 }
 0x5e1   :  { %v873_v16 = vsel %vm837_vm4, %v871_v46, -inf }
 0x5e4   :  { %v866_v40 = vpop.f32.mrf.mxu3 }
 0x5e5   :  { %v870_v55 = vmul.f32 0.25, %v866_v40 }
 0x5e7   :  { %v872_v41 = vadd.f32 %v870_v55, %v7573_v2 }
 0x5e9   :  { %v876_v27 = vsel %vm837_vm4, %v872_v41, -inf }
 0x5ea   :  { %877 = vmax.xlane.f32.xlu0 %v876_v27 }
 0x5fe   :  { %627 = vadd.xlane.f32.xlu2 %v626_v31  ;;  %v7628_v31 = vpack.i.bf16 %v7554_v10, %v7567_v7 }
 0x62f   :  { %v1045_v47 = vpop.permute.xlu2 %1044 }
 0x65d   :  { %v878_v38 = vpop.xlane.xlu0 %877 }
 0x65e   :  { %v880_v44 = vsub.f32 %v872_v41, %v878_v38 }
 0x660   :  { %v883_v30 = vmul.f32 1.442695, %v880_v44 }
 0x662   :  { %6587 = vpow2.f32 %v883_v30 }
 0x668   :  { %v6588_v45 = vpop.eup %6587 }
 0x669   :  { %v888_v15 = vsel %vm837_vm4, %v6588_v45, 0.0 }
 0x66a   :  { %889 = vadd.xlane.f32.xlu0 %v888_v15 }
 0x671   :  { %v628_v50 = vpop.xlane.xlu2 %627 }
 0x672   :  { %v632_v3 = vmul.f32 %v628_v50, %v7330_v8 }
 0x674   :  { %v634_v13 = vsub.f32 %v619_v29, %v632_v3 }
 0x676   :  { %v636_v14 = vmul.f32 %v634_v13, %v634_v13 }
 0x678   :  { %v638_v54 = vsel %vm412_vm10, %v636_v14, 0.0 }
 0x679   :  { %639 = vadd.xlane.f32.xlu1 %v638_v54 }
 0x67e   :  { %6421 = vrot.lane.b32.xlu0 %v7590_v33, %s6907_s30 }
 0x6a8   :  { %874 = vmax.xlane.f32.xlu0 %v873_v16 }
 0x6dd   :  { %v890_v43 = vpop.xlane.xlu0 %889 }
 0x6de   :  { %6589 = vrcp.f32 %v890_v43 }
 0x6e4   :  { %v6590_v34 = vpop.eup %6589 }
 0x6e5   :  { %v894_v62 = vmul.f32 %v6590_v34, %v6588_v45 }
 0x6ec   :  { %v640_v53 = vpop.xlane.xlu1 %639 }
 0x6ed   :  { %v644_v58 = vmul.f32 %v640_v53, %v7330_v8 }
 0x6ef   :  { %v646_v60 = vadd.f32 1e-05, %v644_v58 }
 0x6f0   :  { %v6422_v63 = vpop.permute.xlu0 %6421 }
 0x6f1   :  { %6591 = vrsqrt.f32 %v646_v60  ;;  %v6423_v6 = vunpack.i.l.bf16 %v6422_v63  ;;  %v6424_v35 = vunpack.i.h.bf16 %v6422_v63  ;;  %vm654_vm9 = vweird.f32 %v646_v60 }
 0x6f3   :  { %921 = vmatpush.msrb.mxu0 %v6423_v6  ;;  %6406 = vmatpush.msrb.mxu3 %v6423_v6 }
 0x6f5   :  { %922 = vmatpush.msrb.mxu0 %v6424_v35  ;;  %6407 = vmatpush.msrb.mxu3 %v6424_v35 }
 0x6f6   :  { %6089 = vmatmul.msk.f32.vlgmr.msrb.gmra.mxu3 %vm837_vm4, %v894_v62 }
 0x6f7   :  { %v6592_v57 = vpop.eup %6591  ;;  %6096 = vmatpush.xpose.msk.msra.mxu3 %vm837_vm4, %v1045_v47 }
 0x6f8   :  { %v649_v59 = vmul.f32 %v6592_v57, %v646_v60  ;;  %vm655_vm8 = vweird.f32 %v6592_v57 }
 0x6f9   :  { %vm656_vm14 = vmor %vm654_vm9, %vm655_vm8  ;;  %vm1414_vm9 = vcmask 64512  }
 0x6fa   :  { %v650_v12 = vmul.f32 %v6592_v57, %v649_v59 }
 0x6fb   :  { %6097 = vmatpush.xpose.msk.msra.mxu3 %vm837_vm4, %v1043_v5 }
 0x6fc   :  { %v651_v17 = vmul.f32 0.5, %v650_v12 }
 0x6fe   :  { %v652_v18 = vsub.f32 1.5, %v651_v17  ;;  %6098 = vmatmul.msk.f32.vlgmr.msra.gmra.mxu3 %vm837_vm4, %v7554_v10 }
 0x700   :  { %v653_v19 = vmul.f32 %v6592_v57, %v652_v18 }
 0x702   :  { %v657_v21 = vsel %vm656_vm14, %v6592_v57, %v653_v19  ;;  %v629_v19 = vsel %vm412_vm10, %v622_v48, 0.0 }
 0x703   :  { %v668_v22 = vmul.f32 %v657_v21, %v634_v13 }
 0x705   :  { %v671_v23 = vmul.f32 %v7606_v20, %v668_v22 }
 0x706   :  { %6099 = vmatmul.msk.f32.gmra.mxu3 %vm837_vm4, %v7567_v7 }
 0x707   :  { %v674_v25 = vadd.f32 %v7611_v37, %v671_v23  ;;  %v6115_v23 = vld [vmem:[%s9508_s9 + $0x38] sm:$0xff] }
 0x709   :  { %v676_v28 = vmul.f32 %v674_v25, %v87_v24  ;;  %v6114_v24 = vld [vmem:[%s9508_s9 + $0x30] sm:$0xff]  ;;  %v6112_v25 = vld [vmem:[%s9508_s9 + $0x20] sm:$0xff] }
 0x70b   :  { %v7621_v36 = vadd.f32 %v676_v28, %v526_v26 }
 0x70d   :  { %v1301_v56 = vsel %vm412_vm10, %v7621_v36, 0.0 }
 0x70e   :  { %1302 = vadd.xlane.f32.xlu1 %v1301_v56 }
 0x71b   :  { %v875_v40 = vpop.xlane.xlu0 %874 }
 0x71c   :  { %v879_v55 = vsub.f32 %v871_v46, %v875_v40 }
 0x71e   :  { %v881_v41 = vmul.f32 1.442695, %v879_v55 }
 0x720   :  { %6593 = vpow2.f32 %v881_v41 }
 0x726   :  { %v6594_v27 = vpop.eup %6593 }
 0x727   :  { %v885_v29 = vsel %vm837_vm4, %v6594_v27, 0.0 }
 0x728   :  { %886 = vadd.xlane.f32.xlu1 %v885_v29 }
 0x741   :  { %6426 = vrot.lane.b32.xlu1 %v7628_v31, %s6907_s30 }
 0x749   :  { %930 = vrot.lane.b32.xlu1 %v7535_v4, %s6908_s19 }
 0x751   :  { %932 = vrot.lane.b32.xlu1 %v7546_v0, %s6908_s19 }
 0x759   :  { %1138 = vrot.lane.b32.xlu1 %v7554_v10, %s6908_s19 }
 0x779   :  { %v7638_v38 = vpop.f32.mrf.mxu3 }
 0x781   :  { %v1303_v44 = vpop.xlane.xlu1 %1302  ;;  %v1071_v30 = vpop.f32.mrf.mxu3 }
 0x782   :  { %v1307_v45 = vmul.f32 %v1303_v44, %v7330_v8  ;;  %v1077_v47 = vmul.f32 0.25, %v1071_v30 }
 0x784   :  { %v7642_v15 = vsub.f32 %v7621_v36, %v1307_v45  ;;  %v1079_v50 = vadd.f32 %v1077_v47, %v7573_v2 }
 0x786   :  { %v1081_v3 = vsel %vm837_vm4, %v1079_v50, -inf  ;;  %v1311_v13 = vmul.f32 %v7642_v15, %v7642_v15 }
 0x787   :  { %1082 = vmax.xlane.f32.xlu2 %v1081_v3 }
 0x788   :  { %v1313_v14 = vsel %vm412_vm10, %v1311_v13, 0.0 }
 0x789   :  { %1314 = vadd.xlane.f32.xlu0 %v1313_v14  ;;  %v1074_v54 = vpop.f32.mrf.mxu3 }
 0x78a   :  { %v1078_v9 = vmul.f32 0.25, %v1074_v54  ;;  %v7682_v54 = vld [vmem:[%s9507_s8 + $0x9] ss:$0 sm:$0xff] }
 0x78c   :  { %v1080_v46 = vadd.f32 %v1078_v9, %v7573_v2 }
 0x78e   :  { %v1084_v16 = vsel %vm837_vm4, %v1080_v46, -inf }
 0x78f   :  { %1085 = vmax.xlane.f32.xlu2 %v1084_v16 }
 0x79b   :  { %v887_v5 = vpop.xlane.xlu1 %886 }
 0x79c   :  { %6595 = vrcp.f32 %v887_v5 }
 0x7a2   :  { %v6596_v43 = vpop.eup %6595 }
 0x7a3   :  { %v893_v53 = vmul.f32 %v6596_v43, %v6594_v27  ;;  %v7691_v43 = vld [vmem:[%s9507_s8 + $0xa] ss:$0 sm:$0xff] }
 0x7a5   :  { %6088 = vmatmul.msk.f32.vlgmr.msrb.gmra.mxu0 %vm837_vm4, %v893_v53 }
 0x7b3   :  { %v6427_v58 = vpop.permute.xlu1 %6426 }
 0x7b4   :  { %v6428_v60 = vunpack.i.l.bf16 %v6427_v58  ;;  %v6429_v63 = vunpack.i.h.bf16 %v6427_v58 }
 0x7b6   :  { %1129 = vmatpush.msra.mxu0 %v6428_v60 }
 0x7b8   :  { %1130 = vmatpush.msra.mxu0 %v6429_v63 }
 0x7ba   :  { %1374 = vmatpush.msrb.mxu0 %v6115_v23 }
 0x7bc   :  { %1375 = vmatpush.msrb.mxu0 %v6114_v24 }
 0x7fa   :  { %v1083_v34 = vpop.xlane.xlu2 %1082 }
 0x7fb   :  { %v1087_v6 = vsub.f32 %v1079_v50, %v1083_v34 }
 0x7fc   :  { %v1315_v22 = vpop.xlane.xlu0 %1314 }
 0x7fd   :  { %v1089_v35 = vmul.f32 1.442695, %v1087_v6  ;;  %v1319_v39 = vmul.f32 %v1315_v22, %v7330_v8 }
 0x7ff   :  { %6597 = vpow2.f32 %v1089_v35  ;;  %v1321_v61 = vadd.f32 1e-05, %v1319_v39 }
 0x801   :  { %vm1329_vm1 = vweird.f32 %v1321_v61 }
 0x802   :  { %v1086_v62 = vpop.xlane.xlu2 %1085 }
 0x803   :  { %v1088_v57 = vsub.f32 %v1080_v46, %v1086_v62 }
 0x805   :  { %v6598_v59 = vpop.eup %6597  ;;  %v1091_v12 = vmul.f32 1.442695, %v1088_v57 }
 0x806   :  { %v1093_v17 = vsel %vm837_vm4, %v6598_v59, 0.0 }
 0x807   :  { %6599 = vpow2.f32 %v1091_v12  ;;  %1094 = vadd.xlane.f32.xlu2 %v1093_v17  ;;  %v931_v12 = vpop.permute.xlu1 %930 }
 0x808   :  { %6601 = vrsqrt.f32 %v1321_v61 }
 0x80d   :  { %v6600_v18 = vpop.eup %6599 }
 0x80e   :  { %v1096_v21 = vsel %vm837_vm4, %v6600_v18, 0.0 }
 0x80f   :  { %630 = vadd.xlane.f32.xlu2 %v629_v19  ;;  %1097 = vadd.xlane.f32.xlu0 %v1096_v21  ;;  %v933_v24 = vpop.permute.xlu1 %932 }
 0x827   :  { %936 = vrot.lane.b32.xlu2 %v7546_v0, %s6909_s20  ;;  %v6113_v0 = vld [vmem:[%s9508_s9 + $0x28] sm:$0xff] }
 0x828   :  { %1376 = vmatpush.msrb.mxu0 %v6113_v0  ;;  %v527_v0 = vld [vmem:[%s9502_s3 + $0x8] sm:$0xff]  ;;  %s6910_s3 = smov 48  }
 0x82a   :  { %1377 = vmatpush.msrb.mxu0 %v6112_v25 }
 0x82f   :  { %1144 = vrot.lane.b32.xlu2 %v7567_v7, %s6909_s20 }
 0x837   :  { %1140 = vrot.lane.b32.xlu2 %v7567_v7, %s6908_s19  ;;  %v6602_v7 = vpop.eup %6601 }
 0x838   :  { %v1324_v26 = vmul.f32 %v6602_v7, %v1321_v61  ;;  %vm1330_vm0 = vweird.f32 %v6602_v7 }
 0x839   :  { %vm1331_vm2 = vmor %vm1329_vm1, %vm1330_vm0 }
 0x83a   :  { %v1325_v28 = vmul.f32 %v6602_v7, %v1324_v26 }
 0x83c   :  { %v1326_v40 = vmul.f32 0.5, %v1325_v28 }
 0x83e   :  { %v1327_v55 = vsub.f32 1.5, %v1326_v40 }
 0x840   :  { %v1328_v30 = vmul.f32 %v6602_v7, %v1327_v55 }
 0x842   :  { %v1332_v50 = vsel %vm1331_vm2, %v6602_v7, %v1328_v30 }
 0x843   :  { %v1343_v9 = vmul.f32 %v1332_v50, %v7642_v15  ;;  %v7699_v15 = vpop.f32.mrf.mxu0 }
 0x845   :  { %v1346_v5 = vmul.f32 %v7682_v54, %v1343_v9 }
 0x847   :  { %v1349_v53 = vadd.f32 %v7691_v43, %v1346_v5 }
 0x87a   :  { %v1095_v56 = vpop.xlane.xlu2 %1094 }
 0x87b   :  { %6603 = vrcp.f32 %v1095_v56 }
 0x881   :  { %v6604_v41 = vpop.eup %6603 }
 0x882   :  { %v1101_v27 = vmul.f32 %v6604_v41, %v6598_v59  ;;  %v1098_v29 = vpop.xlane.xlu0 %1097  ;;  %v631_v44 = vpop.xlane.xlu2 %630 }
 0x883   :  { %6605 = vrcp.f32 %v1098_v29  ;;  %v633_v45 = vmul.f32 %v631_v44, %v7330_v8 }
 0x884   :  { %6100 = vmatmul.msk.f32.vlgmr.msra.gmra.mxu0 %vm837_vm4, %v1101_v27 }
 0x885   :  { %v635_v47 = vsub.f32 %v622_v48, %v633_v45 }
 0x887   :  { %v637_v3 = vmul.f32 %v635_v47, %v635_v47 }
 0x889   :  { %v6606_v13 = vpop.eup %6605  ;;  %v641_v14 = vsel %vm412_vm10, %v637_v3, 0.0 }
 0x88a   :  { %642 = vadd.xlane.f32.xlu0 %v641_v14  ;;  %v937_v46 = vpop.permute.xlu2 %936  ;;  %v1102_v16 = vmul.f32 %v6606_v13, %v6600_v18 }
 0x88b   :  { %6090 = vmatpush.xpose.msk.msrb.mxu1 %vm837_vm4, %v937_v46 }
 0x88c   :  { %6101 = vmatmul.msk.f32.gmra.mxu0 %vm837_vm4, %v1102_v16 }
 0x892   :  { %v1145_v48 = vpop.permute.xlu2 %1144 }
 0x894   :  { %6116 = vmatmul.msk.f32.vlgmr.msrb.gmra.mxu0 %vm412_vm10, %v1349_v53 }
 0x89e   :  { %934 = vrot.lane.b32.xlu0 %v7535_v4, %s6909_s20  ;;  %v80_v4 = vand.u32 7, %v7382_v42 }
 0x8a0   :  { %vm82_vm11 = vcmp.ge.s32.totalorder %v80_v4, 1  ;;  %vm84_vm6 = vcmp.le.s32.totalorder %v80_v4, 6 }
 0x8a1   :  { %vm86_vm8 = vmand %vm82_vm11, %vm84_vm6 }
 0x8a2   :  { %v88_v39 = vsel %vm86_vm8, 1.0, %v6905_v51 }
 0x8a6   :  { %1142 = vrot.lane.b32.xlu0 %v7554_v10, %s6909_s20 }
 0x8fd   :  { %v643_v58 = vpop.xlane.xlu0 %642 }
 0x8fe   :  { %v645_v60 = vmul.f32 %v643_v58, %v7330_v8 }
 0x900   :  { %v647_v63 = vadd.f32 1e-05, %v645_v60 }
 0x901   :  { %v7702_v34 = vpop.f32.mrf.mxu0 }
 0x902   :  { %6607 = vrsqrt.f32 %v647_v63  ;;  %vm664_vm5 = vweird.f32 %v647_v63 }
 0x908   :  { %v6608_v6 = vpop.eup %6607 }
 0x909   :  { %v659_v35 = vmul.f32 %v6608_v6, %v647_v63  ;;  %v7704_v62 = vpop.f32.mrf.mxu0  ;;  %vm665_vm3 = vweird.f32 %v6608_v6 }
 0x90a   :  { %vm666_vm7 = vmor %vm664_vm5, %vm665_vm3 }
 0x90b   :  { %v660_v57 = vmul.f32 %v6608_v6, %v659_v35 }
 0x90d   :  { %v661_v59 = vmul.f32 0.5, %v660_v57 }
 0x90f   :  { %v662_v17 = vsub.f32 1.5, %v661_v59 }
 0x910   :  { %v935_v10 = vpop.permute.xlu0 %934 }
 0x911   :  { %v663_v18 = vmul.f32 %v6608_v6, %v662_v17  ;;  %6091 = vmatpush.xpose.msk.msrb.mxu1 %vm837_vm4, %v935_v10  ;;  %v7708_v19 = vpop.f32.mrf.mxu0 }
 0x912   :  { %1454 = vrot.lane.b32.xlu2 %v7708_v19, %s6909_s20  ;;  %1386 = vrot.lane.b32.xlu0 %v7708_v19, %s6906_s28 }
 0x913   :  { %v667_v42 = vsel %vm666_vm7, %v6608_v6, %v663_v18 }
 0x914   :  { %v669_v21 = vmul.f32 %v667_v42, %v635_v47  ;;  %6092 = vmatmul.msk.f32.vlgmr.msrb.gmra.mxu1 %vm837_vm4, %v931_v12 }
 0x915   :  { %6102 = vmatpush.xpose.msk.msra.mxu1 %vm837_vm4, %v1145_v48 }
 0x916   :  { %v672_v22 = vmul.f32 %v7606_v20, %v669_v21  ;;  %v1139_v20 = vpop.permute.xlu1 %1138 }
 0x918   :  { %v1143_v61 = vpop.permute.xlu0 %1142  ;;  %v675_v23 = vadd.f32 %v7611_v37, %v672_v22  ;;  %v1141_v37 = vpop.permute.xlu2 %1140 }
 0x919   :  { %6103 = vmatpush.xpose.msk.msra.mxu1 %vm837_vm4, %v1143_v61 }
 0x91a   :  { %v677_v7 = vmul.f32 %v675_v23, %v88_v39  ;;  %1452 = vrot.lane.b32.xlu0 %v7708_v19, %s6908_s19 }
 0x91c   :  { %6093 = vmatmul.msk.f32.gmra.mxu1 %vm837_vm4, %v933_v24  ;;  %v7726_v25 = vadd.f32 %v677_v7, %v527_v0 }
 0x91e   :  { %v1304_v51 = vsel %vm412_vm10, %v7726_v25, 0.0 }
 0x91f   :  { %1305 = vadd.xlane.f32.xlu1 %v1304_v51 }
 0x924   :  { %6104 = vmatmul.msk.f32.vlgmr.msra.gmra.mxu1 %vm837_vm4, %v1139_v20 }
 0x92c   :  { %6105 = vmatmul.msk.f32.gmra.mxu1 %vm837_vm4, %v1141_v37 }
 0x96c   :  { %v1455_v28 = vpop.permute.xlu2 %1454 }
 0x984   :  { %v1387_v26 = vpop.permute.xlu0 %1386 }
 0x985   :  { %6118 = vmatpush.xpose.msk.msrb.mxu1 %vm837_vm4, %v1387_v26 }
 0x988   :  { %6119 = vmatmul.msk.f32.vlgmr.msrb.gmra.mxu1 %vm837_vm4, %v7708_v19 }
 0x989   :  { %6121 = vmatpush.xpose.msk.msra.mxu1 %vm837_vm4, %v1455_v28 }
 0x98c   :  { %v1453_v56 = vpop.permute.xlu0 %1452 }
 0x990   :  { %6122 = vmatmul.msk.f32.vlgmr.msra.gmra.mxu1 %vm837_vm4, %v1453_v56 }
 0x991   :  { %v963_v40 = vpop.f32.mrf.mxu1 }
 0x992   :  { %v969_v55 = vmul.f32 0.25, %v963_v40  ;;  %v1306_v41 = vpop.xlane.xlu1 %1305 }
 0x993   :  { %v1308_v27 = vmul.f32 %v1306_v41, %v7330_v8 }
 0x994   :  { %v971_v29 = vadd.f32 %v969_v55, %v7573_v2 }
 0x995   :  { %v7740_v44 = vsub.f32 %v7726_v25, %v1308_v27 }
 0x996   :  { %v973_v30 = vsel %vm837_vm4, %v971_v29, -inf }
 0x997   :  { %974 = vmax.xlane.f32.xlu0 %v973_v30  ;;  %v1312_v45 = vmul.f32 %v7740_v44, %v7740_v44 }
 0x999   :  { %v966_v47 = vpop.f32.mrf.mxu1  ;;  %v1316_v50 = vsel %vm412_vm10, %v1312_v45, 0.0 }
 0x99a   :  { %v970_v3 = vmul.f32 0.25, %v966_v47  ;;  %1317 = vadd.xlane.f32.xlu2 %v1316_v50 }
 0x99c   :  { %v972_v13 = vadd.f32 %v970_v3, %v7573_v2 }
 0x99e   :  { %v976_v14 = vsel %vm837_vm4, %v972_v13, -inf }
 0x99f   :  { %977 = vmax.xlane.f32.xlu1 %v976_v14 }
 0x9a1   :  { %v1171_v9 = vpop.f32.mrf.mxu1 }
 0x9a2   :  { %v1177_v46 = vmul.f32 0.25, %v1171_v9 }
 0x9a4   :  { %v1179_v16 = vadd.f32 %v1177_v46, %v7573_v2 }
 0x9a6   :  { %v1181_v5 = vsel %vm837_vm4, %v1179_v16, -inf }
 0x9a7   :  { %1182 = vmax.xlane.f32.xlu1 %v1181_v5 }
 0x9a9   :  { %v1174_v53 = vpop.f32.mrf.mxu1 }
 0x9aa   :  { %v1178_v58 = vmul.f32 0.25, %v1174_v53 }
 0x9ac   :  { %v1180_v60 = vadd.f32 %v1178_v58, %v7573_v2 }
 0x9ae   :  { %v1184_v63 = vsel %vm837_vm4, %v1180_v60, -inf }
 0x9af   :  { %1185 = vmax.xlane.f32.xlu2 %v1184_v63 }
 0xa05   :  { %v1409_v6 = vpop.f32.mrf.mxu1 }
 0xa06   :  { %v1412_v35 = vmul.f32 0.25, %v1409_v6 }
 0xa08   :  { %v1413_v57 = vadd.f32 %v1412_v35, %v7367_v32 }
 0xa0a   :  { %v975_v59 = vpop.xlane.xlu0 %974  ;;  %v1415_v12 = vsel %vm1414_vm9, %v1413_v57, -inf }
 0xa0b   :  { %v979_v4 = vsub.f32 %v971_v29, %v975_v59  ;;  %1416 = vmax.xlane.f32.xlu0 %v1415_v12 }
 0xa0d   :  { %v981_v17 = vmul.f32 1.442695, %v979_v4  ;;  %v1318_v10 = vpop.xlane.xlu2 %1317  ;;  %v1477_v51 = vpop.f32.mrf.mxu1 }
 0xa0e   :  { %v1320_v48 = vmul.f32 %v1318_v10, %v7330_v8  ;;  %v1480_v56 = vmul.f32 0.25, %v1477_v51 }
 0xa0f   :  { %6609 = vpow2.f32 %v981_v17 }
 0xa10   :  { %v1322_v18 = vadd.f32 1e-05, %v1320_v48  ;;  %v1481_v29 = vadd.f32 %v1480_v56, %v7367_v32 }
 0xa12   :  { %6611 = vrsqrt.f32 %v1322_v18  ;;  %v978_v42 = vpop.xlane.xlu1 %977  ;;  %vm1339_vm13 = vweird.f32 %v1322_v18 }
 0xa13   :  { %v980_v21 = vsub.f32 %v972_v13, %v978_v42  ;;  %v1482_v13 = vsel %vm1414_vm9, %v1481_v29, -inf }
 0xa15   :  { %v6610_v22 = vpop.eup %6609  ;;  %v983_v39 = vmul.f32 1.442695, %v980_v21 }
 0xa16   :  { %v985_v61 = vsel %vm837_vm4, %v6610_v22, 0.0 }
 0xa17   :  { %6613 = vpow2.f32 %v983_v39  ;;  %986 = vadd.xlane.f32.xlu2 %v985_v61 }
 0xa18   :  { %v6612_v23 = vpop.eup %6611 }
 0xa19   :  { %v1334_v24 = vmul.f32 %v6612_v23, %v1322_v18  ;;  %vm1340_vm12 = vweird.f32 %v6612_v23 }
 0xa1a   :  { %v1183_v0 = vpop.xlane.xlu1 %1182  ;;  %vm1341_vm14 = vmor %vm1339_vm13, %vm1340_vm12 }
 0xa1b   :  { %v1335_v7 = vmul.f32 %v6612_v23, %v1334_v24  ;;  %v1187_v20 = vsub.f32 %v1179_v16, %v1183_v0 }
 0xa1d   :  { %v6614_v37 = vpop.eup %6613  ;;  %v1336_v26 = vmul.f32 0.5, %v1335_v7  ;;  %v1189_v28 = vmul.f32 1.442695, %v1187_v20 }
 0xa1e   :  { %v988_v40 = vsel %vm837_vm4, %v6614_v37, 0.0 }
 0xa1f   :  { %v1337_v55 = vsub.f32 1.5, %v1336_v26  ;;  %6615 = vpow2.f32 %v1189_v28  ;;  %989 = vadd.xlane.f32.xlu1 %v988_v40  ;;  %6431 = vrot.lane.b32.xlu0 %v7590_v33, %s6910_s3 }
 0xa21   :  { %v1338_v41 = vmul.f32 %v6612_v23, %v1337_v55 }
 0xa22   :  { %v1186_v27 = vpop.xlane.xlu2 %1185 }
 0xa23   :  { %v1188_v30 = vsub.f32 %v1180_v60, %v1186_v27  ;;  %v1342_v45 = vsel %vm1341_vm14, %v6612_v23, %v1338_v41  ;;  %v1250_v27 = vld [vmem:[%s9509_s10 + $0x10] sm:$0xff] }
 0xa24   :  { %v1344_v47 = vmul.f32 %v1342_v45, %v7740_v44 }
 0xa25   :  { %v6616_v50 = vpop.eup %6615  ;;  %v1191_v3 = vmul.f32 1.442695, %v1188_v30  ;;  %v1249_v30 = vld [vmem:[%s9509_s10 + $0x8] sm:$0xff] }
 0xa26   :  { %v1193_v14 = vsel %vm837_vm4, %v6616_v50, 0.0  ;;  %v1347_v9 = vmul.f32 %v7682_v54, %v1344_v47 }
 0xa27   :  { %6617 = vpow2.f32 %v1191_v3  ;;  %1483 = vmax.xlane.f32.xlu1 %v1482_v13  ;;  %1194 = vadd.xlane.f32.xlu2 %v1193_v14  ;;  %v1248_v14 = vld [vmem:[%s9509_s10] sm:$0xff] }
 0xa28   :  { %v1350_v33 = vadd.f32 %v7691_v43, %v1347_v9 }
 0xa2a   :  { %6117 = vmatmul.msk.f32.gmra.mxu0 %vm412_vm10, %v1350_v33 }
 0xa2d   :  { %v6618_v46 = vpop.eup %6617 }
 0xa2e   :  { %v1196_v16 = vsel %vm837_vm4, %v6618_v46, 0.0 }
 0xa2f   :  { %1197 = vadd.xlane.f32.xlu2 %v1196_v16 }
 0xa40   :  { %6436 = vrot.lane.b32.xlu1 %v7628_v31, %s6910_s3 }
 0xa48   :  { %1493 = vrot.lane.b32.xlu1 %v7708_v19, %s6910_s3 }
 0xa7e   :  { %v1417_v44 = vpop.xlane.xlu0 %1416 }
 0xa7f   :  { %v1418_v5 = vsub.f32 %v1413_v57, %v1417_v44 }
 0xa81   :  { %v1419_v54 = vmul.f32 1.442695, %v1418_v5 }
 0xa83   :  { %6619 = vpow2.f32 %v1419_v54 }
 0xa89   :  { %v6620_v53 = vpop.eup %6619 }
 0xa8a   :  { %v987_v58 = vpop.xlane.xlu2 %986  ;;  %v1421_v43 = vsel %vm1414_vm9, %v6620_v53, 0.0 }
 0xa8b   :  { %1422 = vadd.xlane.f32.xlu0 %v1421_v43  ;;  %6621 = vrcp.f32 %v987_v58 }
 0xa91   :  { %v6432_v60 = vpop.permute.xlu0 %6431  ;;  %v6622_v6 = vpop.eup %6621 }
 0xa92   :  { %v990_v63 = vpop.xlane.xlu1 %989  ;;  %v6433_v35 = vunpack.i.l.bf16 %v6432_v60  ;;  %v6434_v31 = vunpack.i.h.bf16 %v6432_v60  ;;  %v993_v59 = vmul.f32 %v6622_v6, %v6610_v22 }
 0xa93   :  { %6623 = vrcp.f32 %v990_v63 }
 0xa94   :  { %1021 = vmatpush.msrb.mxu2 %v6433_v35 }
 0xa96   :  { %1022 = vmatpush.msrb.mxu2 %v6434_v31  ;;  %v6133_v31 = vld [vmem:[%s9509_s10 + $0x38] sm:$0xff] }
 0xa97   :  { %6094 = vmatmul.msk.f32.vlgmr.msrb.gmra.mxu2 %vm837_vm4, %v993_v59  ;;  %v6132_v59 = vld [vmem:[%s9509_s10 + $0x30] sm:$0xff] }
 0xa99   :  { %v6624_v4 = vpop.eup %6623 }
 0xa9a   :  { %v1484_v57 = vpop.xlane.xlu1 %1483  ;;  %v994_v10 = vmul.f32 %v6624_v4, %v6614_v37  ;;  %v1195_v21 = vpop.xlane.xlu2 %1194  ;;  %v6130_v4 = vld [vmem:[%s9509_s10 + $0x20] sm:$0xff] }
 0xa9b   :  { %v1485_v12 = vsub.f32 %v1481_v29, %v1484_v57  ;;  %v6131_v57 = vld [vmem:[%s9509_s10 + $0x28] sm:$0xff] }
 0xa9d   :  { %v1486_v17 = vmul.f32 1.442695, %v1485_v12 }
 0xa9f   :  { %6625 = vpow2.f32 %v1486_v17  ;;  %6095 = vmatmul.msk.f32.gmra.mxu2 %vm837_vm4, %v994_v10 }
 0xaa0   :  { %6627 = vrcp.f32 %v1195_v21 }
 0xaa2   :  { %v1198_v22 = vpop.xlane.xlu2 %1197 }
 0xaa3   :  { %6629 = vrcp.f32 %v1198_v22 }
 0xaa5   :  { %v6626_v48 = vpop.eup %6625 }
 0xaa6   :  { %v1488_v18 = vsel %vm1414_vm9, %v6626_v48, 0.0  ;;  %v6628_v61 = vpop.eup %6627 }
 0xaa7   :  { %v7775_v42 = vpop.f32.mrf.mxu0  ;;  %1489 = vadd.xlane.f32.xlu2 %v1488_v18  ;;  %v1201_v0 = vmul.f32 %v6628_v61, %v6616_v50 }
 0xaa8   :  { %1592 = vrot.lane.b32.xlu1 %v7775_v42, %s6909_s20 }
 0xaa9   :  { %v6630_v7 = vpop.eup %6629 }
 0xaaa   :  { %v1202_v51 = vmul.f32 %v6630_v7, %v6618_v46 }
 0xab0   :  { %1590 = vrot.lane.b32.xlu1 %v7775_v42, %s6908_s19 }
 0xab2   :  { %v6437_v39 = vpop.permute.xlu1 %6436 }
 0xab3   :  { %v6438_v23 = vunpack.i.l.bf16 %v6437_v39  ;;  %v6439_v24 = vunpack.i.h.bf16 %v6437_v39 }
 0xab5   :  { %1229 = vmatpush.msra.mxu2 %v6438_v23 }
 0xab7   :  { %1230 = vmatpush.msra.mxu2 %v6439_v24 }
 0xab8   :  { %6106 = vmatmul.msk.f32.vlgmr.msra.gmra.mxu2 %vm837_vm4, %v1201_v0 }
 0xaba   :  { %v1494_v28 = vpop.permute.xlu1 %1493 }
 0xabf   :  { %1426 = vrot.lane.b32.xlu2 %v7708_v19, %s6907_s30  ;;  %v1251_v19 = vld [vmem:[%s9509_s10 + $0x18] sm:$0xff] }
 0xac0   :  { %6107 = vmatmul.msk.f32.gmra.mxu2 %vm837_vm4, %v1202_v51  ;;  %1278 = vmatpush.msrb.mxu3 %v1251_v19  ;;  %v7847_v51 = vld [vmem:[%s9507_s8 + $0x8] ss:$0 sm:$0xff] }
 0xac2   :  { %1279 = vmatpush.msrb.mxu3 %v1250_v27 }
 0xac4   :  { %1280 = vmatpush.msrb.mxu3 %v1249_v30 }
 0xac6   :  { %1281 = vmatpush.msrb.mxu3 %v1248_v14 }
 0xac7   :  { %1525 = vrot.lane.b32.xlu2 %v7775_v42, %s6906_s28 }
 0xafe   :  { %v1423_v20 = vpop.xlane.xlu0 %1422 }
 0xaff   :  { %6631 = vrcp.f32 %v1423_v20 }
 0xb05   :  { %v6632_v56 = vpop.eup %6631 }
 0xb06   :  { %v1425_v40 = vmul.f32 %v6632_v56, %v6620_v53 }
 0xb1a   :  { %v1490_v37 = vpop.xlane.xlu2 %1489  ;;  %v1024_v26 = vpop.f32.mrf.mxu2 }
 0xb1b   :  { %1032 = vrot.lane.b32.xlu2 %v1024_v26, %s6911_s1  ;;  %6633 = vrcp.f32 %v1490_v37  ;;  %v1593_v29 = vpop.permute.xlu1 %1592 }
 0xb21   :  { %v6634_v45 = vpop.eup %6633 }
 0xb22   :  { %v1427_v55 = vpop.permute.xlu2 %1426  ;;  %v1027_v41 = vpop.f32.mrf.mxu2  ;;  %v1492_v47 = vmul.f32 %v6634_v45, %v6626_v48 }
 0xb23   :  { %1447 = vmatpush.msrb.mxu2 %v1427_v55  ;;  %1034 = vrot.lane.b32.xlu2 %v1027_v41, %s6911_s1  ;;  %v1591_v3 = vpop.permute.xlu1 %1590 }
 0xb24   :  { %6120 = vmatmul.msk.f32.vlgmr.msrb.gmra.mxu2 %vm1414_vm9, %v1425_v40 }
 0xb25   :  { %1514 = vmatpush.msra.mxu2 %v1494_v28 }
 0xb27   :  { %6127 = vmatpush.xpose.msk.msrb.mxu2 %vm837_vm4, %v1593_v29 }
 0xb2a   :  { %v1526_v50 = vpop.permute.xlu2 %1525 }
 0xb2b   :  { %6124 = vmatpush.xpose.msk.msra.mxu0 %vm837_vm4, %v1526_v50 }
 0xb2c   :  { %6123 = vmatmul.msk.f32.vlgmr.msra.gmra.mxu2 %vm1414_vm9, %v1492_v47 }
 0xb2e   :  { %6125 = vmatmul.msk.f32.vlgmr.msra.gmra.mxu0 %vm837_vm4, %v7775_v42 }
 0xb2f   :  { %1687 = vmatpush.msrb.mxu0 %v6133_v31  ;;  %v6136_v31 = vld [vmem:[%s9508_s9 + $0x80] sm:$0xff] }
 0xb31   :  { %1688 = vmatpush.msrb.mxu0 %v6132_v59 }
 0xb33   :  { %1689 = vmatpush.msrb.mxu0 %v6131_v57 }
 0xb34   :  { %6128 = vmatmul.msk.f32.vlgmr.msrb.gmra.mxu2 %vm837_vm4, %v1591_v3 }
 0xb35   :  { %1690 = vmatpush.msrb.mxu0 %v6130_v4 }
 0xb3b   :  { %v1232_v13 = vpop.f32.mrf.mxu2 }
 0xb3c   :  { %1240 = vrot.lane.b32.xlu2 %v1232_v13, %s6911_s1 }
 0xb43   :  { %v1235_v54 = vpop.f32.mrf.mxu2 }
 0xb75   :  { %v1033_v9 = vpop.permute.xlu2 %1032 }
 0xb76   :  { %v1038_v33 = vsel %vm837_vm4, %v7699_v15, %v1033_v9 }
 0xb77   :  { %6108 = vmatmul.msk.f32.vlgmr.msrb.gmra.mxu3 %vm412_vm10, %v1038_v33 }
 0xb7d   :  { %v1035_v46 = vpop.permute.xlu2 %1034 }
 0xb7e   :  { %v1039_v16 = vsel %vm837_vm4, %v7638_v38, %v1035_v46 }
 0xb7f   :  { %6109 = vmatmul.msk.f32.gmra.mxu3 %vm412_vm10, %v1039_v16 }
 0xb96   :  { %v1241_v44 = vpop.permute.xlu2 %1240 }
 0xb97   :  { %v1246_v5 = vsel %vm837_vm4, %v7702_v34, %v1241_v44 }
 0xb98   :  { %6110 = vmatmul.msk.f32.gmra.mxu3 %vm412_vm10, %v1246_v5 }
 0xba7   :  { %v1449_v53 = vpop.f32.mrf.mxu2 }
 0xbab   :  { %v1548_v38 = vpop.f32.mrf.mxu0 }
 0xbac   :  { %v1551_v6 = vmul.f32 0.25, %v1548_v38 }
 0xbae   :  { %v1552_v35 = vadd.f32 %v1551_v6, %v7367_v32 }
 0xbaf   :  { %v1516_v58 = vpop.f32.mrf.mxu2 }
 0xbb0   :  { %1520 = vrot.lane.b32.xlu0 %v1516_v58, %s6911_s1  ;;  %v1553_v34 = vsel %vm1414_vm9, %v1552_v35, -inf }
 0xbb7   :  { %v1615_v15 = vpop.f32.mrf.mxu2 }
 0xbb8   :  { %v1618_v43 = vmul.f32 0.25, %v1615_v15 }
 0xbba   :  { %v1619_v60 = vadd.f32 %v1618_v43, %v7367_v32 }
 0xbbc   :  { %v1620_v63 = vsel %vm1414_vm9, %v1619_v60, -inf }
 0xbbd   :  { %1621 = vmax.xlane.f32.xlu1 %v1620_v63 }
 0xbd6   :  { %1242 = vrot.lane.b32.xlu1 %v1235_v54, %s6911_s1 }
 0xbda   :  { %1554 = vmax.xlane.f32.xlu0 %v1553_v34  ;;  %v6138_v34 = vld [vmem:[%s9508_s9 + $0x90] sm:$0xff] }
 0xbee   :  { %1631 = vrot.lane.b32.xlu0 %v7775_v42, %s6910_s3 }
 0xbfa   :  { %v1283_v7 = vpop.f32.mrf.mxu3 }
 0xbfb   :  { %v1284_v37 = vadd.f32 %v7847_v51, %v1283_v7 }
 0xbfd   :  { %v7854_v26 = vadd.f32 %v1284_v37, %v7408_v1  ;;  %v7867_v1 = vld [vmem:[%s9507_s8 + $0xb] ss:$0 sm:$0xff] }
 0xbff   :  { %v1702_v55 = vsel %vm412_vm10, %v7854_v26, 0.0 }
 0xc02   :  { %v1286_v28 = vpop.f32.mrf.mxu3 }
 0xc03   :  { %v1287_v40 = vadd.f32 %v7847_v51, %v1286_v28 }
 0xc22   :  { %v1521_v12 = vpop.permute.xlu0 %1520 }
 0xc23   :  { %v1523_v17 = vsel %vm837_vm4, %v1449_v53, %v1521_v12  ;;  %v1289_v53 = vpop.f32.mrf.mxu3 }
 0xc24   :  { %6134 = vmatmul.msk.f32.vlgmr.msrb.gmra.mxu0 %vm412_vm10, %v1523_v17  ;;  %v1290_v15 = vadd.f32 %v7847_v51, %v1289_v53 }
 0xc30   :  { %v1622_v10 = vpop.xlane.xlu1 %1621 }
 0xc31   :  { %v1623_v48 = vsub.f32 %v1619_v60, %v1622_v10  ;;  %v7885_v60 = vadd.f32 %v1290_v15, %v7472_v52  ;;  %v6137_v52 = vld [vmem:[%s9508_s9 + $0x88] sm:$0xff] }
 0xc33   :  { %v1624_v18 = vmul.f32 1.442695, %v1623_v48  ;;  %v1708_v63 = vsel %vm412_vm10, %v7885_v60, 0.0 }
 0xc35   :  { %6635 = vpow2.f32 %v1624_v18 }
 0xc3b   :  { %v6636_v21 = vpop.eup %6635 }
 0xc3c   :  { %v1626_v22 = vsel %vm1414_vm9, %v6636_v21, 0.0 }
 0xc3d   :  { %1627 = vadd.xlane.f32.xlu2 %v1626_v22 }
 0xc48   :  { %v1243_v39 = vpop.permute.xlu1 %1242 }
 0xc49   :  { %v1247_v61 = vsel %vm837_vm4, %v7704_v62, %v1243_v39 }
 0xc4a   :  { %6111 = vmatmul.msk.f32.gmra.mxu3 %vm412_vm10, %v1247_v61 }
 0xc4d   :  { %v1555_v23 = vpop.xlane.xlu0 %1554 }
 0xc4e   :  { %v1556_v24 = vsub.f32 %v1552_v35, %v1555_v23  ;;  %v6139_v35 = vld [vmem:[%s9508_s9 + $0x98] sm:$0xff] }
 0xc50   :  { %v1557_v0 = vmul.f32 1.442695, %v1556_v24 }
 0xc52   :  { %6637 = vpow2.f32 %v1557_v0 }
 0xc55   :  { %1564 = vrot.lane.b32.xlu2 %v7775_v42, %s6907_s30  ;;  %v7860_v42 = vadd.f32 %v1287_v40, %v7420_v11 }
 0xc57   :  { %v1705_v41 = vsel %vm412_vm10, %v7860_v42, 0.0 }
 0xc58   :  { %v6638_v20 = vpop.eup %6637 }
 0xc59   :  { %v1559_v62 = vsel %vm1414_vm9, %v6638_v20, 0.0 }
 0xc5a   :  { %1560 = vadd.xlane.f32.xlu1 %v1559_v62  ;;  %v7911_v62 = vld [vmem:[%s9507_s8 + $0x12] ss:$0 sm:$0xff] }
 0xc60   :  { %v1632_v56 = vpop.permute.xlu0 %1631 }
 0xc61   :  { %1652 = vmatpush.msra.mxu3 %v1632_v56 }
 0xc62   :  { %1703 = vadd.xlane.f32.xlu1 %v1702_v55 }
 0xc6a   :  { %1706 = vadd.xlane.f32.xlu1 %v1705_v41  ;;  %v7917_v41 = vld [vmem:[%s9507_s8 + $0x13] ss:$0 sm:$0xff] }
 0xca1   :  { %v1692_v19 = vpop.f32.mrf.mxu0 }
 0xca2   :  { %v1693_v27 = vadd.f32 %v7867_v1, %v1692_v19 }
 0xca4   :  { %v7871_v29 = vadd.f32 %v1693_v27, %v7621_v36 }
 0xca6   :  { %v1848_v30 = vsel %vm412_vm10, %v7871_v29, 0.0 }
 0xca7   :  { %1849 = vadd.xlane.f32.xlu0 %v1848_v30 }
 0xcb0   :  { %v1628_v11 = vpop.xlane.xlu2 %1627 }
 0xcb1   :  { %6639 = vrcp.f32 %v1628_v11 }
 0xcb7   :  { %v6640_v45 = vpop.eup %6639 }
 0xcb8   :  { %v1630_v47 = vmul.f32 %v6640_v45, %v6636_v21  ;;  %v1565_v50 = vpop.permute.xlu2 %1564 }
 0xcb9   :  { %1585 = vmatpush.msrb.mxu1 %v1565_v50 }
 0xcba   :  { %6129 = vmatmul.msk.f32.vlgmr.msra.gmra.mxu3 %vm1414_vm9, %v1630_v47 }
 0xcbb   :  { %1829 = vmatpush.msra.mxu1 %v6139_v35 }
 0xcbd   :  { %1830 = vmatpush.msra.mxu1 %v6138_v34  ;;  %v7943_v34 = vld [vmem:[%s9507_s8 + $0x15] ss:$0 sm:$0xff] }
 0xcbf   :  { %1831 = vmatpush.msra.mxu1 %v6137_v52 }
 0xcc1   :  { %1832 = vmatpush.msra.mxu1 %v6136_v31 }
 0xccd   :  { %v1561_v3 = vpop.xlane.xlu1 %1560  ;;  %v7889_v38 = vpop.f32.mrf.mxu3 }
 0xcce   :  { %6641 = vrcp.f32 %v1561_v3 }
 0xcd4   :  { %v6642_v13 = vpop.eup %6641 }
 0xcd5   :  { %v1563_v14 = vmul.f32 %v6642_v13, %v6638_v20  ;;  %v1704_v9 = vpop.xlane.xlu1 %1703 }
 0xcd6   :  { %v1714_v36 = vmul.f32 %v1704_v9, %v7330_v8 }
 0xcd7   :  { %6126 = vmatmul.msk.f32.vlgmr.msrb.gmra.mxu1 %vm1414_vm9, %v1563_v14 }
 0xcd8   :  { %v1718_v33 = vsub.f32 %v7854_v26, %v1714_v36 }
 0xcda   :  { %v1722_v46 = vmul.f32 %v1718_v33, %v1718_v33 }
 0xcdc   :  { %v1726_v16 = vsel %vm412_vm10, %v1722_v46, 0.0  ;;  %v6146_v46 = vld [vmem:[%s9508_s9 + $0xb0] sm:$0xff] }
 0xcdd   :  { %1727 = vadd.xlane.f32.xlu1 %v1726_v16  ;;  %v1707_v44 = vpop.xlane.xlu1 %1706  ;;  %v6145_v16 = vld [vmem:[%s9508_s9 + $0xa8] sm:$0xff] }
 0xcde   :  { %v1715_v5 = vmul.f32 %v1707_v44, %v7330_v8  ;;  %v6144_v44 = vld [vmem:[%s9508_s9 + $0xa0] sm:$0xff] }
 0xce0   :  { %v1719_v54 = vsub.f32 %v7860_v42, %v1715_v5 }
 0xce2   :  { %v1723_v58 = vmul.f32 %v1719_v54, %v1719_v54 }
 0xce4   :  { %v1729_v43 = vsel %vm412_vm10, %v1723_v58, 0.0 }
 0xce5   :  { %1730 = vadd.xlane.f32.xlu0 %v1729_v43 }
 0xced   :  { %1709 = vadd.xlane.f32.xlu0 %v1708_v63 }
 0xd1a   :  { %v1850_v59 = vpop.xlane.xlu0 %1849 }
 0xd1b   :  { %v1854_v48 = vmul.f32 %v1850_v59, %v7330_v8  ;;  %v7948_v59 = vld [vmem:[%s9507_s8 + $0x16] ss:$0 sm:$0xff] }
 0xd1d   :  { %v1856_v39 = vsub.f32 %v7871_v29, %v1854_v48  ;;  %v1293_v48 = vadd.f32 %v7847_v51, %v7889_v38 }
 0xd1f   :  { %v1858_v0 = vmul.f32 %v1856_v39, %v1856_v39 }
 0xd21   :  { %v1860_v40 = vsel %vm412_vm10, %v1858_v0, 0.0 }
 0xd3d   :  { %v1654_v6 = vpop.f32.mrf.mxu3 }
 0xd3e   :  { %1658 = vrot.lane.b32.xlu2 %v1654_v6, %s6911_s1 }
 0xd50   :  { %v1728_v57 = vpop.xlane.xlu1 %1727 }
 0xd51   :  { %v1738_v4 = vmul.f32 %v1728_v57, %v7330_v8 }
 0xd53   :  { %v1742_v12 = vadd.f32 1e-05, %v1738_v4 }
 0xd54   :  { %v1587_v14 = vpop.f32.mrf.mxu1 }
 0xd55   :  { %6643 = vrsqrt.f32 %v1742_v12  ;;  %vm1752_vm0 = vweird.f32 %v1742_v12 }
 0xd58   :  { %v1731_v17 = vpop.xlane.xlu0 %1730 }
 0xd59   :  { %v1739_v10 = vmul.f32 %v1731_v17, %v7330_v8 }
 0xd5b   :  { %v6644_v18 = vpop.eup %6643  ;;  %v1743_v21 = vadd.f32 1e-05, %v1739_v10 }
 0xd5c   :  { %v1747_v22 = vmul.f32 %v6644_v18, %v1742_v12  ;;  %vm1753_vm15 = vweird.f32 %v6644_v18 }
 0xd5d   :  { %6645 = vrsqrt.f32 %v1743_v21  ;;  %vm1754_vm1 = vmor %vm1752_vm0, %vm1753_vm15  ;;  %vm1762_vm3 = vweird.f32 %v1743_v21 }
 0xd5e   :  { %v1748_v61 = vmul.f32 %v6644_v18, %v1747_v22  ;;  %v7962_v22 = vadd.f32 %v1293_v48, %v7539_v49 }
 0xd60   :  { %v1749_v23 = vmul.f32 0.5, %v1748_v61 }
 0xd62   :  { %v1750_v24 = vsub.f32 1.5, %v1749_v23 }
 0xd63   :  { %v6646_v7 = vpop.eup %6645 }
 0xd64   :  { %v1751_v20 = vmul.f32 %v6644_v18, %v1750_v24  ;;  %v1757_v37 = vmul.f32 %v6646_v7, %v1743_v21  ;;  %vm1763_vm2 = vweird.f32 %v6646_v7  ;;  %v1710_v21 = vpop.xlane.xlu0 %1709 }
 0xd65   :  { %vm1764_vm5 = vmor %vm1762_vm3, %vm1763_vm2 }
 0xd66   :  { %v1755_v28 = vsel %vm1754_vm1, %v6644_v18, %v1751_v20  ;;  %v1758_v56 = vmul.f32 %v6646_v7, %v1757_v37 }
 0xd67   :  { %v1786_v55 = vmul.f32 %v1755_v28, %v1718_v33  ;;  %1861 = vadd.xlane.f32.xlu2 %v1860_v40  ;;  %v6147_v33 = vld [vmem:[%s9508_s9 + $0xb8] sm:$0xff] }
 0xd68   :  { %v1759_v19 = vmul.f32 0.5, %v1758_v56  ;;  %1921 = vmatpush.msra.mxu2 %v6147_v33 }
 0xd69   :  { %v1791_v27 = vmul.f32 %v7911_v62, %v1786_v55 }
 0xd6a   :  { %v1760_v30 = vsub.f32 1.5, %v1759_v19  ;;  %1922 = vmatpush.msra.mxu2 %v6146_v46 }
 0xd6b   :  { %v1796_v11 = vadd.f32 %v7917_v41, %v1791_v27 }
 0xd6c   :  { %v1761_v45 = vmul.f32 %v6646_v7, %v1760_v30  ;;  %1923 = vmatpush.msra.mxu2 %v6145_v16 }
 0xd6d   :  { %6140 = vmatmul.msk.f32.vlgmr.msra.gmra.mxu1 %vm412_vm10, %v1796_v11 }
 0xd6e   :  { %v1765_v47 = vsel %vm1764_vm5, %v6646_v7, %v1761_v45  ;;  %1924 = vmatpush.msra.mxu2 %v6144_v44 }
 0xd6f   :  { %v1787_v50 = vmul.f32 %v1765_v47, %v1719_v54 }
 0xd71   :  { %v1792_v3 = vmul.f32 %v7911_v62, %v1787_v50 }
 0xd73   :  { %v1797_v13 = vadd.f32 %v7917_v41, %v1792_v3 }
 0xd75   :  { %6141 = vmatmul.msk.f32.gmra.mxu1 %vm412_vm10, %v1797_v13 }
 0xd98   :  { %v1659_v9 = vpop.permute.xlu2 %1658 }
 0xd99   :  { %v1661_v36 = vsel %vm837_vm4, %v1587_v14, %v1659_v9 }
 0xd9a   :  { %6135 = vmatmul.msk.f32.gmra.mxu0 %vm412_vm10, %v1661_v36 }
 0xdda   :  { %v1862_v5 = vpop.xlane.xlu2 %1861 }
 0xddb   :  { %v1866_v54 = vmul.f32 %v1862_v5, %v7330_v8 }
 0xddd   :  { %v1868_v53 = vadd.f32 1e-05, %v1866_v54 }
 0xddf   :  { %6647 = vrsqrt.f32 %v1868_v53  ;;  %vm1876_vm6 = vweird.f32 %v1868_v53 }
 0xde5   :  { %v6648_v58 = vpop.eup %6647 }
 0xde6   :  { %v1871_v15 = vmul.f32 %v6648_v58, %v1868_v53  ;;  %vm1877_vm11 = vweird.f32 %v6648_v58 }
 0xde7   :  { %vm1878_vm7 = vmor %vm1876_vm6, %vm1877_vm11 }
 0xde8   :  { %v1872_v43 = vmul.f32 %v6648_v58, %v1871_v15 }
 0xdea   :  { %v1873_v63 = vmul.f32 0.5, %v1872_v43  ;;  %v7973_v38 = vpop.f32.mrf.mxu1 }
 0xdec   :  { %v1874_v6 = vsub.f32 1.5, %v1873_v63 }
 0xdee   :  { %v1875_v35 = vmul.f32 %v6648_v58, %v1874_v6 }
 0xdf0   :  { %v1879_v52 = vsel %vm1878_vm7, %v6648_v58, %v1875_v35 }
 0xdf1   :  { %v1890_v31 = vmul.f32 %v1879_v52, %v1856_v39  ;;  %v1716_v39 = vmul.f32 %v1710_v21, %v7330_v8 }
 0xdf2   :  { %v7984_v13 = vpop.f32.mrf.mxu1 }
 0xdf3   :  { %v1893_v57 = vmul.f32 %v7943_v34, %v1890_v31  ;;  %v1720_v61 = vsub.f32 %v7885_v60, %v1716_v39 }
 0xdf5   :  { %v1896_v4 = vadd.f32 %v7948_v59, %v1893_v57 }
 0xdf7   :  { %6148 = vmatmul.msk.f32.vlgmr.msra.gmra.mxu2 %vm412_vm10, %v1896_v4 }
 0xe17   :  { %v1695_v12 = vpop.f32.mrf.mxu0 }
 0xe18   :  { %v1696_v17 = vadd.f32 %v7867_v1, %v1695_v12  ;;  %v1711_v1 = vsel %vm412_vm10, %v7962_v22, 0.0 }
 0xe1a   :  { %v7955_v10 = vadd.f32 %v1696_v17, %v7726_v25  ;;  %v1724_v25 = vmul.f32 %v1720_v61, %v1720_v61 }
 0xe1c   :  { %v1851_v18 = vsel %vm412_vm10, %v7955_v10, 0.0  ;;  %v1732_v23 = vsel %vm412_vm10, %v1724_v25, 0.0 }
 0xe1d   :  { %1852 = vadd.xlane.f32.xlu1 %v1851_v18 }
 0xe25   :  { %1712 = vadd.xlane.f32.xlu1 %v1711_v1 }
 0xe2d   :  { %1733 = vadd.xlane.f32.xlu1 %v1732_v23 }
 0xe7a   :  { %v7969_v51 = vpop.f32.mrf.mxu2 }
 0xe7b   :  { %1933 = vrot.lane.b32.xlu2 %v7969_v51, %s6906_s28 }
 0xe83   :  { %2024 = vrot.lane.b32.xlu2 %v7973_v38, %s6908_s19 }
 0xe90   :  { %v1853_v49 = vpop.xlane.xlu1 %1852 }
 0xe91   :  { %v1855_v24 = vmul.f32 %v1853_v49, %v7330_v8 }
 0xe93   :  { %v1857_v0 = vsub.f32 %v7955_v10, %v1855_v24 }
 0xe95   :  { %v1859_v7 = vmul.f32 %v1857_v0, %v1857_v0 }
 0xe97   :  { %v1863_v20 = vsel %vm412_vm10, %v1859_v7, 0.0 }
 0xe98   :  { %1864 = vadd.xlane.f32.xlu0 %v1863_v20  ;;  %v1713_v37 = vpop.xlane.xlu1 %1712 }
 0xe99   :  { %v1717_v28 = vmul.f32 %v1713_v37, %v7330_v8 }
 0xe9b   :  { %v1721_v56 = vsub.f32 %v7962_v22, %v1717_v28 }
 0xe9d   :  { %v1725_v40 = vmul.f32 %v1721_v56, %v1721_v56 }
 0xe9f   :  { %v1735_v55 = vsel %vm412_vm10, %v1725_v40, 0.0 }
 0xea0   :  { %1736 = vadd.xlane.f32.xlu0 %v1735_v55  ;;  %v1734_v19 = vpop.xlane.xlu1 %1733 }
 0xea1   :  { %v1740_v27 = vmul.f32 %v1734_v19, %v7330_v8 }
 0xea3   :  { %v1744_v30 = vadd.f32 1e-05, %v1740_v27 }
 0xea5   :  { %6649 = vrsqrt.f32 %v1744_v30  ;;  %vm1772_vm12 = vweird.f32 %v1744_v30 }
 0xeab   :  { %v6650_v11 = vpop.eup %6649 }
 0xeac   :  { %v1767_v45 = vmul.f32 %v6650_v11, %v1744_v30  ;;  %vm1773_vm8 = vweird.f32 %v6650_v11 }
 0xead   :  { %vm1774_vm13 = vmor %vm1772_vm12, %vm1773_vm8 }
 0xeae   :  { %v1768_v47 = vmul.f32 %v6650_v11, %v1767_v45 }
 0xeb0   :  { %v1769_v50 = vmul.f32 0.5, %v1768_v47 }
 0xeb2   :  { %v1770_v3 = vsub.f32 1.5, %v1769_v50 }
 0xeb4   :  { %v1771_v14 = vmul.f32 %v6650_v11, %v1770_v3  ;;  %2026 = vrot.lane.b32.xlu0 %v7984_v13, %s6908_s19 }
 0xeb6   :  { %v1775_v9 = vsel %vm1774_vm13, %v6650_v11, %v1771_v14 }
 0xeb7   :  { %v1788_v36 = vmul.f32 %v1775_v9, %v1720_v61 }
 0xeb9   :  { %v1793_v33 = vmul.f32 %v7911_v62, %v1788_v36 }
 0xebb   :  { %v1798_v46 = vadd.f32 %v7917_v41, %v1793_v33 }
 0xebd   :  { %6142 = vmatmul.msk.f32.gmra.mxu1 %vm412_vm10, %v1798_v46 }
 0xed5   :  { %v1934_v16 = vpop.permute.xlu2 %1933 }
 0xed6   :  { %6150 = vmatpush.xpose.msk.msrb.mxu3 %vm837_vm4, %v1934_v16 }
 0xed9   :  { %6151 = vmatmul.msk.f32.vlgmr.msrb.gmra.mxu3 %vm837_vm4, %v7973_v38 }
 0xedd   :  { %v2025_v33 = vpop.permute.xlu2 %2024 }
 0xee1   :  { %6152 = vmatmul.msk.f32.gmra.mxu3 %vm837_vm4, %v7984_v13 }
 0xf0b   :  { %v1865_v44 = vpop.xlane.xlu0 %1864 }
 0xf0c   :  { %v1867_v5 = vmul.f32 %v1865_v44, %v7330_v8 }
 0xf0e   :  { %v1869_v54 = vadd.f32 1e-05, %v1867_v5 }
 0xf10   :  { %6651 = vrsqrt.f32 %v1869_v54  ;;  %vm1886_vm15 = vweird.f32 %v1869_v54 }
 0xf13   :  { %v1737_v53 = vpop.xlane.xlu0 %1736 }
 0xf14   :  { %v1741_v58 = vmul.f32 %v1737_v53, %v7330_v8 }
 0xf16   :  { %v6652_v15 = vpop.eup %6651  ;;  %v1745_v43 = vadd.f32 1e-05, %v1741_v58 }
 0xf17   :  { %v1881_v63 = vmul.f32 %v6652_v15, %v1869_v54  ;;  %vm1887_vm14 = vweird.f32 %v6652_v15 }
 0xf18   :  { %6653 = vrsqrt.f32 %v1745_v43  ;;  %vm1888_vm0 = vmor %vm1886_vm15, %vm1887_vm14  ;;  %vm1782_vm2 = vweird.f32 %v1745_v43 }
 0xf19   :  { %v1882_v6 = vmul.f32 %v6652_v15, %v1881_v63 }
 0xf1b   :  { %v1883_v35 = vmul.f32 0.5, %v1882_v6 }
 0xf1d   :  { %v1884_v52 = vsub.f32 1.5, %v1883_v35 }
 0xf1e   :  { %v6654_v31 = vpop.eup %6653 }
 0xf1f   :  { %v1885_v57 = vmul.f32 %v6652_v15, %v1884_v52  ;;  %v1777_v4 = vmul.f32 %v6654_v31, %v1745_v43  ;;  %vm1783_vm1 = vweird.f32 %v6654_v31 }
 0xf20   :  { %vm1784_vm3 = vmor %vm1782_vm2, %vm1783_vm1  ;;  %vm3047_vm1 = vcmask 523264  }
 0xf21   :  { %v1778_v12 = vmul.f32 %v6654_v31, %v1777_v4  ;;  %v1889_v17 = vsel %vm1888_vm0, %v6652_v15, %v1885_v57 }
 0xf22   :  { %v1891_v48 = vmul.f32 %v1889_v17, %v1857_v0 }
 0xf23   :  { %v1779_v18 = vmul.f32 0.5, %v1778_v12 }
 0xf24   :  { %v1894_v21 = vmul.f32 %v7943_v34, %v1891_v48 }
 0xf25   :  { %v1780_v39 = vsub.f32 1.5, %v1779_v18 }
 0xf26   :  { %v1897_v61 = vadd.f32 %v7948_v59, %v1894_v21  ;;  %v2027_v55 = vpop.permute.xlu0 %2026 }
 0xf27   :  { %v1781_v1 = vmul.f32 %v6654_v31, %v1780_v39 }
 0xf28   :  { %6149 = vmatmul.msk.f32.gmra.mxu2 %vm412_vm10, %v1897_v61 }
 0xf29   :  { %v1785_v25 = vsel %vm1784_vm3, %v6654_v31, %v1781_v1 }
 0xf2a   :  { %v1789_v23 = vmul.f32 %v1785_v25, %v1721_v56 }
 0xf2c   :  { %v1794_v49 = vmul.f32 %v7911_v62, %v1789_v23 }
 0xf2e   :  { %v1799_v24 = vadd.f32 %v7917_v41, %v1794_v49 }
 0xf30   :  { %6143 = vmatmul.msk.f32.gmra.mxu1 %vm412_vm10, %v1799_v24 }
 0xf3a   :  { %v8004_v0 = vpop.f32.mrf.mxu1 }
 0xf3b   :  { %2219 = vrot.lane.b32.xlu2 %v8004_v0, %s6908_s19 }
 0xf5c   :  { %v1960_v34 = vpop.f32.mrf.mxu3 }
 0xf5d   :  { %v1966_v59 = vmul.f32 0.25, %v1960_v34 }
 0xf5f   :  { %v1968_v7 = vadd.f32 %v1966_v59, %v7367_v32 }
 0xf61   :  { %v1970_v20 = vsel %vm1414_vm9, %v1968_v7, -inf }
 0xf62   :  { %1971 = vmax.xlane.f32.xlu1 %v1970_v20 }
 0xf64   :  { %v1963_v37 = vpop.f32.mrf.mxu3 }
 0xf65   :  { %v1967_v28 = vmul.f32 0.25, %v1963_v37 }
 0xf67   :  { %v1969_v62 = vadd.f32 %v1967_v28, %v7367_v32 }
 0xf69   :  { %v1973_v41 = vsel %vm1414_vm9, %v1969_v62, -inf }
 0xf6a   :  { %1974 = vmax.xlane.f32.xlu0 %v1973_v41 }
 0xf7b   :  { %2028 = vrot.lane.b32.xlu1 %v7969_v51, %s6909_s20 }
 0xf95   :  { %v2220_v46 = vpop.permute.xlu2 %2219 }
 0xfab   :  { %v8014_v56 = vpop.f32.mrf.mxu2 }
 0xfac   :  { %2223 = vrot.lane.b32.xlu2 %v8014_v56, %s6909_s20 }
 0xfad   :  { %v8018_v40 = vpop.f32.mrf.mxu1 }
 0xfae   :  { %2221 = vrot.lane.b32.xlu0 %v8018_v40, %s6908_s19 }
 0xfb6   :  { %1992 = vrot.lane.b32.xlu0 %v7969_v51, %s6907_s30 }
 0xfbe   :  { %2128 = vrot.lane.b32.xlu0 %v8014_v56, %s6906_s28 }
 0xfd5   :  { %v1972_v19 = vpop.xlane.xlu1 %1971 }
 0xfd6   :  { %v1976_v27 = vsub.f32 %v1968_v7, %v1972_v19 }
 0xfd8   :  { %v1978_v30 = vmul.f32 1.442695, %v1976_v27 }
 0xfda   :  { %6655 = vpow2.f32 %v1978_v30 }
 0xfdd   :  { %v1975_v11 = vpop.xlane.xlu0 %1974 }
 0xfde   :  { %v1977_v45 = vsub.f32 %v1969_v62, %v1975_v11 }
 0xfe0   :  { %v6656_v47 = vpop.eup %6655  ;;  %v1980_v50 = vmul.f32 1.442695, %v1977_v45 }
 0xfe1   :  { %v1982_v3 = vsel %vm1414_vm9, %v6656_v47, 0.0 }
 0xfe2   :  { %6657 = vpow2.f32 %v1980_v50  ;;  %1983 = vadd.xlane.f32.xlu2 %v1982_v3 }
 0xfe8   :  { %v6658_v14 = vpop.eup %6657 }
 0xfe9   :  { %v1985_v9 = vsel %vm1414_vm9, %v6658_v14, 0.0 }
 0xfea   :  { %1986 = vadd.xlane.f32.xlu1 %v1985_v9 }
 0xfed   :  { %v2029_v36 = vpop.permute.xlu1 %2028 }
 0xfee   :  { %6155 = vmatpush.xpose.msk.msrb.mxu2 %vm837_vm4, %v2029_v36 }
 0xff1   :  { %6156 = vmatmul.msk.f32.vlgmr.msrb.gmra.mxu2 %vm837_vm4, %v2025_v33 }
 0xff9   :  { %6157 = vmatmul.msk.f32.gmra.mxu2 %vm837_vm4, %v2027_v55 }
0x1006   :  { %v2224_v16 = vpop.permute.xlu2 %2223 }
0x1007   :  { %6165 = vmatpush.xpose.msk.msra.mxu2 %vm837_vm4, %v2224_v16 }
0x100a   :  { %6166 = vmatmul.msk.f32.vlgmr.msra.gmra.mxu2 %vm837_vm4, %v2220_v46 }
0x1020   :  { %v2222_v44 = vpop.permute.xlu0 %2221 }
0x1021   :  { %6167 = vmatmul.msk.f32.gmra.mxu2 %vm837_vm4, %v2222_v44 }
0x1028   :  { %v1993_v5 = vpop.permute.xlu0 %1992 }
0x1029   :  { %2016 = vmatpush.msra.mxu0 %v1993_v5 }
0x1030   :  { %v2129_v54 = vpop.permute.xlu0 %2128 }
0x1031   :  { %6160 = vmatpush.xpose.msk.msrb.mxu0 %vm837_vm4, %v2129_v54 }
0x1055   :  { %v1984_v53 = vpop.xlane.xlu2 %1983 }
0x1056   :  { %6659 = vrcp.f32 %v1984_v53 }
0x105c   :  { %v6660_v58 = vpop.eup %6659 }
0x105d   :  { %v1990_v15 = vmul.f32 %v6660_v58, %v6656_v47  ;;  %v1987_v43 = vpop.xlane.xlu1 %1986 }
0x105e   :  { %6661 = vrcp.f32 %v1987_v43 }
0x105f   :  { %6153 = vmatmul.msk.f32.vlgmr.msra.gmra.mxu0 %vm1414_vm9, %v1990_v15 }
0x1064   :  { %v6662_v63 = vpop.eup %6661 }
0x1065   :  { %v1991_v6 = vmul.f32 %v6662_v63, %v6658_v14 }
0x1067   :  { %6154 = vmatmul.msk.f32.gmra.mxu0 %vm1414_vm9, %v1991_v6 }
0x106f   :  { %6161 = vmatmul.msk.f32.vlgmr.msrb.gmra.mxu0 %vm837_vm4, %v8004_v0 }
0x1074   :  { %v2053_v35 = vpop.f32.mrf.mxu2 }
0x1075   :  { %v2059_v52 = vmul.f32 0.25, %v2053_v35 }
0x1077   :  { %6162 = vmatmul.msk.f32.gmra.mxu0 %vm837_vm4, %v8018_v40  ;;  %v2061_v31 = vadd.f32 %v2059_v52, %v7367_v32 }
0x1079   :  { %v2063_v57 = vsel %vm1414_vm9, %v2061_v31, -inf }
0x107a   :  { %2064 = vmax.xlane.f32.xlu0 %v2063_v57 }
0x107c   :  { %v2056_v4 = vpop.f32.mrf.mxu2 }
0x107d   :  { %v2060_v12 = vmul.f32 0.25, %v2056_v4 }
0x107f   :  { %v2062_v17 = vadd.f32 %v2060_v12, %v7367_v32 }
0x1081   :  { %v2066_v48 = vsel %vm1414_vm9, %v2062_v17, -inf }
0x1082   :  { %2067 = vmax.xlane.f32.xlu2 %v2066_v48 }
0x108d   :  { %v2248_v18 = vpop.f32.mrf.mxu2 }
0x108e   :  { %v2254_v21 = vmul.f32 0.25, %v2248_v18  ;;  %2085 = vrot.lane.b32.xlu0 %v7969_v51, %s6910_s3 }
0x1090   :  { %v2256_v39 = vadd.f32 %v2254_v21, %v7367_v32 }
0x1092   :  { %v2258_v61 = vsel %vm1414_vm9, %v2256_v39, -inf }
0x1093   :  { %2259 = vmax.xlane.f32.xlu1 %v2258_v61 }
0x1096   :  { %2444 = vrot.lane.b32.xlu0 %v7973_v38, %s6909_s20 }
0x109e   :  { %2442 = vrot.lane.b32.xlu0 %v7969_v51, %s6908_s19 }
0x10a4   :  { %v2251_v34 = vpop.f32.mrf.mxu2 }
0x10a5   :  { %v2255_v37 = vmul.f32 0.25, %v2251_v34 }
0x10a7   :  { %v2257_v41 = vadd.f32 %v2255_v37, %v7367_v32 }
0x10a9   :  { %v2261_v47 = vsel %vm1414_vm9, %v2257_v41, -inf }
0x10dc   :  { %v8053_v1 = vpop.f32.mrf.mxu0 }
0x10e4   :  { %v8055_v25 = vpop.f32.mrf.mxu0 }
0x10ec   :  { %v2155_v23 = vpop.f32.mrf.mxu0 }
0x10ed   :  { %v2161_v49 = vmul.f32 0.25, %v2155_v23  ;;  %v2065_v24 = vpop.xlane.xlu0 %2064 }
0x10ee   :  { %v2069_v59 = vsub.f32 %v2061_v31, %v2065_v24 }
0x10ef   :  { %v2163_v7 = vadd.f32 %v2161_v49, %v7367_v32 }
0x10f0   :  { %v2071_v20 = vmul.f32 1.442695, %v2069_v59 }
0x10f1   :  { %v2165_v28 = vsel %vm1414_vm9, %v2163_v7, -inf }
0x10f2   :  { %6663 = vpow2.f32 %v2071_v20  ;;  %2166 = vmax.xlane.f32.xlu2 %v2165_v28 }
0x10f4   :  { %v2158_v55 = vpop.f32.mrf.mxu0 }
0x10f5   :  { %v2068_v62 = vpop.xlane.xlu2 %2067  ;;  %v2162_v11 = vmul.f32 0.25, %v2158_v55 }
0x10f6   :  { %v2070_v19 = vsub.f32 %v2062_v17, %v2068_v62 }
0x10f7   :  { %v2164_v50 = vadd.f32 %v2162_v11, %v7367_v32 }
0x10f8   :  { %v6664_v27 = vpop.eup %6663  ;;  %v2073_v30 = vmul.f32 1.442695, %v2070_v19 }
0x10f9   :  { %v2075_v45 = vsel %vm1414_vm9, %v6664_v27, 0.0  ;;  %v2168_v36 = vsel %vm1414_vm9, %v2164_v50, -inf }
0x10fa   :  { %6665 = vpow2.f32 %v2073_v30  ;;  %2076 = vadd.xlane.f32.xlu1 %v2075_v45  ;;  %2262 = vmax.xlane.f32.xlu2 %v2261_v47 }
0x1100   :  { %v6666_v3 = vpop.eup %6665  ;;  %v2086_v14 = vpop.permute.xlu0 %2085 }
0x1101   :  { %2109 = vmatpush.msra.mxu3 %v2086_v14  ;;  %v2078_v9 = vsel %vm1414_vm9, %v6666_v3, 0.0 }
0x1102   :  { %2079 = vadd.xlane.f32.xlu1 %v2078_v9  ;;  %2169 = vmax.xlane.f32.xlu2 %v2168_v36  ;;  %v6173_v9 = vld [vmem:[%s9509_s10 + $0x98] sm:$0xff]  ;;  %v6172_v36 = vld [vmem:[%s9509_s10 + $0x90] sm:$0xff] }
0x1103   :  { %2353 = vmatpush.msra.mxu0 %v6173_v9 }
0x1105   :  { %2354 = vmatpush.msra.mxu0 %v6172_v36 }
0x1106   :  { %v2260_v33 = vpop.xlane.xlu1 %2259 }
0x1107   :  { %v2264_v46 = vsub.f32 %v2256_v39, %v2260_v33 }
0x1108   :  { %v2445_v37 = vpop.permute.xlu0 %2444 }
0x1109   :  { %v2266_v16 = vmul.f32 1.442695, %v2264_v46  ;;  %v6171_v46 = vld [vmem:[%s9509_s10 + $0x88] sm:$0xff] }
0x110a   :  { %2355 = vmatpush.msra.mxu0 %v6171_v46 }
0x110b   :  { %6667 = vpow2.f32 %v2266_v16  ;;  %v6170_v16 = vld [vmem:[%s9509_s10 + $0x80] sm:$0xff] }
0x110c   :  { %2356 = vmatpush.msra.mxu0 %v6170_v16 }
0x1110   :  { %v2443_v28 = vpop.permute.xlu0 %2442 }
0x1111   :  { %v6668_v44 = vpop.eup %6667 }
0x1112   :  { %v2270_v5 = vsel %vm1414_vm9, %v6668_v44, 0.0 }
0x1113   :  { %2271 = vadd.xlane.f32.xlu1 %v2270_v5 }
0x111a   :  { %2446 = vrot.lane.b32.xlu2 %v7984_v13, %s6909_s20 }
0x112c   :  { %2280 = vrot.lane.b32.xlu1 %v8014_v56, %s6910_s3 }
0x1165   :  { %v2167_v54 = vpop.xlane.xlu2 %2166 }
0x1166   :  { %v2171_v53 = vsub.f32 %v2163_v7, %v2167_v54 }
0x1168   :  { %v2173_v58 = vmul.f32 1.442695, %v2171_v53 }
0x116a   :  { %6669 = vpow2.f32 %v2173_v58 }
0x116d   :  { %v2263_v15 = vpop.xlane.xlu2 %2262  ;;  %v2077_v43 = vpop.xlane.xlu1 %2076 }
0x116e   :  { %v2265_v63 = vsub.f32 %v2257_v41, %v2263_v15  ;;  %6671 = vrcp.f32 %v2077_v43 }
0x1170   :  { %v6670_v6 = vpop.eup %6669  ;;  %v2268_v35 = vmul.f32 1.442695, %v2265_v63 }
0x1171   :  { %v2177_v52 = vsel %vm1414_vm9, %v6670_v6, 0.0 }
0x1172   :  { %6673 = vpow2.f32 %v2268_v35  ;;  %2178 = vadd.xlane.f32.xlu0 %v2177_v52 }
0x1174   :  { %v6672_v31 = vpop.eup %6671 }
0x1175   :  { %v2083_v57 = vmul.f32 %v6672_v31, %v6664_v27  ;;  %v2170_v4 = vpop.xlane.xlu2 %2169  ;;  %v2080_v12 = vpop.xlane.xlu1 %2079 }
0x1176   :  { %v2172_v17 = vsub.f32 %v2164_v50, %v2170_v4  ;;  %6675 = vrcp.f32 %v2080_v12  ;;  %v6440_v4 = vpack.i.bf16 %v7973_v38, %v7984_v13 }
0x1177   :  { %6158 = vmatmul.msk.f32.vlgmr.msra.gmra.mxu3 %vm1414_vm9, %v2083_v57 }
0x1178   :  { %v6674_v48 = vpop.eup %6673  ;;  %v2175_v18 = vmul.f32 1.442695, %v2172_v17 }
0x1179   :  { %v2273_v21 = vsel %vm1414_vm9, %v6674_v48, 0.0 }
0x117a   :  { %6677 = vpow2.f32 %v2175_v18  ;;  %2274 = vadd.xlane.f32.xlu2 %v2273_v21 }
0x117c   :  { %v6676_v39 = vpop.eup %6675 }
0x117d   :  { %v2084_v61 = vmul.f32 %v6676_v39, %v6666_v3  ;;  %v2447_v20 = vpop.permute.xlu2 %2446 }
0x117f   :  { %6159 = vmatmul.msk.f32.gmra.mxu3 %vm1414_vm9, %v2084_v61 }
0x1180   :  { %v6678_v23 = vpop.eup %6677 }
0x1181   :  { %v2180_v49 = vsel %vm1414_vm9, %v6678_v23, 0.0 }
0x1182   :  { %2181 = vadd.xlane.f32.xlu1 %v2180_v49 }
0x1186   :  { %v2272_v24 = vpop.xlane.xlu1 %2271 }
0x1187   :  { %6679 = vrcp.f32 %v2272_v24 }
0x118d   :  { %v6680_v34 = vpop.eup %6679 }
0x118e   :  { %v2278_v59 = vmul.f32 %v6680_v34, %v6668_v44 }
0x1192   :  { %2187 = vrot.lane.b32.xlu2 %v8014_v56, %s6907_s30 }
0x119a   :  { %2372 = vrot.lane.b32.xlu2 %v7984_v13, %s6906_s28 }
0x119e   :  { %v2281_v7 = vpop.permute.xlu1 %2280 }
0x119f   :  { %2304 = vmatpush.msrb.mxu3 %v2281_v7 }
0x11a0   :  { %6168 = vmatmul.msk.f32.vlgmr.msrb.gmra.mxu3 %vm1414_vm9, %v2278_v59 }
0x11a1   :  { %6182 = vmatpush.xpose.msk.msra.mxu3 %vm837_vm4, %v2447_v20 }
0x11a2   :  { %2370 = vrot.lane.b32.xlu2 %v7973_v38, %s6906_s28  ;;  %v8137_v38 = vld [vmem:[%s9507_s8 + $0x14] ss:$0 sm:$0xff] }
0x11a5   :  { %6183 = vmatpush.xpose.msk.msra.mxu3 %vm837_vm4, %v2445_v37 }
0x11e5   :  { %v2179_v62 = vpop.xlane.xlu0 %2178 }
0x11e6   :  { %6681 = vrcp.f32 %v2179_v62 }
0x11ec   :  { %v6682_v55 = vpop.eup %6681 }
0x11ed   :  { %v2275_v41 = vpop.xlane.xlu2 %2274  ;;  %v2185_v27 = vmul.f32 %v6682_v55, %v6670_v6 }
0x11ee   :  { %6683 = vrcp.f32 %v2275_v41 }
0x11f4   :  { %v6684_v19 = vpop.eup %6683 }
0x11f5   :  { %v2188_v30 = vpop.permute.xlu2 %2187  ;;  %v2182_v11 = vpop.xlane.xlu1 %2181  ;;  %v2279_v45 = vmul.f32 %v6684_v19, %v6674_v48 }
0x11f6   :  { %6685 = vrcp.f32 %v2182_v11  ;;  %2211 = vmatpush.msrb.mxu1 %v2188_v30 }
0x11f7   :  { %6163 = vmatmul.msk.f32.vlgmr.msrb.gmra.mxu1 %vm1414_vm9, %v2185_v27  ;;  %6169 = vmatmul.msk.f32.gmra.mxu3 %vm1414_vm9, %v2279_v45 }
0x11fa   :  { %v2111_v47 = vpop.f32.mrf.mxu3 }
0x11fb   :  { %2119 = vrot.lane.b32.xlu1 %v2111_v47, %s6911_s1 }
0x11fc   :  { %v6686_v50 = vpop.eup %6685 }
0x11fd   :  { %v2373_v3 = vpop.permute.xlu2 %2372  ;;  %v2186_v14 = vmul.f32 %v6686_v50, %v6678_v23 }
0x11fe   :  { %6178 = vmatpush.xpose.msk.msra.mxu1 %vm837_vm4, %v2373_v3 }
0x11ff   :  { %6164 = vmatmul.msk.f32.gmra.mxu1 %vm1414_vm9, %v2186_v14  ;;  %6184 = vmatmul.msk.f32.vlgmr.msra.gmra.mxu3 %vm837_vm4, %v2443_v28 }
0x1202   :  { %v2114_v44 = vpop.f32.mrf.mxu3 }
0x1205   :  { %v2371_v33 = vpop.permute.xlu2 %2370 }
0x1206   :  { %6179 = vmatpush.xpose.msk.msra.mxu1 %vm837_vm4, %v2371_v33 }
0x1209   :  { %6180 = vmatmul.msk.f32.vlgmr.msra.gmra.mxu1 %vm837_vm4, %v7969_v51 }
0x1223   :  { %v8108_v53 = vpop.f32.mrf.mxu3 }
0x126d   :  { %v2120_v5 = vpop.permute.xlu1 %2119 }
0x126e   :  { %v2125_v54 = vsel %vm837_vm4, %v8053_v1, %v2120_v5 }
0x126f   :  { %6174 = vmatmul.msk.f32.vlgmr.msra.gmra.mxu0 %vm412_vm10, %v2125_v54 }
0x1274   :  { %v8110_v58 = vpop.f32.mrf.mxu1 }
0x127a   :  { %v8112_v15 = vpop.f32.mrf.mxu3 }
0x127c   :  { %v8114_v43 = vpop.f32.mrf.mxu1 }
0x1282   :  { %v2471_v51 = vpop.f32.mrf.mxu3 }
0x1283   :  { %v2474_v63 = vmul.f32 0.25, %v2471_v51 }
0x1285   :  { %v2475_v6 = vadd.f32 %v2474_v63, %v7573_v2 }
0x1286   :  { %v2397_v35 = vpop.f32.mrf.mxu1 }
0x1287   :  { %v2400_v52 = vmul.f32 0.25, %v2397_v35  ;;  %v2476_v31 = vsel %vm837_vm4, %v2475_v6, -inf }
0x1288   :  { %2477 = vmax.xlane.f32.xlu2 %v2476_v31 }
0x1289   :  { %v2401_v1 = vadd.f32 %v2400_v52, %v7573_v2 }
0x128b   :  { %v2402_v57 = vsel %vm837_vm4, %v2401_v1, -inf }
0x128c   :  { %2403 = vmax.xlane.f32.xlu0 %v2402_v57 }
0x12a0   :  { %2595 = vrot.lane.b32.xlu2 %v8004_v0, %s6909_s20  ;;  %6441 = vrot.lane.b32.xlu0 %v6440_v4, %s6910_s3 }
0x12a8   :  { %2521 = vrot.lane.b32.xlu2 %v8004_v0, %s6906_s28  ;;  %2597 = vrot.lane.b32.xlu0 %v8018_v40, %s6909_s20 }
0x12b0   :  { %2593 = vrot.lane.b32.xlu0 %v8014_v56, %s6908_s19 }
0x12b8   :  { %6446 = vrot.lane.b32.xlu0 %v6440_v4, %s6907_s30 }
0x12c0   :  { %2523 = vrot.lane.b32.xlu0 %v8018_v40, %s6906_s28 }
0x12ec   :  { %v2358_v13 = vpop.f32.mrf.mxu0 }
0x12ed   :  { %v2359_v12 = vadd.f32 %v8137_v38, %v2358_v13 }
0x12ef   :  { %v8141_v17 = vadd.f32 %v2359_v12, %v7854_v26 }
0x12f1   :  { %v2716_v48 = vsel %vm412_vm10, %v8141_v17, 0.0 }
0x12f2   :  { %2717 = vadd.xlane.f32.xlu0 %v2716_v48 }
0x12fb   :  { %v2478_v18 = vpop.xlane.xlu2 %2477 }
0x12fc   :  { %v2479_v21 = vsub.f32 %v2475_v6, %v2478_v18 }
0x12fe   :  { %v2480_v39 = vmul.f32 1.442695, %v2479_v21 }
0x12ff   :  { %v2404_v49 = vpop.xlane.xlu0 %2403 }
0x1300   :  { %6687 = vpow2.f32 %v2480_v39  ;;  %v2405_v19 = vsub.f32 %v2401_v1, %v2404_v49  ;;  %v2816_v49 = vld [vmem:[%s9510_s11 + $0x10] sm:$0xff] }
0x1302   :  { %v2406_v27 = vmul.f32 1.442695, %v2405_v19 }
0x1303   :  { %v2596_v7 = vpop.permute.xlu2 %2595 }
0x1304   :  { %6689 = vpow2.f32 %v2406_v27 }
0x1306   :  { %v6688_v61 = vpop.eup %6687 }
0x1307   :  { %v2482_v23 = vsel %vm837_vm4, %v6688_v61, 0.0 }
0x1308   :  { %2483 = vadd.xlane.f32.xlu1 %v2482_v23 }
0x130a   :  { %v6690_v30 = vpop.eup %6689 }
0x130b   :  { %v2522_v55 = vpop.permute.xlu2 %2521  ;;  %v2408_v11 = vsel %vm837_vm4, %v6690_v30, 0.0 }
0x1312   :  { %v6442_v24 = vpop.permute.xlu0 %6441 }
0x1313   :  { %v6443_v34 = vunpack.i.l.bf16 %v6442_v24  ;;  %v6444_v59 = vunpack.i.h.bf16 %v6442_v24  ;;  %v2814_v24 = vld [vmem:[%s9510_s11] sm:$0xff] }
0x1315   :  { %2510 = vmatpush.msrb.mxu1 %v6443_v34 }
0x1317   :  { %2511 = vmatpush.msrb.mxu1 %v6444_v59 }
0x131a   :  { %v2598_v26 = vpop.permute.xlu0 %2597 }
0x131b   :  { %6190 = vmatpush.xpose.msk.msra.mxu1 %vm837_vm4, %v2598_v26 }
0x131f   :  { %6191 = vmatpush.xpose.msk.msra.mxu1 %vm837_vm4, %v2596_v7 }
0x1321   :  { %2121 = vrot.lane.b32.xlu1 %v2114_v44, %s6911_s1 }
0x1322   :  { %v2594_v20 = vpop.permute.xlu0 %2593 }
0x132a   :  { %v6447_v37 = vpop.permute.xlu0 %6446 }
0x132b   :  { %v6448_v28 = vunpack.i.l.bf16 %v6447_v37  ;;  %v6449_v62 = vunpack.i.h.bf16 %v6447_v37 }
0x132d   :  { %2436 = vmatpush.msrb.mxu2 %v6448_v28 }
0x132f   :  { %2437 = vmatpush.msrb.mxu2 %v6449_v62 }
0x1332   :  { %v2524_v41 = vpop.permute.xlu0 %2523 }
0x1333   :  { %6186 = vmatpush.xpose.msk.msra.mxu2 %vm837_vm4, %v2524_v41 }
0x1337   :  { %6187 = vmatpush.xpose.msk.msra.mxu2 %vm837_vm4, %v2522_v55 }
0x134b   :  { %2409 = vadd.xlane.f32.xlu1 %v2408_v11 }
0x137b   :  { %v2484_v45 = vpop.xlane.xlu1 %2483 }
0x137c   :  { %6691 = vrcp.f32 %v2484_v45  ;;  %v8207_v45 = vld [vmem:[%s9507_s8 + $0x1e] ss:$0 sm:$0xff] }
0x1382   :  { %v6692_v47 = vpop.eup %6691 }
0x1383   :  { %v2486_v50 = vmul.f32 %v6692_v47, %v6688_v61  ;;  %v2817_v61 = vld [vmem:[%s9510_s11 + $0x18] sm:$0xff] }
0x1385   :  { %6185 = vmatmul.msk.f32.vlgmr.msrb.gmra.mxu1 %vm837_vm4, %v2486_v50 }
0x1386   :  { %2844 = vmatpush.msrb.mxu1 %v2817_v61 }
0x1388   :  { %2845 = vmatpush.msrb.mxu1 %v2816_v49 }
0x138d   :  { %6192 = vmatmul.msk.f32.vlgmr.msra.gmra.mxu1 %vm837_vm4, %v2594_v20 }
0x1393   :  { %v2122_v3 = vpop.permute.xlu1 %2121 }
0x1394   :  { %v2126_v14 = vsel %vm837_vm4, %v8055_v25, %v2122_v3  ;;  %v2718_v25 = vpop.xlane.xlu0 %2717  ;;  %v8212_v3 = vld [vmem:[%s9507_s8 + $0x1f] ss:$0 sm:$0xff] }
0x1395   :  { %6175 = vmatmul.msk.f32.gmra.mxu0 %vm412_vm10, %v2126_v14  ;;  %v2728_v63 = vmul.f32 %v2718_v25, %v7330_v8 }
0x13be   :  { %v2410_v9 = vpop.xlane.xlu1 %2409 }
0x13bf   :  { %6693 = vrcp.f32 %v2410_v9 }
0x13c5   :  { %v6694_v36 = vpop.eup %6693 }
0x13c6   :  { %v2412_v33 = vmul.f32 %v6694_v36, %v6690_v30 }
0x13c8   :  { %6181 = vmatmul.msk.f32.vlgmr.msrb.gmra.mxu2 %vm837_vm4, %v2412_v33 }
0x13d0   :  { %6188 = vmatmul.msk.f32.vlgmr.msra.gmra.mxu2 %vm837_vm4, %v8014_v56  ;;  %v2732_v56 = vsub.f32 %v8141_v17, %v2728_v63 }
0x13d2   :  { %v2736_v31 = vmul.f32 %v2732_v56, %v2732_v56 }
0x13d4   :  { %v2740_v1 = vsel %vm412_vm10, %v2736_v31, 0.0 }
0x1402   :  { %v8160_v46 = vpop.f32.mrf.mxu1 }
0x140a   :  { %v2622_v16 = vpop.f32.mrf.mxu1 }
0x140b   :  { %v2625_v44 = vmul.f32 0.25, %v2622_v16 }
0x140d   :  { %v2626_v5 = vadd.f32 %v2625_v44, %v7573_v2 }
0x140f   :  { %v2627_v54 = vsel %vm837_vm4, %v2626_v5, -inf }
0x1410   :  { %2628 = vmax.xlane.f32.xlu2 %v2627_v54 }
0x1412   :  { %v2361_v51 = vpop.f32.mrf.mxu0 }
0x1413   :  { %v2362_v6 = vadd.f32 %v8137_v38, %v2361_v51 }
0x1415   :  { %v8167_v35 = vadd.f32 %v2362_v6, %v7860_v42  ;;  %v6450_v42 = vpack.i.bf16 %v8004_v0, %v8018_v40  ;;  %v2815_v40 = vld [vmem:[%s9510_s11 + $0x8] sm:$0xff] }
0x1416   :  { %2846 = vmatpush.msrb.mxu1 %v2815_v40 }
0x1417   :  { %v2719_v52 = vsel %vm412_vm10, %v8167_v35, 0.0 }
0x1418   :  { %2720 = vadd.xlane.f32.xlu1 %v2719_v52  ;;  %2847 = vmatpush.msrb.mxu1 %v2814_v24 }
0x1420   :  { %2741 = vadd.xlane.f32.xlu1 %v2740_v1 }
0x144b   :  { %v8173_v57 = vpop.f32.mrf.mxu2 }
0x1453   :  { %v2548_v4 = vpop.f32.mrf.mxu2 }
0x1454   :  { %v2551_v13 = vmul.f32 0.25, %v2548_v4 }
0x1456   :  { %v2552_v12 = vadd.f32 %v2551_v13, %v7573_v2 }
0x1458   :  { %v2553_v48 = vsel %vm837_vm4, %v2552_v12, -inf }
0x1459   :  { %2554 = vmax.xlane.f32.xlu1 %v2553_v48 }
0x1472   :  { %6451 = vrot.lane.b32.xlu1 %v6450_v42, %s6910_s3 }
0x147a   :  { %6456 = vrot.lane.b32.xlu1 %v6450_v42, %s6907_s30 }
0x1483   :  { %v2629_v18 = vpop.xlane.xlu2 %2628 }
0x1484   :  { %v2630_v21 = vsub.f32 %v2626_v5, %v2629_v18 }
0x1486   :  { %v2631_v39 = vmul.f32 1.442695, %v2630_v21 }
0x1488   :  { %6695 = vpow2.f32 %v2631_v39 }
0x148b   :  { %v2721_v23 = vpop.xlane.xlu1 %2720 }
0x148c   :  { %v2729_v0 = vmul.f32 %v2721_v23, %v7330_v8 }
0x148e   :  { %v6696_v34 = vpop.eup %6695  ;;  %v8195_v59 = vsub.f32 %v8167_v35, %v2729_v0 }
0x148f   :  { %v2633_v26 = vsel %vm837_vm4, %v6696_v34, 0.0 }
0x1490   :  { %2634 = vadd.xlane.f32.xlu0 %v2633_v26  ;;  %v2737_v7 = vmul.f32 %v8195_v59, %v8195_v59 }
0x1492   :  { %v2743_v20 = vsel %vm412_vm10, %v2737_v7, 0.0 }
0x1493   :  { %2744 = vadd.xlane.f32.xlu2 %v2743_v20  ;;  %v2742_v37 = vpop.xlane.xlu1 %2741  ;;  %v3044_v20 = vld [vmem:[%s9511_s12 + $0x38] sm:$0xff] }
0x1494   :  { %v2752_v28 = vmul.f32 %v2742_v37, %v7330_v8  ;;  %3068 = vmatpush.msrb.mxu0 %v3044_v20 }
0x1496   :  { %v2756_v62 = vadd.f32 1e-05, %v2752_v28 }
0x1498   :  { %6697 = vrsqrt.f32 %v2756_v62  ;;  %vm2766_vm11 = vweird.f32 %v2756_v62 }
0x149e   :  { %v6698_v41 = vpop.eup %6697 }
0x149f   :  { %v2761_v55 = vmul.f32 %v6698_v41, %v2756_v62  ;;  %vm2767_vm5 = vweird.f32 %v6698_v41  ;;  %v3043_v62 = vld [vmem:[%s9511_s12 + $0x30] sm:$0xff] }
0x14a0   :  { %vm2768_vm6 = vmor %vm2766_vm11, %vm2767_vm5  ;;  %3069 = vmatpush.msrb.mxu0 %v3043_v62 }
0x14a1   :  { %v2762_v19 = vmul.f32 %v6698_v41, %v2761_v55 }
0x14a3   :  { %v2763_v27 = vmul.f32 0.5, %v2762_v19 }
0x14a4   :  { %2316 = vrot.lane.b32.xlu0 %v8112_v15, %s6911_s1 }
0x14a5   :  { %v2764_v30 = vsub.f32 1.5, %v2763_v27  ;;  %v3042_v27 = vld [vmem:[%s9511_s12 + $0x28] sm:$0xff] }
0x14a6   :  { %3070 = vmatpush.msrb.mxu0 %v3042_v27 }
0x14a7   :  { %v2765_v11 = vmul.f32 %v6698_v41, %v2764_v30  ;;  %v6196_v30 = vld [vmem:[%s9509_s10 + $0xb0] sm:$0xff] }
0x14a9   :  { %v2769_v47 = vsel %vm2768_vm6, %v6698_v41, %v2765_v11  ;;  %v6197_v41 = vld [vmem:[%s9509_s10 + $0xb8] sm:$0xff] }
0x14aa   :  { %v2800_v50 = vmul.f32 %v2769_v47, %v2732_v56 }
0x14ab   :  { %2314 = vrot.lane.b32.xlu2 %v8108_v53, %s6911_s1 }
0x14ac   :  { %v2805_v15 = vmul.f32 %v8207_v45, %v2800_v50  ;;  %v3041_v50 = vld [vmem:[%s9511_s12 + $0x20] sm:$0xff] }
0x14ad   :  { %3071 = vmatpush.msrb.mxu0 %v3041_v50 }
0x14ae   :  { %v2810_v14 = vadd.f32 %v8212_v3, %v2805_v15  ;;  %v6195_v15 = vld [vmem:[%s9509_s10 + $0xa8] sm:$0xff] }
0x14b0   :  { %6200 = vmatmul.msk.f32.vlgmr.msrb.gmra.mxu1 %vm412_vm10, %v2810_v14 }
0x14b3   :  { %2517 = vrot.lane.b32.xlu2 %v8160_v46, %s6911_s1 }
0x14cc   :  { %v2555_v9 = vpop.xlane.xlu1 %2554 }
0x14cd   :  { %v2556_v36 = vsub.f32 %v2552_v12, %v2555_v9  ;;  %v3040_v9 = vld [vmem:[%s9511_s12 + $0x18] sm:$0xff] }
0x14ce   :  { %3072 = vmatpush.msrb.mxu0 %v3040_v9 }
0x14cf   :  { %v2557_v33 = vmul.f32 1.442695, %v2556_v36 }
0x14d1   :  { %6699 = vpow2.f32 %v2557_v33  ;;  %v6194_v33 = vld [vmem:[%s9509_s10 + $0xa0] sm:$0xff] }
0x14d7   :  { %v8221_v16 = vpop.eup %6699 }
0x14d8   :  { %v2559_v44 = vsel %vm837_vm4, %v8221_v16, 0.0 }
0x14d9   :  { %2560 = vadd.xlane.f32.xlu0 %v2559_v44 }
0x14e4   :  { %v6452_v53 = vpop.permute.xlu1 %6451 }
0x14e5   :  { %v6453_v5 = vunpack.i.l.bf16 %v6452_v53  ;;  %v6454_v54 = vunpack.i.h.bf16 %v6452_v53  ;;  %v3039_v53 = vld [vmem:[%s9511_s12 + $0x10] sm:$0xff] }
0x14e6   :  { %3073 = vmatpush.msrb.mxu0 %v3039_v53 }
0x14e7   :  { %2661 = vmatpush.msrb.mxu2 %v6453_v5 }
0x14e9   :  { %2662 = vmatpush.msrb.mxu2 %v6454_v54  ;;  %v3038_v54 = vld [vmem:[%s9511_s12 + $0x8] sm:$0xff] }
0x14ea   :  { %3074 = vmatpush.msrb.mxu0 %v3038_v54 }
0x14ec   :  { %v6457_v25 = vpop.permute.xlu1 %6456 }
0x14ed   :  { %v6458_v51 = vunpack.i.l.bf16 %v6457_v25  ;;  %v6459_v63 = vunpack.i.h.bf16 %v6457_v25 }
0x14ef   :  { %2587 = vmatpush.msrb.mxu3 %v6458_v51  ;;  %v3037_v51 = vld [vmem:[%s9511_s12] sm:$0xff] }
0x14f0   :  { %3075 = vmatpush.msrb.mxu0 %v3037_v51 }
0x14f1   :  { %2588 = vmatpush.msrb.mxu3 %v6459_v63 }
0x14f3   :  { %2697 = vmatpush.msra.mxu3 %v6197_v41 }
0x14f5   :  { %2698 = vmatpush.msra.mxu3 %v6196_v30 }
0x14f7   :  { %2699 = vmatpush.msra.mxu3 %v6195_v15 }
0x14f9   :  { %2700 = vmatpush.msra.mxu3 %v6194_v33 }
0x1503   :  { %v2635_v46 = vpop.xlane.xlu0 %2634 }
0x1504   :  { %6701 = vrcp.f32 %v2635_v46 }
0x1506   :  { %v2745_v6 = vpop.xlane.xlu2 %2744 }
0x1507   :  { %v2753_v56 = vmul.f32 %v2745_v6, %v7330_v8 }
0x1509   :  { %v2757_v52 = vadd.f32 1e-05, %v2753_v56 }
0x150a   :  { %v6702_v31 = vpop.eup %6701 }
0x150b   :  { %v2637_v1 = vmul.f32 %v6702_v31, %v6696_v34  ;;  %6703 = vrsqrt.f32 %v2757_v52  ;;  %vm2776_vm8 = vweird.f32 %v2757_v52 }
0x150d   :  { %6193 = vmatmul.msk.f32.vlgmr.msrb.gmra.mxu2 %vm837_vm4, %v2637_v1 }
0x150e   :  { %v2315_v4 = vpop.permute.xlu2 %2314 }
0x150f   :  { %v2320_v13 = vsel %vm837_vm4, %v8110_v58, %v2315_v4 }
0x1510   :  { %6176 = vmatmul.msk.f32.gmra.mxu0 %vm412_vm10, %v2320_v13 }
0x1511   :  { %v6704_v12 = vpop.eup %6703 }
0x1512   :  { %v2771_v48 = vmul.f32 %v6704_v12, %v2757_v52  ;;  %vm2777_vm7 = vweird.f32 %v6704_v12 }
0x1513   :  { %vm2778_vm12 = vmor %vm2776_vm8, %vm2777_vm7 }
0x1514   :  { %v2772_v42 = vmul.f32 %v6704_v12, %v2771_v48 }
0x1516   :  { %v2773_v18 = vmul.f32 0.5, %v2772_v42  ;;  %v2317_v21 = vpop.permute.xlu0 %2316 }
0x1517   :  { %v2321_v39 = vsel %vm837_vm4, %v8114_v43, %v2317_v21  ;;  %v8240_v43 = vld [vmem:[%s9512_s13] ss:$0 sm:$0xff] }
0x1518   :  { %v2774_v61 = vsub.f32 1.5, %v2773_v18  ;;  %6177 = vmatmul.msk.f32.gmra.mxu0 %vm412_vm10, %v2321_v39 }
0x151a   :  { %v2775_v23 = vmul.f32 %v6704_v12, %v2774_v61 }
0x151c   :  { %v2779_v49 = vsel %vm2778_vm12, %v6704_v12, %v2775_v23 }
0x151d   :  { %v2801_v58 = vmul.f32 %v2779_v49, %v8195_v59 }
0x151f   :  { %v2806_v0 = vmul.f32 %v8207_v45, %v2801_v58 }
0x1521   :  { %v2811_v40 = vadd.f32 %v8212_v3, %v2806_v0 }
0x1523   :  { %6201 = vmatmul.msk.f32.gmra.mxu1 %vm412_vm10, %v2811_v40 }
0x152d   :  { %v2849_v24 = vpop.f32.mrf.mxu1 }
0x152e   :  { %v8243_v34 = vadd.f32 %v8240_v43, %v2849_v24 }
0x1530   :  { %v8246_v26 = vmul.f32 0.70710677, %v8243_v34 }
0x1532   :  { %v2869_v59 = vmul.f32 %v8246_v26, %v8246_v26 }
0x1534   :  { %v2870_v7 = vmin.f32 %v2869_v59, 16.0  ;;  %v2518_v59 = vpop.permute.xlu2 %2517 }
0x1536   :  { %v2871_v37 = vmul.f32 2.1237322e-06, %v2870_v7  ;;  %v2882_v28 = vmul.f32 3.8918573e-05, %v2870_v7 }
0x1538   :  { %v2872_v55 = vadd.f32 0.00028619796, %v2871_v37  ;;  %v2883_v19 = vadd.f32 0.001143296, %v2882_v28  ;;  %v2861_v28 = vmul.f32 0.5, %v8243_v34 }
0x153a   :  { %v2873_v11 = vmul.f32 %v2872_v55, %v2870_v7  ;;  %v2884_v47 = vmul.f32 %v2883_v19, %v2870_v7 }
0x153c   :  { %v2885_v14 = vadd.f32 0.014752088, %v2884_v47  ;;  %v2874_v36 = vadd.f32 0.0036580483, %v2873_v11 }
0x153e   :  { %v2886_v44 = vmul.f32 %v2885_v14, %v2870_v7  ;;  %v2875_v25 = vmul.f32 %v2874_v36, %v2870_v7 }
0x1540   :  { %v2887_v5 = vadd.f32 0.112945676, %v2886_v44  ;;  %v2876_v6 = vadd.f32 0.05243302, %v2875_v25 }
0x1542   :  { %v2888_v63 = vmul.f32 %v2887_v5, %v2870_v7  ;;  %v2877_v31 = vmul.f32 %v2876_v6, %v2870_v7 }
0x1544   :  { %v2889_v46 = vadd.f32 0.4994258, %v2888_v63  ;;  %v2878_v4 = vadd.f32 0.18741608, %v2877_v31 }
0x1546   :  { %v2890_v56 = vmul.f32 %v2889_v46, %v2870_v7  ;;  %v2879_v12 = vmul.f32 %v2878_v4, %v2870_v7 }
0x1548   :  { %v2891_v52 = vadd.f32 1.0, %v2890_v56  ;;  %v2880_v61 = vadd.f32 1.1283791, %v2879_v12 }
0x154a   :  { %6705 = vrcp.f32 %v2891_v52  ;;  %v2903_v21 = vand.u32 2147483648, %v2891_v52  ;;  %v2901_v49 = vand.u32 2147483647, %v2891_v52  ;;  %vm2897_vm14 = vweird.f32 %v2891_v52 }
0x154b   :  { %v2881_v40 = vmul.f32 %v2880_v61, %v8246_v26 }
0x154c   :  { %v2561_v1 = vpop.xlane.xlu0 %2560  ;;  %v2904_v0 = vor.u32 1.1754944e-38, %v2903_v21  ;;  %vm2902_vm0 = vcmp.eq.f32.partialorder %v2901_v49, 8.507059e+37 }
0x154d   :  { %6707 = vrcp.f32 %v2561_v1 }
0x1550   :  { %v6706_v13 = vpop.eup %6705 }
0x1551   :  { %v2893_v48 = vmul.f32 %v6706_v13, %v2891_v52  ;;  %vm2898_vm13 = vweird.f32 %v6706_v13 }
0x1552   :  { %vm2899_vm15 = vmor %vm2897_vm14, %vm2898_vm13 }
0x1553   :  { %v6708_v42 = vpop.eup %6707  ;;  %v2894_v18 = vsub.f32 1.0, %v2893_v48 }
0x1554   :  { %v2563_v39 = vmul.f32 %v6708_v42, %v8221_v16  ;;  %v2520_v16 = vsel %vm837_vm4, %v8173_v57, %v2518_v59 }
0x1555   :  { %v2895_v23 = vmul.f32 %v6706_v13, %v2894_v18 }
0x1556   :  { %6189 = vmatmul.msk.f32.vlgmr.msrb.gmra.mxu3 %vm837_vm4, %v2563_v39 }
0x1557   :  { %v2896_v58 = vadd.f32 %v6706_v13, %v2895_v23 }
0x1559   :  { %v2900_v24 = vsel %vm2899_vm15, %v6706_v13, %v2896_v58 }
0x155a   :  { %v2905_v7 = vsel %vm2902_vm0, %v2904_v0, %v2900_v24 }
0x155b   :  { %v2906_v20 = vmul.f32 %v2905_v7, %v2881_v40 }
0x155d   :  { %v6204_v37 = vclamps-f32 %v2906_v20, 1.0 }
0x155e   :  { %6198 = vmatmul.msk.f32.vlgmr.msra.gmra.mxu3 %vm412_vm10, %v2520_v16 }
0x155f   :  { %v3029_v62 = vadd.f32 1.0, %v6204_v37 }
0x1561   :  { %v3033_v41 = vmul.f32 %v3029_v62, %v2861_v28  ;;  %v8312_v28 = vld [vmem:[%s9507_s8 + $0x20] ss:$0 sm:$0xff]  ;;  %v6523_v62 = vld [vmem:[%s9507_s8 + $0x17] ss:$0 sm:$0xff] }
0x1563   :  { %6208 = vmatmul.msk.f32.vlgmr.msrb.gmra.mxu0 %vm3047_vm1, %v3033_v41 }
0x158d   :  { %v2364_v55 = vpop.f32.mrf.mxu0 }
0x158e   :  { %v2365_v26 = vadd.f32 %v8137_v38, %v2364_v55 }
0x1590   :  { %v8296_v19 = vadd.f32 %v2365_v26, %v7885_v60  ;;  %v2664_v27 = vpop.f32.mrf.mxu2 }
0x1591   :  { %2668 = vrot.lane.b32.xlu1 %v2664_v27, %s6911_s1 }
0x1592   :  { %v2722_v57 = vsel %vm412_vm10, %v8296_v19, 0.0 }
0x1593   :  { %2723 = vadd.xlane.f32.xlu2 %v2722_v57 }
0x1595   :  { %v2367_v44 = vpop.f32.mrf.mxu0 }
0x1596   :  { %v2368_v25 = vadd.f32 %v8137_v38, %v2367_v44 }
0x1598   :  { %v8304_v6 = vadd.f32 %v2368_v25, %v7962_v22 }
0x159a   :  { %v2725_v1 = vsel %vm412_vm10, %v8304_v6, 0.0 }
0x15a0   :  { %v2852_v30 = vpop.f32.mrf.mxu1 }
0x15a1   :  { %v2853_v34 = vadd.f32 %v8240_v43, %v2852_v30 }
0x15a3   :  { %v2866_v11 = vmul.f32 0.70710677, %v2853_v34  ;;  %v2862_v7 = vmul.f32 0.5, %v2853_v34 }
0x15a5   :  { %v2909_v47 = vmul.f32 %v2866_v11, %v2866_v11 }
0x15a7   :  { %v2910_v50 = vmin.f32 %v2909_v47, 16.0 }
0x15a9   :  { %v2911_v15 = vmul.f32 2.1237322e-06, %v2910_v50  ;;  %v2922_v14 = vmul.f32 3.8918573e-05, %v2910_v50 }
0x15ab   :  { %v2912_v9 = vadd.f32 0.00028619796, %v2911_v15  ;;  %v2923_v36 = vadd.f32 0.001143296, %v2922_v14 }
0x15ad   :  { %v2913_v33 = vmul.f32 %v2912_v9, %v2910_v50  ;;  %v2924_v60 = vmul.f32 %v2923_v36, %v2910_v50 }
0x15af   :  { %v2925_v53 = vadd.f32 0.014752088, %v2924_v60  ;;  %v2914_v5 = vadd.f32 0.0036580483, %v2913_v33 }
0x15b1   :  { %v2926_v54 = vmul.f32 %v2925_v53, %v2910_v50  ;;  %v2915_v63 = vmul.f32 %v2914_v5, %v2910_v50 }
0x15b3   :  { %v2927_v51 = vadd.f32 0.112945676, %v2926_v54  ;;  %v2916_v52 = vadd.f32 0.05243302, %v2915_v63 }
0x15b5   :  { %v2928_v46 = vmul.f32 %v2927_v51, %v2910_v50  ;;  %v2917_v13 = vmul.f32 %v2916_v52, %v2910_v50 }
0x15b7   :  { %v2929_v56 = vadd.f32 0.4994258, %v2928_v46  ;;  %v2918_v12 = vadd.f32 0.18741608, %v2917_v13 }
0x15b9   :  { %v2930_v31 = vmul.f32 %v2929_v56, %v2910_v50  ;;  %v2919_v42 = vmul.f32 %v2918_v12, %v2910_v50 }
0x15bb   :  { %v2931_v4 = vadd.f32 1.0, %v2930_v31  ;;  %2726 = vadd.xlane.f32.xlu1 %v2725_v1  ;;  %v2920_v39 = vadd.f32 1.1283791, %v2919_v42 }
0x15bd   :  { %6709 = vrcp.f32 %v2931_v4  ;;  %v2943_v21 = vand.u32 2147483648, %v2931_v4  ;;  %v2941_v22 = vand.u32 2147483647, %v2931_v4  ;;  %vm2937_vm3 = vweird.f32 %v2931_v4 }
0x15be   :  { %v2921_v58 = vmul.f32 %v2920_v39, %v2866_v11 }
0x15bf   :  { %v2944_v49 = vor.u32 1.1754944e-38, %v2943_v21  ;;  %vm2942_vm11 = vcmp.eq.f32.partialorder %v2941_v22, 8.507059e+37 }
0x15c3   :  { %v6710_v48 = vpop.eup %6709 }
0x15c4   :  { %v2933_v38 = vmul.f32 %v6710_v48, %v2931_v4  ;;  %vm2938_vm2 = vweird.f32 %v6710_v48 }
0x15c5   :  { %vm2939_vm5 = vmor %vm2937_vm3, %vm2938_vm2 }
0x15c6   :  { %v2934_v18 = vsub.f32 1.0, %v2933_v38 }
0x15c8   :  { %v2935_v61 = vmul.f32 %v6710_v48, %v2934_v18 }
0x15ca   :  { %v2936_v23 = vadd.f32 %v6710_v48, %v2935_v61 }
0x15cc   :  { %v2940_v0 = vsel %vm2939_vm5, %v6710_v48, %v2936_v23 }
0x15cd   :  { %v2945_v40 = vsel %vm2942_vm11, %v2944_v49, %v2940_v0 }
0x15ce   :  { %v2946_v24 = vmul.f32 %v2945_v40, %v2921_v58 }
0x15d0   :  { %v6205_v59 = vclamps-f32 %v2946_v24, 1.0 }
0x15d2   :  { %v3030_v20 = vadd.f32 1.0, %v6205_v59 }
0x15d4   :  { %v3034_v16 = vmul.f32 %v3030_v20, %v2862_v7 }
0x15d6   :  { %6209 = vmatmul.msk.f32.gmra.mxu0 %vm3047_vm1, %v3034_v16 }
0x15d9   :  { %v2590_v37 = vpop.f32.mrf.mxu3 }
0x15e0   :  { %v3077_v41 = vpop.f32.mrf.mxu0 }
0x15e1   :  { %v3078_v55 = vadd.f32 %v8312_v28, %v3077_v41  ;;  %v2702_v26 = vpop.f32.mrf.mxu3 }
0x15e2   :  { %v2703_v27 = vadd.f32 %v6523_v62, %v2702_v26 }
0x15e3   :  { %v8319_v57 = vadd.f32 %v3078_v55, %v8141_v17 }
0x15e4   :  { %v8322_v30 = vadd.f32 %v2703_v27, %v7871_v29 }
0x15e5   :  { %v3313_v34 = vsel %vm412_vm10, %v8319_v57, 0.0 }
0x15e6   :  { %3314 = vadd.xlane.f32.xlu1 %v3313_v34  ;;  %v3095_v11 = vsel %vm412_vm10, %v8322_v30, 0.0 }
0x15e7   :  { %3096 = vadd.xlane.f32.xlu2 %v3095_v11 }
0x1603   :  { %v2669_v47 = vpop.permute.xlu1 %2668 }
0x1604   :  { %v2671_v50 = vsel %vm837_vm4, %v2590_v37, %v2669_v47 }
0x1605   :  { %6199 = vmatmul.msk.f32.gmra.mxu3 %vm412_vm10, %v2671_v50 }
0x1606   :  { %v2724_v15 = vpop.xlane.xlu2 %2723 }
0x1607   :  { %v2730_v17 = vmul.f32 %v2724_v15, %v7330_v8 }
0x1609   :  { %v2734_v14 = vsub.f32 %v8296_v19, %v2730_v17 }
0x160b   :  { %v2738_v29 = vmul.f32 %v2734_v14, %v2734_v14 }
0x160d   :  { %v2746_v9 = vsel %vm412_vm10, %v2738_v29, 0.0 }
0x160e   :  { %2747 = vadd.xlane.f32.xlu0 %v2746_v9 }
0x162e   :  { %v2727_v36 = vpop.xlane.xlu1 %2726 }
0x162f   :  { %v2731_v33 = vmul.f32 %v2727_v36, %v7330_v8 }
0x1631   :  { %v2735_v60 = vsub.f32 %v8304_v6, %v2731_v33  ;;  %v6214_v33 = vld [vmem:[%s9510_s11 + $0x30] sm:$0xff] }
0x1633   :  { %v2739_v44 = vmul.f32 %v2735_v60, %v2735_v60 }
0x1635   :  { %v2749_v53 = vsel %vm412_vm10, %v2739_v44, 0.0  ;;  %v6213_v44 = vld [vmem:[%s9510_s11 + $0x28] sm:$0xff] }
0x1636   :  { %2750 = vadd.xlane.f32.xlu0 %v2749_v53 }
0x1653   :  { %v3080_v5 = vpop.f32.mrf.mxu0 }
0x1654   :  { %v3081_v54 = vadd.f32 %v8312_v28, %v3080_v5  ;;  %v6212_v5 = vld [vmem:[%s9510_s11 + $0x20] sm:$0xff] }
0x1656   :  { %v8338_v25 = vadd.f32 %v3081_v54, %v8167_v35 }
0x1658   :  { %v3316_v51 = vsel %vm412_vm10, %v8338_v25, 0.0 }
0x1659   :  { %3317 = vadd.xlane.f32.xlu2 %v3316_v51  ;;  %v3315_v63 = vpop.xlane.xlu1 %3314 }
0x165a   :  { %v3325_v46 = vmul.f32 %v3315_v63, %v7330_v8  ;;  %v3097_v13 = vpop.xlane.xlu2 %3096 }
0x165b   :  { %v3101_v48 = vmul.f32 %v3097_v13, %v7330_v8 }
0x165c   :  { %v8344_v56 = vsub.f32 %v8319_v57, %v3325_v46 }
0x165d   :  { %v8355_v21 = vsub.f32 %v8322_v30, %v3101_v48 }
0x165e   :  { %v3333_v52 = vmul.f32 %v8344_v56, %v8344_v56 }
0x165f   :  { %v3105_v49 = vmul.f32 %v8355_v21, %v8355_v21 }
0x1660   :  { %v3337_v31 = vsel %vm412_vm10, %v3333_v52, 0.0 }
0x1661   :  { %3338 = vadd.xlane.f32.xlu2 %v3337_v31 }
0x1681   :  { %v2748_v1 = vpop.xlane.xlu0 %2747 }
0x1682   :  { %v2754_v35 = vmul.f32 %v2748_v1, %v7330_v8 }
0x1684   :  { %v2758_v4 = vadd.f32 1e-05, %v2754_v35 }
0x1686   :  { %6711 = vrsqrt.f32 %v2758_v4  ;;  %vm2786_vm7 = vweird.f32 %v2758_v4 }
0x1688   :  { %v2705_v12 = vpop.f32.mrf.mxu3 }
0x1689   :  { %v2706_v42 = vadd.f32 %v6523_v62, %v2705_v12 }
0x168b   :  { %v8352_v38 = vadd.f32 %v2706_v42, %v7955_v10  ;;  %v3107_v10 = vsel %vm412_vm10, %v3105_v49, 0.0  ;;  %v8406_v49 = vld [vmem:[%s9507_s8 + $0x22] ss:$0 sm:$0xff] }
0x168c   :  { %v6712_v18 = vpop.eup %6711 }
0x168d   :  { %v2781_v39 = vmul.f32 %v6712_v18, %v2758_v4  ;;  %v3098_v61 = vsel %vm412_vm10, %v8352_v38, 0.0  ;;  %vm2787_vm6 = vweird.f32 %v6712_v18 }
0x168e   :  { %3099 = vadd.xlane.f32.xlu0 %v3098_v61  ;;  %vm2788_vm8 = vmor %vm2786_vm7, %vm2787_vm6 }
0x168f   :  { %v2782_v22 = vmul.f32 %v6712_v18, %v2781_v39 }
0x1691   :  { %v2783_v23 = vmul.f32 0.5, %v2782_v22 }
0x1693   :  { %v2784_v58 = vsub.f32 1.5, %v2783_v23 }
0x1695   :  { %v2785_v0 = vmul.f32 %v6712_v18, %v2784_v58 }
0x1696   :  { %3108 = vadd.xlane.f32.xlu0 %v3107_v10 }
0x1697   :  { %v2789_v40 = vsel %vm2788_vm8, %v6712_v18, %v2785_v0  ;;  %v8400_v18 = vld [vmem:[%s9507_s8 + $0x21] ss:$0 sm:$0xff] }
0x1698   :  { %v2802_v24 = vmul.f32 %v2789_v40, %v2734_v14 }
0x169a   :  { %v2807_v59 = vmul.f32 %v8207_v45, %v2802_v24 }
0x169c   :  { %v2812_v7 = vadd.f32 %v8212_v3, %v2807_v59 }
0x169e   :  { %6202 = vmatmul.msk.f32.gmra.mxu1 %vm412_vm10, %v2812_v7 }
0x16a9   :  { %v2751_v20 = vpop.xlane.xlu0 %2750 }
0x16aa   :  { %v2755_v16 = vmul.f32 %v2751_v20, %v7330_v8 }
0x16ac   :  { %v2759_v37 = vadd.f32 1e-05, %v2755_v16 }
0x16ae   :  { %6713 = vrsqrt.f32 %v2759_v37  ;;  %vm2796_vm13 = vweird.f32 %v2759_v37 }
0x16b4   :  { %v6714_v62 = vpop.eup %6713 }
0x16b5   :  { %v2791_v41 = vmul.f32 %v6714_v62, %v2759_v37  ;;  %vm2797_vm12 = vweird.f32 %v6714_v62 }
0x16b6   :  { %vm2798_vm14 = vmor %vm2796_vm13, %vm2797_vm12 }
0x16b7   :  { %v2792_v55 = vmul.f32 %v6714_v62, %v2791_v41 }
0x16b9   :  { %v2793_v26 = vmul.f32 0.5, %v2792_v55 }
0x16bb   :  { %v2794_v27 = vsub.f32 1.5, %v2793_v26 }
0x16bd   :  { %v2795_v34 = vmul.f32 %v6714_v62, %v2794_v27 }
0x16bf   :  { %v2799_v11 = vsel %vm2798_vm14, %v6714_v62, %v2795_v34 }
0x16c0   :  { %v2803_v47 = vmul.f32 %v2799_v11, %v2735_v60 }
0x16c2   :  { %v2808_v50 = vmul.f32 %v8207_v45, %v2803_v47  ;;  %v6215_v45 = vld [vmem:[%s9510_s11 + $0x38] sm:$0xff] }
0x16c3   :  { %3170 = vmatpush.msra.mxu2 %v6215_v45 }
0x16c4   :  { %v2813_v15 = vadd.f32 %v8212_v3, %v2808_v50 }
0x16c5   :  { %3171 = vmatpush.msra.mxu2 %v6214_v33 }
0x16c6   :  { %6203 = vmatmul.msk.f32.gmra.mxu1 %vm412_vm10, %v2813_v15 }
0x16c7   :  { %3172 = vmatpush.msra.mxu2 %v6213_v44 }
0x16c9   :  { %3173 = vmatpush.msra.mxu2 %v6212_v5 }
0x16cc   :  { %v3318_v17 = vpop.xlane.xlu2 %3317 }
0x16cd   :  { %v3326_v14 = vmul.f32 %v3318_v17, %v7330_v8 }
0x16cf   :  { %v8371_v29 = vsub.f32 %v8338_v25, %v3326_v14 }
0x16d1   :  { %v3334_v9 = vmul.f32 %v8371_v29, %v8371_v29 }
0x16d3   :  { %v3340_v36 = vsel %vm412_vm10, %v3334_v9, 0.0 }
0x16d4   :  { %3341 = vadd.xlane.f32.xlu0 %v3340_v36 }
0x1701   :  { %v3100_v3 = vpop.xlane.xlu0 %3099 }
0x1702   :  { %v3102_v60 = vmul.f32 %v3100_v3, %v7330_v8 }
0x1704   :  { %v8387_v53 = vsub.f32 %v8352_v38, %v3102_v60 }
0x1706   :  { %v3106_v54 = vmul.f32 %v8387_v53, %v8387_v53 }
0x1708   :  { %v3110_v51 = vsel %vm412_vm10, %v3106_v54, 0.0 }
0x1709   :  { %3111 = vadd.xlane.f32.xlu1 %v3110_v51  ;;  %v3109_v63 = vpop.xlane.xlu0 %3108 }
0x170a   :  { %v3113_v46 = vmul.f32 %v3109_v63, %v7330_v8 }
0x170c   :  { %v3115_v52 = vadd.f32 1e-05, %v3113_v46 }
0x170e   :  { %6715 = vrsqrt.f32 %v3115_v52  ;;  %vm3123_vm0 = vweird.f32 %v3115_v52 }
0x1714   :  { %v6716_v31 = vpop.eup %6715 }
0x1715   :  { %v3118_v1 = vmul.f32 %v6716_v31, %v3115_v52  ;;  %vm3124_vm15 = vweird.f32 %v6716_v31 }
0x1716   :  { %vm3125_vm2 = vmor %vm3123_vm0, %vm3124_vm15 }
0x1717   :  { %v3119_v35 = vmul.f32 %v6716_v31, %v3118_v1 }
0x1719   :  { %v3120_v4 = vmul.f32 0.5, %v3119_v35 }
0x171b   :  { %v3121_v13 = vsub.f32 1.5, %v3120_v4  ;;  %v2855_v12 = vpop.f32.mrf.mxu1 }
0x171c   :  { %v2856_v48 = vadd.f32 %v8240_v43, %v2855_v12 }
0x171d   :  { %v3122_v42 = vmul.f32 %v6716_v31, %v3121_v13 }
0x171e   :  { %v2867_v39 = vmul.f32 0.70710677, %v2856_v48 }
0x171f   :  { %v3126_v61 = vsel %vm3125_vm2, %v6716_v31, %v3122_v42 }
0x1720   :  { %v3137_v22 = vmul.f32 %v3126_v61, %v8355_v21  ;;  %v2949_v23 = vmul.f32 %v2867_v39, %v2867_v39  ;;  %v2863_v61 = vmul.f32 0.5, %v2856_v48 }
0x1722   :  { %v3140_v58 = vmul.f32 %v8400_v18, %v3137_v22  ;;  %v2950_v0 = vmin.f32 %v2949_v23, 16.0 }
0x1724   :  { %v2951_v10 = vmul.f32 2.1237322e-06, %v2950_v0  ;;  %v2962_v40 = vmul.f32 3.8918573e-05, %v2950_v0  ;;  %v3143_v24 = vadd.f32 %v8406_v49, %v3140_v58 }
0x1726   :  { %v2952_v59 = vadd.f32 0.00028619796, %v2951_v10  ;;  %v2963_v7 = vadd.f32 0.001143296, %v2962_v40  ;;  %6216 = vmatmul.msk.f32.vlgmr.msra.gmra.mxu2 %vm412_vm10, %v3143_v24 }
0x1728   :  { %v2953_v20 = vmul.f32 %v2952_v59, %v2950_v0  ;;  %v2964_v16 = vmul.f32 %v2963_v7, %v2950_v0 }
0x172a   :  { %v2965_v21 = vadd.f32 0.014752088, %v2964_v16  ;;  %v2954_v37 = vadd.f32 0.0036580483, %v2953_v20 }
0x172c   :  { %v2966_v62 = vmul.f32 %v2965_v21, %v2950_v0  ;;  %v2955_v55 = vmul.f32 %v2954_v37, %v2950_v0 }
0x172e   :  { %v2967_v41 = vadd.f32 0.112945676, %v2966_v62  ;;  %v2956_v34 = vadd.f32 0.05243302, %v2955_v55 }
0x1730   :  { %v2968_v26 = vmul.f32 %v2967_v41, %v2950_v0  ;;  %v2957_v50 = vmul.f32 %v2956_v34, %v2950_v0 }
0x1732   :  { %v2969_v27 = vadd.f32 0.4994258, %v2968_v26  ;;  %v2958_v15 = vadd.f32 0.18741608, %v2957_v50 }
0x1734   :  { %v2970_v11 = vmul.f32 %v2969_v27, %v2950_v0  ;;  %v2959_v14 = vmul.f32 %v2958_v15, %v2950_v0 }
0x1736   :  { %v2971_v47 = vadd.f32 1.0, %v2970_v11  ;;  %v2960_v3 = vadd.f32 1.1283791, %v2959_v14 }
0x1738   :  { %6717 = vrcp.f32 %v2971_v47  ;;  %v2983_v45 = vand.u32 2147483648, %v2971_v47  ;;  %v2981_v60 = vand.u32 2147483647, %v2971_v47  ;;  %vm2977_vm5 = vweird.f32 %v2971_v47 }
0x1739   :  { %v2961_v46 = vmul.f32 %v2960_v3, %v2867_v39 }
0x173a   :  { %v2984_v51 = vor.u32 1.1754944e-38, %v2983_v45  ;;  %vm2982_vm6 = vcmp.eq.f32.partialorder %v2981_v60, 8.507059e+37 }
0x173e   :  { %v6718_v17 = vpop.eup %6717 }
0x173f   :  { %v2973_v9 = vmul.f32 %v6718_v17, %v2971_v47  ;;  %vm2978_vm3 = vweird.f32 %v6718_v17 }
0x1740   :  { %vm2979_vm11 = vmor %vm2977_vm5, %vm2978_vm3 }
0x1741   :  { %v2974_v36 = vsub.f32 1.0, %v2973_v9 }
0x1743   :  { %v2975_v33 = vmul.f32 %v6718_v17, %v2974_v36  ;;  %v2858_v44 = vpop.f32.mrf.mxu1 }
0x1744   :  { %v2859_v5 = vadd.f32 %v8240_v43, %v2858_v44 }
0x1745   :  { %v2976_v54 = vadd.f32 %v6718_v17, %v2975_v33 }
0x1746   :  { %v2868_v63 = vmul.f32 0.70710677, %v2859_v5 }
0x1747   :  { %v2980_v52 = vsel %vm2979_vm11, %v6718_v17, %v2976_v54  ;;  %v3339_v17 = vpop.xlane.xlu2 %3338 }
0x1748   :  { %v2985_v31 = vsel %vm2982_vm6, %v2984_v51, %v2980_v52  ;;  %v2989_v1 = vmul.f32 %v2868_v63, %v2868_v63  ;;  %v3349_v36 = vmul.f32 %v3339_v17, %v7330_v8  ;;  %v3342_v51 = vpop.xlane.xlu0 %3341 }
0x1749   :  { %v2986_v35 = vmul.f32 %v2985_v31, %v2961_v46  ;;  %v2864_v46 = vmul.f32 0.5, %v2859_v5  ;;  %v3350_v31 = vmul.f32 %v3342_v51, %v7330_v8  ;;  %v6231_v5 = vld [vmem:[%s9508_s9 + $0x48] sm:$0xff]  ;;  %v6226_v51 = vld [vmem:[%s9511_s12 + $0x70] sm:$0xff] }
0x174a   :  { %v2990_v4 = vmin.f32 %v2989_v1, 16.0  ;;  %v3353_v44 = vadd.f32 1e-05, %v3349_v36 }
0x174b   :  { %v6206_v13 = vclamps-f32 %v2986_v35, 1.0  ;;  %v6233_v35 = vld [vmem:[%s9508_s9 + $0x58] sm:$0xff] }
0x174c   :  { %v2991_v12 = vmul.f32 2.1237322e-06, %v2990_v4  ;;  %v3002_v42 = vmul.f32 3.8918573e-05, %v2990_v4  ;;  %3440 = vmatpush.msrb.mxu2 %v6233_v35  ;;  %vm3363_vm3 = vweird.f32 %v3353_v44 }
0x174d   :  { %v3031_v22 = vadd.f32 1.0, %v6206_v13 }
0x174e   :  { %v2992_v23 = vadd.f32 0.00028619796, %v2991_v12  ;;  %v3003_v58 = vadd.f32 0.001143296, %v3002_v42 }
0x174f   :  { %v3035_v43 = vmul.f32 %v3031_v22, %v2863_v61  ;;  %v6230_v61 = vld [vmem:[%s9508_s9 + $0x40] sm:$0xff] }
0x1750   :  { %v2993_v0 = vmul.f32 %v2992_v23, %v2990_v4  ;;  %v3004_v10 = vmul.f32 %v3003_v58, %v2990_v4 }
0x1751   :  { %6210 = vmatmul.msk.f32.gmra.mxu0 %vm3047_vm1, %v3035_v43 }
0x1752   :  { %v3005_v40 = vadd.f32 0.014752088, %v3004_v10  ;;  %v2994_v39 = vadd.f32 0.0036580483, %v2993_v0 }
0x1754   :  { %v3006_v24 = vmul.f32 %v3005_v40, %v2990_v4  ;;  %v2995_v7 = vmul.f32 %v2994_v39, %v2990_v4 }
0x1756   :  { %v3007_v59 = vadd.f32 0.112945676, %v3006_v24  ;;  %v2996_v21 = vadd.f32 0.05243302, %v2995_v7 }
0x1758   :  { %v3008_v20 = vmul.f32 %v3007_v59, %v2990_v4  ;;  %v2997_v41 = vmul.f32 %v2996_v21, %v2990_v4 }
0x175a   :  { %v3009_v16 = vadd.f32 0.4994258, %v3008_v20  ;;  %v2998_v48 = vadd.f32 0.18741608, %v2997_v41 }
0x175c   :  { %v3010_v37 = vmul.f32 %v3009_v16, %v2990_v4  ;;  %v2999_v26 = vmul.f32 %v2998_v48, %v2990_v4  ;;  %v3354_v4 = vadd.f32 1e-05, %v3350_v31  ;;  %v6225_v31 = vld [vmem:[%s9511_s12 + $0x68] sm:$0xff] }
0x175e   :  { %v3011_v62 = vadd.f32 1.0, %v3010_v37  ;;  %v3000_v47 = vadd.f32 1.1283791, %v2999_v26  ;;  %vm3373_vm6 = vweird.f32 %v3354_v4 }
0x1760   :  { %6719 = vrcp.f32 %v3011_v62  ;;  %v3023_v11 = vand.u32 2147483648, %v3011_v62  ;;  %v3021_v15 = vand.u32 2147483647, %v3011_v62  ;;  %vm3017_vm8 = vweird.f32 %v3011_v62 }
0x1761   :  { %v3001_v45 = vmul.f32 %v3000_v47, %v2868_v63  ;;  %6721 = vrsqrt.f32 %v3353_v44  ;;  %v6232_v63 = vld [vmem:[%s9508_s9 + $0x50] sm:$0xff] }
0x1762   :  { %v3024_v9 = vor.u32 1.1754944e-38, %v3023_v11  ;;  %vm3022_vm13 = vcmp.eq.f32.partialorder %v3021_v15, 8.507059e+37  ;;  %3441 = vmatpush.msrb.mxu2 %v6232_v63  ;;  %6723 = vrsqrt.f32 %v3354_v4  ;;  %v6224_v63 = vld [vmem:[%s9511_s12 + $0x60] sm:$0xff] }
0x1764   :  { %3442 = vmatpush.msrb.mxu2 %v6231_v5 }
0x1766   :  { %v6720_v55 = vpop.eup %6719  ;;  %3443 = vmatpush.msrb.mxu2 %v6230_v61 }
0x1767   :  { %v3013_v27 = vmul.f32 %v6720_v55, %v3011_v62  ;;  %vm3018_vm7 = vweird.f32 %v6720_v55  ;;  %v6722_v12 = vpop.eup %6721 }
0x1768   :  { %vm3019_vm12 = vmor %vm3017_vm8, %vm3018_vm7  ;;  %v3358_v23 = vmul.f32 %v6722_v12, %v3353_v44  ;;  %v6724_v43 = vpop.eup %6723  ;;  %vm3364_vm15 = vweird.f32 %v6722_v12 }
0x1769   :  { %v3014_v34 = vsub.f32 1.0, %v3013_v27  ;;  %v3368_v40 = vmul.f32 %v6724_v43, %v3354_v4  ;;  %vm3365_vm5 = vmor %vm3363_vm3, %vm3364_vm15  ;;  %vm3374_vm11 = vweird.f32 %v6724_v43 }
0x176a   :  { %v3359_v58 = vmul.f32 %v6722_v12, %v3358_v23  ;;  %vm3375_vm7 = vmor %vm3373_vm6, %vm3374_vm11  ;;  %v6221_v23 = vld [vmem:[%s9511_s12 + $0x48] sm:$0xff] }
0x176b   :  { %v3015_v50 = vmul.f32 %v6720_v55, %v3014_v34  ;;  %v3369_v7 = vmul.f32 %v6724_v43, %v3368_v40  ;;  %v8434_v34 = vld [vmem:[%s9507_s8 + $0xc] ss:$0 sm:$0xff] }
0x176c   :  { %v3360_v10 = vmul.f32 0.5, %v3359_v58  ;;  %v6220_v58 = vld [vmem:[%s9511_s12 + $0x40] sm:$0xff] }
0x176d   :  { %v3016_v14 = vadd.f32 %v6720_v55, %v3015_v50  ;;  %v3370_v37 = vmul.f32 0.5, %v3369_v7 }
0x176e   :  { %v3361_v59 = vsub.f32 1.5, %v3360_v10 }
0x176f   :  { %v3020_v3 = vsel %vm3019_vm12, %v6720_v55, %v3016_v14  ;;  %v3371_v26 = vsub.f32 1.5, %v3370_v37  ;;  %v8452_v14 = vld [vmem:[%s9512_s13 + $0x1] ss:$0 sm:$0xff] }
0x1770   :  { %v3025_v33 = vsel %vm3022_vm13, %v3024_v9, %v3020_v3  ;;  %v3362_v21 = vmul.f32 %v6722_v12, %v3361_v59 }
0x1771   :  { %v3026_v60 = vmul.f32 %v3025_v33, %v3001_v45  ;;  %v3372_v50 = vmul.f32 %v6724_v43, %v3371_v26 }
0x1772   :  { %v3366_v55 = vsel %vm3365_vm5, %v6722_v12, %v3362_v21 }
0x1773   :  { %v6207_v54 = vclamps-f32 %v3026_v60, 1.0  ;;  %v3397_v11 = vmul.f32 %v3366_v55, %v8344_v56  ;;  %v3376_v15 = vsel %vm3375_vm7, %v6724_v43, %v3372_v50 }
0x1774   :  { %v3398_v56 = vmul.f32 %v3376_v15, %v8371_v29  ;;  %v6227_v29 = vld [vmem:[%s9511_s12 + $0x78] sm:$0xff] }
0x1775   :  { %v3032_v52 = vadd.f32 1.0, %v6207_v54  ;;  %3294 = vmatpush.msrb.mxu3 %v6227_v29 }
0x1777   :  { %v3036_v1 = vmul.f32 %v3032_v52, %v2864_v46  ;;  %3295 = vmatpush.msrb.mxu3 %v6226_v51 }
0x1779   :  { %6211 = vmatmul.msk.f32.gmra.mxu0 %vm3047_vm1, %v3036_v1  ;;  %3296 = vmatpush.msrb.mxu3 %v6225_v31 }
0x177b   :  { %3297 = vmatpush.msrb.mxu3 %v6224_v63 }
0x177c   :  { %v3112_v13 = vpop.xlane.xlu1 %3111 }
0x177d   :  { %v3114_v42 = vmul.f32 %v3112_v13, %v7330_v8  ;;  %v6223_v13 = vld [vmem:[%s9511_s12 + $0x58] sm:$0xff] }
0x177e   :  { %3298 = vmatpush.msrb.mxu3 %v6223_v13 }
0x177f   :  { %v3116_v22 = vadd.f32 1e-05, %v3114_v42  ;;  %v6222_v42 = vld [vmem:[%s9511_s12 + $0x50] sm:$0xff] }
0x1780   :  { %3299 = vmatpush.msrb.mxu3 %v6222_v42 }
0x1781   :  { %6725 = vrsqrt.f32 %v3116_v22  ;;  %vm3133_vm0 = vweird.f32 %v3116_v22 }
0x1782   :  { %3300 = vmatpush.msrb.mxu3 %v6221_v23 }
0x1784   :  { %3301 = vmatpush.msrb.mxu3 %v6220_v58 }
0x1787   :  { %v6726_v0 = vpop.eup %6725 }
0x1788   :  { %v3128_v39 = vmul.f32 %v6726_v0, %v3116_v22  ;;  %vm3134_vm14 = vweird.f32 %v6726_v0 }
0x1789   :  { %vm3135_vm2 = vmor %vm3133_vm0, %vm3134_vm14 }
0x178a   :  { %v3129_v24 = vmul.f32 %v6726_v0, %v3128_v39 }
0x178c   :  { %v3130_v20 = vmul.f32 0.5, %v3129_v24 }
0x178e   :  { %v3131_v16 = vsub.f32 1.5, %v3130_v20 }
0x1790   :  { %v3132_v62 = vmul.f32 %v6726_v0, %v3131_v16 }
0x1792   :  { %v3136_v41 = vsel %vm3135_vm2, %v6726_v0, %v3132_v62 }
0x1793   :  { %v3138_v48 = vmul.f32 %v3136_v41, %v8387_v53  ;;  %v3402_v53 = vmul.f32 %v8434_v34, %v3397_v11 }
0x1795   :  { %v3141_v27 = vmul.f32 %v8400_v18, %v3138_v48  ;;  %v8443_v18 = vld [vmem:[%s9507_s8 + $0xd] ss:$0 sm:$0xff] }
0x1796   :  { %v3407_v17 = vadd.f32 %v8443_v18, %v3402_v53 }
0x1797   :  { %v3144_v47 = vadd.f32 %v8406_v49, %v3141_v27  ;;  %v3403_v49 = vmul.f32 %v8434_v34, %v3398_v56 }
0x1799   :  { %6217 = vmatmul.msk.f32.gmra.mxu2 %vm412_vm10, %v3144_v47  ;;  %v3408_v9 = vadd.f32 %v8443_v18, %v3403_v49 }
0x17a1   :  { %6234 = vmatmul.msk.f32.vlgmr.msrb.gmra.mxu2 %vm412_vm10, %v3407_v17 }
0x17a9   :  { %v3175_v36 = vpop.f32.mrf.mxu2  ;;  %6235 = vmatmul.msk.f32.gmra.mxu2 %vm412_vm10, %v3408_v9 }
0x17aa   :  { %v3176_v45 = vadd.f32 %v8452_v14, %v3175_v36 }
0x17ac   :  { %v3183_v3 = vmul.f32 0.70710677, %v3176_v45  ;;  %v3181_v9 = vmul.f32 0.5, %v3176_v45 }
0x17ae   :  { %v3185_v33 = vmul.f32 %v3183_v3, %v3183_v3 }
0x17b0   :  { %v3186_v60 = vmin.f32 %v3185_v33, 16.0 }
0x17b2   :  { %v3187_v44 = vmul.f32 2.1237322e-06, %v3186_v60  ;;  %v3198_v54 = vmul.f32 3.8918573e-05, %v3186_v60 }
0x17b4   :  { %v3188_v46 = vadd.f32 0.00028619796, %v3187_v44  ;;  %v3199_v52 = vadd.f32 0.001143296, %v3198_v54 }
0x17b6   :  { %v3189_v1 = vmul.f32 %v3188_v46, %v3186_v60  ;;  %v3200_v35 = vmul.f32 %v3199_v52, %v3186_v60 }
0x17b8   :  { %v3190_v4 = vadd.f32 0.0036580483, %v3189_v1  ;;  %v3201_v5 = vadd.f32 0.014752088, %v3200_v35 }
0x17ba   :  { %v3202_v12 = vmul.f32 %v3201_v5, %v3186_v60  ;;  %v3191_v61 = vmul.f32 %v3190_v4, %v3186_v60 }
0x17bc   :  { %v3203_v22 = vadd.f32 0.112945676, %v3202_v12  ;;  %v3192_v0 = vadd.f32 0.05243302, %v3191_v61 }
0x17be   :  { %v3204_v43 = vmul.f32 %v3203_v22, %v3186_v60  ;;  %v3193_v39 = vmul.f32 %v3192_v0, %v3186_v60 }
0x17c0   :  { %v3205_v10 = vadd.f32 0.4994258, %v3204_v43  ;;  %v3194_v59 = vadd.f32 0.18741608, %v3193_v39 }
0x17c2   :  { %v3206_v40 = vmul.f32 %v3205_v10, %v3186_v60  ;;  %v3195_v20 = vmul.f32 %v3194_v59, %v3186_v60 }
0x17c4   :  { %v3207_v24 = vadd.f32 1.0, %v3206_v40  ;;  %v3196_v41 = vadd.f32 1.1283791, %v3195_v20 }
0x17c6   :  { %6727 = vrcp.f32 %v3207_v24  ;;  %v3219_v48 = vand.u32 2147483648, %v3207_v24  ;;  %v3217_v26 = vand.u32 2147483647, %v3207_v24  ;;  %vm3213_vm12 = vweird.f32 %v3207_v24 }
0x17c7   :  { %v3197_v53 = vmul.f32 %v3196_v41, %v3183_v3 }
0x17c8   :  { %v3220_v50 = vor.u32 1.1754944e-38, %v3219_v48  ;;  %vm3218_vm14 = vcmp.eq.f32.partialorder %v3217_v26, 8.507059e+37 }
0x17cc   :  { %v6728_v7 = vpop.eup %6727 }
0x17cd   :  { %v3209_v16 = vmul.f32 %v6728_v7, %v3207_v24  ;;  %vm3214_vm8 = vweird.f32 %v6728_v7 }
0x17ce   :  { %v3083_v21 = vpop.f32.mrf.mxu0  ;;  %vm3215_vm13 = vmor %vm3213_vm12, %vm3214_vm8 }
0x17cf   :  { %v3210_v37 = vsub.f32 1.0, %v3209_v16  ;;  %v3084_v62 = vadd.f32 %v8312_v28, %v3083_v21 }
0x17d1   :  { %v3211_v55 = vmul.f32 %v6728_v7, %v3210_v37  ;;  %v8483_v27 = vadd.f32 %v3084_v62, %v8296_v19 }
0x17d3   :  { %v3212_v11 = vadd.f32 %v6728_v7, %v3211_v55  ;;  %v3319_v47 = vsel %vm412_vm10, %v8483_v27, 0.0 }
0x17d4   :  { %3320 = vadd.xlane.f32.xlu1 %v3319_v47 }
0x17d5   :  { %v3216_v15 = vsel %vm3215_vm13, %v6728_v7, %v3212_v11 }
0x17d6   :  { %v3221_v17 = vsel %vm3218_vm14, %v3220_v50, %v3216_v15 }
0x17d7   :  { %v3222_v56 = vmul.f32 %v3221_v17, %v3197_v53 }
0x17d9   :  { %v6218_v49 = vclamps-f32 %v3222_v56, 1.0 }
0x17db   :  { %v3265_v36 = vadd.f32 1.0, %v6218_v49 }
0x17dd   :  { %v3267_v33 = vmul.f32 %v3265_v36, %v3181_v9 }
0x17df   :  { %6228 = vmatmul.msk.f32.vlgmr.msrb.gmra.mxu3 %vm3047_vm1, %v3267_v33 }
0x17f6   :  { %v3086_v19 = vpop.f32.mrf.mxu0 }
0x17f7   :  { %v3087_v60 = vadd.f32 %v8312_v28, %v3086_v19 }
0x17f9   :  { %v8490_v29 = vadd.f32 %v3087_v60, %v8304_v6 }
0x17fb   :  { %v3322_v44 = vsel %vm412_vm10, %v8490_v29, 0.0 }
0x17fc   :  { %3323 = vadd.xlane.f32.xlu1 %v3322_v44 }
0x181c   :  { %v3178_v3 = vpop.f32.mrf.mxu2 }
0x181d   :  { %v3179_v54 = vadd.f32 %v8452_v14, %v3178_v3 }
0x181f   :  { %v3184_v51 = vmul.f32 0.70710677, %v3179_v54  ;;  %v3182_v17 = vmul.f32 0.5, %v3179_v54 }
0x1821   :  { %v3225_v46 = vmul.f32 %v3184_v51, %v3184_v51 }
0x1823   :  { %v3226_v45 = vmin.f32 %v3225_v46, 16.0 }
0x1824   :  { %v8495_v52 = vpop.f32.mrf.mxu2 }
0x1825   :  { %v3227_v31 = vmul.f32 2.1237322e-06, %v3226_v45  ;;  %v3238_v1 = vmul.f32 3.8918573e-05, %v3226_v45  ;;  %3459 = vrot.lane.b32.xlu0 %v8495_v52, %s6906_s28 }
0x1827   :  { %v3228_v28 = vadd.f32 0.00028619796, %v3227_v31  ;;  %v3239_v6 = vadd.f32 0.001143296, %v3238_v1 }
0x1829   :  { %v3229_v35 = vmul.f32 %v3228_v28, %v3226_v45  ;;  %v3240_v63 = vmul.f32 %v3239_v6, %v3226_v45 }
0x182b   :  { %v3241_v4 = vadd.f32 0.014752088, %v3240_v63  ;;  %v3230_v5 = vadd.f32 0.0036580483, %v3229_v35 }
0x182c   :  { %v8499_v13 = vpop.f32.mrf.mxu2 }
0x182d   :  { %v3242_v12 = vmul.f32 %v3241_v4, %v3226_v45  ;;  %3461 = vrot.lane.b32.xlu2 %v8499_v13, %s6906_s28  ;;  %v3231_v42 = vmul.f32 %v3230_v5, %v3226_v45  ;;  %v8513_v54 = vpack.i.bf16 %v8495_v52, %v8499_v13 }
0x182f   :  { %v3243_v14 = vadd.f32 0.112945676, %v3242_v12  ;;  %v3232_v23 = vadd.f32 0.05243302, %v3231_v42 }
0x1831   :  { %v3244_v61 = vmul.f32 %v3243_v14, %v3226_v45  ;;  %v3233_v0 = vmul.f32 %v3232_v23, %v3226_v45 }
0x1833   :  { %v3245_v22 = vadd.f32 0.4994258, %v3244_v61  ;;  %v3234_v10 = vadd.f32 0.18741608, %v3233_v0 }
0x1835   :  { %v3246_v58 = vmul.f32 %v3245_v22, %v3226_v45  ;;  %v3235_v39 = vmul.f32 %v3234_v10, %v3226_v45 }
0x1837   :  { %v3247_v43 = vadd.f32 1.0, %v3246_v58  ;;  %v3236_v20 = vadd.f32 1.1283791, %v3235_v39 }
0x1839   :  { %6729 = vrcp.f32 %v3247_v43  ;;  %v3259_v7 = vand.u32 2147483648, %v3247_v43  ;;  %v3257_v21 = vand.u32 2147483647, %v3247_v43  ;;  %vm3253_vm0 = vweird.f32 %v3247_v43 }
0x183a   :  { %v3237_v48 = vmul.f32 %v3236_v20, %v3184_v51 }
0x183b   :  { %v3260_v62 = vor.u32 1.1754944e-38, %v3259_v7  ;;  %vm3258_vm3 = vcmp.eq.f32.partialorder %v3257_v21, 8.507059e+37 }
0x183f   :  { %v6730_v40 = vpop.eup %6729 }
0x1840   :  { %v3249_v24 = vmul.f32 %v6730_v40, %v3247_v43  ;;  %vm3254_vm15 = vweird.f32 %v6730_v40 }
0x1841   :  { %vm3255_vm2 = vmor %vm3253_vm0, %vm3254_vm15 }
0x1842   :  { %v3250_v59 = vsub.f32 1.0, %v3249_v24 }
0x1844   :  { %v3251_v16 = vmul.f32 %v6730_v40, %v3250_v59 }
0x1846   :  { %v3252_v37 = vadd.f32 %v6730_v40, %v3251_v16 }
0x1847   :  { %v3321_v41 = vpop.xlane.xlu1 %3320 }
0x1848   :  { %v3256_v55 = vsel %vm3255_vm2, %v6730_v40, %v3252_v37  ;;  %v3327_v26 = vmul.f32 %v3321_v41, %v7330_v8 }
0x1849   :  { %v3261_v11 = vsel %vm3258_vm3, %v3260_v62, %v3256_v55 }
0x184a   :  { %v3262_v47 = vmul.f32 %v3261_v11, %v3237_v48  ;;  %v3331_v50 = vsub.f32 %v8483_v27, %v3327_v26 }
0x184c   :  { %v6219_v53 = vclamps-f32 %v3262_v47, 1.0  ;;  %v3335_v15 = vmul.f32 %v3331_v50, %v3331_v50 }
0x184e   :  { %v3266_v56 = vadd.f32 1.0, %v6219_v53  ;;  %v3343_v49 = vsel %vm412_vm10, %v3335_v15, 0.0 }
0x184f   :  { %3344 = vadd.xlane.f32.xlu1 %v3343_v49 }
0x1850   :  { %v3268_v9 = vmul.f32 %v3266_v56, %v3182_v17 }
0x1852   :  { %6229 = vmatmul.msk.f32.gmra.mxu3 %vm3047_vm1, %v3268_v9 }
0x1862   :  { %v3303_v62 = vpop.f32.mrf.mxu3 }
0x186f   :  { %v3324_v36 = vpop.xlane.xlu1 %3323 }
0x1870   :  { %v3328_v33 = vmul.f32 %v3324_v36, %v7330_v8 }
0x1872   :  { %v3332_v19 = vsub.f32 %v8490_v29, %v3328_v33 }
0x1874   :  { %v3336_v60 = vmul.f32 %v3332_v19, %v3332_v19 }
0x1876   :  { %v3346_v44 = vsel %vm412_vm10, %v3336_v60, 0.0 }
0x1877   :  { %3347 = vadd.xlane.f32.xlu1 %v3346_v44  ;;  %v6529_v44 = vld [vmem:[%s9507_s8 + $0x23] ss:$0 sm:$0xff] }
0x1887   :  { %v3462_v3 = vpop.permute.xlu2 %3461 }
0x1888   :  { %6238 = vmatpush.xpose.msk.msra.mxu3 %vm837_vm4, %v3462_v3 }
0x1890   :  { %6461 = vrot.lane.b32.xlu1 %v8513_v54, %s6907_s30 }
0x1897   :  { %v3460_v51 = vpop.permute.xlu0 %3459 }
0x1898   :  { %6239 = vmatpush.xpose.msk.msra.mxu3 %vm837_vm4, %v3460_v51  ;;  %v3304_v51 = vadd.f32 %v6529_v44, %v3303_v62 }
0x189b   :  { %6240 = vmatmul.msk.f32.vlgmr.msra.gmra.mxu3 %vm837_vm4, %v8495_v52 }
0x18a3   :  { %6241 = vmatmul.msk.f32.gmra.mxu3 %vm837_vm4, %v8499_v13 }
0x18c2   :  { %v3345_v46 = vpop.xlane.xlu1 %3344 }
0x18c3   :  { %v3351_v45 = vmul.f32 %v3345_v46, %v7330_v8 }
0x18c5   :  { %v3355_v31 = vadd.f32 1e-05, %v3351_v45  ;;  %v8550_v45 = vadd.f32 %v3304_v51, %v8322_v30  ;;  %v6271_v51 = vld [vmem:[%s9508_s9 + $0x68] sm:$0xff] }
0x18c7   :  { %6731 = vrsqrt.f32 %v3355_v31  ;;  %vm3383_vm11 = vweird.f32 %v3355_v31 }
0x18cd   :  { %v6732_v1 = vpop.eup %6731 }
0x18ce   :  { %v3378_v28 = vmul.f32 %v6732_v1, %v3355_v31  ;;  %vm3384_vm5 = vweird.f32 %v6732_v1  ;;  %v3927_v31 = vsel %vm412_vm10, %v8550_v45, 0.0 }
0x18cf   :  { %vm3385_vm6 = vmor %vm3383_vm11, %vm3384_vm5 }
0x18d0   :  { %v3379_v6 = vmul.f32 %v6732_v1, %v3378_v28 }
0x18d2   :  { %v3380_v35 = vmul.f32 0.5, %v3379_v6 }
0x18d4   :  { %v3381_v63 = vsub.f32 1.5, %v3380_v35 }
0x18d5   :  { %v8530_v41 = vpop.f32.mrf.mxu3 }
0x18d6   :  { %v3382_v4 = vmul.f32 %v6732_v1, %v3381_v63 }
0x18d8   :  { %v3386_v5 = vsel %vm3385_vm6, %v6732_v1, %v3382_v4 }
0x18d9   :  { %v3399_v12 = vmul.f32 %v3386_v5, %v3331_v50 }
0x18db   :  { %v3404_v14 = vmul.f32 %v8434_v34, %v3399_v12 }
0x18dd   :  { %v3409_v42 = vadd.f32 %v8443_v18, %v3404_v14 }
0x18df   :  { %6236 = vmatmul.msk.f32.gmra.mxu2 %vm412_vm10, %v3409_v42 }
0x18ea   :  { %v3348_v61 = vpop.xlane.xlu1 %3347 }
0x18eb   :  { %v3352_v22 = vmul.f32 %v3348_v61, %v7330_v8 }
0x18ed   :  { %v3356_v23 = vadd.f32 1e-05, %v3352_v22 }
0x18ef   :  { %6733 = vrsqrt.f32 %v3356_v23  ;;  %vm3393_vm8 = vweird.f32 %v3356_v23 }
0x18f5   :  { %v6734_v58 = vpop.eup %6733 }
0x18f6   :  { %v3388_v43 = vmul.f32 %v6734_v58, %v3356_v23  ;;  %vm3394_vm7 = vweird.f32 %v6734_v58 }
0x18f7   :  { %vm3395_vm12 = vmor %vm3393_vm8, %vm3394_vm7 }
0x18f8   :  { %v3389_v0 = vmul.f32 %v6734_v58, %v3388_v43 }
0x18fa   :  { %v3390_v10 = vmul.f32 0.5, %v3389_v0 }
0x18fc   :  { %v3391_v40 = vsub.f32 1.5, %v3390_v10 }
0x18fe   :  { %v3392_v39 = vmul.f32 %v6734_v58, %v3391_v40 }
0x1900   :  { %v3396_v24 = vsel %vm3395_vm12, %v6734_v58, %v3392_v39 }
0x1901   :  { %v3400_v59 = vmul.f32 %v3396_v24, %v3332_v19 }
0x1902   :  { %v6462_v7 = vpop.permute.xlu1 %6461 }
0x1903   :  { %v6463_v20 = vunpack.i.l.bf16 %v6462_v7  ;;  %v3405_v16 = vmul.f32 %v8434_v34, %v3400_v59  ;;  %v6464_v21 = vunpack.i.h.bf16 %v6462_v7 }
0x1905   :  { %3546 = vmatpush.msra.mxu1 %v6463_v20  ;;  %v3410_v37 = vadd.f32 %v8443_v18, %v3405_v16  ;;  %v3307_v16 = vadd.f32 %v6529_v44, %v8530_v41 }
0x1907   :  { %6237 = vmatmul.msk.f32.gmra.mxu2 %vm412_vm10, %v3410_v37  ;;  %3547 = vmatpush.msra.mxu1 %v6464_v21  ;;  %v8589_v21 = vadd.f32 %v3307_v16, %v8352_v38 }
0x1909   :  { %v3930_v37 = vsel %vm412_vm10, %v8589_v21, 0.0 }
0x191e   :  { %v3488_v48 = vpop.f32.mrf.mxu3 }
0x191f   :  { %v3494_v55 = vmul.f32 0.25, %v3488_v48 }
0x1921   :  { %v3496_v26 = vadd.f32 %v3494_v55, %v7573_v2 }
0x1923   :  { %v3498_v11 = vsel %vm837_vm4, %v3496_v26, -inf }
0x1924   :  { %3499 = vmax.xlane.f32.xlu2 %v3498_v11 }
0x1926   :  { %v3491_v47 = vpop.f32.mrf.mxu3 }
0x1927   :  { %v3495_v50 = vmul.f32 0.25, %v3491_v47 }
0x1929   :  { %v3497_v34 = vadd.f32 %v3495_v50, %v7573_v2 }
0x192b   :  { %v3501_v53 = vsel %vm837_vm4, %v3497_v34, -inf }
0x192c   :  { %3502 = vmax.xlane.f32.xlu0 %v3501_v53 }
0x1962   :  { %v8536_v18 = vpop.f32.mrf.mxu2 }
0x1963   :  { %3667 = vrot.lane.b32.xlu0 %v8536_v18, %s6906_s28 }
0x198a   :  { %v8540_v15 = vpop.f32.mrf.mxu2 }
0x198b   :  { %3669 = vrot.lane.b32.xlu2 %v8540_v15, %s6906_s28  ;;  %v8579_v20 = vpack.i.bf16 %v8536_v18, %v8540_v15 }
0x1997   :  { %v3500_v17 = vpop.xlane.xlu2 %3499 }
0x1998   :  { %v3504_v56 = vsub.f32 %v3496_v26, %v3500_v17 }
0x199a   :  { %v3506_v49 = vmul.f32 1.442695, %v3504_v56 }
0x199c   :  { %6735 = vpow2.f32 %v3506_v49 }
0x199f   :  { %v3503_v9 = vpop.xlane.xlu0 %3502 }
0x19a0   :  { %v3505_v36 = vsub.f32 %v3497_v34, %v3503_v9 }
0x19a2   :  { %v6736_v33 = vpop.eup %6735  ;;  %v3508_v19 = vmul.f32 1.442695, %v3505_v36 }
0x19a3   :  { %v3510_v60 = vsel %vm837_vm4, %v6736_v33, 0.0 }
0x19a4   :  { %6737 = vpow2.f32 %v3508_v19  ;;  %3511 = vadd.xlane.f32.xlu1 %v3510_v60 }
0x19aa   :  { %v6738_v3 = vpop.eup %6737 }
0x19ab   :  { %v3513_v46 = vsel %vm837_vm4, %v6738_v3, 0.0 }
0x19ac   :  { %3514 = vadd.xlane.f32.xlu1 %v3513_v46 }
0x19b4   :  { %3928 = vadd.xlane.f32.xlu2 %v3927_v31 }
0x19d5   :  { %v3668_v28 = vpop.permute.xlu0 %3667 }
0x19e5   :  { %v3670_v1 = vpop.permute.xlu2 %3669 }
0x19e6   :  { %6250 = vmatpush.xpose.msk.msrb.mxu1 %vm837_vm4, %v3670_v1  ;;  %v6270_v1 = vld [vmem:[%s9508_s9 + $0x60] sm:$0xff] }
0x19ea   :  { %6251 = vmatpush.xpose.msk.msrb.mxu1 %vm837_vm4, %v3668_v28 }
0x1a17   :  { %v3512_v6 = vpop.xlane.xlu1 %3511 }
0x1a18   :  { %6739 = vrcp.f32 %v3512_v6 }
0x1a1e   :  { %v6740_v35 = vpop.eup %6739 }
0x1a1f   :  { %v3518_v63 = vmul.f32 %v6740_v35, %v6736_v33  ;;  %v3515_v4 = vpop.xlane.xlu1 %3514 }
0x1a20   :  { %6741 = vrcp.f32 %v3515_v4 }
0x1a21   :  { %6242 = vmatmul.msk.f32.vlgmr.msra.gmra.mxu1 %vm837_vm4, %v3518_v63 }
0x1a26   :  { %v6742_v30 = vpop.eup %6741 }
0x1a27   :  { %v3519_v5 = vmul.f32 %v6742_v30, %v6738_v3  ;;  %v3929_v58 = vpop.xlane.xlu2 %3928  ;;  %v6272_v3 = vld [vmem:[%s9508_s9 + $0x70] sm:$0xff] }
0x1a28   :  { %v3933_v0 = vmul.f32 %v3929_v58, %v7330_v8 }
0x1a29   :  { %6243 = vmatmul.msk.f32.gmra.mxu1 %vm837_vm4, %v3519_v5 }
0x1a2a   :  { %v8571_v39 = vsub.f32 %v8550_v45, %v3933_v0  ;;  %v6531_v0 = vld [vmem:[%s9507_s8 + $0x10] ss:$0 sm:$0xff] }
0x1a2c   :  { %v3937_v59 = vmul.f32 %v8571_v39, %v8571_v39 }
0x1a2e   :  { %v3939_v7 = vsel %vm412_vm10, %v3937_v59, 0.0 }
0x1a31   :  { %6252 = vmatmul.msk.f32.vlgmr.msrb.gmra.mxu1 %vm837_vm4, %v8536_v18 }
0x1a39   :  { %6253 = vmatmul.msk.f32.gmra.mxu1 %vm837_vm4, %v8540_v15 }
0x1a9e   :  { %v8562_v12 = vpop.f32.mrf.mxu1 }
0x1aa6   :  { %v8564_v14 = vpop.f32.mrf.mxu1 }
0x1aae   :  { %v3696_v42 = vpop.f32.mrf.mxu1 }
0x1aaf   :  { %v3702_v61 = vmul.f32 0.25, %v3696_v42 }
0x1ab1   :  { %v3704_v22 = vadd.f32 %v3702_v61, %v7573_v2 }
0x1ab3   :  { %v3706_v23 = vsel %vm837_vm4, %v3704_v22, -inf }
0x1ab4   :  { %3707 = vmax.xlane.f32.xlu0 %v3706_v23  ;;  %v6530_v23 = vld [vmem:[%s9507_s8 + $0xf] ss:$0 sm:$0xff] }
0x1ab6   :  { %v3699_v43 = vpop.f32.mrf.mxu1 }
0x1ab7   :  { %v3703_v10 = vmul.f32 0.25, %v3699_v43 }
0x1ab9   :  { %v3705_v40 = vadd.f32 %v3703_v10, %v7573_v2 }
0x1abb   :  { %v3709_v24 = vsel %vm837_vm4, %v3705_v40, -inf }
0x1abc   :  { %3710 = vmax.xlane.f32.xlu1 %v3709_v24 }
0x1ac4   :  { %3940 = vadd.xlane.f32.xlu1 %v3939_v7 }
0x1ac8   :  { %6466 = vrot.lane.b32.xlu0 %v8579_v20, %s6907_s30 }
0x1ad0   :  { %3555 = vrot.lane.b32.xlu0 %v8495_v52, %s6908_s19 }
0x1ad8   :  { %3769 = vrot.lane.b32.xlu0 %v8540_v15, %s6909_s20 }
0x1b02   :  { %3931 = vadd.xlane.f32.xlu0 %v3930_v37 }
0x1b27   :  { %v3708_v62 = vpop.xlane.xlu0 %3707 }
0x1b28   :  { %v3712_v48 = vsub.f32 %v3704_v22, %v3708_v62 }
0x1b2a   :  { %v3714_v55 = vmul.f32 1.442695, %v3712_v48 }
0x1b2c   :  { %6743 = vpow2.f32 %v3714_v55 }
0x1b2f   :  { %v3711_v26 = vpop.xlane.xlu1 %3710 }
0x1b30   :  { %v3713_v11 = vsub.f32 %v3705_v40, %v3711_v26 }
0x1b32   :  { %v6744_v47 = vpop.eup %6743  ;;  %v3716_v50 = vmul.f32 1.442695, %v3713_v11 }
0x1b33   :  { %v3718_v34 = vsel %vm837_vm4, %v6744_v47, 0.0 }
0x1b34   :  { %6745 = vpow2.f32 %v3716_v50  ;;  %3719 = vadd.xlane.f32.xlu1 %v3718_v34 }
0x1b3a   :  { %v6746_v41 = vpop.eup %6745  ;;  %v6467_v53 = vpop.permute.xlu0 %6466 }
0x1b3b   :  { %v6468_v38 = vunpack.i.l.bf16 %v6467_v53  ;;  %v3721_v17 = vsel %vm837_vm4, %v6746_v41, 0.0  ;;  %v6469_v56 = vunpack.i.h.bf16 %v6467_v53 }
0x1b3c   :  { %3722 = vadd.xlane.f32.xlu2 %v3721_v17 }
0x1b3d   :  { %3754 = vmatpush.msra.mxu2 %v6468_v38 }
0x1b3f   :  { %3755 = vmatpush.msra.mxu2 %v6469_v56 }
0x1b42   :  { %v3556_v49 = vpop.permute.xlu0 %3555 }
0x1b4a   :  { %v3770_v9 = vpop.permute.xlu0 %3769 }
0x1b4d   :  { %3561 = vrot.lane.b32.xlu1 %v8499_v13, %s6909_s20 }
0x1b54   :  { %3559 = vrot.lane.b32.xlu2 %v8495_v52, %s6909_s20 }
0x1b55   :  { %3557 = vrot.lane.b32.xlu1 %v8499_v13, %s6908_s19  ;;  %v3941_v13 = vpop.xlane.xlu1 %3940 }
0x1b5c   :  { %3767 = vrot.lane.b32.xlu2 %v8536_v18, %s6909_s20 }
0x1b5d   :  { %3763 = vrot.lane.b32.xlu1 %v8536_v18, %s6908_s19  ;;  %v3945_v18 = vmul.f32 %v3941_v13, %v7330_v8 }
0x1b5f   :  { %v3947_v44 = vadd.f32 1e-05, %v3945_v18 }
0x1b61   :  { %6747 = vrsqrt.f32 %v3947_v44  ;;  %vm3955_vm14 = vweird.f32 %v3947_v44 }
0x1b64   :  { %3765 = vrot.lane.b32.xlu2 %v8540_v15, %s6908_s19  ;;  %v6273_v15 = vld [vmem:[%s9508_s9 + $0x78] sm:$0xff] }
0x1b65   :  { %4000 = vmatpush.msrb.mxu2 %v6273_v15 }
0x1b67   :  { %4001 = vmatpush.msrb.mxu2 %v6272_v3  ;;  %v6748_v46 = vpop.eup %6747 }
0x1b68   :  { %v3950_v31 = vmul.f32 %v6748_v46, %v3947_v44  ;;  %vm3956_vm13 = vweird.f32 %v6748_v46 }
0x1b69   :  { %4002 = vmatpush.msrb.mxu2 %v6271_v51  ;;  %vm3957_vm15 = vmor %vm3955_vm14, %vm3956_vm13 }
0x1b6a   :  { %v3951_v28 = vmul.f32 %v6748_v46, %v3950_v31 }
0x1b6b   :  { %4003 = vmatpush.msrb.mxu2 %v6270_v1 }
0x1b6c   :  { %v3952_v35 = vmul.f32 0.5, %v3951_v28 }
0x1b6e   :  { %v3953_v63 = vsub.f32 1.5, %v3952_v35 }
0x1b70   :  { %v3954_v42 = vmul.f32 %v6748_v46, %v3953_v63 }
0x1b72   :  { %v3958_v61 = vsel %vm3957_vm15, %v6748_v46, %v3954_v42 }
0x1b73   :  { %v3969_v58 = vmul.f32 %v3958_v61, %v8571_v39 }
0x1b75   :  { %v3932_v36 = vpop.xlane.xlu0 %3931  ;;  %v3972_v10 = vmul.f32 %v6530_v23, %v3969_v58 }
0x1b76   :  { %v3934_v33 = vmul.f32 %v3932_v36, %v7330_v8 }
0x1b77   :  { %v3975_v24 = vadd.f32 %v6531_v0, %v3972_v10 }
0x1b78   :  { %v8609_v19 = vsub.f32 %v8589_v21, %v3934_v33 }
0x1b7a   :  { %v3938_v52 = vmul.f32 %v8609_v19, %v8609_v19 }
0x1b7c   :  { %v3942_v60 = vsel %vm412_vm10, %v3938_v52, 0.0 }
0x1b8d   :  { %3943 = vadd.xlane.f32.xlu2 %v3942_v60 }
0x1ba7   :  { %v3720_v6 = vpop.xlane.xlu1 %3719 }
0x1ba8   :  { %6749 = vrcp.f32 %v3720_v6 }
0x1bae   :  { %v6750_v4 = vpop.eup %6749 }
0x1baf   :  { %v3726_v30 = vmul.f32 %v6750_v4, %v6744_v47  ;;  %v3723_v5 = vpop.xlane.xlu2 %3722 }
0x1bb0   :  { %6751 = vrcp.f32 %v3723_v5 }
0x1bb1   :  { %6254 = vmatmul.msk.f32.vlgmr.msra.gmra.mxu2 %vm837_vm4, %v3726_v30 }
0x1bb6   :  { %v6752_v22 = vpop.eup %6751 }
0x1bb7   :  { %v3727_v43 = vmul.f32 %v6752_v22, %v6746_v41  ;;  %v3560_v40 = vpop.permute.xlu2 %3559 }
0x1bb9   :  { %6255 = vmatmul.msk.f32.gmra.mxu2 %vm837_vm4, %v3727_v43 }
0x1bbf   :  { %v3562_v59 = vpop.permute.xlu1 %3561  ;;  %v3768_v39 = vpop.permute.xlu2 %3767 }
0x1bc0   :  { %6244 = vmatpush.xpose.msk.msra.mxu0 %vm837_vm4, %v3562_v59 }
0x1bc1   :  { %6274 = vmatmul.msk.f32.vlgmr.msrb.gmra.mxu2 %vm412_vm10, %v3975_v24 }
0x1bc4   :  { %6245 = vmatpush.xpose.msk.msra.mxu0 %vm837_vm4, %v3560_v40 }
0x1bc7   :  { %6246 = vmatmul.msk.f32.vlgmr.msra.gmra.mxu0 %vm837_vm4, %v3556_v49  ;;  %v3558_v7 = vpop.permute.xlu1 %3557  ;;  %v3766_v37 = vpop.permute.xlu2 %3765 }
0x1bc8   :  { %6256 = vmatpush.xpose.msk.msrb.mxu0 %vm837_vm4, %v3770_v9 }
0x1bcc   :  { %6257 = vmatpush.xpose.msk.msrb.mxu0 %vm837_vm4, %v3768_v39 }
0x1bcf   :  { %6247 = vmatmul.msk.f32.gmra.mxu0 %vm837_vm4, %v3558_v7  ;;  %v3764_v16 = vpop.permute.xlu1 %3763 }
0x1bd7   :  { %6258 = vmatmul.msk.f32.vlgmr.msrb.gmra.mxu0 %vm837_vm4, %v3764_v16 }
0x1bdf   :  { %6259 = vmatmul.msk.f32.gmra.mxu0 %vm837_vm4, %v3766_v37 }
0x1c00   :  { %v3944_v62 = vpop.xlane.xlu2 %3943 }
0x1c01   :  { %v3946_v48 = vmul.f32 %v3944_v62, %v7330_v8 }
0x1c03   :  { %v3948_v55 = vadd.f32 1e-05, %v3946_v48 }
0x1c05   :  { %6753 = vrsqrt.f32 %v3948_v55  ;;  %vm3965_vm2 = vweird.f32 %v3948_v55 }
0x1c0b   :  { %v6754_v26 = vpop.eup %6753 }
0x1c0c   :  { %v3960_v11 = vmul.f32 %v6754_v26, %v3948_v55  ;;  %vm3966_vm0 = vweird.f32 %v6754_v26 }
0x1c0d   :  { %vm3967_vm3 = vmor %vm3965_vm2, %vm3966_vm0 }
0x1c0e   :  { %v3961_v47 = vmul.f32 %v6754_v26, %v3960_v11 }
0x1c10   :  { %v3962_v50 = vmul.f32 0.5, %v3961_v47 }
0x1c12   :  { %v3963_v34 = vsub.f32 1.5, %v3962_v50 }
0x1c14   :  { %v3964_v41 = vmul.f32 %v6754_v26, %v3963_v34 }
0x1c16   :  { %v3968_v53 = vsel %vm3967_vm3, %v6754_v26, %v3964_v41 }
0x1c17   :  { %v3970_v38 = vmul.f32 %v3968_v53, %v8609_v19 }
0x1c19   :  { %v3973_v17 = vmul.f32 %v6530_v23, %v3970_v38 }
0x1c1b   :  { %v3976_v56 = vadd.f32 %v6531_v0, %v3973_v17 }
0x1c1d   :  { %6275 = vmatmul.msk.f32.gmra.mxu2 %vm412_vm10, %v3976_v56 }
0x1c34   :  { %v8648_v49 = vpop.f32.mrf.mxu2 }
0x1c3c   :  { %v8650_v9 = vpop.f32.mrf.mxu2 }
0x1c44   :  { %v3588_v36 = vpop.f32.mrf.mxu0  ;;  %v8652_v33 = vpop.f32.mrf.mxu2 }
0x1c45   :  { %4012 = vrot.lane.b32.xlu1 %v8652_v33, %s6906_s28  ;;  %v3594_v28 = vmul.f32 0.25, %v3588_v36 }
0x1c47   :  { %v3596_v6 = vadd.f32 %v3594_v28, %v7573_v2 }
0x1c49   :  { %v3598_v35 = vsel %vm837_vm4, %v3596_v6, -inf }
0x1c4c   :  { %v3591_v52 = vpop.f32.mrf.mxu0 }
0x1c4d   :  { %v3595_v13 = vmul.f32 0.25, %v3591_v52  ;;  %4079 = vrot.lane.b32.xlu1 %v8652_v33, %s6909_s20 }
0x1c4f   :  { %v3597_v19 = vadd.f32 %v3595_v13, %v7573_v2 }
0x1c51   :  { %v3601_v60 = vsel %vm837_vm4, %v3597_v19, -inf }
0x1c52   :  { %3602 = vmax.xlane.f32.xlu0 %v3601_v60 }
0x1c54   :  { %v3796_v18 = vpop.f32.mrf.mxu0 }
0x1c55   :  { %v3802_v44 = vmul.f32 0.25, %v3796_v18  ;;  %4077 = vrot.lane.b32.xlu1 %v8652_v33, %s6908_s19 }
0x1c57   :  { %v3804_v15 = vadd.f32 %v3802_v44, %v7573_v2 }
0x1c59   :  { %v3806_v3 = vsel %vm837_vm4, %v3804_v15, -inf }
0x1c5a   :  { %3807 = vmax.xlane.f32.xlu0 %v3806_v3 }
0x1c5c   :  { %v3799_v51 = vpop.f32.mrf.mxu0 }
0x1c5d   :  { %v3803_v46 = vmul.f32 0.25, %v3799_v51 }
0x1c5f   :  { %v3805_v31 = vadd.f32 %v3803_v46, %v7573_v2 }
0x1c61   :  { %v3809_v1 = vsel %vm837_vm4, %v3805_v31, -inf }
0x1c62   :  { %3810 = vmax.xlane.f32.xlu2 %v3809_v1 }
0x1c7f   :  { %3599 = vmax.xlane.f32.xlu1 %v3598_v35 }
0x1ca0   :  { %v8685_v11 = vpop.f32.mrf.mxu2 }
0x1cb7   :  { %v4013_v63 = vpop.permute.xlu1 %4012 }
0x1cb8   :  { %6276 = vmatpush.xpose.msk.msra.mxu0 %vm837_vm4, %v4013_v63 }
0x1cbb   :  { %6277 = vmatmul.msk.f32.vlgmr.msra.gmra.mxu0 %vm837_vm4, %v8652_v33 }
0x1cbf   :  { %v4080_v4 = vpop.permute.xlu1 %4079 }
0x1cc0   :  { %6279 = vmatpush.xpose.msk.msrb.mxu0 %vm837_vm4, %v4080_v4 }
0x1cc5   :  { %v3603_v30 = vpop.xlane.xlu0 %3602 }
0x1cc6   :  { %v3605_v7 = vsub.f32 %v3597_v19, %v3603_v30 }
0x1cc7   :  { %v4078_v5 = vpop.permute.xlu1 %4077 }
0x1cc8   :  { %6280 = vmatmul.msk.f32.vlgmr.msrb.gmra.mxu0 %vm837_vm4, %v4078_v5  ;;  %v3608_v37 = vmul.f32 1.442695, %v3605_v7 }
0x1ccd   :  { %v3808_v42 = vpop.xlane.xlu0 %3807 }
0x1cce   :  { %v3812_v61 = vsub.f32 %v3804_v15, %v3808_v42 }
0x1cd0   :  { %v3814_v22 = vmul.f32 1.442695, %v3812_v61 }
0x1cd2   :  { %6755 = vpow2.f32 %v3814_v22 }
0x1cd5   :  { %v3811_v23 = vpop.xlane.xlu2 %3810 }
0x1cd6   :  { %v3813_v58 = vsub.f32 %v3805_v31, %v3811_v23 }
0x1cd8   :  { %v8673_v43 = vpop.eup %6755  ;;  %v3816_v0 = vmul.f32 1.442695, %v3813_v58 }
0x1cd9   :  { %v3818_v10 = vsel %vm837_vm4, %v8673_v43, 0.0 }
0x1cda   :  { %6757 = vpow2.f32 %v3816_v0  ;;  %3819 = vadd.xlane.f32.xlu1 %v3818_v10 }
0x1ce0   :  { %v8677_v40 = vpop.eup %6757 }
0x1ce1   :  { %v3821_v24 = vsel %vm837_vm4, %v8677_v40, 0.0 }
0x1ce2   :  { %3822 = vadd.xlane.f32.xlu1 %v3821_v24 }
0x1cf2   :  { %v3600_v59 = vpop.xlane.xlu1 %3599 }
0x1cf3   :  { %v3604_v39 = vsub.f32 %v3596_v6, %v3600_v59 }
0x1cf5   :  { %v3606_v16 = vmul.f32 1.442695, %v3604_v39 }
0x1cf7   :  { %6759 = vpow2.f32 %v3606_v16 }
0x1cf8   :  { %6761 = vpow2.f32 %v3608_v37 }
0x1cfd   :  { %v6760_v62 = vpop.eup %6759 }
0x1cfe   :  { %v3610_v48 = vsel %vm837_vm4, %v6760_v62, 0.0  ;;  %v6762_v55 = vpop.eup %6761 }
0x1cff   :  { %3611 = vadd.xlane.f32.xlu2 %v3610_v48  ;;  %v3613_v26 = vsel %vm837_vm4, %v6762_v55, 0.0 }
0x1d07   :  { %3614 = vadd.xlane.f32.xlu2 %v3613_v26 }
0x1d1f   :  { %6476 = vrot.lane.b32.xlu2 %v8579_v20, %s6910_s3 }
0x1d27   :  { %4150 = vrot.lane.b32.xlu2 %v8685_v11, %s6906_s28 }
0x1d38   :  { %v4035_v47 = vpop.f32.mrf.mxu0 }
0x1d39   :  { %v4038_v50 = vmul.f32 0.25, %v4035_v47 }
0x1d3b   :  { %v4039_v34 = vadd.f32 %v4038_v50, %v7367_v32 }
0x1d3d   :  { %v4040_v41 = vsel %vm1414_vm9, %v4039_v34, -inf }
0x1d3e   :  { %4041 = vmax.xlane.f32.xlu0 %v4040_v41 }
0x1d45   :  { %v4102_v53 = vpop.f32.mrf.mxu0 }
0x1d46   :  { %v4105_v38 = vmul.f32 0.25, %v4102_v53 }
0x1d48   :  { %v4106_v17 = vadd.f32 %v4105_v38, %v7367_v32 }
0x1d4a   :  { %v4107_v20 = vsel %vm1414_vm9, %v4106_v17, -inf }
0x1d4d   :  { %v3820_v1 = vpop.xlane.xlu1 %3819 }
0x1d52   :  { %6471 = vrot.lane.b32.xlu0 %v8513_v54, %s6910_s3 }
0x1d55   :  { %v3823_v63 = vpop.xlane.xlu1 %3822 }
0x1d72   :  { %v3612_v36 = vpop.xlane.xlu2 %3611 }
0x1d7a   :  { %v3615_v60 = vpop.xlane.xlu2 %3614 }
0x1d7c   :  { %4108 = vmax.xlane.f32.xlu0 %v4107_v20 }
0x1d82   :  { %v6477_v3 = vpop.permute.xlu2 %6476 }
0x1d83   :  { %v6478_v31 = vunpack.i.l.bf16 %v6477_v3  ;;  %v6479_v28 = vunpack.i.h.bf16 %v6477_v3 }
0x1d90   :  { %4217 = vrot.lane.b32.xlu0 %v8685_v11, %s6909_s20 }
0x1db1   :  { %v4042_v56 = vpop.xlane.xlu0 %4041 }
0x1db2   :  { %v4043_v52 = vsub.f32 %v4039_v34, %v4042_v56 }
0x1db4   :  { %v4044_v13 = vmul.f32 1.442695, %v4043_v52 }
0x1db6   :  { %6763 = vpow2.f32 %v4044_v13 }
0x1db7   :  { %6765 = vrcp.f32 %v3612_v36 }
0x1db8   :  { %6767 = vrcp.f32 %v3615_v60  ;;  %v6265_v60 = vld [vmem:[%s9509_s10 + $0x58] sm:$0xff] }
0x1db9   :  { %6769 = vrcp.f32 %v3820_v1  ;;  %3904 = vmatpush.msra.mxu1 %v6265_v60 }
0x1dba   :  { %6771 = vrcp.f32 %v3823_v63 }
0x1dbc   :  { %v6764_v19 = vpop.eup %6763 }
0x1dbd   :  { %v4046_v18 = vsel %vm1414_vm9, %v6764_v19, 0.0  ;;  %v6766_v44 = vpop.eup %6765 }
0x1dbe   :  { %4047 = vadd.xlane.f32.xlu1 %v4046_v18  ;;  %v3618_v46 = vmul.f32 %v6766_v44, %v6760_v62  ;;  %v6768_v6 = vpop.eup %6767  ;;  %v6264_v18 = vld [vmem:[%s9509_s10 + $0x50] sm:$0xff]  ;;  %v6263_v44 = vld [vmem:[%s9509_s10 + $0x48] sm:$0xff] }
0x1dbf   :  { %v3619_v35 = vmul.f32 %v6768_v6, %v6762_v55  ;;  %v6770_v4 = vpop.eup %6769  ;;  %3905 = vmatpush.msra.mxu1 %v6264_v18 }
0x1dc0   :  { %v3826_v30 = vmul.f32 %v6770_v4, %v8673_v43  ;;  %v6772_v5 = vpop.eup %6771 }
0x1dc1   :  { %v3827_v42 = vmul.f32 %v6772_v5, %v8677_v40  ;;  %v4151_v40 = vpop.permute.xlu2 %4150  ;;  %3906 = vmatpush.msra.mxu1 %v6263_v44 }
0x1dc4   :  { %v6472_v54 = vpop.permute.xlu0 %6471 }
0x1dc5   :  { %v6473_v15 = vunpack.i.l.bf16 %v6472_v54  ;;  %v6474_v51 = vunpack.i.h.bf16 %v6472_v54 }
0x1dc7   :  { %3646 = vmatpush.msrb.mxu3 %v6473_v15  ;;  %v6262_v15 = vld [vmem:[%s9509_s10 + $0x40] sm:$0xff] }
0x1dc8   :  { %3907 = vmatpush.msra.mxu1 %v6262_v15 }
0x1dc9   :  { %3647 = vmatpush.msrb.mxu3 %v6474_v51 }
0x1dca   :  { %6248 = vmatmul.msk.f32.vlgmr.msrb.gmra.mxu3 %vm837_vm4, %v3618_v46 }
0x1dcb   :  { %3854 = vmatpush.msra.mxu3 %v6478_v31 }
0x1dcd   :  { %3855 = vmatpush.msra.mxu3 %v6479_v28 }
0x1dd2   :  { %6249 = vmatmul.msk.f32.gmra.mxu3 %vm837_vm4, %v3619_v35 }
0x1dd7   :  { %4051 = vrot.lane.b32.xlu1 %v8652_v33, %s6907_s30 }
0x1dda   :  { %6260 = vmatmul.msk.f32.vlgmr.msra.gmra.mxu3 %vm837_vm4, %v3826_v30 }
0x1ddf   :  { %4118 = vrot.lane.b32.xlu1 %v8652_v33, %s6910_s3 }
0x1de2   :  { %6261 = vmatmul.msk.f32.gmra.mxu3 %vm837_vm4, %v3827_v42 }
0x1de7   :  { %4215 = vrot.lane.b32.xlu1 %v8685_v11, %s6908_s19 }
0x1def   :  { %v4109_v61 = vpop.xlane.xlu0 %4108 }
0x1df0   :  { %v4110_v22 = vsub.f32 %v4106_v17, %v4109_v61 }
0x1df2   :  { %v4111_v23 = vmul.f32 1.442695, %v4110_v22 }
0x1df4   :  { %6773 = vpow2.f32 %v4111_v23  ;;  %v6291_v23 = vld [vmem:[%s9509_s10 + $0x78] sm:$0xff] }
0x1dfa   :  { %v6774_v58 = vpop.eup %6773 }
0x1dfb   :  { %v4113_v43 = vsel %vm1414_vm9, %v6774_v58, 0.0 }
0x1dfc   :  { %4114 = vadd.xlane.f32.xlu2 %v4113_v43  ;;  %v6288_v43 = vld [vmem:[%s9509_s10 + $0x60] sm:$0xff] }
0x1e02   :  { %v4218_v39 = vpop.permute.xlu0 %4217 }
0x1e31   :  { %v4048_v0 = vpop.xlane.xlu1 %4047 }
0x1e32   :  { %6775 = vrcp.f32 %v4048_v0 }
0x1e38   :  { %v6776_v10 = vpop.eup %6775 }
0x1e39   :  { %v4050_v24 = vmul.f32 %v6776_v10, %v6764_v19  ;;  %v8773_v10 = vld [vmem:[%s9507_s8 + $0xe] ss:$0 sm:$0xff] }
0x1e49   :  { %v4052_v33 = vpop.permute.xlu1 %4051 }
0x1e4a   :  { %4072 = vmatpush.msrb.mxu3 %v4052_v33 }
0x1e4b   :  { %6278 = vmatmul.msk.f32.vlgmr.msrb.gmra.mxu3 %vm1414_vm9, %v4050_v24 }
0x1e4c   :  { %6282 = vmatpush.xpose.msk.msra.mxu3 %vm837_vm4, %v4151_v40 }
0x1e4d   :  { %v3649_v48 = vpop.f32.mrf.mxu3 }
0x1e51   :  { %v4119_v59 = vpop.permute.xlu1 %4118 }
0x1e52   :  { %4139 = vmatpush.msra.mxu2 %v4119_v59 }
0x1e53   :  { %6283 = vmatmul.msk.f32.vlgmr.msra.gmra.mxu3 %vm837_vm4, %v8685_v11 }
0x1e54   :  { %6285 = vmatpush.xpose.msk.msrb.mxu2 %vm837_vm4, %v4218_v39 }
0x1e55   :  { %v3652_v55 = vpop.f32.mrf.mxu3 }
0x1e59   :  { %v4216_v62 = vpop.permute.xlu1 %4215 }
0x1e5d   :  { %v3857_v26 = vpop.f32.mrf.mxu3 }
0x1e65   :  { %v8718_v47 = vpop.f32.mrf.mxu3 }
0x1e6f   :  { %v4115_v7 = vpop.xlane.xlu2 %4114 }
0x1e70   :  { %6777 = vrcp.f32 %v4115_v7 }
0x1e76   :  { %v6778_v16 = vpop.eup %6777 }
0x1e77   :  { %v4117_v37 = vmul.f32 %v6778_v16, %v6774_v58  ;;  %v6289_v58 = vld [vmem:[%s9509_s10 + $0x68] sm:$0xff] }
0x1e79   :  { %6281 = vmatmul.msk.f32.vlgmr.msra.gmra.mxu2 %vm1414_vm9, %v4117_v37 }
0x1e81   :  { %6286 = vmatmul.msk.f32.vlgmr.msrb.gmra.mxu2 %vm837_vm4, %v4216_v62 }
0x1ece   :  { %v8720_v50 = vpop.f32.mrf.mxu3 }
0x1ed6   :  { %v4173_v34 = vpop.f32.mrf.mxu3 }
0x1ed7   :  { %v4176_v41 = vmul.f32 0.25, %v4173_v34 }
0x1ed9   :  { %v4177_v53 = vadd.f32 %v4176_v41, %v7367_v32 }
0x1edb   :  { %v4178_v38 = vsel %vm1414_vm9, %v4177_v53, -inf }
0x1edc   :  { %4179 = vmax.xlane.f32.xlu1 %v4178_v38 }
0x1efc   :  { %v4141_v17 = vpop.f32.mrf.mxu2 }
0x1efd   :  { %4145 = vrot.lane.b32.xlu1 %v4141_v17, %s6911_s1 }
0x1f04   :  { %v4240_v20 = vpop.f32.mrf.mxu2 }
0x1f05   :  { %v4243_v56 = vmul.f32 0.25, %v4240_v20  ;;  %3657 = vrot.lane.b32.xlu1 %v3649_v48, %s6911_s1 }
0x1f07   :  { %v4244_v36 = vadd.f32 %v4243_v56, %v7367_v32 }
0x1f09   :  { %v4245_v52 = vsel %vm1414_vm9, %v4244_v36, -inf }
0x1f0a   :  { %4246 = vmax.xlane.f32.xlu0 %v4245_v52 }
0x1f1e   :  { %4256 = vrot.lane.b32.xlu0 %v8685_v11, %s6910_s3 }
0x1f26   :  { %3659 = vrot.lane.b32.xlu0 %v3652_v55, %s6911_s1 }
0x1f4f   :  { %v4180_v13 = vpop.xlane.xlu1 %4179 }
0x1f50   :  { %v4181_v19 = vsub.f32 %v4177_v53, %v4180_v13 }
0x1f52   :  { %v4182_v54 = vmul.f32 1.442695, %v4181_v19 }
0x1f54   :  { %6779 = vpow2.f32 %v4182_v54 }
0x1f5a   :  { %v6780_v3 = vpop.eup %6779 }
0x1f5b   :  { %v4184_v51 = vsel %vm1414_vm9, %v6780_v3, 0.0 }
0x1f5c   :  { %4185 = vadd.xlane.f32.xlu2 %v4184_v51 }
0x1f6f   :  { %v4146_v46 = vpop.permute.xlu1 %4145 }
0x1f70   :  { %v4148_v0 = vsel %vm837_vm4, %v8720_v50, %v4146_v46 }
0x1f74   :  { %4189 = vrot.lane.b32.xlu2 %v8685_v11, %s6907_s30 }
0x1f77   :  { %v3658_v31 = vpop.permute.xlu1 %3657 }
0x1f78   :  { %v3663_v1 = vsel %vm837_vm4, %v8562_v12, %v3658_v31  ;;  %v6305_v31 = vld [vmem:[%s9508_s9 + $0xf8] sm:$0xff] }
0x1f79   :  { %6266 = vmatmul.msk.f32.vlgmr.msra.gmra.mxu1 %vm412_vm10, %v3663_v1  ;;  %4546 = vmatpush.msra.mxu2 %v6305_v31  ;;  %v6304_v1 = vld [vmem:[%s9508_s9 + $0xf0] sm:$0xff] }
0x1f7b   :  { %4547 = vmatpush.msra.mxu2 %v6304_v1 }
0x1f7d   :  { %v4247_v28 = vpop.xlane.xlu0 %4246 }
0x1f7e   :  { %v4248_v6 = vsub.f32 %v4244_v36, %v4247_v28  ;;  %v6302_v28 = vld [vmem:[%s9508_s9 + $0xe0] sm:$0xff] }
0x1f80   :  { %v4249_v35 = vmul.f32 1.442695, %v4248_v6 }
0x1f82   :  { %6781 = vpow2.f32 %v4249_v35 }
0x1f88   :  { %v6782_v30 = vpop.eup %6781 }
0x1f89   :  { %v4251_v11 = vsel %vm1414_vm9, %v6782_v30, 0.0 }
0x1f90   :  { %v4257_v63 = vpop.permute.xlu0 %4256 }
0x1f91   :  { %4277 = vmatpush.msrb.mxu3 %v4257_v63 }
0x1f98   :  { %v3660_v4 = vpop.permute.xlu0 %3659 }
0x1f99   :  { %v3664_v5 = vsel %vm837_vm4, %v8564_v14, %v3660_v4  ;;  %v6290_v14 = vld [vmem:[%s9509_s10 + $0x70] sm:$0xff]  ;;  %v6297_v4 = vld [vmem:[%s9508_s9 + $0xd8] sm:$0xff] }
0x1f9a   :  { %6267 = vmatmul.msk.f32.gmra.mxu1 %vm412_vm10, %v3664_v5  ;;  %v6296_v5 = vld [vmem:[%s9508_s9 + $0xd0] sm:$0xff] }
0x1f9b   :  { %4454 = vmatpush.msrb.mxu1 %v6297_v4 }
0x1f9d   :  { %4252 = vadd.xlane.f32.xlu2 %v4251_v11  ;;  %4455 = vmatpush.msrb.mxu1 %v6296_v5 }
0x1fb5   :  { %3865 = vrot.lane.b32.xlu2 %v3857_v26, %s6911_s1 }
0x1fcf   :  { %v4186_v12 = vpop.xlane.xlu2 %4185 }
0x1fd0   :  { %6783 = vrcp.f32 %v4186_v12  ;;  %v6295_v12 = vld [vmem:[%s9508_s9 + $0xc8] sm:$0xff] }
0x1fd1   :  { %4456 = vmatpush.msrb.mxu1 %v6295_v12 }
0x1fd6   :  { %v6784_v42 = vpop.eup %6783 }
0x1fd7   :  { %v4188_v61 = vmul.f32 %v6784_v42, %v6780_v3  ;;  %v4190_v22 = vpop.permute.xlu2 %4189 }
0x1fd8   :  { %4210 = vmatpush.msra.mxu0 %v4190_v22  ;;  %v6294_v22 = vld [vmem:[%s9508_s9 + $0xc0] sm:$0xff] }
0x1fd9   :  { %6284 = vmatmul.msk.f32.vlgmr.msra.gmra.mxu0 %vm1414_vm9, %v4188_v61  ;;  %4457 = vmatpush.msrb.mxu1 %v6294_v22 }
0x1fda   :  { %4312 = vmatpush.msrb.mxu0 %v6291_v23 }
0x1fdc   :  { %4313 = vmatpush.msrb.mxu0 %v6290_v14 }
0x1fde   :  { %4314 = vmatpush.msrb.mxu0 %v6289_v58 }
0x1fe0   :  { %4315 = vmatpush.msrb.mxu0 %v6288_v43 }
0x1fe1   :  { %6292 = vmatmul.msk.f32.vlgmr.msrb.gmra.mxu0 %vm412_vm10, %v4148_v0 }
0x1ff6   :  { %v3909_v24 = vpop.f32.mrf.mxu1 }
0x1ff7   :  { %v3910_v33 = vadd.f32 %v8773_v10, %v3909_v24 }
0x1ff9   :  { %v8777_v40 = vadd.f32 %v3910_v33, %v8319_v57  ;;  %v8788_v57 = vld [vmem:[%s9507_s8 + $0x11] ss:$0 sm:$0xff] }
0x1ffb   :  { %v4327_v59 = vsel %vm412_vm10, %v8777_v40, 0.0 }
0x1ffc   :  { %4328 = vadd.xlane.f32.xlu2 %v4327_v59 }
0x2010   :  { %v4253_v39 = vpop.xlane.xlu2 %4252 }
0x2011   :  { %6785 = vrcp.f32 %v4253_v39 }
0x2017   :  { %v6786_v7 = vpop.eup %6785 }
0x2018   :  { %v4255_v16 = vmul.f32 %v6786_v7, %v6782_v30  ;;  %v3866_v37 = vpop.permute.xlu2 %3865 }
0x2019   :  { %v3871_v62 = vsel %vm837_vm4, %v8648_v49, %v3866_v37  ;;  %v3912_v49 = vpop.f32.mrf.mxu1 }
0x201a   :  { %6268 = vmatmul.msk.f32.gmra.mxu1 %vm412_vm10, %v3871_v62  ;;  %6287 = vmatmul.msk.f32.vlgmr.msrb.gmra.mxu3 %vm1414_vm9, %v4255_v16  ;;  %v3913_v52 = vadd.f32 %v8773_v10, %v3912_v49  ;;  %v8862_v16 = vld [vmem:[%s9507_s8 + $0x1b] ss:$0 sm:$0xff]  ;;  %v8867_v62 = vld [vmem:[%s9507_s8 + $0x1c] ss:$0 sm:$0xff] }
0x2056   :  { %v4212_v48 = vpop.f32.mrf.mxu0 }
0x205e   :  { %v4317_v55 = vpop.f32.mrf.mxu0 }
0x205f   :  { %v4318_v26 = vadd.f32 %v8788_v57, %v4317_v55 }
0x2061   :  { %v8792_v50 = vadd.f32 %v4318_v26, %v8550_v45 }
0x2063   :  { %v4473_v34 = vsel %vm412_vm10, %v8792_v50, 0.0 }
0x2064   :  { %4474 = vadd.xlane.f32.xlu1 %v4473_v34 }
0x206f   :  { %v4329_v19 = vpop.xlane.xlu2 %4328 }
0x2070   :  { %v4339_v60 = vmul.f32 %v4329_v19, %v7330_v8 }
0x2072   :  { %v8814_v18 = vsub.f32 %v8777_v40, %v4339_v60 }
0x2074   :  { %v4347_v44 = vmul.f32 %v8814_v18, %v8814_v18 }
0x2076   :  { %v4351_v15 = vsel %vm412_vm10, %v4347_v44, 0.0 }
0x207d   :  { %3867 = vrot.lane.b32.xlu1 %v8718_v47, %s6911_s1 }
0x2097   :  { %v3915_v41 = vpop.f32.mrf.mxu1 }
0x2098   :  { %v3916_v53 = vadd.f32 %v8773_v10, %v3915_v41 }
0x209a   :  { %v8800_v38 = vadd.f32 %v3916_v53, %v8483_v27  ;;  %v8810_v27 = vadd.f32 %v3913_v52, %v8338_v25 }
0x209c   :  { %v4333_v17 = vsel %vm412_vm10, %v8800_v38, 0.0  ;;  %v4330_v54 = vsel %vm412_vm10, %v8810_v27, 0.0 }
0x209d   :  { %v4279_v20 = vpop.f32.mrf.mxu3  ;;  %4334 = vadd.xlane.f32.xlu2 %v4333_v17 }
0x209e   :  { %4283 = vrot.lane.b32.xlu0 %v4279_v20, %s6911_s1 }
0x20d7   :  { %v4475_v45 = vpop.xlane.xlu1 %4474 }
0x20d8   :  { %v4479_v56 = vmul.f32 %v4475_v45, %v7330_v8  ;;  %v8875_v45 = vld [vmem:[%s9507_s8 + $0x18] ss:$0 sm:$0xff] }
0x20da   :  { %v4481_v36 = vsub.f32 %v8792_v50, %v4479_v56 }
0x20dc   :  { %v4483_v47 = vmul.f32 %v4481_v36, %v4481_v36 }
0x20de   :  { %v4485_v13 = vsel %vm412_vm10, %v4483_v47, 0.0 }
0x20df   :  { %4486 = vadd.xlane.f32.xlu0 %v4485_v13 }
0x20e7   :  { %4331 = vadd.xlane.f32.xlu0 %v4330_v54 }
0x20ef   :  { %4352 = vadd.xlane.f32.xlu0 %v4351_v15  ;;  %v3868_v3 = vpop.permute.xlu1 %3867 }
0x20f0   :  { %v3872_v25 = vsel %vm837_vm4, %v8650_v9, %v3868_v3  ;;  %v6303_v9 = vld [vmem:[%s9508_s9 + $0xe8] sm:$0xff] }
0x20f1   :  { %6269 = vmatmul.msk.f32.gmra.mxu1 %vm412_vm10, %v3872_v25  ;;  %4548 = vmatpush.msra.mxu2 %v6303_v9 }
0x20f3   :  { %4549 = vmatpush.msra.mxu2 %v6302_v28 }
0x2110   :  { %v4284_v51 = vpop.permute.xlu0 %4283  ;;  %v4335_v5 = vpop.xlane.xlu2 %4334 }
0x2111   :  { %v4286_v46 = vsel %vm837_vm4, %v4212_v48, %v4284_v51 }
0x2112   :  { %6293 = vmatmul.msk.f32.gmra.mxu0 %vm412_vm10, %v4286_v46 }
0x2152   :  { %v4487_v6 = vpop.xlane.xlu0 %4486 }
0x2153   :  { %v4491_v35 = vmul.f32 %v4487_v6, %v7330_v8 }
0x2155   :  { %v4493_v63 = vadd.f32 1e-05, %v4491_v35 }
0x2157   :  { %6787 = vrsqrt.f32 %v4493_v63  ;;  %vm4501_vm11 = vweird.f32 %v4493_v63 }
0x215a   :  { %v4332_v30 = vpop.xlane.xlu0 %4331 }
0x215b   :  { %v4340_v11 = vmul.f32 %v4332_v30, %v7330_v8 }
0x215d   :  { %v6788_v42 = vpop.eup %6787  ;;  %v8850_v61 = vsub.f32 %v8810_v27, %v4340_v11 }
0x215e   :  { %v4496_v23 = vmul.f32 %v6788_v42, %v4493_v63  ;;  %vm4502_vm5 = vweird.f32 %v6788_v42 }
0x215f   :  { %v4348_v14 = vmul.f32 %v8850_v61, %v8850_v61  ;;  %vm4503_vm6 = vmor %vm4501_vm11, %vm4502_vm5 }
0x2160   :  { %v4497_v58 = vmul.f32 %v6788_v42, %v4496_v23 }
0x2161   :  { %v4354_v43 = vsel %vm412_vm10, %v4348_v14, 0.0 }
0x2162   :  { %v4498_v0 = vmul.f32 0.5, %v4497_v58  ;;  %4355 = vadd.xlane.f32.xlu1 %v4354_v43  ;;  %v4353_v24 = vpop.xlane.xlu0 %4352 }
0x2163   :  { %v4363_v33 = vmul.f32 %v4353_v24, %v7330_v8 }
0x2164   :  { %v4499_v59 = vsub.f32 1.5, %v4498_v0 }
0x2165   :  { %v4367_v39 = vadd.f32 1e-05, %v4363_v33 }
0x2166   :  { %v4500_v7 = vmul.f32 %v6788_v42, %v4499_v59 }
0x2167   :  { %6789 = vrsqrt.f32 %v4367_v39  ;;  %vm4377_vm8 = vweird.f32 %v4367_v39 }
0x2168   :  { %v4504_v37 = vsel %vm4503_vm6, %v6788_v42, %v4500_v7  ;;  %v4341_v42 = vmul.f32 %v4335_v5, %v7330_v8 }
0x2169   :  { %v4515_v48 = vmul.f32 %v4504_v37, %v4481_v36  ;;  %v8880_v36 = vld [vmem:[%s9507_s8 + $0x19] ss:$0 sm:$0xff] }
0x216a   :  { %v4345_v23 = vsub.f32 %v8800_v38, %v4341_v42 }
0x216b   :  { %v4518_v55 = vmul.f32 %v8862_v16, %v4515_v48 }
0x216c   :  { %v4349_v0 = vmul.f32 %v4345_v23, %v4345_v23 }
0x216d   :  { %v6790_v26 = vpop.eup %6789  ;;  %v4521_v34 = vadd.f32 %v8867_v62, %v4518_v55 }
0x216e   :  { %v4372_v49 = vmul.f32 %v6790_v26, %v4367_v39  ;;  %vm4378_vm7 = vweird.f32 %v6790_v26  ;;  %v3918_v54 = vpop.f32.mrf.mxu1  ;;  %v4357_v33 = vsel %vm412_vm10, %v4349_v0, 0.0 }
0x216f   :  { %6306 = vmatmul.msk.f32.vlgmr.msra.gmra.mxu2 %vm412_vm10, %v4521_v34  ;;  %vm4379_vm12 = vmor %vm4377_vm8, %vm4378_vm7  ;;  %v3919_v15 = vadd.f32 %v8773_v10, %v3918_v54 }
0x2170   :  { %v4373_v41 = vmul.f32 %v6790_v26, %v4372_v49 }
0x2172   :  { %v4374_v53 = vmul.f32 0.5, %v4373_v41 }
0x2174   :  { %v4375_v17 = vsub.f32 1.5, %v4374_v53 }
0x2176   :  { %v4376_v20 = vmul.f32 %v6790_v26, %v4375_v17 }
0x2178   :  { %v4380_v56 = vsel %vm4379_vm12, %v6790_v26, %v4376_v20 }
0x2179   :  { %v4411_v47 = vmul.f32 %v4380_v56, %v8814_v18  ;;  %v8894_v18 = vadd.f32 %v3919_v15, %v8490_v29 }
0x217b   :  { %v4416_v52 = vmul.f32 %v8875_v45, %v4411_v47  ;;  %v4336_v25 = vsel %vm412_vm10, %v8894_v18, 0.0 }
0x217d   :  { %v4421_v13 = vadd.f32 %v8880_v36, %v4416_v52 }
0x217f   :  { %6298 = vmatmul.msk.f32.vlgmr.msrb.gmra.mxu1 %vm412_vm10, %v4421_v13 }
0x218f   :  { %v4320_v19 = vpop.f32.mrf.mxu0 }
0x2190   :  { %v4321_v60 = vadd.f32 %v8788_v57, %v4320_v19 }
0x2192   :  { %v8888_v44 = vadd.f32 %v4321_v60, %v8589_v21 }
0x2194   :  { %v4476_v3 = vsel %vm412_vm10, %v8888_v44, 0.0 }
0x2195   :  { %4477 = vadd.xlane.f32.xlu0 %v4476_v3 }
0x219d   :  { %4337 = vadd.xlane.f32.xlu0 %v4336_v25 }
0x21d5   :  { %v4356_v51 = vpop.xlane.xlu1 %4355 }
0x21d6   :  { %v4364_v57 = vmul.f32 %v4356_v51, %v7330_v8 }
0x21d8   :  { %v4368_v46 = vadd.f32 1e-05, %v4364_v57 }
0x21da   :  { %6791 = vrsqrt.f32 %v4368_v46  ;;  %vm4387_vm14 = vweird.f32 %v4368_v46 }
0x21e0   :  { %v6792_v21 = vpop.eup %6791 }
0x21e1   :  { %v4382_v31 = vmul.f32 %v6792_v21, %v4368_v46  ;;  %vm4388_vm13 = vweird.f32 %v6792_v21 }
0x21e2   :  { %vm4389_vm15 = vmor %vm4387_vm14, %vm4388_vm13 }
0x21e3   :  { %v4383_v1 = vmul.f32 %v6792_v21, %v4382_v31 }
0x21e5   :  { %v4384_v10 = vmul.f32 0.5, %v4383_v1 }
0x21e7   :  { %v4385_v9 = vsub.f32 1.5, %v4384_v10 }
0x21e9   :  { %v4386_v28 = vmul.f32 %v6792_v21, %v4385_v9 }
0x21eb   :  { %v4390_v29 = vsel %vm4389_vm15, %v6792_v21, %v4386_v28 }
0x21ec   :  { %v4412_v6 = vmul.f32 %v4390_v29, %v8850_v61 }
0x21ee   :  { %v4417_v35 = vmul.f32 %v8875_v45, %v4412_v6 }
0x21f0   :  { %v4422_v63 = vadd.f32 %v8880_v36, %v4417_v35 }
0x21f2   :  { %6299 = vmatmul.msk.f32.gmra.mxu1 %vm412_vm10, %v4422_v63  ;;  %v8903_v4 = vpop.f32.mrf.mxu2 }
0x21f3   :  { %4558 = vrot.lane.b32.xlu2 %v8903_v4, %s6906_s28 }
0x21fc   :  { %v8907_v30 = vpop.f32.mrf.mxu1 }
0x21fd   :  { %4649 = vrot.lane.b32.xlu1 %v8907_v30, %s6908_s19 }
0x2208   :  { %v4478_v11 = vpop.xlane.xlu0 %4477 }
0x2209   :  { %v4480_v12 = vmul.f32 %v4478_v11, %v7330_v8 }
0x220b   :  { %v4482_v61 = vsub.f32 %v8888_v44, %v4480_v12 }
0x220d   :  { %v4484_v22 = vmul.f32 %v4482_v61, %v4482_v61 }
0x220f   :  { %v4488_v14 = vsel %vm412_vm10, %v4484_v22, 0.0 }
0x2210   :  { %4489 = vadd.xlane.f32.xlu0 %v4488_v14  ;;  %v4338_v58 = vpop.xlane.xlu0 %4337 }
0x2211   :  { %v4342_v43 = vmul.f32 %v4338_v58, %v7330_v8 }
0x2213   :  { %v8918_v24 = vsub.f32 %v8894_v18, %v4342_v43 }
0x2215   :  { %v4350_v59 = vmul.f32 %v8918_v24, %v8918_v24 }
0x2217   :  { %v4360_v39 = vsel %vm412_vm10, %v4350_v59, 0.0 }
0x2218   :  { %4358 = vadd.xlane.f32.xlu0 %v4357_v33 }
0x2220   :  { %4361 = vadd.xlane.f32.xlu0 %v4360_v39 }
0x2234   :  { %4653 = vrot.lane.b32.xlu0 %v8903_v4, %s6909_s20 }
0x224d   :  { %v4559_v7 = vpop.permute.xlu2 %4558 }
0x224e   :  { %6308 = vmatpush.xpose.msk.msra.mxu3 %vm837_vm4, %v4559_v7 }
0x2251   :  { %6309 = vmatmul.msk.f32.vlgmr.msra.gmra.mxu3 %vm837_vm4, %v8907_v30 }
0x226f   :  { %v8929_v37 = vpop.f32.mrf.mxu1 }
0x2270   :  { %4651 = vrot.lane.b32.xlu0 %v8929_v37, %s6908_s19  ;;  %6310 = vmatmul.msk.f32.gmra.mxu3 %vm837_vm4, %v8929_v37 }
0x2283   :  { %v4490_v48 = vpop.xlane.xlu0 %4489 }
0x2284   :  { %v4492_v55 = vmul.f32 %v4490_v48, %v7330_v8 }
0x2286   :  { %v4494_v26 = vadd.f32 1e-05, %v4492_v55 }
0x2288   :  { %6793 = vrsqrt.f32 %v4494_v26  ;;  %vm4511_vm2 = vweird.f32 %v4494_v26 }
0x228b   :  { %v4359_v34 = vpop.xlane.xlu0 %4358 }
0x228c   :  { %v4365_v49 = vmul.f32 %v4359_v34, %v7330_v8 }
0x228e   :  { %v6794_v41 = vpop.eup %6793  ;;  %v4369_v53 = vadd.f32 1e-05, %v4365_v49 }
0x228f   :  { %v4506_v17 = vmul.f32 %v6794_v41, %v4494_v26  ;;  %vm4512_vm0 = vweird.f32 %v6794_v41 }
0x2290   :  { %6795 = vrsqrt.f32 %v4369_v53  ;;  %vm4513_vm3 = vmor %vm4511_vm2, %vm4512_vm0  ;;  %vm4397_vm11 = vweird.f32 %v4369_v53 }
0x2291   :  { %v4507_v20 = vmul.f32 %v6794_v41, %v4506_v17 }
0x2293   :  { %v4508_v56 = vmul.f32 0.5, %v4507_v20  ;;  %v4362_v47 = vpop.xlane.xlu0 %4361 }
0x2294   :  { %v4366_v52 = vmul.f32 %v4362_v47, %v7330_v8 }
0x2295   :  { %v4509_v13 = vsub.f32 1.5, %v4508_v56 }
0x2296   :  { %v6796_v19 = vpop.eup %6795  ;;  %v4370_v60 = vadd.f32 1e-05, %v4366_v52 }
0x2297   :  { %v4510_v54 = vmul.f32 %v6794_v41, %v4509_v13  ;;  %v4392_v15 = vmul.f32 %v6796_v19, %v4369_v53  ;;  %vm4398_vm5 = vweird.f32 %v6796_v19 }
0x2298   :  { %6797 = vrsqrt.f32 %v4370_v60  ;;  %vm4399_vm6 = vmor %vm4397_vm11, %vm4398_vm5  ;;  %vm4407_vm8 = vweird.f32 %v4370_v60 }
0x2299   :  { %v4514_v3 = vsel %vm4513_vm3, %v6794_v41, %v4510_v54  ;;  %v4393_v25 = vmul.f32 %v6796_v19, %v4392_v15 }
0x229a   :  { %v4516_v51 = vmul.f32 %v4514_v3, %v4482_v61 }
0x229b   :  { %v4394_v57 = vmul.f32 0.5, %v4393_v25 }
0x229c   :  { %v4519_v46 = vmul.f32 %v8862_v16, %v4516_v51 }
0x229d   :  { %v4395_v21 = vsub.f32 1.5, %v4394_v57 }
0x229e   :  { %v6798_v31 = vpop.eup %6797  ;;  %v4522_v1 = vadd.f32 %v8867_v62, %v4519_v46  ;;  %v4650_v62 = vpop.permute.xlu1 %4649 }
0x229f   :  { %v4396_v10 = vmul.f32 %v6796_v19, %v4395_v21  ;;  %v4402_v9 = vmul.f32 %v6798_v31, %v4370_v60  ;;  %vm4408_vm7 = vweird.f32 %v6798_v31 }
0x22a0   :  { %6307 = vmatmul.msk.f32.gmra.mxu2 %vm412_vm10, %v4522_v1  ;;  %vm4409_vm12 = vmor %vm4407_vm8, %vm4408_vm7 }
0x22a1   :  { %v4400_v28 = vsel %vm4399_vm6, %v6796_v19, %v4396_v10  ;;  %v4403_v29 = vmul.f32 %v6798_v31, %v4402_v9 }
0x22a2   :  { %v4413_v6 = vmul.f32 %v4400_v28, %v4345_v23 }
0x22a3   :  { %v4404_v35 = vmul.f32 0.5, %v4403_v29 }
0x22a4   :  { %v4418_v63 = vmul.f32 %v8875_v45, %v4413_v6 }
0x22a5   :  { %v4405_v5 = vsub.f32 1.5, %v4404_v35 }
0x22a6   :  { %v4654_v16 = vpop.permute.xlu0 %4653  ;;  %v4423_v11 = vadd.f32 %v8880_v36, %v4418_v63 }
0x22a7   :  { %v4406_v12 = vmul.f32 %v6798_v31, %v4405_v5  ;;  %6313 = vmatpush.xpose.msk.msrb.mxu2 %vm837_vm4, %v4654_v16 }
0x22a8   :  { %6300 = vmatmul.msk.f32.gmra.mxu1 %vm412_vm10, %v4423_v11 }
0x22a9   :  { %v4410_v42 = vsel %vm4409_vm12, %v6798_v31, %v4406_v12 }
0x22aa   :  { %v4414_v61 = vmul.f32 %v4410_v42, %v8918_v24  ;;  %6314 = vmatmul.msk.f32.vlgmr.msrb.gmra.mxu2 %vm837_vm4, %v4650_v62 }
0x22ac   :  { %v4419_v22 = vmul.f32 %v8875_v45, %v4414_v61 }
0x22ae   :  { %v4424_v23 = vadd.f32 %v8880_v36, %v4419_v22 }
0x22b0   :  { %6301 = vmatmul.msk.f32.gmra.mxu1 %vm412_vm10, %v4424_v23 }
0x22d4   :  { %v4585_v14 = vpop.f32.mrf.mxu3 }
0x22d5   :  { %v4591_v58 = vmul.f32 0.25, %v4585_v14 }
0x22d7   :  { %v4593_v43 = vadd.f32 %v4591_v58, %v7367_v32 }
0x22d9   :  { %v4595_v0 = vsel %vm1414_vm9, %v4593_v43, -inf }
0x22da   :  { %4596 = vmax.xlane.f32.xlu2 %v4595_v0 }
0x22e2   :  { %v4652_v33 = vpop.permute.xlu0 %4651 }
0x22e3   :  { %6315 = vmatmul.msk.f32.gmra.mxu2 %vm837_vm4, %v4652_v33 }
0x22f3   :  { %v4588_v59 = vpop.f32.mrf.mxu3 }
0x22f4   :  { %v4592_v24 = vmul.f32 0.25, %v4588_v59 }
0x22f6   :  { %v4594_v39 = vadd.f32 %v4592_v24, %v7367_v32 }
0x22f8   :  { %v4598_v45 = vsel %vm1414_vm9, %v4594_v39, -inf }
0x22f9   :  { %4599 = vmax.xlane.f32.xlu1 %v4598_v45 }
0x2323   :  { %v8955_v36 = vpop.f32.mrf.mxu2 }
0x2324   :  { %4848 = vrot.lane.b32.xlu0 %v8955_v36, %s6909_s20 }
0x2325   :  { %v8959_v7 = vpop.f32.mrf.mxu1 }
0x2326   :  { %4844 = vrot.lane.b32.xlu1 %v8959_v7, %s6908_s19 }
0x232d   :  { %v8963_v48 = vpop.f32.mrf.mxu1  ;;  %v4678_v49 = vpop.f32.mrf.mxu2 }
0x232e   :  { %4846 = vrot.lane.b32.xlu0 %v8963_v48, %s6908_s19  ;;  %v4684_v41 = vmul.f32 0.25, %v4678_v49 }
0x2330   :  { %v4686_v20 = vadd.f32 %v4684_v41, %v7367_v32 }
0x2332   :  { %v4688_v56 = vsel %vm1414_vm9, %v4686_v20, -inf }
0x2336   :  { %4617 = vrot.lane.b32.xlu0 %v8903_v4, %s6907_s30 }
0x234d   :  { %v4597_v55 = vpop.xlane.xlu2 %4596 }
0x234e   :  { %v4601_v26 = vsub.f32 %v4593_v43, %v4597_v55 }
0x2350   :  { %v4603_v34 = vmul.f32 1.442695, %v4601_v26 }
0x2352   :  { %6799 = vpow2.f32 %v4603_v34 }
0x2358   :  { %v6800_v53 = vpop.eup %6799 }
0x2359   :  { %v4607_v17 = vsel %vm1414_vm9, %v6800_v53, 0.0 }
0x235a   :  { %4608 = vadd.xlane.f32.xlu2 %v4607_v17 }
0x2360   :  { %4689 = vmax.xlane.f32.xlu0 %v4688_v56 }
0x2366   :  { %v4681_v54 = vpop.f32.mrf.mxu2 }
0x2367   :  { %v4685_v15 = vmul.f32 0.25, %v4681_v54 }
0x2369   :  { %v4687_v3 = vadd.f32 %v4685_v15, %v7367_v32 }
0x236b   :  { %v4691_v57 = vsel %vm1414_vm9, %v4687_v3, -inf }
0x236c   :  { %v4600_v47 = vpop.xlane.xlu1 %4599 }
0x236d   :  { %v4602_v52 = vsub.f32 %v4594_v39, %v4600_v47 }
0x236f   :  { %v4605_v13 = vmul.f32 1.442695, %v4602_v52 }
0x2371   :  { %6801 = vpow2.f32 %v4605_v13 }
0x2372   :  { %4753 = vrot.lane.b32.xlu2 %v8955_v36, %s6906_s28 }
0x2377   :  { %v6802_v19 = vpop.eup %6801 }
0x2378   :  { %v4610_v60 = vsel %vm1414_vm9, %v6802_v19, 0.0 }
0x2379   :  { %4611 = vadd.xlane.f32.xlu1 %v4610_v60 }
0x2396   :  { %v4849_v25 = vpop.permute.xlu0 %4848 }
0x2397   :  { %6323 = vmatpush.xpose.msk.msra.mxu2 %vm837_vm4, %v4849_v25 }
0x2398   :  { %v4845_v51 = vpop.permute.xlu1 %4844 }
0x239a   :  { %6324 = vmatmul.msk.f32.vlgmr.msra.gmra.mxu2 %vm837_vm4, %v4845_v51 }
0x239b   :  { %4692 = vmax.xlane.f32.xlu2 %v4691_v57 }
0x23a0   :  { %v4847_v46 = vpop.permute.xlu0 %4846 }
0x23a2   :  { %6325 = vmatmul.msk.f32.gmra.mxu2 %vm837_vm4, %v4847_v46 }
0x23a8   :  { %v4618_v21 = vpop.permute.xlu0 %4617 }
0x23a9   :  { %4641 = vmatpush.msra.mxu0 %v4618_v21 }
0x23cd   :  { %v4609_v31 = vpop.xlane.xlu2 %4608 }
0x23ce   :  { %6803 = vrcp.f32 %v4609_v31 }
0x23d3   :  { %v4690_v1 = vpop.xlane.xlu0 %4689 }
0x23d4   :  { %v6804_v10 = vpop.eup %6803  ;;  %v4694_v9 = vsub.f32 %v4686_v20, %v4690_v1 }
0x23d5   :  { %v4615_v28 = vmul.f32 %v6804_v10, %v6800_v53  ;;  %v4754_v29 = vpop.permute.xlu2 %4753 }
0x23d6   :  { %v4696_v6 = vmul.f32 1.442695, %v4694_v9  ;;  %6318 = vmatpush.xpose.msk.msrb.mxu0 %vm837_vm4, %v4754_v29 }
0x23d7   :  { %6311 = vmatmul.msk.f32.vlgmr.msra.gmra.mxu0 %vm1414_vm9, %v4615_v28 }
0x23d8   :  { %6805 = vpow2.f32 %v4696_v6 }
0x23de   :  { %v6806_v35 = vpop.eup %6805 }
0x23df   :  { %v4700_v63 = vsel %vm1414_vm9, %v6806_v35, 0.0 }
0x23e0   :  { %4701 = vadd.xlane.f32.xlu0 %v4700_v63  ;;  %v9024_v63 = vpack.i.bf16 %v8907_v30, %v8929_v37 }
0x23ec   :  { %v4612_v5 = vpop.xlane.xlu1 %4611 }
0x23ed   :  { %6807 = vrcp.f32 %v4612_v5 }
0x23f3   :  { %v6808_v16 = vpop.eup %6807 }
0x23f4   :  { %v4616_v11 = vmul.f32 %v6808_v16, %v6802_v19 }
0x23f6   :  { %6312 = vmatmul.msk.f32.gmra.mxu0 %vm1414_vm9, %v4616_v11 }
0x23fe   :  { %6319 = vmatmul.msk.f32.vlgmr.msrb.gmra.mxu0 %vm837_vm4, %v8959_v7 }
0x2406   :  { %6320 = vmatmul.msk.f32.gmra.mxu0 %vm837_vm4, %v8963_v48 }
0x240e   :  { %v4693_v12 = vpop.xlane.xlu2 %4692 }
0x240f   :  { %v4695_v62 = vsub.f32 %v4687_v3, %v4693_v12 }
0x2411   :  { %v4698_v42 = vmul.f32 1.442695, %v4695_v62 }
0x2413   :  { %6809 = vpow2.f32 %v4698_v42 }
0x2419   :  { %v6810_v61 = vpop.eup %6809 }
0x241a   :  { %v4703_v22 = vsel %vm1414_vm9, %v6810_v61, 0.0 }
0x241b   :  { %4704 = vadd.xlane.f32.xlu0 %v4703_v22 }
0x241d   :  { %v4873_v23 = vpop.f32.mrf.mxu2 }
0x241e   :  { %v4879_v14 = vmul.f32 0.25, %v4873_v23 }
0x2420   :  { %v4881_v58 = vadd.f32 %v4879_v14, %v7367_v32 }
0x2422   :  { %v4883_v43 = vsel %vm1414_vm9, %v4881_v58, -inf }
0x2423   :  { %4884 = vmax.xlane.f32.xlu1 %v4883_v43 }
0x2425   :  { %v4876_v0 = vpop.f32.mrf.mxu2 }
0x2426   :  { %v4880_v33 = vmul.f32 0.25, %v4876_v0 }
0x2428   :  { %v4882_v59 = vadd.f32 %v4880_v33, %v7367_v32 }
0x242a   :  { %v4886_v24 = vsel %vm1414_vm9, %v4882_v59, -inf }
0x242b   :  { %4887 = vmax.xlane.f32.xlu1 %v4886_v24 }
0x2444   :  { %4710 = vrot.lane.b32.xlu1 %v8903_v4, %s6910_s3 }
0x2453   :  { %v4702_v54 = vpop.xlane.xlu0 %4701 }
0x2454   :  { %v8995_v39 = vpop.f32.mrf.mxu0 }
0x2473   :  { %v8997_v45 = vpop.f32.mrf.mxu0 }
0x247b   :  { %v4780_v55 = vpop.f32.mrf.mxu0 }
0x247c   :  { %v4786_v26 = vmul.f32 0.25, %v4780_v55 }
0x247e   :  { %v4788_v34 = vadd.f32 %v4786_v26, %v7367_v32 }
0x2480   :  { %v4790_v49 = vsel %vm1414_vm9, %v4788_v34, -inf }
0x2481   :  { %4791 = vmax.xlane.f32.xlu1 %v4790_v49 }
0x2483   :  { %v4783_v19 = vpop.f32.mrf.mxu0 }
0x2484   :  { %v4787_v15 = vmul.f32 0.25, %v4783_v19 }
0x2486   :  { %v4789_v25 = vadd.f32 %v4787_v15, %v7367_v32 }
0x2488   :  { %v4793_v57 = vsel %vm1414_vm9, %v4789_v25, -inf }
0x248e   :  { %v4705_v51 = vpop.xlane.xlu0 %4704 }
0x2496   :  { %v4885_v41 = vpop.xlane.xlu1 %4884 }
0x2497   :  { %v4889_v53 = vsub.f32 %v4881_v58, %v4885_v41 }
0x2499   :  { %v4891_v17 = vmul.f32 1.442695, %v4889_v53 }
0x249a   :  { %5069 = vrot.lane.b32.xlu1 %v8907_v30, %s6909_s20 }
0x249b   :  { %6811 = vpow2.f32 %v4891_v17 }
0x249e   :  { %v4888_v20 = vpop.xlane.xlu1 %4887 }
0x249f   :  { %v4890_v56 = vsub.f32 %v4882_v59, %v4888_v20 }
0x24a1   :  { %v6812_v47 = vpop.eup %6811  ;;  %v4893_v52 = vmul.f32 1.442695, %v4890_v56 }
0x24a2   :  { %5067 = vrot.lane.b32.xlu1 %v8903_v4, %s6908_s19  ;;  %v4895_v13 = vsel %vm1414_vm9, %v6812_v47, 0.0 }
0x24a3   :  { %6813 = vpow2.f32 %v4893_v52  ;;  %4896 = vadd.xlane.f32.xlu2 %v4895_v13 }
0x24a4   :  { %6815 = vrcp.f32 %v4702_v54 }
0x24a5   :  { %6817 = vrcp.f32 %v4705_v51 }
0x24a9   :  { %v6814_v60 = vpop.eup %6813 }
0x24aa   :  { %v4898_v3 = vsel %vm1414_vm9, %v6814_v60, 0.0  ;;  %v6816_v46 = vpop.eup %6815 }
0x24ab   :  { %4899 = vadd.xlane.f32.xlu0 %v4898_v3  ;;  %v4708_v21 = vmul.f32 %v6816_v46, %v6806_v35  ;;  %v6818_v1 = vpop.eup %6817 }
0x24ac   :  { %v4709_v10 = vmul.f32 %v6818_v1, %v6810_v61 }
0x24b3   :  { %4794 = vmax.xlane.f32.xlu0 %v4793_v57 }
0x24b6   :  { %v4711_v31 = vpop.permute.xlu1 %4710 }
0x24b7   :  { %4734 = vmatpush.msrb.mxu3 %v4711_v31 }
0x24b8   :  { %6316 = vmatmul.msk.f32.vlgmr.msrb.gmra.mxu3 %vm1414_vm9, %v4708_v21 }
0x24bb   :  { %4905 = vrot.lane.b32.xlu2 %v8955_v36, %s6910_s3 }
0x24c0   :  { %6317 = vmatmul.msk.f32.gmra.mxu3 %vm1414_vm9, %v4709_v10 }
0x24c7   :  { %5071 = vrot.lane.b32.xlu0 %v8929_v37, %s6909_s20 }
0x24cf   :  { %4812 = vrot.lane.b32.xlu0 %v8955_v36, %s6907_s30 }
0x24d7   :  { %4997 = vrot.lane.b32.xlu0 %v8929_v37, %s6906_s28 }
0x24df   :  { %4995 = vrot.lane.b32.xlu0 %v8907_v30, %s6906_s28 }
0x24f4   :  { %v4792_v32 = vpop.xlane.xlu1 %4791 }
0x24f5   :  { %v4796_v9 = vsub.f32 %v4788_v34, %v4792_v32 }
0x24f7   :  { %v4798_v28 = vmul.f32 1.442695, %v4796_v9 }
0x24f9   :  { %6819 = vpow2.f32 %v4798_v28 }
0x24ff   :  { %v6820_v29 = vpop.eup %6819 }
0x2500   :  { %v4802_v6 = vsel %vm1414_vm9, %v6820_v29, 0.0 }
0x2501   :  { %4803 = vadd.xlane.f32.xlu2 %v4802_v6 }
0x250c   :  { %v5070_v14 = vpop.permute.xlu1 %5069 }
0x2514   :  { %v5068_v43 = vpop.permute.xlu1 %5067 }
0x2516   :  { %v4897_v35 = vpop.xlane.xlu2 %4896 }
0x2517   :  { %6821 = vrcp.f32 %v4897_v35 }
0x2519   :  { %6481 = vrot.lane.b32.xlu2 %v9024_v63, %s6910_s3 }
0x251d   :  { %v6822_v5 = vpop.eup %6821 }
0x251e   :  { %v4903_v16 = vmul.f32 %v6822_v5, %v6812_v47  ;;  %v4906_v11 = vpop.permute.xlu2 %4905  ;;  %v4900_v12 = vpop.xlane.xlu0 %4899 }
0x251f   :  { %6823 = vrcp.f32 %v4900_v12  ;;  %4929 = vmatpush.msra.mxu3 %v4906_v11 }
0x2520   :  { %6326 = vmatmul.msk.f32.vlgmr.msra.gmra.mxu3 %vm1414_vm9, %v4903_v16 }
0x2525   :  { %v6824_v62 = vpop.eup %6823 }
0x2526   :  { %v4795_v42 = vpop.xlane.xlu0 %4794  ;;  %v4904_v61 = vmul.f32 %v6824_v62, %v6814_v60 }
0x2527   :  { %v4797_v22 = vsub.f32 %v4789_v25, %v4795_v42 }
0x2528   :  { %6327 = vmatmul.msk.f32.gmra.mxu3 %vm1414_vm9, %v4904_v61 }
0x2529   :  { %v4800_v23 = vmul.f32 1.442695, %v4797_v22 }
0x252b   :  { %6825 = vpow2.f32 %v4800_v23 }
0x2531   :  { %v6826_v30 = vpop.eup %6825 }
0x2532   :  { %v4805_v37 = vsel %vm1414_vm9, %v6826_v30, 0.0 }
0x2533   :  { %4806 = vadd.xlane.f32.xlu1 %v4805_v37 }
0x2539   :  { %v5072_v58 = vpop.permute.xlu0 %5071 }
0x253a   :  { %6340 = vmatpush.xpose.msk.msrb.mxu3 %vm837_vm4, %v5072_v58 }
0x253b   :  { %v9037_v53 = vpop.f32.mrf.mxu3 }
0x253e   :  { %6341 = vmatpush.xpose.msk.msrb.mxu3 %vm837_vm4, %v5070_v14 }
0x2541   :  { %v4813_v0 = vpop.permute.xlu0 %4812  ;;  %6342 = vmatmul.msk.f32.vlgmr.msrb.gmra.mxu3 %vm837_vm4, %v5068_v43 }
0x2542   :  { %4836 = vmatpush.msra.mxu1 %v4813_v0 }
0x2543   :  { %v9039_v20 = vpop.f32.mrf.mxu3 }
0x2549   :  { %v4998_v33 = vpop.permute.xlu0 %4997 }
0x254a   :  { %6336 = vmatpush.xpose.msk.msrb.mxu1 %vm837_vm4, %v4998_v33 }
0x2551   :  { %v4996_v59 = vpop.permute.xlu0 %4995 }
0x2552   :  { %6337 = vmatpush.xpose.msk.msrb.mxu1 %vm837_vm4, %v4996_v59 }
0x2574   :  { %v4804_v24 = vpop.xlane.xlu2 %4803 }
0x2575   :  { %6827 = vrcp.f32 %v4804_v24 }
0x257b   :  { %v6828_v55 = vpop.eup %6827 }
0x257c   :  { %v4810_v26 = vmul.f32 %v6828_v55, %v6820_v29  ;;  %v6482_v34 = vpop.permute.xlu2 %6481 }
0x257d   :  { %v6483_v49 = vunpack.i.l.bf16 %v6482_v34  ;;  %v6484_v41 = vunpack.i.h.bf16 %v6482_v34 }
0x257e   :  { %6321 = vmatmul.msk.f32.vlgmr.msra.gmra.mxu1 %vm1414_vm9, %v4810_v26 }
0x257f   :  { %5135 = vmatpush.msra.mxu1 %v6483_v49 }
0x2581   :  { %5136 = vmatpush.msra.mxu1 %v6484_v41 }
0x25a3   :  { %v9042_v52 = vpop.f32.mrf.mxu3 }
0x25a6   :  { %v4807_v17 = vpop.xlane.xlu1 %4806 }
0x25a7   :  { %6829 = vrcp.f32 %v4807_v17 }
0x25ab   :  { %v9046_v13 = vpop.f32.mrf.mxu3 }
0x25ad   :  { %v6830_v56 = vpop.eup %6829 }
0x25ae   :  { %v4811_v47 = vmul.f32 %v6830_v56, %v6826_v30 }
0x25b0   :  { %6322 = vmatmul.msk.f32.gmra.mxu1 %vm1414_vm9, %v4811_v47  ;;  %v6495_v47 = vpack.i.bf16 %v8959_v7, %v8963_v48 }
0x25b8   :  { %6338 = vmatmul.msk.f32.vlgmr.msrb.gmra.mxu1 %vm837_vm4, %v8903_v4 }
0x25c4   :  { %v5096_v19 = vpop.f32.mrf.mxu3 }
0x25c5   :  { %v5099_v60 = vmul.f32 0.25, %v5096_v19 }
0x25c7   :  { %v5100_v54 = vadd.f32 %v5099_v60, %v7573_v2 }
0x25c9   :  { %v5101_v15 = vsel %vm837_vm4, %v5100_v54, -inf }
0x25ca   :  { %5102 = vmax.xlane.f32.xlu0 %v5101_v15 }
0x25de   :  { %5220 = vrot.lane.b32.xlu0 %v8959_v7, %s6909_s20 }
0x25e6   :  { %5146 = vrot.lane.b32.xlu0 %v8959_v7, %s6906_s28  ;;  %v6330_v7 = vld [vmem:[%s9509_s10 + $0xd0] sm:$0xff] }
0x25fb   :  { %v9054_v3 = vpop.f32.mrf.mxu1 }
0x262d   :  { %v9056_v25 = vpop.f32.mrf.mxu1 }
0x2635   :  { %v5022_v4 = vpop.f32.mrf.mxu1 }
0x2636   :  { %v5025_v51 = vmul.f32 0.25, %v5022_v4 }
0x2638   :  { %v5026_v57 = vadd.f32 %v5025_v51, %v7573_v2 }
0x263a   :  { %v5027_v46 = vsel %vm837_vm4, %v5026_v57, -inf }
0x263b   :  { %5028 = vmax.xlane.f32.xlu2 %v5027_v46 }
0x263d   :  { %v5103_v21 = vpop.xlane.xlu0 %5102 }
0x263e   :  { %v5104_v31 = vsub.f32 %v5100_v54, %v5103_v21 }
0x2640   :  { %v5105_v1 = vmul.f32 1.442695, %v5104_v31 }
0x2642   :  { %6831 = vpow2.f32 %v5105_v1 }
0x2648   :  { %v6832_v10 = vpop.eup %6831 }
0x2649   :  { %v5107_v32 = vsel %vm837_vm4, %v6832_v10, 0.0 }
0x264a   :  { %5108 = vadd.xlane.f32.xlu1 %v5107_v32 }
0x2653   :  { %5218 = vrot.lane.b32.xlu2 %v8955_v36, %s6908_s19 }
0x265b   :  { %6486 = vrot.lane.b32.xlu2 %v9024_v63, %s6907_s30  ;;  %v5221_v63 = vpop.permute.xlu0 %5220 }
0x2663   :  { %5222 = vrot.lane.b32.xlu1 %v8963_v48, %s6909_s20  ;;  %5148 = vrot.lane.b32.xlu2 %v8963_v48, %s6906_s28  ;;  %v5147_v23 = vpop.permute.xlu0 %5146  ;;  %v6329_v48 = vld [vmem:[%s9509_s10 + $0xc8] sm:$0xff] }
0x26ae   :  { %v5029_v9 = vpop.xlane.xlu2 %5028 }
0x26af   :  { %v5030_v28 = vsub.f32 %v5026_v57, %v5029_v9 }
0x26b1   :  { %v5031_v29 = vmul.f32 1.442695, %v5030_v28 }
0x26b3   :  { %6833 = vpow2.f32 %v5031_v29 }
0x26b6   :  { %v5219_v6 = vpop.permute.xlu2 %5218 }
0x26b9   :  { %v6834_v35 = vpop.eup %6833 }
0x26ba   :  { %v5033_v5 = vsel %vm837_vm4, %v6834_v35, 0.0 }
0x26bb   :  { %5034 = vadd.xlane.f32.xlu1 %v5033_v5  ;;  %v6353_v5 = vld [vmem:[%s9509_s10 + $0xe8] sm:$0xff] }
0x26bd   :  { %v5109_v16 = vpop.xlane.xlu1 %5108 }
0x26be   :  { %6835 = vrcp.f32 %v5109_v16  ;;  %v6487_v11 = vpop.permute.xlu2 %6486  ;;  %v6352_v16 = vld [vmem:[%s9509_s10 + $0xe0] sm:$0xff] }
0x26bf   :  { %v6488_v12 = vunpack.i.l.bf16 %v6487_v11  ;;  %v6489_v62 = vunpack.i.h.bf16 %v6487_v11 }
0x26c1   :  { %5061 = vmatpush.msrb.mxu2 %v6488_v12 }
0x26c3   :  { %5062 = vmatpush.msrb.mxu2 %v6489_v62 }
0x26c4   :  { %v6836_v42 = vpop.eup %6835 }
0x26c5   :  { %v5111_v61 = vmul.f32 %v6836_v42, %v6832_v10 }
0x26c6   :  { %v5149_v22 = vpop.permute.xlu2 %5148 }
0x26c7   :  { %6343 = vmatmul.msk.f32.vlgmr.msra.gmra.mxu1 %vm837_vm4, %v5111_v61  ;;  %6344 = vmatpush.xpose.msk.msra.mxu2 %vm837_vm4, %v5149_v22  ;;  %v9131_v61 = vld [vmem:[%s9507_s8 + $0x1a] ss:$0 sm:$0xff] }
0x26cb   :  { %6345 = vmatpush.xpose.msk.msra.mxu2 %vm837_vm4, %v5147_v23 }
0x26d5   :  { %v5223_v30 = vpop.permute.xlu1 %5222 }
0x26d6   :  { %6348 = vmatpush.xpose.msk.msrb.mxu1 %vm837_vm4, %v5223_v30 }
0x26da   :  { %6349 = vmatpush.xpose.msk.msrb.mxu1 %vm837_vm4, %v5221_v63 }
0x26dd   :  { %6350 = vmatmul.msk.f32.vlgmr.msrb.gmra.mxu1 %vm837_vm4, %v5219_v6 }
0x272e   :  { %v5035_v37 = vpop.xlane.xlu1 %5034 }
0x272f   :  { %6837 = vrcp.f32 %v5035_v37 }
0x2735   :  { %v6838_v14 = vpop.eup %6837 }
0x2736   :  { %v5037_v58 = vmul.f32 %v6838_v14, %v6834_v35  ;;  %v6355_v35 = vld [vmem:[%s9509_s10 + $0xf8] sm:$0xff] }
0x2738   :  { %6339 = vmatmul.msk.f32.vlgmr.msrb.gmra.mxu2 %vm837_vm4, %v5037_v58 }
0x2740   :  { %6346 = vmatmul.msk.f32.vlgmr.msra.gmra.mxu2 %vm837_vm4, %v8955_v36 }
0x2744   :  { %v5138_v43 = vpop.f32.mrf.mxu1 }
0x275a   :  { %v5247_v0 = vpop.f32.mrf.mxu1 }
0x275b   :  { %v5250_v33 = vmul.f32 0.25, %v5247_v0 }
0x275d   :  { %v5251_v59 = vadd.f32 %v5250_v33, %v7573_v2 }
0x275f   :  { %v5252_v24 = vsel %vm837_vm4, %v5251_v59, -inf }
0x2760   :  { %5253 = vmax.xlane.f32.xlu2 %v5252_v24 }
0x27bb   :  { %v9081_v55 = vpop.f32.mrf.mxu2 }
0x27c3   :  { %v5173_v26 = vpop.f32.mrf.mxu2 }
0x27c4   :  { %v5176_v34 = vmul.f32 0.25, %v5173_v26 }
0x27c6   :  { %v5177_v49 = vadd.f32 %v5176_v34, %v7573_v2  ;;  %v6331_v2 = vld [vmem:[%s9509_s10 + $0xd8] sm:$0xff] }
0x27c7   :  { %4978 = vmatpush.msra.mxu0 %v6331_v2 }
0x27c8   :  { %v5178_v41 = vsel %vm837_vm4, %v5177_v49, -inf }
0x27c9   :  { %5179 = vmax.xlane.f32.xlu0 %v5178_v41  ;;  %4979 = vmatpush.msra.mxu0 %v6330_v7 }
0x27cb   :  { %4980 = vmatpush.msra.mxu0 %v6329_v48 }
0x27d3   :  { %v5254_v17 = vpop.xlane.xlu2 %5253 }
0x27d4   :  { %v5255_v56 = vsub.f32 %v5251_v59, %v5254_v17 }
0x27d6   :  { %v5256_v36 = vmul.f32 1.442695, %v5255_v56 }
0x27d8   :  { %6839 = vpow2.f32 %v5256_v36 }
0x27dd   :  { %6496 = vrot.lane.b32.xlu0 %v6495_v47, %s6907_s30 }
0x27de   :  { %v6840_v19 = vpop.eup %6839 }
0x27df   :  { %v5258_v60 = vsel %vm837_vm4, %v6840_v19, 0.0 }
0x27e0   :  { %5259 = vadd.xlane.f32.xlu1 %v5258_v60 }
0x27e5   :  { %4744 = vrot.lane.b32.xlu0 %v9037_v53, %s6911_s1  ;;  %v6328_v53 = vld [vmem:[%s9509_s10 + $0xc0] sm:$0xff] }
0x27e6   :  { %4981 = vmatpush.msra.mxu0 %v6328_v53 }
0x27ed   :  { %4939 = vrot.lane.b32.xlu0 %v9042_v52, %s6911_s1 }
0x27f9   :  { %6491 = vrot.lane.b32.xlu1 %v6495_v47, %s6910_s3 }
0x283c   :  { %v5180_v52 = vpop.xlane.xlu0 %5179 }
0x283d   :  { %v5181_v54 = vsub.f32 %v5177_v49, %v5180_v52 }
0x283f   :  { %v5182_v15 = vmul.f32 1.442695, %v5181_v54 }
0x2841   :  { %6841 = vpow2.f32 %v5182_v15 }
0x2847   :  { %v6842_v4 = vpop.eup %6841 }
0x2848   :  { %v5184_v51 = vsel %vm837_vm4, %v6842_v4, 0.0 }
0x2849   :  { %5185 = vadd.xlane.f32.xlu2 %v5184_v51 }
0x284f   :  { %v6497_v57 = vpop.permute.xlu0 %6496 }
0x2850   :  { %v6498_v46 = vunpack.i.l.bf16 %v6497_v57  ;;  %v6499_v21 = vunpack.i.h.bf16 %v6497_v57 }
0x2852   :  { %5212 = vmatpush.msra.mxu3 %v6498_v46  ;;  %v6384_v46 = vld [vmem:[%s9510_s11 + $0x70] sm:$0xff] }
0x2853   :  { %v5260_v10 = vpop.xlane.xlu1 %5259 }
0x2854   :  { %5213 = vmatpush.msra.mxu3 %v6499_v21  ;;  %6843 = vrcp.f32 %v5260_v10  ;;  %v6383_v21 = vld [vmem:[%s9510_s11 + $0x68] sm:$0xff] }
0x2856   :  { %5322 = vmatpush.msrb.mxu3 %v6355_v35 }
0x2857   :  { %v4745_v31 = vpop.permute.xlu0 %4744 }
0x2858   :  { %v4750_v1 = vsel %vm837_vm4, %v8995_v39, %v4745_v31  ;;  %v6354_v39 = vld [vmem:[%s9509_s10 + $0xf0] sm:$0xff]  ;;  %v6382_v31 = vld [vmem:[%s9510_s11 + $0x60] sm:$0xff] }
0x2859   :  { %6332 = vmatmul.msk.f32.vlgmr.msra.gmra.mxu0 %vm412_vm10, %v4750_v1  ;;  %5323 = vmatpush.msrb.mxu3 %v6354_v39  ;;  %v9200_v39 = vld [vmem:[%s9507_s8 + $0x27] ss:$0 sm:$0xff] }
0x285a   :  { %v6844_v9 = vpop.eup %6843 }
0x285b   :  { %v5262_v6 = vmul.f32 %v6844_v9, %v6840_v19  ;;  %5324 = vmatpush.msrb.mxu3 %v6353_v5 }
0x285d   :  { %5325 = vmatpush.msrb.mxu3 %v6352_v16  ;;  %v9205_v16 = vld [vmem:[%s9507_s8 + $0x28] ss:$0 sm:$0xff] }
0x285f   :  { %v4940_v34 = vpop.permute.xlu0 %4939 }
0x2861   :  { %5142 = vrot.lane.b32.xlu2 %v5138_v43, %s6911_s1  ;;  %v6539_v43 = vld [vmem:[%s9507_s8 + $0x1d] ss:$0 sm:$0xff] }
0x286b   :  { %v6492_v32 = vpop.permute.xlu1 %6491 }
0x286c   :  { %v6493_v28 = vunpack.i.l.bf16 %v6492_v32  ;;  %v6494_v29 = vunpack.i.h.bf16 %v6492_v32 }
0x286e   :  { %5286 = vmatpush.msrb.mxu2 %v6493_v28 }
0x2870   :  { %5287 = vmatpush.msrb.mxu2 %v6494_v29 }
0x2871   :  { %6351 = vmatmul.msk.f32.vlgmr.msrb.gmra.mxu2 %vm837_vm4, %v5262_v6 }
0x28bc   :  { %v5186_v11 = vpop.xlane.xlu2 %5185 }
0x28bd   :  { %6845 = vrcp.f32 %v5186_v11 }
0x28c3   :  { %v6846_v12 = vpop.eup %6845 }
0x28c4   :  { %v5188_v63 = vmul.f32 %v6846_v12, %v6842_v4  ;;  %v5143_v62 = vpop.permute.xlu2 %5142 }
0x28c5   :  { %v5145_v42 = vsel %vm837_vm4, %v9081_v55, %v5143_v62 }
0x28c6   :  { %6347 = vmatmul.msk.f32.vlgmr.msra.gmra.mxu3 %vm837_vm4, %v5188_v63 }
0x28ce   :  { %6356 = vmatmul.msk.f32.vlgmr.msrb.gmra.mxu3 %vm412_vm10, %v5145_v42 }
0x28d6   :  { %v4983_v22 = vpop.f32.mrf.mxu0 }
0x28d7   :  { %v4984_v23 = vadd.f32 %v9131_v61, %v4983_v22 }
0x28d9   :  { %v9135_v30 = vadd.f32 %v4984_v23, %v8777_v40 }
0x28db   :  { %v5341_v37 = vsel %vm412_vm10, %v9135_v30, 0.0 }
0x28dc   :  { %5342 = vadd.xlane.f32.xlu0 %v5341_v37 }
0x28f4   :  { %v5289_v14 = vpop.f32.mrf.mxu2 }
0x28f5   :  { %5293 = vrot.lane.b32.xlu1 %v5289_v14, %s6911_s1 }
0x28fd   :  { %4746 = vrot.lane.b32.xlu1 %v9039_v20, %s6911_s1 }
0x2949   :  { %v5215_v58 = vpop.f32.mrf.mxu3 }
0x294f   :  { %v5343_v53 = vpop.xlane.xlu0 %5342 }
0x2950   :  { %v5353_v54 = vmul.f32 %v5343_v53, %v7330_v8 }
0x2951   :  { %v5327_v0 = vpop.f32.mrf.mxu3 }
0x2952   :  { %v5328_v33 = vadd.f32 %v6539_v43, %v5327_v0  ;;  %v9175_v4 = vsub.f32 %v9135_v30, %v5353_v54 }
0x2954   :  { %v9146_v40 = vadd.f32 %v5328_v33, %v8792_v50  ;;  %v4945_v50 = vsel %vm837_vm4, %v9054_v3, %v4940_v34  ;;  %v5361_v51 = vmul.f32 %v9175_v4, %v9175_v4  ;;  %v6361_v33 = vld [vmem:[%s9510_s11 + $0x58] sm:$0xff] }
0x2955   :  { %5470 = vmatpush.msra.mxu1 %v6361_v33 }
0x2956   :  { %v5717_v59 = vsel %vm412_vm10, %v9146_v40, 0.0  ;;  %v5365_v57 = vsel %vm412_vm10, %v5361_v51, 0.0 }
0x2957   :  { %5718 = vadd.xlane.f32.xlu1 %v5717_v59 }
0x2967   :  { %v5294_v24 = vpop.permute.xlu1 %5293 }
0x2968   :  { %v5296_v55 = vsel %vm837_vm4, %v5215_v58, %v5294_v24 }
0x2969   :  { %6357 = vmatmul.msk.f32.gmra.mxu3 %vm412_vm10, %v5296_v55  ;;  %v6360_v55 = vld [vmem:[%s9510_s11 + $0x50] sm:$0xff] }
0x296a   :  { %5471 = vmatpush.msra.mxu1 %v6360_v55 }
0x296f   :  { %v4747_v20 = vpop.permute.xlu1 %4746 }
0x2970   :  { %v4751_v26 = vsel %vm837_vm4, %v8997_v45, %v4747_v20 }
0x2971   :  { %6333 = vmatmul.msk.f32.gmra.mxu0 %vm412_vm10, %v4751_v26  ;;  %v6359_v26 = vld [vmem:[%s9510_s11 + $0x48] sm:$0xff] }
0x2972   :  { %5472 = vmatpush.msra.mxu1 %v6359_v26 }
0x2979   :  { %6334 = vmatmul.msk.f32.gmra.mxu0 %vm412_vm10, %v4945_v50  ;;  %v6358_v50 = vld [vmem:[%s9510_s11 + $0x40] sm:$0xff] }
0x297a   :  { %5473 = vmatpush.msra.mxu1 %v6358_v50  ;;  %v6394_v50 = vld [vmem:[%s9511_s12 + $0xe0] sm:$0xff] }
0x29ca   :  { %v5719_v49 = vpop.xlane.xlu1 %5718 }
0x29cb   :  { %v5723_v41 = vmul.f32 %v5719_v49, %v7330_v8 }
0x29cd   :  { %v5725_v17 = vsub.f32 %v9146_v40, %v5723_v41 }
0x29cf   :  { %v5727_v56 = vmul.f32 %v5725_v17, %v5725_v17 }
0x29d1   :  { %v5729_v36 = vsel %vm412_vm10, %v5727_v56, 0.0 }
0x29d2   :  { %5730 = vadd.xlane.f32.xlu0 %v5729_v36 }
0x29ec   :  { %v5330_v47 = vpop.f32.mrf.mxu3 }
0x29ed   :  { %v5331_v19 = vadd.f32 %v6539_v43, %v5330_v47 }
0x29ee   :  { %v4986_v45 = vpop.f32.mrf.mxu0 }
0x29ef   :  { %v9162_v60 = vadd.f32 %v5331_v19, %v8888_v44  ;;  %v4987_v2 = vadd.f32 %v9131_v61, %v4986_v45 }
0x29f1   :  { %v5334_v3 = vadd.f32 %v4987_v2, %v8810_v27  ;;  %v5720_v7 = vsel %vm412_vm10, %v9162_v60, 0.0 }
0x29f2   :  { %5721 = vadd.xlane.f32.xlu2 %v5720_v7 }
0x29f3   :  { %v5344_v48 = vsel %vm412_vm10, %v5334_v3, 0.0 }
0x29f4   :  { %5345 = vadd.xlane.f32.xlu1 %v5344_v48 }
0x29f6   :  { %v4989_v52 = vpop.f32.mrf.mxu0 }
0x29f7   :  { %v4990_v15 = vadd.f32 %v9131_v61, %v4989_v52  ;;  %v9249_v52 = vld [vmem:[%s9507_s8 + $0x24] ss:$0 sm:$0xff] }
0x29f9   :  { %v9172_v44 = vadd.f32 %v4990_v15, %v8800_v38  ;;  %v6385_v38 = vld [vmem:[%s9510_s11 + $0x78] sm:$0xff] }
0x29fa   :  { %5792 = vmatpush.msra.mxu2 %v6385_v38 }
0x29fb   :  { %v5347_v27 = vsel %vm412_vm10, %v9172_v44, 0.0 }
0x29fc   :  { %5348 = vadd.xlane.f32.xlu2 %v5347_v27  ;;  %5793 = vmatpush.msra.mxu2 %v6384_v46 }
0x29fe   :  { %5794 = vmatpush.msra.mxu2 %v6383_v21  ;;  %v9264_v21 = vld [vmem:[%s9512_s13 + $0x3] ss:$0 sm:$0xff] }
0x2a00   :  { %5795 = vmatpush.msra.mxu2 %v6382_v31 }
0x2a04   :  { %5366 = vadd.xlane.f32.xlu2 %v5365_v57 }
0x2a1c   :  { %4941 = vrot.lane.b32.xlu2 %v9046_v13, %s6911_s1 }
0x2a45   :  { %v5731_v13 = vpop.xlane.xlu0 %5730 }
0x2a46   :  { %v5735_v1 = vmul.f32 %v5731_v13, %v7330_v8 }
0x2a48   :  { %v5737_v10 = vadd.f32 1e-05, %v5735_v1 }
0x2a4a   :  { %6847 = vrsqrt.f32 %v5737_v10  ;;  %vm5745_vm13 = vweird.f32 %v5737_v10 }
0x2a50   :  { %v6848_v32 = vpop.eup %6847 }
0x2a51   :  { %v5740_v9 = vmul.f32 %v6848_v32, %v5737_v10  ;;  %vm5746_vm9 = vweird.f32 %v6848_v32 }
0x2a52   :  { %vm5747_vm14 = vmor %vm5745_vm13, %vm5746_vm9 }
0x2a53   :  { %v5741_v28 = vmul.f32 %v6848_v32, %v5740_v9 }
0x2a55   :  { %v5742_v29 = vmul.f32 0.5, %v5741_v28 }
0x2a57   :  { %v5743_v6 = vsub.f32 1.5, %v5742_v29 }
0x2a59   :  { %v5744_v35 = vmul.f32 %v6848_v32, %v5743_v6 }
0x2a5b   :  { %v5748_v5 = vsel %vm5747_vm14, %v6848_v32, %v5744_v35 }
0x2a5c   :  { %v5759_v11 = vmul.f32 %v5748_v5, %v5725_v17 }
0x2a5e   :  { %v5762_v12 = vmul.f32 %v9200_v39, %v5759_v11  ;;  %v6397_v11 = vld [vmem:[%s9511_s12 + $0xf8] sm:$0xff] }
0x2a5f   :  { %5916 = vmatpush.msra.mxu3 %v6397_v11 }
0x2a60   :  { %v5765_v63 = vadd.f32 %v9205_v16, %v5762_v12 }
0x2a62   :  { %6386 = vmatmul.msk.f32.vlgmr.msra.gmra.mxu2 %vm412_vm10, %v5765_v63 }
0x2a65   :  { %v5722_v62 = vpop.xlane.xlu2 %5721 }
0x2a66   :  { %v5724_v42 = vmul.f32 %v5722_v62, %v7330_v8 }
0x2a67   :  { %v5346_v22 = vpop.xlane.xlu1 %5345 }
0x2a68   :  { %v9212_v23 = vsub.f32 %v9162_v60, %v5724_v42  ;;  %v5354_v37 = vmul.f32 %v5346_v22, %v7330_v8 }
0x2a6a   :  { %v9215_v14 = vsub.f32 %v5334_v3, %v5354_v37  ;;  %v5728_v58 = vmul.f32 %v9212_v23, %v9212_v23  ;;  %v6396_v37 = vld [vmem:[%s9511_s12 + $0xf0] sm:$0xff] }
0x2a6b   :  { %5917 = vmatpush.msra.mxu3 %v6396_v37 }
0x2a6c   :  { %v5732_v43 = vsel %vm412_vm10, %v5728_v58, 0.0  ;;  %v5362_v0 = vmul.f32 %v9215_v14, %v9215_v14 }
0x2a6d   :  { %5733 = vadd.xlane.f32.xlu1 %v5732_v43 }
0x2a6e   :  { %v5368_v59 = vsel %vm412_vm10, %v5362_v0, 0.0 }
0x2a6f   :  { %v5349_v24 = vpop.xlane.xlu2 %5348  ;;  %5369 = vadd.xlane.f32.xlu0 %v5368_v59  ;;  %v6395_v59 = vld [vmem:[%s9511_s12 + $0xe8] sm:$0xff] }
0x2a70   :  { %v5355_v20 = vmul.f32 %v5349_v24, %v7330_v8  ;;  %5918 = vmatpush.msra.mxu3 %v6395_v59 }
0x2a72   :  { %v9234_v34 = vsub.f32 %v9172_v44, %v5355_v20  ;;  %5919 = vmatpush.msra.mxu3 %v6394_v50 }
0x2a74   :  { %v5363_v49 = vmul.f32 %v9234_v34, %v9234_v34 }
0x2a76   :  { %v5371_v41 = vsel %vm412_vm10, %v5363_v49, 0.0 }
0x2a77   :  { %v5367_v17 = vpop.xlane.xlu2 %5366  ;;  %5372 = vadd.xlane.f32.xlu1 %v5371_v41 }
0x2a78   :  { %v5377_v56 = vmul.f32 %v5367_v17, %v7330_v8 }
0x2a7a   :  { %v5381_v36 = vadd.f32 1e-05, %v5377_v56  ;;  %v6393_v56 = vld [vmem:[%s9511_s12 + $0xd8] sm:$0xff] }
0x2a7b   :  { %5920 = vmatpush.msra.mxu3 %v6393_v56 }
0x2a7c   :  { %6849 = vrsqrt.f32 %v5381_v36  ;;  %vm5391_vm0 = vweird.f32 %v5381_v36 }
0x2a7f   :  { %v4942_v47 = vpop.permute.xlu2 %4941 }
0x2a80   :  { %v4946_v19 = vsel %vm837_vm4, %v9056_v25, %v4942_v47  ;;  %v9254_v25 = vld [vmem:[%s9507_s8 + $0x25] ss:$0 sm:$0xff] }
0x2a81   :  { %6335 = vmatmul.msk.f32.gmra.mxu0 %vm412_vm10, %v4946_v19 }
0x2a82   :  { %v6850_v45 = vpop.eup %6849 }
0x2a83   :  { %v5386_v2 = vmul.f32 %v6850_v45, %v5381_v36  ;;  %vm5392_vm15 = vweird.f32 %v6850_v45 }
0x2a84   :  { %vm5393_vm2 = vmor %vm5391_vm0, %vm5392_vm15 }
0x2a85   :  { %v5387_v3 = vmul.f32 %v6850_v45, %v5386_v2 }
0x2a87   :  { %v5388_v7 = vmul.f32 0.5, %v5387_v3 }
0x2a89   :  { %v5389_v48 = vsub.f32 1.5, %v5388_v7  ;;  %v6392_v7 = vld [vmem:[%s9511_s12 + $0xd0] sm:$0xff] }
0x2a8a   :  { %5921 = vmatpush.msra.mxu3 %v6392_v7 }
0x2a8b   :  { %v5390_v53 = vmul.f32 %v6850_v45, %v5389_v48 }
0x2a8d   :  { %v5394_v54 = vsel %vm5393_vm2, %v6850_v45, %v5390_v53 }
0x2a8e   :  { %v5425_v15 = vmul.f32 %v5394_v54, %v9175_v4 }
0x2a90   :  { %v5430_v27 = vmul.f32 %v9249_v52, %v5425_v15 }
0x2a92   :  { %v5435_v51 = vadd.f32 %v9254_v25, %v5430_v27  ;;  %v6391_v27 = vld [vmem:[%s9511_s12 + $0xc8] sm:$0xff] }
0x2a93   :  { %5922 = vmatpush.msra.mxu3 %v6391_v27 }
0x2a94   :  { %6362 = vmatmul.msk.f32.vlgmr.msra.gmra.mxu1 %vm412_vm10, %v5435_v51 }
0x2ae0   :  { %v5734_v57 = vpop.xlane.xlu1 %5733 }
0x2ae1   :  { %v5736_v38 = vmul.f32 %v5734_v57, %v7330_v8 }
0x2ae2   :  { %v5370_v46 = vpop.xlane.xlu0 %5369 }
0x2ae3   :  { %v5738_v31 = vadd.f32 1e-05, %v5736_v38  ;;  %v5378_v13 = vmul.f32 %v5370_v46, %v7330_v8 }
0x2ae5   :  { %6851 = vrsqrt.f32 %v5738_v31  ;;  %v5382_v4 = vadd.f32 1e-05, %v5378_v13  ;;  %v5797_v1 = vpop.f32.mrf.mxu2  ;;  %vm5755_vm3 = vweird.f32 %v5738_v31 }
0x2ae6   :  { %v9268_v10 = vadd.f32 %v9264_v21, %v5797_v1 }
0x2ae7   :  { %6853 = vrsqrt.f32 %v5382_v4  ;;  %vm5401_vm6 = vweird.f32 %v5382_v4 }
0x2ae8   :  { %v9271_v32 = vmul.f32 0.70710677, %v9268_v10 }
0x2aea   :  { %v5807_v9 = vmul.f32 %v9271_v32, %v9271_v32  ;;  %v5373_v28 = vpop.xlane.xlu1 %5372 }
0x2aeb   :  { %v6852_v29 = vpop.eup %6851  ;;  %v5379_v6 = vmul.f32 %v5373_v28, %v7330_v8 }
0x2aec   :  { %v5750_v35 = vmul.f32 %v6852_v29, %v5738_v31  ;;  %v9276_v5 = vmin.f32 %v5807_v9, 16.0  ;;  %vm5756_vm4 = vweird.f32 %v6852_v29 }
0x2aed   :  { %v6854_v12 = vpop.eup %6853  ;;  %v9281_v63 = vadd.f32 1e-05, %v5379_v6  ;;  %vm5757_vm11 = vmor %vm5755_vm3, %vm5756_vm4 }
0x2aee   :  { %v5751_v62 = vmul.f32 %v6852_v29, %v5750_v35  ;;  %v5396_v42 = vmul.f32 %v6854_v12, %v5382_v4  ;;  %v5809_v22 = vmul.f32 2.1237322e-06, %v9276_v5  ;;  %v5820_v58 = vmul.f32 3.8918573e-05, %v9276_v5 }
0x2aef   :  { %6855 = vrsqrt.f32 %v9281_v63  ;;  %vm5402_vm5 = vweird.f32 %v6854_v12  ;;  %vm5411_vm12 = vweird.f32 %v9281_v63 }
0x2af0   :  { %v5752_v43 = vmul.f32 0.5, %v5751_v62  ;;  %v5397_v0 = vmul.f32 %v6854_v12, %v5396_v42  ;;  %v5810_v33 = vadd.f32 0.00028619796, %v5809_v22  ;;  %v5821_v24 = vadd.f32 0.001143296, %v5820_v58  ;;  %vm5403_vm7 = vmor %vm5401_vm6, %vm5402_vm5 }
0x2af2   :  { %v5753_v55 = vsub.f32 1.5, %v5752_v43  ;;  %v5398_v20 = vmul.f32 0.5, %v5397_v0  ;;  %v5811_v26 = vmul.f32 %v5810_v33, %v9276_v5  ;;  %v5822_v49 = vmul.f32 %v5821_v24, %v9276_v5 }
0x2af4   :  { %v5754_v41 = vmul.f32 %v6852_v29, %v5753_v55  ;;  %v5399_v17 = vsub.f32 1.5, %v5398_v20  ;;  %v5823_v47 = vadd.f32 0.014752088, %v5822_v49  ;;  %v5812_v2 = vadd.f32 0.0036580483, %v5811_v26 }
0x2af5   :  { %v6856_v36 = vpop.eup %6855  ;;  %v9338_v20 = vld [vmem:[%s9512_s13 + $0x2] ss:$0 sm:$0xff] }
0x2af6   :  { %v5758_v19 = vsel %vm5757_vm11, %v6852_v29, %v5754_v41  ;;  %v5400_v45 = vmul.f32 %v6854_v12, %v5399_v17  ;;  %v5406_v3 = vmul.f32 %v6856_v36, %v9281_v63  ;;  %v5824_v53 = vmul.f32 %v5823_v47, %v9276_v5 }
0x2af7   :  { %v5760_v48 = vmul.f32 %v5758_v19, %v9212_v23  ;;  %v5813_v46 = vmul.f32 %v5812_v2, %v9276_v5  ;;  %v6390_v23 = vld [vmem:[%s9511_s12 + $0xc0] sm:$0xff]  ;;  %vm5412_vm8 = vweird.f32 %v6856_v36  ;;  %v5803_v2 = vmul.f32 0.5, %v9268_v10  ;;  %v6375_v10 = vld [vmem:[%s9511_s12 + $0xa8] sm:$0xff] }
0x2af8   :  { %v5404_v54 = vsel %vm5403_vm7, %v6854_v12, %v5400_v45  ;;  %v5407_v15 = vmul.f32 %v6856_v36, %v5406_v3  ;;  %v5825_v57 = vadd.f32 0.112945676, %v5824_v53  ;;  %5923 = vmatpush.msra.mxu3 %v6390_v23  ;;  %vm5413_vm9 = vmor %vm5411_vm12, %vm5412_vm8  ;;  %v6373_v23 = vld [vmem:[%s9511_s12 + $0x98] sm:$0xff] }
0x2af9   :  { %v5426_v51 = vmul.f32 %v5404_v54, %v9215_v14  ;;  %v5763_v38 = vmul.f32 %v9200_v39, %v5760_v48  ;;  %v5814_v28 = vadd.f32 0.05243302, %v5813_v46  ;;  %v6377_v48 = vld [vmem:[%s9511_s12 + $0xb8] sm:$0xff]  ;;  %v6374_v46 = vld [vmem:[%s9511_s12 + $0xa0] sm:$0xff] }
0x2afa   :  { %v5408_v31 = vmul.f32 0.5, %v5407_v15  ;;  %v5826_v13 = vmul.f32 %v5825_v57, %v9276_v5  ;;  %5694 = vmatpush.msrb.mxu0 %v6377_v48  ;;  %v6376_v15 = vld [vmem:[%s9511_s12 + $0xb0] sm:$0xff] }
0x2afb   :  { %v5766_v4 = vadd.f32 %v9205_v16, %v5763_v38  ;;  %v5431_v1 = vmul.f32 %v9249_v52, %v5426_v51  ;;  %v5815_v22 = vmul.f32 %v5814_v28, %v9276_v5  ;;  %v6370_v28 = vld [vmem:[%s9511_s12 + $0x80] sm:$0xff] }
0x2afc   :  { %v5409_v9 = vsub.f32 1.5, %v5408_v31  ;;  %v5827_v14 = vadd.f32 0.4994258, %v5826_v13  ;;  %5695 = vmatpush.msrb.mxu0 %v6376_v15 }
0x2afd   :  { %6387 = vmatmul.msk.f32.gmra.mxu2 %vm412_vm10, %v5766_v4  ;;  %v5436_v39 = vadd.f32 %v9254_v25, %v5431_v1  ;;  %v5816_v58 = vadd.f32 0.18741608, %v5815_v22  ;;  %v6372_v1 = vld [vmem:[%s9511_s12 + $0x90] sm:$0xff] }
0x2afe   :  { %v5410_v29 = vmul.f32 %v6856_v36, %v5409_v9  ;;  %v4992_v6 = vpop.f32.mrf.mxu0  ;;  %v5828_v35 = vmul.f32 %v5827_v14, %v9276_v5  ;;  %5696 = vmatpush.msrb.mxu0 %v6375_v10  ;;  %v6371_v14 = vld [vmem:[%s9511_s12 + $0x88] sm:$0xff] }
0x2aff   :  { %v4993_v16 = vadd.f32 %v9131_v61, %v4992_v6  ;;  %6363 = vmatmul.msk.f32.gmra.mxu1 %vm412_vm10, %v5436_v39 }
0x2b00   :  { %v5414_v11 = vsel %vm5413_vm9, %v6856_v36, %v5410_v29  ;;  %v5829_v12 = vadd.f32 1.0, %v5828_v35  ;;  %5697 = vmatpush.msrb.mxu0 %v6374_v46 }
0x2b01   :  { %v5427_v62 = vmul.f32 %v5414_v11, %v9234_v34  ;;  %v9326_v42 = vadd.f32 %v4993_v16, %v8894_v18  ;;  %v5817_v34 = vmul.f32 %v5816_v58, %v9276_v5 }
0x2b02   :  { %6857 = vrcp.f32 %v5829_v12  ;;  %v5841_v33 = vand.u32 2147483648, %v5829_v12  ;;  %v5839_v55 = vand.u32 2147483647, %v5829_v12  ;;  %vm5835_vm14 = vweird.f32 %v5829_v12  ;;  %5698 = vmatpush.msrb.mxu0 %v6373_v23 }
0x2b03   :  { %v5350_v63 = vsel %vm412_vm10, %v9326_v42, 0.0  ;;  %v5432_v37 = vmul.f32 %v9249_v52, %v5427_v62  ;;  %v5818_v59 = vadd.f32 1.1283791, %v5817_v34 }
0x2b04   :  { %5351 = vadd.xlane.f32.xlu0 %v5350_v63  ;;  %v5842_v50 = vor.u32 1.1754944e-38, %v5841_v33  ;;  %vm5840_vm0 = vcmp.eq.f32.partialorder %v5839_v55, 8.507059e+37  ;;  %5699 = vmatpush.msrb.mxu0 %v6372_v1 }
0x2b05   :  { %v5437_v61 = vadd.f32 %v9254_v25, %v5432_v37  ;;  %v5819_v41 = vmul.f32 %v5818_v59, %v9271_v32 }
0x2b06   :  { %5700 = vmatpush.msrb.mxu0 %v6371_v14 }
0x2b07   :  { %6364 = vmatmul.msk.f32.gmra.mxu1 %vm412_vm10, %v5437_v61 }
0x2b08   :  { %v6858_v43 = vpop.eup %6857  ;;  %5701 = vmatpush.msrb.mxu0 %v6370_v28 }
0x2b09   :  { %v5831_v0 = vmul.f32 %v6858_v43, %v5829_v12  ;;  %vm5836_vm13 = vweird.f32 %v6858_v43 }
0x2b0a   :  { %vm5837_vm15 = vmor %vm5835_vm14, %vm5836_vm13 }
0x2b0b   :  { %v5832_v18 = vsub.f32 1.0, %v5831_v0 }
0x2b0d   :  { %v5833_v24 = vmul.f32 %v6858_v43, %v5832_v18 }
0x2b0f   :  { %v5834_v26 = vadd.f32 %v6858_v43, %v5833_v24 }
0x2b11   :  { %v5475_v49 = vpop.f32.mrf.mxu1  ;;  %v5838_v5 = vsel %vm5837_vm15, %v6858_v43, %v5834_v26 }
0x2b12   :  { %v9342_v17 = vadd.f32 %v9338_v20, %v5475_v49  ;;  %v5843_v56 = vsel %vm5840_vm0, %v5842_v50, %v5838_v5 }
0x2b13   :  { %v5844_v36 = vmul.f32 %v5843_v56, %v5819_v41 }
0x2b14   :  { %v5491_v47 = vmul.f32 0.70710677, %v9342_v17  ;;  %v5487_v49 = vmul.f32 0.5, %v9342_v17 }
0x2b15   :  { %v6388_v19 = vclamps-f32 %v5844_v36, 1.0 }
0x2b16   :  { %v5495_v45 = vmul.f32 %v5491_v47, %v5491_v47 }
0x2b17   :  { %v5887_v3 = vadd.f32 1.0, %v6388_v19 }
0x2b18   :  { %v5496_v7 = vmin.f32 %v5495_v45, 16.0 }
0x2b19   :  { %v5889_v32 = vmul.f32 %v5887_v3, %v5803_v2 }
0x2b1a   :  { %v5497_v53 = vmul.f32 2.1237322e-06, %v5496_v7  ;;  %v5508_v54 = vmul.f32 3.8918573e-05, %v5496_v7 }
0x2b1b   :  { %6398 = vmatmul.msk.f32.vlgmr.msra.gmra.mxu3 %vm3047_vm1, %v5889_v32 }
0x2b1c   :  { %v5498_v27 = vadd.f32 0.00028619796, %v5497_v53  ;;  %v5509_v51 = vadd.f32 0.001143296, %v5508_v54 }
0x2b1e   :  { %v5499_v57 = vmul.f32 %v5498_v27, %v5496_v7  ;;  %v5510_v38 = vmul.f32 %v5509_v51, %v5496_v7 }
0x2b20   :  { %v5511_v31 = vadd.f32 0.014752088, %v5510_v38  ;;  %v5500_v13 = vadd.f32 0.0036580483, %v5499_v57 }
0x2b22   :  { %v5512_v4 = vmul.f32 %v5511_v31, %v5496_v7  ;;  %v5501_v39 = vmul.f32 %v5500_v13, %v5496_v7 }
0x2b24   :  { %v5513_v9 = vadd.f32 0.112945676, %v5512_v4  ;;  %v5502_v35 = vadd.f32 0.05243302, %v5501_v39 }
0x2b26   :  { %v5514_v29 = vmul.f32 %v5513_v9, %v5496_v7  ;;  %v5503_v12 = vmul.f32 %v5502_v35, %v5496_v7 }
0x2b28   :  { %v5515_v6 = vadd.f32 0.4994258, %v5514_v29  ;;  %v5504_v62 = vadd.f32 0.18741608, %v5503_v12 }
0x2b2a   :  { %v5516_v16 = vmul.f32 %v5515_v6, %v5496_v7  ;;  %v5505_v63 = vmul.f32 %v5504_v62, %v5496_v7 }
0x2b2c   :  { %v5517_v11 = vadd.f32 1.0, %v5516_v16  ;;  %v5506_v43 = vadd.f32 1.1283791, %v5505_v63 }
0x2b2e   :  { %6859 = vrcp.f32 %v5517_v11  ;;  %v5529_v61 = vand.u32 2147483648, %v5517_v11  ;;  %v5527_v0 = vand.u32 2147483647, %v5517_v11  ;;  %vm5523_vm4 = vweird.f32 %v5517_v11 }
0x2b2f   :  { %v5507_v59 = vmul.f32 %v5506_v43, %v5491_v47 }
0x2b30   :  { %v5530_v33 = vor.u32 1.1754944e-38, %v5529_v61  ;;  %vm5528_vm5 = vcmp.eq.f32.partialorder %v5527_v0, 8.507059e+37 }
0x2b34   :  { %v6860_v22 = vpop.eup %6859 }
0x2b35   :  { %v5519_v37 = vmul.f32 %v6860_v22, %v5517_v11  ;;  %vm5524_vm2 = vweird.f32 %v6860_v22 }
0x2b36   :  { %vm5525_vm3 = vmor %vm5523_vm4, %vm5524_vm2 }
0x2b37   :  { %v5520_v58 = vsub.f32 1.0, %v5519_v37 }
0x2b39   :  { %v5521_v34 = vmul.f32 %v6860_v22, %v5520_v58 }
0x2b3b   :  { %v5522_v18 = vadd.f32 %v6860_v22, %v5521_v34 }
0x2b3d   :  { %v5526_v24 = vsel %vm5525_vm3, %v6860_v22, %v5522_v18 }
0x2b3e   :  { %v5531_v55 = vsel %vm5528_vm5, %v5530_v33, %v5526_v24 }
0x2b3f   :  { %v5532_v26 = vmul.f32 %v5531_v55, %v5507_v59 }
0x2b41   :  { %v6366_v50 = vclamps-f32 %v5532_v26, 1.0 }
0x2b43   :  { %v5655_v41 = vadd.f32 1.0, %v6366_v50 }
0x2b45   :  { %v5659_v5 = vmul.f32 %v5655_v41, %v5487_v49 }
0x2b47   :  { %6378 = vmatmul.msk.f32.vlgmr.msrb.gmra.mxu0 %vm3047_vm1, %v5659_v5 }
0x2b77   :  { %v5352_v56 = vpop.xlane.xlu0 %5351 }
0x2b78   :  { %v5356_v36 = vmul.f32 %v5352_v56, %v7330_v8 }
0x2b7a   :  { %v9375_v19 = vsub.f32 %v9326_v42, %v5356_v36 }
0x2b7c   :  { %v5478_v45 = vpop.f32.mrf.mxu1  ;;  %v5364_v2 = vmul.f32 %v9375_v19, %v9375_v19 }
0x2b7d   :  { %v9378_v47 = vadd.f32 %v9338_v20, %v5478_v45 }
0x2b7e   :  { %v5374_v17 = vsel %vm412_vm10, %v5364_v2, 0.0 }
0x2b7f   :  { %v9383_v3 = vmul.f32 0.70710677, %v9378_v47  ;;  %5375 = vadd.xlane.f32.xlu1 %v5374_v17 }
0x2b80   :  { %v5800_v7 = vpop.f32.mrf.mxu2 }
0x2b81   :  { %v5535_v48 = vmul.f32 %v9383_v3, %v9383_v3  ;;  %v9389_v42 = vadd.f32 %v9264_v21, %v5800_v7 }
0x2b83   :  { %v5536_v32 = vmin.f32 %v5535_v48, 16.0  ;;  %v9392_v53 = vmul.f32 0.70710677, %v9389_v42 }
0x2b84   :  { %v5481_v51 = vpop.f32.mrf.mxu1 }
0x2b85   :  { %v5537_v54 = vmul.f32 2.1237322e-06, %v5536_v32  ;;  %v5548_v15 = vmul.f32 3.8918573e-05, %v5536_v32  ;;  %v5847_v27 = vmul.f32 %v9392_v53, %v9392_v53  ;;  %v9397_v10 = vadd.f32 %v9338_v20, %v5481_v51 }
0x2b87   :  { %v5538_v57 = vadd.f32 0.00028619796, %v5537_v54  ;;  %v5549_v38 = vadd.f32 0.001143296, %v5548_v15  ;;  %v5848_v46 = vmin.f32 %v5847_v27, 16.0 }
0x2b88   :  { %v9400_v31 = vmul.f32 0.70710677, %v9397_v10 }
0x2b89   :  { %v5539_v21 = vmul.f32 %v5538_v57, %v5536_v32  ;;  %v5550_v23 = vmul.f32 %v5549_v38, %v5536_v32  ;;  %v5849_v13 = vmul.f32 2.1237322e-06, %v5848_v46  ;;  %v5860_v4 = vmul.f32 3.8918573e-05, %v5848_v46 }
0x2b8a   :  { %v5575_v1 = vmul.f32 %v9400_v31, %v9400_v31 }
0x2b8b   :  { %v5540_v9 = vadd.f32 0.0036580483, %v5539_v21  ;;  %v5551_v14 = vadd.f32 0.014752088, %v5550_v23  ;;  %v5850_v39 = vadd.f32 0.00028619796, %v5849_v13 }
0x2b8c   :  { %v5861_v28 = vadd.f32 0.001143296, %v5860_v4  ;;  %v9404_v29 = vmin.f32 %v5575_v1, 16.0 }
0x2b8d   :  { %v5552_v6 = vmul.f32 %v5551_v14, %v5536_v32  ;;  %v5851_v35 = vmul.f32 %v5850_v39, %v5848_v46  ;;  %v5541_v62 = vmul.f32 %v5540_v9, %v5536_v32 }
0x2b8e   :  { %v5862_v16 = vmul.f32 %v5861_v28, %v5848_v46  ;;  %v5577_v11 = vmul.f32 2.1237322e-06, %v9404_v29  ;;  %v5588_v12 = vmul.f32 3.8918573e-05, %v9404_v29 }
0x2b8f   :  { %v5553_v22 = vadd.f32 0.112945676, %v5552_v6  ;;  %v5852_v63 = vadd.f32 0.0036580483, %v5851_v35  ;;  %v5542_v33 = vadd.f32 0.05243302, %v5541_v62 }
0x2b90   :  { %v5863_v37 = vadd.f32 0.014752088, %v5862_v16  ;;  %v5578_v58 = vadd.f32 0.00028619796, %v5577_v11  ;;  %v5589_v61 = vadd.f32 0.001143296, %v5588_v12 }
0x2b91   :  { %v5554_v43 = vmul.f32 %v5553_v22, %v5536_v32  ;;  %v5853_v24 = vmul.f32 %v5852_v63, %v5848_v46  ;;  %v5543_v56 = vmul.f32 %v5542_v33, %v5536_v32 }
0x2b92   :  { %v5864_v34 = vmul.f32 %v5863_v37, %v5848_v46  ;;  %v5579_v0 = vmul.f32 %v5578_v58, %v9404_v29  ;;  %v5590_v18 = vmul.f32 %v5589_v61, %v9404_v29 }
0x2b93   :  { %v5555_v59 = vadd.f32 0.4994258, %v5554_v43  ;;  %v5854_v45 = vadd.f32 0.05243302, %v5853_v24  ;;  %v5544_v54 = vadd.f32 0.18741608, %v5543_v56 }
0x2b94   :  { %v5865_v55 = vadd.f32 0.112945676, %v5864_v34  ;;  %v5591_v26 = vadd.f32 0.014752088, %v5590_v18  ;;  %v5580_v49 = vadd.f32 0.0036580483, %v5579_v0 }
0x2b95   :  { %v5556_v50 = vmul.f32 %v5555_v59, %v5536_v32  ;;  %v5855_v15 = vmul.f32 %v5854_v45, %v5848_v46  ;;  %v5545_v23 = vmul.f32 %v5544_v54, %v5536_v32 }
0x2b96   :  { %v5866_v41 = vmul.f32 %v5865_v55, %v5848_v46  ;;  %v5592_v5 = vmul.f32 %v5591_v26, %v9404_v29  ;;  %v5581_v7 = vmul.f32 %v5580_v49, %v9404_v29  ;;  %v5488_v26 = vmul.f32 0.5, %v9378_v47 }
0x2b97   :  { %v5557_v36 = vadd.f32 1.0, %v5556_v50  ;;  %v5856_v13 = vadd.f32 0.18741608, %v5855_v15  ;;  %v5546_v28 = vadd.f32 1.1283791, %v5545_v23 }
0x2b98   :  { %v5867_v2 = vadd.f32 0.4994258, %v5866_v41  ;;  %v5593_v17 = vadd.f32 0.112945676, %v5592_v5  ;;  %v5582_v57 = vadd.f32 0.05243302, %v5581_v7 }
0x2b99   :  { %6861 = vrcp.f32 %v5557_v36  ;;  %v5569_v6 = vand.u32 2147483648, %v5557_v36  ;;  %v5857_v35 = vmul.f32 %v5856_v13, %v5848_v46  ;;  %v5567_v12 = vand.u32 2147483647, %v5557_v36 }
0x2b9a   :  { %v5868_v48 = vmul.f32 %v5867_v2, %v5848_v46  ;;  %v5594_v27 = vmul.f32 %v5593_v17, %v9404_v29  ;;  %v5583_v9 = vmul.f32 %v5582_v57, %v9404_v29  ;;  %vm5563_vm6 = vweird.f32 %v5557_v36 }
0x2b9b   :  { %v5547_v32 = vmul.f32 %v5546_v28, %v9383_v3  ;;  %v5570_v37 = vor.u32 1.1754944e-38, %v5569_v6  ;;  %v5858_v58 = vadd.f32 1.1283791, %v5857_v35  ;;  %vm5568_vm8 = vcmp.eq.f32.partialorder %v5567_v12, 8.507059e+37 }
0x2b9c   :  { %v5869_v51 = vadd.f32 1.0, %v5868_v48  ;;  %v5595_v38 = vadd.f32 0.4994258, %v5594_v27  ;;  %v5584_v22 = vadd.f32 0.18741608, %v5583_v9  ;;  %v5804_v57 = vmul.f32 0.5, %v9389_v42 }
0x2b9d   :  { %v5859_v3 = vmul.f32 %v5858_v58, %v9392_v53 }
0x2b9e   :  { %6863 = vrcp.f32 %v5869_v51  ;;  %v5596_v4 = vmul.f32 %v5595_v38, %v9404_v29  ;;  %v5879_v34 = vand.u32 2147483647, %v5869_v51  ;;  %v5881_v0 = vand.u32 2147483648, %v5869_v51  ;;  %v5925_v58 = vpop.f32.mrf.mxu3 }
0x2b9f   :  { %v6862_v21 = vpop.eup %6861  ;;  %v5585_v59 = vmul.f32 %v5584_v22, %v9404_v29  ;;  %vm5875_vm9 = vweird.f32 %v5869_v51 }
0x2ba0   :  { %v5559_v1 = vmul.f32 %v6862_v21, %v5557_v36  ;;  %v5597_v14 = vadd.f32 1.0, %v5596_v4  ;;  %vm5564_vm11 = vweird.f32 %v6862_v21  ;;  %vm5880_vm14 = vcmp.eq.f32.partialorder %v5879_v34, 8.507059e+37 }
0x2ba1   :  { %vm5565_vm7 = vmor %vm5563_vm6, %vm5564_vm11  ;;  %v5882_v41 = vor.u32 1.1754944e-38, %v5881_v0  ;;  %v5586_v36 = vadd.f32 1.1283791, %v5585_v59  ;;  %vm5936_vm6 = vcmask 1040384  }
0x2ba2   :  { %v5560_v39 = vsub.f32 1.0, %v5559_v1  ;;  %6865 = vrcp.f32 %v5597_v14  ;;  %v5607_v45 = vand.u32 2147483647, %v5597_v14  ;;  %v5609_v2 = vand.u32 2147483648, %v5597_v14 }
0x2ba3   :  { %vm5603_vm0 = vweird.f32 %v5597_v14  ;;  %v5587_v27 = vmul.f32 %v5586_v36, %v9400_v31  ;;  %v5489_v1 = vmul.f32 0.5, %v9397_v10 }
0x2ba4   :  { %v6864_v16 = vpop.eup %6863  ;;  %v5561_v11 = vmul.f32 %v6862_v21, %v5560_v39  ;;  %v5610_v15 = vor.u32 1.1754944e-38, %v5609_v2  ;;  %vm5608_vm4 = vcmp.eq.f32.partialorder %v5607_v45, 8.507059e+37 }
0x2ba5   :  { %v5871_v62 = vmul.f32 %v6864_v16, %v5869_v51  ;;  %vm5876_vm12 = vweird.f32 %v6864_v16 }
0x2ba6   :  { %v5562_v63 = vadd.f32 %v6862_v21, %v5561_v11  ;;  %vm5877_vm13 = vmor %vm5875_vm9, %vm5876_vm12 }
0x2ba7   :  { %v5872_v61 = vsub.f32 1.0, %v5871_v62 }
0x2ba8   :  { %v5566_v43 = vsel %vm5565_vm7, %v6862_v21, %v5562_v63  ;;  %v6866_v46 = vpop.eup %6865  ;;  %vm5944_vm7 = vcmask 254976  }
0x2ba9   :  { %v5571_v18 = vsel %vm5568_vm8, %v5570_v37, %v5566_v43  ;;  %v5873_v33 = vmul.f32 %v6864_v16, %v5872_v61  ;;  %v5599_v55 = vmul.f32 %v6866_v46, %v5597_v14  ;;  %vm5604_vm15 = vweird.f32 %v6866_v46  ;;  %v6547_v61 = vld [vmem:[%s9507_s8 + $0x26] ss:$0 sm:$0xff]  ;;  %v6546_v43 = vld [vmem:[%s9507_s8 + $0x29] ss:$0 sm:$0xff] }
0x2baa   :  { %v5572_v24 = vmul.f32 %v5571_v18, %v5547_v32  ;;  %vm5605_vm2 = vmor %vm5603_vm0, %vm5604_vm15 }
0x2bab   :  { %v5874_v50 = vadd.f32 %v6864_v16, %v5873_v33  ;;  %v5600_v5 = vsub.f32 1.0, %v5599_v55 }
0x2bac   :  { %v6367_v49 = vclamps-f32 %v5572_v24, 1.0 }
0x2bad   :  { %v5878_v56 = vsel %vm5877_vm13, %v6864_v16, %v5874_v50  ;;  %v5601_v29 = vmul.f32 %v6866_v46, %v5600_v5 }
0x2bae   :  { %v5656_v17 = vadd.f32 1.0, %v6367_v49  ;;  %v5883_v7 = vsel %vm5880_vm14, %v5882_v41, %v5878_v56 }
0x2baf   :  { %v5884_v48 = vmul.f32 %v5883_v7, %v5859_v3  ;;  %v5602_v47 = vadd.f32 %v6866_v46, %v5601_v29 }
0x2bb0   :  { %v5660_v54 = vmul.f32 %v5656_v17, %v5488_v26 }
0x2bb1   :  { %v6389_v53 = vclamps-f32 %v5884_v48, 1.0  ;;  %v5606_v51 = vsel %vm5605_vm2, %v6866_v46, %v5602_v47 }
0x2bb2   :  { %6379 = vmatmul.msk.f32.gmra.mxu0 %vm3047_vm1, %v5660_v54  ;;  %v5611_v21 = vsel %vm5608_vm4, %v5610_v15, %v5606_v51 }
0x2bb3   :  { %v5888_v38 = vadd.f32 1.0, %v6389_v53  ;;  %v5612_v23 = vmul.f32 %v5611_v21, %v5587_v27 }
0x2bb5   :  { %v5890_v13 = vmul.f32 %v5888_v38, %v5804_v57  ;;  %v6368_v4 = vclamps-f32 %v5612_v23, 1.0 }
0x2bb7   :  { %6399 = vmatmul.msk.f32.gmra.mxu3 %vm3047_vm1, %v5890_v13  ;;  %v5657_v9 = vadd.f32 1.0, %v6368_v4 }
0x2bb9   :  { %v5661_v14 = vmul.f32 %v5657_v9, %v5489_v1 }
0x2bbb   :  { %6380 = vmatmul.msk.f32.gmra.mxu0 %vm3047_vm1, %v5661_v14 }
0x2bc4   :  { %v5703_v32 = vpop.f32.mrf.mxu0 }
0x2bc5   :  { %v5704_v0 = vadd.f32 %v6547_v61, %v5703_v32 }
0x2bc7   :  { %v5713_v59 = vadd.f32 %v5704_v0, %v9135_v30 }
0x2bf2   :  { %v5376_v31 = vpop.xlane.xlu1 %5375 }
0x2bf3   :  { %v5380_v39 = vmul.f32 %v5376_v31, %v7330_v8 }
0x2bf5   :  { %v5384_v28 = vadd.f32 1e-05, %v5380_v39 }
0x2bf7   :  { %6867 = vrsqrt.f32 %v5384_v28  ;;  %vm5421_vm5 = vweird.f32 %v5384_v28 }
0x2bfd   :  { %v6868_v6 = vpop.eup %6867 }
0x2bfe   :  { %v5416_v42 = vmul.f32 %v6868_v6, %v5384_v28  ;;  %vm5422_vm3 = vweird.f32 %v6868_v6 }
0x2bff   :  { %vm5423_vm11 = vmor %vm5421_vm5, %vm5422_vm3  ;;  %vm6059_vm3 = vcmask 33792  }
0x2c00   :  { %v5417_v35 = vmul.f32 %v6868_v6, %v5416_v42 }
0x2c02   :  { %v5418_v16 = vmul.f32 0.5, %v5417_v35 }
0x2c04   :  { %v5419_v11 = vsub.f32 1.5, %v5418_v16 }
0x2c06   :  { %v5420_v12 = vmul.f32 %v6868_v6, %v5419_v11 }
0x2c08   :  { %v5424_v62 = vsel %vm5423_vm11, %v6868_v6, %v5420_v12 }
0x2c09   :  { %v5428_v10 = vmul.f32 %v5424_v62, %v9375_v19 }
0x2c0b   :  { %v5433_v22 = vmul.f32 %v9249_v52, %v5428_v10  ;;  %v5926_v52 = vadd.f32 %v6546_v43, %v5925_v58 }
0x2c0d   :  { %v5438_v63 = vadd.f32 %v9254_v25, %v5433_v22  ;;  %v5931_v55 = vadd.f32 %v5926_v52, %v9146_v40  ;;  %v6403_v52 = vld [vmem:[%s9513_s14 + $0x38] sm:$0xff] }
0x2c0e   :  { %6023 = vmatpush.msrb.mxu2 %v6403_v52 }
0x2c0f   :  { %6365 = vmatmul.msk.f32.gmra.mxu1 %vm412_vm10, %v5438_v63 }
0x2c2f   :  { %v5706_v37 = vpop.f32.mrf.mxu0 }
0x2c38   :  { %v5708_v34 = vpop.f32.mrf.mxu0 }
0x2c39   :  { %v5709_v19 = vadd.f32 %v6547_v61, %v5708_v34 }
0x2c3a   :  { %v5928_v46 = vpop.f32.mrf.mxu3 }
0x2c3b   :  { %v5929_v18 = vadd.f32 %v6546_v43, %v5928_v46  ;;  %v5714_v25 = vadd.f32 %v5709_v19, %v9172_v44 }
0x2c3d   :  { %v5932_v33 = vadd.f32 %v5929_v18, %v9162_v60  ;;  %v5934_v24 = vrot.slane %v5714_v25, 7  ;;  %v6402_v18 = vld [vmem:[%s9513_s14 + $0x30] sm:$0xff]  ;;  %v6401_v25 = vld [vmem:[%s9513_s14 + $0x28] sm:$0xff] }
0x2c3e   :  { %6024 = vmatpush.msrb.mxu2 %v6402_v18 }
0x2c3f   :  { %v5939_v26 = vrot.slane %v5932_v33, 7  ;;  %v5937_v3 = vsel %vm5936_vm6, %v5713_v59, %v5934_v24  ;;  %v6400_v33 = vld [vmem:[%s9513_s14 + $0x20] sm:$0xff]  ;;  %v5974_v59 = vld [vmem:[%s9513_s14 + $0x18] sm:$0xff]  ;;  %v5973_v24 = vld [vmem:[%s9513_s14 + $0x10] sm:$0xff] }
0x2c40   :  { %v5945_v50 = vsel %vm5944_vm7, %v5937_v3, 0.0  ;;  %6025 = vmatpush.msrb.mxu2 %v6401_v25 }
0x2c41   :  { %v5941_v49 = vsel %vm5936_vm6, %v5931_v55, %v5939_v26  ;;  %5946 = vadd.xlane.f32.xlu1 %v5945_v50  ;;  %v5972_v50 = vld [vmem:[%s9513_s14 + $0x8] sm:$0xff] }
0x2c42   :  { %v5977_v41 = vsel %vm5944_vm7, %v5941_v49, 0.0  ;;  %6026 = vmatpush.msrb.mxu2 %v6400_v33 }
0x2c43   :  { %5978 = vadd.xlane.f32.xlu0 %v5977_v41 }
0x2c44   :  { %6046 = vmatpush.msra.mxu2 %v5974_v59 }
0x2c46   :  { %6047 = vmatpush.msra.mxu2 %v5973_v24 }
0x2c48   :  { %6048 = vmatpush.msra.mxu2 %v5972_v50 }
0x2c8c   :  { %v5484_v5 = vpop.f32.mrf.mxu1 }
0x2c8d   :  { %v5485_v44 = vadd.f32 %v9338_v20, %v5484_v5  ;;  %v5971_v5 = vld [vmem:[%s9513_s14] sm:$0xff] }
0x2c8e   :  { %6049 = vmatpush.msra.mxu2 %v5971_v5 }
0x2c8f   :  { %v5494_v60 = vmul.f32 0.70710677, %v5485_v44  ;;  %v5490_v0 = vmul.f32 0.5, %v5485_v44 }
0x2c91   :  { %v5615_v56 = vmul.f32 %v5494_v60, %v5494_v60 }
0x2c93   :  { %v5616_v36 = vmin.f32 %v5615_v56, 16.0 }
0x2c95   :  { %v5617_v30 = vmul.f32 2.1237322e-06, %v5616_v36  ;;  %v5628_v45 = vmul.f32 3.8918573e-05, %v5616_v36 }
0x2c97   :  { %v5618_v2 = vadd.f32 0.00028619796, %v5617_v30  ;;  %v5629_v17 = vadd.f32 0.001143296, %v5628_v45 }
0x2c99   :  { %v5619_v40 = vmul.f32 %v5618_v2, %v5616_v36  ;;  %v5630_v7 = vmul.f32 %v5629_v17, %v5616_v36 }
0x2c9b   :  { %v5631_v29 = vadd.f32 0.014752088, %v5630_v7  ;;  %v5620_v48 = vadd.f32 0.0036580483, %v5619_v40 }
0x2c9d   :  { %v5632_v54 = vmul.f32 %v5631_v29, %v5616_v36  ;;  %v5621_v53 = vmul.f32 %v5620_v48, %v5616_v36 }
0x2c9f   :  { %v5633_v47 = vadd.f32 0.112945676, %v5632_v54  ;;  %v5622_v51 = vadd.f32 0.05243302, %v5621_v53 }
0x2ca1   :  { %v5634_v15 = vmul.f32 %v5633_v47, %v5616_v36  ;;  %v5623_v20 = vmul.f32 %v5622_v51, %v5616_v36  ;;  %v6550_v47 = vld [vmem:[%s9507_s8 + $0x2c] ss:$0 sm:$0xff] }
0x2ca3   :  { %v5635_v27 = vadd.f32 0.4994258, %v5634_v15  ;;  %v5624_v21 = vadd.f32 0.18741608, %v5623_v20  ;;  %v6551_v15 = vld [vmem:[%s9507_s8 + $0x2d] ss:$0 sm:$0xff] }
0x2ca5   :  { %v5636_v57 = vmul.f32 %v5635_v27, %v5616_v36  ;;  %v5625_v13 = vmul.f32 %v5624_v21, %v5616_v36 }
0x2ca7   :  { %v5637_v38 = vadd.f32 1.0, %v5636_v57  ;;  %v5626_v14 = vadd.f32 1.1283791, %v5625_v13 }
0x2ca9   :  { %6869 = vrcp.f32 %v5637_v38  ;;  %v5649_v9 = vand.u32 2147483648, %v5637_v38  ;;  %v5647_v39 = vand.u32 2147483647, %v5637_v38  ;;  %vm5643_vm12 = vweird.f32 %v5637_v38 }
0x2caa   :  { %v5627_v62 = vmul.f32 %v5626_v14, %v5494_v60 }
0x2cab   :  { %v5650_v11 = vor.u32 1.1754944e-38, %v5649_v9  ;;  %vm5648_vm13 = vcmp.eq.f32.partialorder %v5647_v39, 8.507059e+37  ;;  %v6552_v9 = vld [vmem:[%s9514_s15] ss:$0 sm:$0xff] }
0x2caf   :  { %v6870_v23 = vpop.eup %6869 }
0x2cb0   :  { %v5639_v4 = vmul.f32 %v6870_v23, %v5637_v38  ;;  %vm5644_vm8 = vweird.f32 %v6870_v23  ;;  %v6548_v38 = vld [vmem:[%s9507_s8 + $0x2a] ss:$0 sm:$0xff] }
0x2cb1   :  { %vm5645_vm9 = vmor %vm5643_vm12, %vm5644_vm8 }
0x2cb2   :  { %v5640_v1 = vsub.f32 1.0, %v5639_v4 }
0x2cb4   :  { %v5641_v31 = vmul.f32 %v6870_v23, %v5640_v1  ;;  %v5947_v28 = vpop.xlane.xlu1 %5946 }
0x2cb5   :  { %v5948_v6 = vmul.f32 %v5947_v28, %v7330_v8 }
0x2cb6   :  { %v5979_v42 = vpop.xlane.xlu0 %5978  ;;  %v5642_v35 = vadd.f32 %v6870_v23, %v5641_v31 }
0x2cb7   :  { %v5980_v16 = vmul.f32 %v5979_v42, %v7330_v8  ;;  %v9445_v12 = vsub.f32 %v5937_v3, %v5948_v6 }
0x2cb8   :  { %v5646_v10 = vsel %vm5645_vm9, %v6870_v23, %v5642_v35  ;;  %v6549_v23 = vld [vmem:[%s9507_s8 + $0x2b] ss:$0 sm:$0xff] }
0x2cb9   :  { %v5981_v22 = vsub.f32 %v5941_v49, %v5980_v16  ;;  %v5651_v63 = vsel %vm5648_vm13, %v5650_v11, %v5646_v10  ;;  %v5950_v32 = vmul.f32 %v9445_v12, %v9445_v12 }
0x2cba   :  { %v5652_v37 = vmul.f32 %v5651_v63, %v5627_v62 }
0x2cbb   :  { %v5982_v58 = vmul.f32 %v5981_v22, %v5981_v22  ;;  %v5951_v61 = vsel %vm5944_vm7, %v5950_v32, 0.0 }
0x2cbc   :  { %v6369_v43 = vclamps-f32 %v5652_v37, 1.0  ;;  %5952 = vadd.xlane.f32.xlu1 %v5951_v61 }
0x2cbd   :  { %v5983_v34 = vsel %vm5944_vm7, %v5982_v58, 0.0 }
0x2cbe   :  { %5984 = vadd.xlane.f32.xlu0 %v5983_v34  ;;  %v5658_v19 = vadd.f32 1.0, %v6369_v43 }
0x2cc0   :  { %v5662_v46 = vmul.f32 %v5658_v19, %v5490_v0 }
0x2cc2   :  { %6381 = vmatmul.msk.f32.gmra.mxu0 %vm3047_vm1, %v5662_v46 }
0x2d2f   :  { %v5953_v55 = vpop.xlane.xlu1 %5952 }
0x2d30   :  { %v5954_v26 = vmul.f32 %v5953_v55, %v7330_v8 }
0x2d31   :  { %v5985_v3 = vpop.xlane.xlu0 %5984 }
0x2d32   :  { %v5986_v49 = vmul.f32 %v5985_v3, %v7330_v8  ;;  %v5955_v41 = vadd.f32 1e-05, %v5954_v26 }
0x2d34   :  { %v5987_v44 = vadd.f32 1e-05, %v5986_v49  ;;  %6871 = vrsqrt.f32 %v5955_v41  ;;  %vm5962_vm2 = vweird.f32 %v5955_v41 }
0x2d36   :  { %6873 = vrsqrt.f32 %v5987_v44  ;;  %vm5994_vm15 = vweird.f32 %v5987_v44 }
0x2d3a   :  { %v6872_v60 = vpop.eup %6871 }
0x2d3b   :  { %v5957_v36 = vmul.f32 %v6872_v60, %v5955_v41  ;;  %vm5963_vm14 = vweird.f32 %v6872_v60 }
0x2d3c   :  { %v6874_v56 = vpop.eup %6873  ;;  %vm5964_vm4 = vmor %vm5962_vm2, %vm5963_vm14 }
0x2d3d   :  { %v5989_v30 = vmul.f32 %v6874_v56, %v5987_v44  ;;  %v5958_v45 = vmul.f32 %v6872_v60, %v5957_v36  ;;  %vm5995_vm1 = vweird.f32 %v6874_v56 }
0x2d3e   :  { %vm5996_vm0 = vmor %vm5994_vm15, %vm5995_vm1 }
0x2d3f   :  { %v5990_v2 = vmul.f32 %v6874_v56, %v5989_v30  ;;  %v5959_v17 = vmul.f32 0.5, %v5958_v45  ;;  %v5711_v40 = vpop.f32.mrf.mxu0 }
0x2d41   :  { %v5991_v8 = vmul.f32 0.5, %v5990_v2  ;;  %v5960_v7 = vsub.f32 1.5, %v5959_v17 }
0x2d43   :  { %v5992_v29 = vsub.f32 1.5, %v5991_v8  ;;  %v5961_v48 = vmul.f32 %v6872_v60, %v5960_v7 }
0x2d45   :  { %v5993_v54 = vmul.f32 %v6874_v56, %v5992_v29  ;;  %v5965_v51 = vsel %vm5964_vm4, %v6872_v60, %v5961_v48 }
0x2d46   :  { %v5966_v20 = vmul.f32 %v5965_v51, %v9445_v12 }
0x2d47   :  { %v5997_v53 = vsel %vm5996_vm0, %v6874_v56, %v5993_v54 }
0x2d48   :  { %v5998_v27 = vmul.f32 %v5997_v53, %v5981_v22  ;;  %v5968_v13 = vmul.f32 %v6548_v38, %v5966_v20 }
0x2d4a   :  { %v6000_v57 = vmul.f32 %v6550_v47, %v5998_v27  ;;  %v5970_v4 = vadd.f32 %v6549_v23, %v5968_v13 }
0x2d4c   :  { %v6002_v21 = vadd.f32 %v6551_v15, %v6000_v57 }
0x2d4e   :  { %6404 = vmatmul.msk.f32.vlgmr.msrb.gmra.mxu2 %vm412_vm10, %v6002_v21 }
0x2d56   :  { %6405 = vmatmul.msk.f32.vlgmr.msra.gmra.mxu2 %vm412_vm10, %v5970_v4 }
0x2dd1   :  { %v6028_v1 = vpop.f32.mrf.mxu2 }
0x2dd9   :  { %v6051_v14 = vpop.f32.mrf.mxu2 }
0x2dda   :  { %v6052_v31 = vadd.f32 %v6051_v14, %v6028_v1 }
0x2ddc   :  { %v6058_v39 = vadd.f32 %v6552_v9, %v6052_v31 }
0x2dde   :  { %6060 = vst.msk [vmem:[#allocation2] sm:$0x3] %vm6059_vm3, %v6058_v39 }
0x2ddf   :  { %6071 = dma.vmem_to_hbm [thread:$0]  %s6067_s25, 32, %s6069_s27, [#allocation3]  }
0x2de0   :  { %6899 = dma.done.wait [#allocation3], 32  }
0x2de1   :  { %6900 = vsyncadd [#allocation3], 4294967264 }
0x2de2   :  { %6076 = vsyncpa [#allocation3], 1 }

</bundles_post_ra>
